<compile_context>
chip_gen: v6e
topology: v6e:2x2x1
jax: 0.10.0
libtpu: 0.0.40
codegen_flags: <defaults>
</compile_context>

<pallas_src>
import functools

import jax
import jax.numpy as jnp
from jax.experimental import pallas as pl
from jax.experimental.pallas import tpu as pltpu


def _round_up(x, m):
    return ((x + m - 1) // m) * m


# --------------------------------------------------------------------------- matmul kernels
def _mm_kernel_acc(a_ref, b_ref, o_ref, acc_ref):
    @pl.when(pl.program_id(2) == 0)
    def _():
        acc_ref[...] = jnp.zeros_like(acc_ref)

    acc_ref[...] += jnp.dot(a_ref[...], b_ref[...], preferred_element_type=jnp.float32)

    @pl.when(pl.program_id(2) == pl.num_programs(2) - 1)
    def _():
        o_ref[...] = acc_ref[...].astype(o_ref.dtype)


def _mm_bias_kernel_acc(a_ref, b_ref, bias_ref, o_ref, acc_ref):
    @pl.when(pl.program_id(2) == 0)
    def _():
        acc_ref[...] = jnp.zeros_like(acc_ref)

    acc_ref[...] += jnp.dot(a_ref[...], b_ref[...], preferred_element_type=jnp.float32)

    @pl.when(pl.program_id(2) == pl.num_programs(2) - 1)
    def _():
        o_ref[...] = (acc_ref[...] + bias_ref[...].astype(jnp.float32)).astype(o_ref.dtype)


def _mm_kernel_k1(a_ref, b_ref, o_ref):
    o_ref[...] = jnp.dot(a_ref[...], b_ref[...],
                         preferred_element_type=jnp.float32).astype(o_ref.dtype)


def _mm_bias_kernel_k1(a_ref, b_ref, bias_ref, o_ref):
    acc = jnp.dot(a_ref[...], b_ref[...], preferred_element_type=jnp.float32)
    o_ref[...] = (acc + bias_ref[...].astype(jnp.float32)).astype(o_ref.dtype)


def matmul_pallas(a, b, bias=None, out_dtype=jnp.bfloat16,
                  tm_max=256, tn_max=512, tk_max=1024):
    """out = a @ b (+ bias). bf16 MXU operands, f32 accumulation.

    N is padded to a multiple of 128 (unmasked lane-dense stores); M to a multiple of 16.
    If K fits a single tile (< tk_max) it is padded only to a multiple of 16 and handled by
    a no-accumulator fast-path kernel (this covers every matmul in this model); otherwise a
    3-D grid with a resident f32 VMEM accumulator and "arbitrary" reduction axis is used.
    Tiles are small (<1 MiB each, double-buffered) -> ample VMEM headroom on v5e/v6e/v7x.
    """
    M, K = a.shape
    K2, N = b.shape
    assert K == K2
    tm = tm_max if M >= tm_max else _round_up(M, 16)
    tn = tn_max if N >= tn_max else _round_up(N, 128)
    tk = tk_max if K >= tk_max else _round_up(K, 16)
    Mp, Np, Kp = _round_up(M, tm), _round_up(N, tn), _round_up(K, tk)

    a_p = jnp.pad(a.astype(jnp.bfloat16), ((0, Mp - M), (0, Kp - K)))
    b_p = jnp.pad(b.astype(jnp.bfloat16), ((0, Kp - K), (0, Np - N)))

    nk = Kp // tk
    if nk == 1:
        grid = (Mp // tm, Np // tn)
        in_specs = [
            pl.BlockSpec((tm, tk), lambda i, j: (i, 0)),
            pl.BlockSpec((tk, tn), lambda i, j: (0, j)),
        ]
        out_spec = pl.BlockSpec((tm, tn), lambda i, j: (i, j))
        bias_spec = pl.BlockSpec((1, tn), lambda i, j: (0, j))
        scratch = []
        dims = ("parallel", "parallel")
        kernel = _mm_kernel_k1 if bias is None else _mm_bias_kernel_k1
    else:
        grid = (Mp // tm, Np // tn, nk)
        in_specs = [
            pl.BlockSpec((tm, tk), lambda i, j, k: (i, k)),
            pl.BlockSpec((tk, tn), lambda i, j, k: (k, j)),
        ]
        out_spec = pl.BlockSpec((tm, tn), lambda i, j, k: (i, j))
        bias_spec = pl.BlockSpec((1, tn), lambda i, j, k: (0, j))
        scratch = [pltpu.VMEM((tm, tn), jnp.float32)]
        dims = ("parallel", "parallel", "arbitrary")
        kernel = _mm_kernel_acc if bias is None else _mm_bias_kernel_acc

    args = [a_p, b_p]
    if bias is not None:
        bias_p = jnp.pad(bias.reshape(1, N).astype(jnp.float32), ((0, 0), (0, Np - N)))
        in_specs.append(bias_spec)
        args.append(bias_p)

    out = pl.pallas_call(
        kernel,
        out_shape=jax.ShapeDtypeStruct((Mp, Np), out_dtype),
        grid=grid,
        in_specs=in_specs,
        out_specs=out_spec,
        scratch_shapes=scratch,
        compiler_params=pltpu.CompilerParams(
            dimension_semantics=dims,
            vmem_limit_bytes=32 * 1024 * 1024,
        ),
    )(*args)
    return out[:M, :N]


# --------------------------------------------------------------------------- conv via im2col + matmul
def conv2d(x, w_hwio, stride=1):
    """x: (N,H,W,Cin) NHWC; w_hwio: (kh,kw,Cin,Cout); pad=(k-1)//2, no bias. bf16 I/O."""
    kh, kw, cin, cout = w_hwio.shape
    pad = (kh - 1) // 2
    n, h, w, _ = x.shape
    x = x.astype(jnp.bfloat16)
    xp = jnp.pad(x, ((0, 0), (pad, pad), (pad, pad), (0, 0)))
    ho = (h + 2 * pad - kh) // stride + 1
    wo = (w + 2 * pad - kw) // stride + 1
    # TODO(synk): fold the kh*kw taps into the matmul K grid axis (index_map offsets into the
    # padded NHWC input) to avoid materializing the im2col patches in HBM for large feature maps;
    # at these sizes the bf16 patches are tiny and the Pallas matmul dominates.
    cols = []
    for dy in range(kh):
        for dx in range(kw):
            cols.append(xp[:, dy:dy + stride * (ho - 1) + 1:stride,
                              dx:dx + stride * (wo - 1) + 1:stride, :])
    patches = jnp.stack(cols, axis=3).reshape(n * ho * wo, kh * kw * cin)
    wmat = w_hwio.reshape(kh * kw * cin, cout).astype(jnp.bfloat16)
    y = matmul_pallas(patches, wmat, bias=None, out_dtype=jnp.bfloat16)
    return y.reshape(n, ho, wo, cout)


# --------------------------------------------------------------------------- fused GroupNorm (+residual)(+act)
def _make_gn_kernel(act, add_residual, eps, inv_count):
    def kernel(x_ref, mask_ref, maskT_ref, gamma_ref, beta_ref, *rest):
        if add_residual:
            res_ref, o_ref = rest
        else:
            (o_ref,) = rest
        x = x_ref[0].astype(jnp.float32)                         # (HW, C)
        # per-channel sums -> per-group mean via {0,1} channel->group mask matmuls (MXU)
        sum_c = jnp.sum(x, axis=0, keepdims=True)                # (1, C)
        mean_g = jnp.dot(sum_c, mask_ref[...], preferred_element_type=jnp.float32) * inv_count
        mean_c = jnp.dot(mean_g, maskT_ref[...], preferred_element_type=jnp.float32)  # (1, C)
        # centered variance (stable vs E[x^2]-E[x]^2 cancellation)
        d = x - mean_c
        sq_c = jnp.sum(d * d, axis=0, keepdims=True)             # (1, C)
        var_g = jnp.dot(sq_c, mask_ref[...], preferred_element_type=jnp.float32) * inv_count
        rstd_c = jnp.dot(jax.lax.rsqrt(var_g + eps), maskT_ref[...],
                         preferred_element_type=jnp.float32)     # (1, C)
        y = d * rstd_c * gamma_ref[...] + beta_ref[...]
        if add_residual:
            y = y + res_ref[0].astype(jnp.float32)
        if act == "relu":
            y = jnp.maximum(y, 0.0)
        elif act == "silu":
            y = y * jax.nn.sigmoid(y)
        o_ref[0] = y.astype(o_ref.dtype)

    return kernel


def group_norm(x_nhwc, num_groups, gamma, beta, act=None, residual=None, eps=1e-5):
    n, h, w, c = x_nhwc.shape
    hw = h * w
    cg = c // num_groups
    x2 = x_nhwc.reshape(n, hw, c).astype(jnp.bfloat16)
    mask = (jnp.arange(c)[:, None] // cg == jnp.arange(num_groups)[None, :]).astype(jnp.float32)
    maskT = mask.T
    inv_count = 1.0 / float(hw * cg)
    kernel = _make_gn_kernel(act, residual is not None, eps, inv_count)

    # TODO(synk): if hw*c grows past a few MiB per batch element, switch to a two-pass /
    # HW-chunked stats scheme; at these sizes one (1, hw, c) bf16 block per step is tiny.
    in_specs = [
        pl.BlockSpec((1, hw, c), lambda i: (i, 0, 0)),
        pl.BlockSpec((c, num_groups), lambda i: (0, 0)),
        pl.BlockSpec((num_groups, c), lambda i: (0, 0)),
        pl.BlockSpec((1, c), lambda i: (0, 0)),
        pl.BlockSpec((1, c), lambda i: (0, 0)),
    ]
    args = [x2, mask, maskT,
            gamma.reshape(1, c).astype(jnp.float32),
            beta.reshape(1, c).astype(jnp.float32)]
    if residual is not None:
        in_specs.append(pl.BlockSpec((1, hw, c), lambda i: (i, 0, 0)))
        args.append(residual.reshape(n, hw, c).astype(jnp.bfloat16))

    out = pl.pallas_call(
        kernel,
        out_shape=jax.ShapeDtypeStruct((n, hw, c), jnp.bfloat16),
        grid=(n,),
        in_specs=in_specs,
        out_specs=pl.BlockSpec((1, hw, c), lambda i: (i, 0, 0)),
        compiler_params=pltpu.CompilerParams(dimension_semantics=("parallel",)),
    )(*args)
    return out.reshape(n, h, w, c)


# --------------------------------------------------------------------------- parameters
def make_resnet_params(key, config, in_channels, hidden_size, num_classes, resize):
    """Returns (params, block_strides). params contains only arrays (jit-friendly pytree);
    block strides / shortcut structure are static Python values."""
    keys = iter(jax.random.split(key, 64))

    def conv_w(cin, cout, k):
        scale = 1.0 / (k * k * cin) ** 0.5
        return jax.random.normal(next(keys), (k, k, cin, cout), jnp.float32) * scale

    def gn_p(c):
        return jnp.ones((c,), jnp.float32), jnp.zeros((c,), jnp.float32)

    params = {
        "stem_conv": conv_w(in_channels, hidden_size, 3),
        "stem_gn": gn_p(hidden_size),
        "blocks": [],
        "final_gn": gn_p(hidden_size * 8),
    }
    block_strides = []
    h = hidden_size
    stage_planes = [hidden_size, hidden_size * 2, hidden_size * 4, hidden_size * 8]
    stage_strides = [1, 2, 2, 2]
    for planes, nblocks, s in zip(stage_planes, config, stage_strides):
        strides = [s] + [1] * (nblocks - 1)
        for st in strides:
            blk = {
                "conv1": conv_w(h, planes, 3),
                "gn1": gn_p(planes),
                "conv2": conv_w(planes, planes, 3),
                "gn2": gn_p(planes),
            }
            if st != 1 or h != planes:
                blk["sc_conv"] = conv_w(h, planes, 1)
                blk["sc_gn"] = gn_p(planes)
            params["blocks"].append(blk)
            block_strides.append(st)
            h = planes

    feat = (resize // 8) ** 2 * (hidden_size * 8)
    params["fc_w"] = jax.random.normal(next(keys), (feat, num_classes), jnp.float32) * (1.0 / feat ** 0.5)
    params["fc_b"] = jnp.zeros((num_classes,), jnp.float32)
    return params, tuple(block_strides)


# --------------------------------------------------------------------------- forward
def resnet_forward(params, x_nchw, block_strides, act="relu"):
    # boundary: NCHW (PyTorch convention) -> NHWC bf16 for kernels
    x = jnp.transpose(x_nchw, (0, 2, 3, 1)).astype(jnp.bfloat16)

    # stem: conv3x3 -> GN(C//4, C) -> act
    x = conv2d(x, params["stem_conv"], stride=1)
    g, b = params["stem_gn"]
    x = group_norm(x, x.shape[-1] // 4, g, b, act=act)

    # residual stages (GroupNorm BasicBlocks)
    for blk, st in zip(params["blocks"], block_strides):
        out = conv2d(x, blk["conv1"], stride=st)
        g1, b1 = blk["gn1"]
        out = group_norm(out, out.shape[-1] // 4, g1, b1, act=act)
        out = conv2d(out, blk["conv2"], stride=1)
        if "sc_conv" in blk:
            sc = conv2d(x, blk["sc_conv"], stride=st)
            gs, bs = blk["sc_gn"]
            sc = group_norm(sc, sc.shape[-1] // 4, gs, bs, act=None)
        else:
            sc = x
        g2, b2 = blk["gn2"]
        # fused: GN(conv2 out) + residual add + activation
        x = group_norm(out, out.shape[-1] // 4, g2, b2, act=act, residual=sc)

    # final GN(hidden_size, hidden_size*8) -> act  (num_groups = C // 8, static from shape)
    gF, bF = params["final_gn"]
    x = group_norm(x, x.shape[-1] // 8, gF, bF, act=act)

    # Flatten exactly like torch.nn.Flatten on NCHW: (N, C, H, W) -> (N, C*H*W)
    x = jnp.transpose(x, (0, 3, 1, 2)).reshape(x.shape[0], -1)

    # classifier (output lane dim padded to 128 inside matmul_pallas, sliced back)
    return matmul_pallas(x, params["fc_w"], bias=params["fc_b"], out_dtype=jnp.float32)


if __name__ == "__main__":
    config = [1, 1, 1, 1]
    in_channels, hidden_size, num_classes, resize = 4, 8, 10, 16
    penult_spectral_norm = False  # False -> ReLU, True -> SiLU
    act = "silu" if penult_spectral_norm else "relu"

    key = jax.random.PRNGKey(0)
    pkey, xkey = jax.random.split(key)
    params, block_strides = make_resnet_params(
        pkey, config, in_channels, hidden_size, num_classes, resize)
    x = jax.random.normal(xkey, (2, in_channels, resize, resize), jnp.float32)  # NCHW like PyTorch

    fwd = jax.jit(functools.partial(resnet_forward, block_strides=block_strides, act=act))
    logits = fwd(params, x)
    logits = jax.block_until_ready(logits)
    assert logits.shape == (2, num_classes)
    assert bool(jnp.all(jnp.isfinite(logits)))
    print("KERNEL_OK")
</pallas_src>

<mosaic_0001>
module attributes {stable_mosaic.version = 11 : i64} {
  func.func @_mm_kernel_k1(%arg0: i32, %arg1: i32, %arg2: memref<256x48xbf16, #tpu.memory_space<vmem>>, %arg3: memref<48x128xbf16, #tpu.memory_space<vmem>>, %arg4: memref<256x128xbf16, #tpu.memory_space<vmem>>) attributes {dimension_semantics = [#tpu.dimension_semantics<parallel>, #tpu.dimension_semantics<parallel>], iteration_bounds = array<i64: 2, 1>, scalar_prefetch = 0 : i64, scratch_operands = 0 : i64, tpu.core_type = #tpu.core_type<tc>, window_params = [{transform_indices = @transform_0, window_bounds = array<i64: 256, 48>}, {transform_indices = @transform_1, window_bounds = array<i64: 48, 128>}, {transform_indices = @transform_2, window_bounds = array<i64: 256, 128>}]} {
    %c0 = arith.constant 0 : index
    %c0_0 = arith.constant 0 : index
    %0 = vector.load %arg2[%c0, %c0_0] : memref<256x48xbf16, #tpu.memory_space<vmem>>, vector<256x48xbf16>
    %c0_1 = arith.constant 0 : index
    %c0_2 = arith.constant 0 : index
    %1 = vector.load %arg3[%c0_1, %c0_2] : memref<48x128xbf16, #tpu.memory_space<vmem>>, vector<48x128xbf16>
    %cst = arith.constant dense<0.000000e+00> : vector<256x128xf32>
    %2 = tpu.matmul %0, %1, %cst {dimension_numbers = #tpu.dot_dimension_numbers<[1], [0], [0], [1], [0, 0, 1, 1], [], []>} : vector<256x48xbf16>, vector<48x128xbf16>, vector<256x128xf32> -> vector<256x128xf32>
    %3 = arith.truncf %2 : vector<256x128xf32> to vector<256x128xbf16>
    %c0_3 = arith.constant 0 : index
    %c0_4 = arith.constant 0 : index
    %4 = vector.load %arg4[%c0_3, %c0_4] : memref<256x128xbf16, #tpu.memory_space<vmem>>, vector<256x128xbf16>
    tpu.vector_store %arg4[%c0_3, %c0_4], %3 {strides = array<i32>} : memref<256x128xbf16, #tpu.memory_space<vmem>>, vector<256x128xbf16>,
    return
  }
  func.func @transform_0(%arg0: i32, %arg1: i32) -> (i32, i32) {
    %c0_i32 = arith.constant 0 : i32
    %c0_i32_0 = arith.constant 0 : i32
    return %arg0, %c0_i32 : i32, i32
  }
  func.func @transform_1(%arg0: i32, %arg1: i32) -> (i32, i32) {
    %c0_i32 = arith.constant 0 : i32
    %c0_i32_0 = arith.constant 0 : i32
    return %c0_i32, %arg1 : i32, i32
  }
  func.func @transform_2(%arg0: i32, %arg1: i32) -> (i32, i32) {
    %c0_i32 = arith.constant 0 : i32
    return %arg0, %arg1 : i32, i32
  }
}

module attributes {stable_mosaic.version = 11 : i64} {
  func.func @kernel(%arg0: i32, %arg1: memref<1x256x8xbf16, #tpu.memory_space<vmem>>, %arg2: memref<8x2xf32, #tpu.memory_space<vmem>>, %arg3: memref<2x8xf32, #tpu.memory_space<vmem>>, %arg4: memref<1x8xf32, #tpu.memory_space<vmem>>, %arg5: memref<1x8xf32, #tpu.memory_space<vmem>>, %arg6: memref<1x256x8xbf16, #tpu.memory_space<vmem>>) attributes {dimension_semantics = [#tpu.dimension_semantics<parallel>], iteration_bounds = array<i64: 2>, scalar_prefetch = 0 : i64, scratch_operands = 0 : i64, tpu.core_type = #tpu.core_type<tc>, window_params = [{transform_indices = @transform_0, window_bounds = array<i64: 1, 256, 8>}, {pipeline_mode = #tpu.pipeline_mode<synchronous>, transform_indices = @transform_1, window_bounds = array<i64: 8, 2>}, {pipeline_mode = #tpu.pipeline_mode<synchronous>, transform_indices = @transform_2, window_bounds = array<i64: 2, 8>}, {pipeline_mode = #tpu.pipeline_mode<synchronous>, transform_indices = @transform_3, window_bounds = array<i64: 1, 8>}, {pipeline_mode = #tpu.pipeline_mode<synchronous>, transform_indices = @transform_4, window_bounds = array<i64: 1, 8>}, {transform_indices = @transform_5, window_bounds = array<i64: 1, 256, 8>}]} {
    %c0 = arith.constant 0 : index
    %c0_0 = arith.constant 0 : index
    %c0_1 = arith.constant 0 : index
    %0 = vector.load %arg1[%c0, %c0_0, %c0_1] : memref<1x256x8xbf16, #tpu.memory_space<vmem>>, vector<1x256x8xbf16>
    %1 = vector.shape_cast %0 : vector<1x256x8xbf16> to vector<256x8xbf16>
    %2 = arith.extf %1 : vector<256x8xbf16> to vector<256x8xf32>
    %cst = arith.constant dense<0.000000e+00> : vector<8xf32>
    %3 = vector.multi_reduction <add>, %2, %cst [0] : vector<256x8xf32> to vector<8xf32>
    %4 = vector.shape_cast %3 : vector<8xf32> to vector<1x8xf32>
    %c0_2 = arith.constant 0 : index
    %c0_3 = arith.constant 0 : index
    %5 = vector.load %arg2[%c0_2, %c0_3] : memref<8x2xf32, #tpu.memory_space<vmem>>, vector<8x2xf32>
    %cst_4 = arith.constant dense<0.000000e+00> : vector<1x2xf32>
    %6 = tpu.matmul %4, %5, %cst_4 {dimension_numbers = #tpu.dot_dimension_numbers<[1], [0], [0], [1], [0, 0, 1, 1], [], []>} : vector<1x8xf32>, vector<8x2xf32>, vector<1x2xf32> -> vector<1x2xf32>
    %cst_5 = arith.constant 9.765625E-4 : f32
    %7 = vector.broadcast %cst_5 : f32 to vector<1x2xf32>
    %8 = arith.mulf %6, %7 : vector<1x2xf32>
    %c0_6 = arith.constant 0 : index
    %c0_7 = arith.constant 0 : index
    %9 = vector.load %arg3[%c0_6, %c0_7] : memref<2x8xf32, #tpu.memory_space<vmem>>, vector<2x8xf32>
    %cst_8 = arith.constant dense<0.000000e+00> : vector<1x8xf32>
    %10 = tpu.matmul %8, %9, %cst_8 {dimension_numbers = #tpu.dot_dimension_numbers<[1], [0], [0], [1], [0, 0, 1, 1], [], []>} : vector<1x2xf32>, vector<2x8xf32>, vector<1x8xf32> -> vector<1x8xf32>
    %11 = vector.broadcast %10 : vector<1x8xf32> to vector<256x8xf32>
    %12 = arith.subf %2, %11 : vector<256x8xf32>
    %13 = arith.mulf %12, %12 : vector<256x8xf32>
    %cst_9 = arith.constant dense<0.000000e+00> : vector<8xf32>
    %14 = vector.multi_reduction <add>, %13, %cst_9 [0] : vector<256x8xf32> to vector<8xf32>
    %15 = vector.shape_cast %14 : vector<8xf32> to vector<1x8xf32>
    %c0_10 = arith.constant 0 : index
    %c0_11 = arith.constant 0 : index
    %16 = vector.load %arg2[%c0_10, %c0_11] : memref<8x2xf32, #tpu.memory_space<vmem>>, vector<8x2xf32>
    %cst_12 = arith.constant dense<0.000000e+00> : vector<1x2xf32>
    %17 = tpu.matmul %15, %16, %cst_12 {dimension_numbers = #tpu.dot_dimension_numbers<[1], [0], [0], [1], [0, 0, 1, 1], [], []>} : vector<1x8xf32>, vector<8x2xf32>, vector<1x2xf32> -> vector<1x2xf32>
    %cst_13 = arith.constant 9.765625E-4 : f32
    %18 = vector.broadcast %cst_13 : f32 to vector<1x2xf32>
    %19 = arith.mulf %17, %18 : vector<1x2xf32>
    %cst_14 = arith.constant 9.99999974E-6 : f32
    %20 = vector.broadcast %cst_14 : f32 to vector<1x2xf32>
    %21 = arith.addf %19, %20 : vector<1x2xf32>
    %22 = math.rsqrt %21 : vector<1x2xf32>
    %c0_15 = arith.constant 0 : index
    %c0_16 = arith.constant 0 : index
    %23 = vector.load %arg3[%c0_15, %c0_16] : memref<2x8xf32, #tpu.memory_space<vmem>>, vector<2x8xf32>
    %cst_17 = arith.constant dense<0.000000e+00> : vector<1x8xf32>
    %24 = tpu.matmul %22, %23, %cst_17 {dimension_numbers = #tpu.dot_dimension_numbers<[1], [0], [0], [1], [0, 0, 1, 1], [], []>} : vector<1x2xf32>, vector<2x8xf32>, vector<1x8xf32> -> vector<1x8xf32>
    %25 = vector.broadcast %24 : vector<1x8xf32> to vector<256x8xf32>
    %26 = arith.mulf %12, %25 : vector<256x8xf32>
    %c0_18 = arith.constant 0 : index
    %c0_19 = arith.constant 0 : index
    %27 = vector.load %arg4[%c0_18, %c0_19] : memref<1x8xf32, #tpu.memory_space<vmem>>, vector<1x8xf32>
    %28 = vector.broadcast %27 : vector<1x8xf32> to vector<256x8xf32>
    %29 = arith.mulf %26, %28 : vector<256x8xf32>
    %c0_20 = arith.constant 0 : index
    %c0_21 = arith.constant 0 : index
    %30 = vector.load %arg5[%c0_20, %c0_21] : memref<1x8xf32, #tpu.memory_space<vmem>>, vector<1x8xf32>
    %31 = vector.broadcast %30 : vector<1x8xf32> to vector<256x8xf32>
    %32 = arith.addf %29, %31 : vector<256x8xf32>
    %cst_22 = arith.constant 0.000000e+00 : f32
    %33 = vector.broadcast %cst_22 : f32 to vector<256x8xf32>
    %34 = arith.maximumf %32, %33 : vector<256x8xf32>
    %35 = arith.truncf %34 : vector<256x8xf32> to vector<256x8xbf16>
    %c0_23 = arith.constant 0 : index
    %c0_24 = arith.constant 0 : index
    %c0_25 = arith.constant 0 : index
    %36 = vector.load %arg6[%c0_23, %c0_24, %c0_25] : memref<1x256x8xbf16, #tpu.memory_space<vmem>>, vector<1x256x8xbf16>
    %37 = vector.shape_cast %36 : vector<1x256x8xbf16> to vector<256x8xbf16>
    %38 = vector.shape_cast %35 : vector<256x8xbf16> to vector<1x256x8xbf16>
    tpu.vector_store %arg6[%c0_23, %c0_24, %c0_25], %38 {strides = array<i32>} : memref<1x256x8xbf16, #tpu.memory_space<vmem>>, vector<1x256x8xbf16>,
    return
  }
  func.func @transform_0(%arg0: i32) -> (i32, i32, i32) {
    %c0_i32 = arith.constant 0 : i32
    %c0_i32_0 = arith.constant 0 : i32
    %c0_i32_1 = arith.constant 0 : i32
    return %arg0, %c0_i32, %c0_i32_0 : i32, i32, i32
  }
  func.func @transform_1(%arg0: i32) -> (i32, i32) {
    %c0_i32 = arith.constant 0 : i32
    %c0_i32_0 = arith.constant 0 : i32
    %c0_i32_1 = arith.constant 0 : i32
    return %c0_i32, %c0_i32_0 : i32, i32
  }
  func.func @transform_2(%arg0: i32) -> (i32, i32) {
    %c0_i32 = arith.constant 0 : i32
    %c0_i32_0 = arith.constant 0 : i32
    %c0_i32_1 = arith.constant 0 : i32
    return %c0_i32, %c0_i32_0 : i32, i32
  }
  func.func @transform_3(%arg0: i32) -> (i32, i32) {
    %c0_i32 = arith.constant 0 : i32
    %c0_i32_0 = arith.constant 0 : i32
    %c0_i32_1 = arith.constant 0 : i32
    return %c0_i32, %c0_i32_0 : i32, i32
  }
  func.func @transform_4(%arg0: i32) -> (i32, i32) {
    %c0_i32 = arith.constant 0 : i32
    %c0_i32_0 = arith.constant 0 : i32
    %c0_i32_1 = arith.constant 0 : i32
    return %c0_i32, %c0_i32_0 : i32, i32
  }
  func.func @transform_5(%arg0: i32) -> (i32, i32, i32) {
    %c0_i32 = arith.constant 0 : i32
    %c0_i32_0 = arith.constant 0 : i32
    %c0_i32_1 = arith.constant 0 : i32
    return %arg0, %c0_i32, %c0_i32_0 : i32, i32, i32
  }
}

module attributes {stable_mosaic.version = 11 : i64} {
  func.func @_mm_kernel_k1(%arg0: i32, %arg1: i32, %arg2: memref<256x80xbf16, #tpu.memory_space<vmem>>, %arg3: memref<80x128xbf16, #tpu.memory_space<vmem>>, %arg4: memref<256x128xbf16, #tpu.memory_space<vmem>>) attributes {dimension_semantics = [#tpu.dimension_semantics<parallel>, #tpu.dimension_semantics<parallel>], iteration_bounds = array<i64: 2, 1>, scalar_prefetch = 0 : i64, scratch_operands = 0 : i64, tpu.core_type = #tpu.core_type<tc>, window_params = [{transform_indices = @transform_0, window_bounds = array<i64: 256, 80>}, {transform_indices = @transform_1, window_bounds = array<i64: 80, 128>}, {transform_indices = @transform_2, window_bounds = array<i64: 256, 128>}]} {
    %c0 = arith.constant 0 : index
    %c0_0 = arith.constant 0 : index
    %0 = vector.load %arg2[%c0, %c0_0] : memref<256x80xbf16, #tpu.memory_space<vmem>>, vector<256x80xbf16>
    %c0_1 = arith.constant 0 : index
    %c0_2 = arith.constant 0 : index
    %1 = vector.load %arg3[%c0_1, %c0_2] : memref<80x128xbf16, #tpu.memory_space<vmem>>, vector<80x128xbf16>
    %cst = arith.constant dense<0.000000e+00> : vector<256x128xf32>
    %2 = tpu.matmul %0, %1, %cst {dimension_numbers = #tpu.dot_dimension_numbers<[1], [0], [0], [1], [0, 0, 1, 1], [], []>} : vector<256x80xbf16>, vector<80x128xbf16>, vector<256x128xf32> -> vector<256x128xf32>
    %3 = arith.truncf %2 : vector<256x128xf32> to vector<256x128xbf16>
    %c0_3 = arith.constant 0 : index
    %c0_4 = arith.constant 0 : index
    %4 = vector.load %arg4[%c0_3, %c0_4] : memref<256x128xbf16, #tpu.memory_space<vmem>>, vector<256x128xbf16>
    tpu.vector_store %arg4[%c0_3, %c0_4], %3 {strides = array<i32>} : memref<256x128xbf16, #tpu.memory_space<vmem>>, vector<256x128xbf16>,
    return
  }
  func.func @transform_0(%arg0: i32, %arg1: i32) -> (i32, i32) {
    %c0_i32 = arith.constant 0 : i32
    %c0_i32_0 = arith.constant 0 : i32
    return %arg0, %c0_i32 : i32, i32
  }
  func.func @transform_1(%arg0: i32, %arg1: i32) -> (i32, i32) {
    %c0_i32 = arith.constant 0 : i32
    %c0_i32_0 = arith.constant 0 : i32
    return %c0_i32, %arg1 : i32, i32
  }
  func.func @transform_2(%arg0: i32, %arg1: i32) -> (i32, i32) {
    %c0_i32 = arith.constant 0 : i32
    return %arg0, %arg1 : i32, i32
  }
}

module attributes {stable_mosaic.version = 11 : i64} {
  func.func @kernel(%arg0: i32, %arg1: memref<1x256x8xbf16, #tpu.memory_space<vmem>>, %arg2: memref<8x2xf32, #tpu.memory_space<vmem>>, %arg3: memref<2x8xf32, #tpu.memory_space<vmem>>, %arg4: memref<1x8xf32, #tpu.memory_space<vmem>>, %arg5: memref<1x8xf32, #tpu.memory_space<vmem>>, %arg6: memref<1x256x8xbf16, #tpu.memory_space<vmem>>, %arg7: memref<1x256x8xbf16, #tpu.memory_space<vmem>>) attributes {dimension_semantics = [#tpu.dimension_semantics<parallel>], iteration_bounds = array<i64: 2>, scalar_prefetch = 0 : i64, scratch_operands = 0 : i64, tpu.core_type = #tpu.core_type<tc>, window_params = [{transform_indices = @transform_0, window_bounds = array<i64: 1, 256, 8>}, {pipeline_mode = #tpu.pipeline_mode<synchronous>, transform_indices = @transform_1, window_bounds = array<i64: 8, 2>}, {pipeline_mode = #tpu.pipeline_mode<synchronous>, transform_indices = @transform_2, window_bounds = array<i64: 2, 8>}, {pipeline_mode = #tpu.pipeline_mode<synchronous>, transform_indices = @transform_3, window_bounds = array<i64: 1, 8>}, {pipeline_mode = #tpu.pipeline_mode<synchronous>, transform_indices = @transform_4, window_bounds = array<i64: 1, 8>}, {transform_indices = @transform_5, window_bounds = array<i64: 1, 256, 8>}, {transform_indices = @transform_6, window_bounds = array<i64: 1, 256, 8>}]} {
    %c0 = arith.constant 0 : index
    %c0_0 = arith.constant 0 : index
    %c0_1 = arith.constant 0 : index
    %0 = vector.load %arg1[%c0, %c0_0, %c0_1] : memref<1x256x8xbf16, #tpu.memory_space<vmem>>, vector<1x256x8xbf16>
    %1 = vector.shape_cast %0 : vector<1x256x8xbf16> to vector<256x8xbf16>
    %2 = arith.extf %1 : vector<256x8xbf16> to vector<256x8xf32>
    %cst = arith.constant dense<0.000000e+00> : vector<8xf32>
    %3 = vector.multi_reduction <add>, %2, %cst [0] : vector<256x8xf32> to vector<8xf32>
    %4 = vector.shape_cast %3 : vector<8xf32> to vector<1x8xf32>
    %c0_2 = arith.constant 0 : index
    %c0_3 = arith.constant 0 : index
    %5 = vector.load %arg2[%c0_2, %c0_3] : memref<8x2xf32, #tpu.memory_space<vmem>>, vector<8x2xf32>
    %cst_4 = arith.constant dense<0.000000e+00> : vector<1x2xf32>
    %6 = tpu.matmul %4, %5, %cst_4 {dimension_numbers = #tpu.dot_dimension_numbers<[1], [0], [0], [1], [0, 0, 1, 1], [], []>} : vector<1x8xf32>, vector<8x2xf32>, vector<1x2xf32> -> vector<1x2xf32>
    %cst_5 = arith.constant 9.765625E-4 : f32
    %7 = vector.broadcast %cst_5 : f32 to vector<1x2xf32>
    %8 = arith.mulf %6, %7 : vector<1x2xf32>
    %c0_6 = arith.constant 0 : index
    %c0_7 = arith.constant 0 : index
    %9 = vector.load %arg3[%c0_6, %c0_7] : memref<2x8xf32, #tpu.memory_space<vmem>>, vector<2x8xf32>
    %cst_8 = arith.constant dense<0.000000e+00> : vector<1x8xf32>
    %10 = tpu.matmul %8, %9, %cst_8 {dimension_numbers = #tpu.dot_dimension_numbers<[1], [0], [0], [1], [0, 0, 1, 1], [], []>} : vector<1x2xf32>, vector<2x8xf32>, vector<1x8xf32> -> vector<1x8xf32>
    %11 = vector.broadcast %10 : vector<1x8xf32> to vector<256x8xf32>
    %12 = arith.subf %2, %11 : vector<256x8xf32>
    %13 = arith.mulf %12, %12 : vector<256x8xf32>
    %cst_9 = arith.constant dense<0.000000e+00> : vector<8xf32>
    %14 = vector.multi_reduction <add>, %13, %cst_9 [0] : vector<256x8xf32> to vector<8xf32>
    %15 = vector.shape_cast %14 : vector<8xf32> to vector<1x8xf32>
    %c0_10 = arith.constant 0 : index
    %c0_11 = arith.constant 0 : index
    %16 = vector.load %arg2[%c0_10, %c0_11] : memref<8x2xf32, #tpu.memory_space<vmem>>, vector<8x2xf32>
    %cst_12 = arith.constant dense<0.000000e+00> : vector<1x2xf32>
    %17 = tpu.matmul %15, %16, %cst_12 {dimension_numbers = #tpu.dot_dimension_numbers<[1], [0], [0], [1], [0, 0, 1, 1], [], []>} : vector<1x8xf32>, vector<8x2xf32>, vector<1x2xf32> -> vector<1x2xf32>
    %cst_13 = arith.constant 9.765625E-4 : f32
    %18 = vector.broadcast %cst_13 : f32 to vector<1x2xf32>
    %19 = arith.mulf %17, %18 : vector<1x2xf32>
    %cst_14 = arith.constant 9.99999974E-6 : f32
    %20 = vector.broadcast %cst_14 : f32 to vector<1x2xf32>
    %21 = arith.addf %19, %20 : vector<1x2xf32>
    %22 = math.rsqrt %21 : vector<1x2xf32>
    %c0_15 = arith.constant 0 : index
    %c0_16 = arith.constant 0 : index
    %23 = vector.load %arg3[%c0_15, %c0_16] : memref<2x8xf32, #tpu.memory_space<vmem>>, vector<2x8xf32>
    %cst_17 = arith.constant dense<0.000000e+00> : vector<1x8xf32>
    %24 = tpu.matmul %22, %23, %cst_17 {dimension_numbers = #tpu.dot_dimension_numbers<[1], [0], [0], [1], [0, 0, 1, 1], [], []>} : vector<1x2xf32>, vector<2x8xf32>, vector<1x8xf32> -> vector<1x8xf32>
    %25 = vector.broadcast %24 : vector<1x8xf32> to vector<256x8xf32>
    %26 = arith.mulf %12, %25 : vector<256x8xf32>
    %c0_18 = arith.constant 0 : index
    %c0_19 = arith.constant 0 : index
    %27 = vector.load %arg4[%c0_18, %c0_19] : memref<1x8xf32, #tpu.memory_space<vmem>>, vector<1x8xf32>
    %28 = vector.broadcast %27 : vector<1x8xf32> to vector<256x8xf32>
    %29 = arith.mulf %26, %28 : vector<256x8xf32>
    %c0_20 = arith.constant 0 : index
    %c0_21 = arith.constant 0 : index
    %30 = vector.load %arg5[%c0_20, %c0_21] : memref<1x8xf32, #tpu.memory_space<vmem>>, vector<1x8xf32>
    %31 = vector.broadcast %30 : vector<1x8xf32> to vector<256x8xf32>
    %32 = arith.addf %29, %31 : vector<256x8xf32>
    %c0_22 = arith.constant 0 : index
    %c0_23 = arith.constant 0 : index
    %c0_24 = arith.constant 0 : index
    %33 = vector.load %arg6[%c0_22, %c0_23, %c0_24] : memref<1x256x8xbf16, #tpu.memory_space<vmem>>, vector<1x256x8xbf16>
    %34 = vector.shape_cast %33 : vector<1x256x8xbf16> to vector<256x8xbf16>
    %35 = arith.extf %34 : vector<256x8xbf16> to vector<256x8xf32>
    %36 = arith.addf %32, %35 : vector<256x8xf32>
    %cst_25 = arith.constant 0.000000e+00 : f32
    %37 = vector.broadcast %cst_25 : f32 to vector<256x8xf32>
    %38 = arith.maximumf %36, %37 : vector<256x8xf32>
    %39 = arith.truncf %38 : vector<256x8xf32> to vector<256x8xbf16>
    %c0_26 = arith.constant 0 : index
    %c0_27 = arith.constant 0 : index
    %c0_28 = arith.constant 0 : index
    %40 = vector.load %arg7[%c0_26, %c0_27, %c0_28] : memref<1x256x8xbf16, #tpu.memory_space<vmem>>, vector<1x256x8xbf16>
    %41 = vector.shape_cast %40 : vector<1x256x8xbf16> to vector<256x8xbf16>
    %42 = vector.shape_cast %39 : vector<256x8xbf16> to vector<1x256x8xbf16>
    tpu.vector_store %arg7[%c0_26, %c0_27, %c0_28], %42 {strides = array<i32>} : memref<1x256x8xbf16, #tpu.memory_space<vmem>>, vector<1x256x8xbf16>,
    return
  }
  func.func @transform_0(%arg0: i32) -> (i32, i32, i32) {
    %c0_i32 = arith.constant 0 : i32
    %c0_i32_0 = arith.constant 0 : i32
    %c0_i32_1 = arith.constant 0 : i32
    return %arg0, %c0_i32, %c0_i32_0 : i32, i32, i32
  }
  func.func @transform_1(%arg0: i32) -> (i32, i32) {
    %c0_i32 = arith.constant 0 : i32
    %c0_i32_0 = arith.constant 0 : i32
    %c0_i32_1 = arith.constant 0 : i32
    return %c0_i32, %c0_i32_0 : i32, i32
  }
  func.func @transform_2(%arg0: i32) -> (i32, i32) {
    %c0_i32 = arith.constant 0 : i32
    %c0_i32_0 = arith.constant 0 : i32
    %c0_i32_1 = arith.constant 0 : i32
    return %c0_i32, %c0_i32_0 : i32, i32
  }
  func.func @transform_3(%arg0: i32) -> (i32, i32) {
    %c0_i32 = arith.constant 0 : i32
    %c0_i32_0 = arith.constant 0 : i32
    %c0_i32_1 = arith.constant 0 : i32
    return %c0_i32, %c0_i32_0 : i32, i32
  }
  func.func @transform_4(%arg0: i32) -> (i32, i32) {
    %c0_i32 = arith.constant 0 : i32
    %c0_i32_0 = arith.constant 0 : i32
    %c0_i32_1 = arith.constant 0 : i32
    return %c0_i32, %c0_i32_0 : i32, i32
  }
  func.func @transform_5(%arg0: i32) -> (i32, i32, i32) {
    %c0_i32 = arith.constant 0 : i32
    %c0_i32_0 = arith.constant 0 : i32
    %c0_i32_1 = arith.constant 0 : i32
    return %arg0, %c0_i32, %c0_i32_0 : i32, i32, i32
  }
  func.func @transform_6(%arg0: i32) -> (i32, i32, i32) {
    %c0_i32 = arith.constant 0 : i32
    %c0_i32_0 = arith.constant 0 : i32
    %c0_i32_1 = arith.constant 0 : i32
    return %arg0, %c0_i32, %c0_i32_0 : i32, i32, i32
  }
}

module attributes {stable_mosaic.version = 11 : i64} {
  func.func @_mm_kernel_k1(%arg0: i32, %arg1: i32, %arg2: memref<128x80xbf16, #tpu.memory_space<vmem>>, %arg3: memref<80x128xbf16, #tpu.memory_space<vmem>>, %arg4: memref<128x128xbf16, #tpu.memory_space<vmem>>) attributes {dimension_semantics = [#tpu.dimension_semantics<parallel>, #tpu.dimension_semantics<parallel>], iteration_bounds = array<i64: 1, 1>, scalar_prefetch = 0 : i64, scratch_operands = 0 : i64, tpu.core_type = #tpu.core_type<tc>, window_params = [{transform_indices = @transform_0, window_bounds = array<i64: 128, 80>}, {transform_indices = @transform_1, window_bounds = array<i64: 80, 128>}, {transform_indices = @transform_2, window_bounds = array<i64: 128, 128>}]} {
    %c0 = arith.constant 0 : index
    %c0_0 = arith.constant 0 : index
    %0 = vector.load %arg2[%c0, %c0_0] : memref<128x80xbf16, #tpu.memory_space<vmem>>, vector<128x80xbf16>
    %c0_1 = arith.constant 0 : index
    %c0_2 = arith.constant 0 : index
    %1 = vector.load %arg3[%c0_1, %c0_2] : memref<80x128xbf16, #tpu.memory_space<vmem>>, vector<80x128xbf16>
    %cst = arith.constant dense<0.000000e+00> : vector<128x128xf32>
    %2 = tpu.matmul %0, %1, %cst {dimension_numbers = #tpu.dot_dimension_numbers<[1], [0], [0], [1], [0, 0, 1, 1], [], []>} : vector<128x80xbf16>, vector<80x128xbf16>, vector<128x128xf32> -> vector<128x128xf32>
    %3 = arith.truncf %2 : vector<128x128xf32> to vector<128x128xbf16>
    %c0_3 = arith.constant 0 : index
    %c0_4 = arith.constant 0 : index
    %4 = vector.load %arg4[%c0_3, %c0_4] : memref<128x128xbf16, #tpu.memory_space<vmem>>, vector<128x128xbf16>
    tpu.vector_store %arg4[%c0_3, %c0_4], %3 {strides = array<i32>} : memref<128x128xbf16, #tpu.memory_space<vmem>>, vector<128x128xbf16>,
    return
  }
  func.func @transform_0(%arg0: i32, %arg1: i32) -> (i32, i32) {
    %c0_i32 = arith.constant 0 : i32
    %c0_i32_0 = arith.constant 0 : i32
    return %arg0, %c0_i32 : i32, i32
  }
  func.func @transform_1(%arg0: i32, %arg1: i32) -> (i32, i32) {
    %c0_i32 = arith.constant 0 : i32
    %c0_i32_0 = arith.constant 0 : i32
    return %c0_i32, %arg1 : i32, i32
  }
  func.func @transform_2(%arg0: i32, %arg1: i32) -> (i32, i32) {
    %c0_i32 = arith.constant 0 : i32
    return %arg0, %arg1 : i32, i32
  }
}

module attributes {stable_mosaic.version = 11 : i64} {
  func.func @kernel(%arg0: i32, %arg1: memref<1x64x16xbf16, #tpu.memory_space<vmem>>, %arg2: memref<16x4xf32, #tpu.memory_space<vmem>>, %arg3: memref<4x16xf32, #tpu.memory_space<vmem>>, %arg4: memref<1x16xf32, #tpu.memory_space<vmem>>, %arg5: memref<1x16xf32, #tpu.memory_space<vmem>>, %arg6: memref<1x64x16xbf16, #tpu.memory_space<vmem>>) attributes {dimension_semantics = [#tpu.dimension_semantics<parallel>], iteration_bounds = array<i64: 2>, scalar_prefetch = 0 : i64, scratch_operands = 0 : i64, tpu.core_type = #tpu.core_type<tc>, window_params = [{transform_indices = @transform_0, window_bounds = array<i64: 1, 64, 16>}, {pipeline_mode = #tpu.pipeline_mode<synchronous>, transform_indices = @transform_1, window_bounds = array<i64: 16, 4>}, {pipeline_mode = #tpu.pipeline_mode<synchronous>, transform_indices = @transform_2, window_bounds = array<i64: 4, 16>}, {pipeline_mode = #tpu.pipeline_mode<synchronous>, transform_indices = @transform_3, window_bounds = array<i64: 1, 16>}, {pipeline_mode = #tpu.pipeline_mode<synchronous>, transform_indices = @transform_4, window_bounds = array<i64: 1, 16>}, {transform_indices = @transform_5, window_bounds = array<i64: 1, 64, 16>}]} {
    %c0 = arith.constant 0 : index
    %c0_0 = arith.constant 0 : index
    %c0_1 = arith.constant 0 : index
    %0 = vector.load %arg1[%c0, %c0_0, %c0_1] : memref<1x64x16xbf16, #tpu.memory_space<vmem>>, vector<1x64x16xbf16>
    %1 = vector.shape_cast %0 : vector<1x64x16xbf16> to vector<64x16xbf16>
    %2 = arith.extf %1 : vector<64x16xbf16> to vector<64x16xf32>
    %cst = arith.constant dense<0.000000e+00> : vector<16xf32>
    %3 = vector.multi_reduction <add>, %2, %cst [0] : vector<64x16xf32> to vector<16xf32>
    %4 = vector.shape_cast %3 : vector<16xf32> to vector<1x16xf32>
    %c0_2 = arith.constant 0 : index
    %c0_3 = arith.constant 0 : index
    %5 = vector.load %arg2[%c0_2, %c0_3] : memref<16x4xf32, #tpu.memory_space<vmem>>, vector<16x4xf32>
    %cst_4 = arith.constant dense<0.000000e+00> : vector<1x4xf32>
    %6 = tpu.matmul %4, %5, %cst_4 {dimension_numbers = #tpu.dot_dimension_numbers<[1], [0], [0], [1], [0, 0, 1, 1], [], []>} : vector<1x16xf32>, vector<16x4xf32>, vector<1x4xf32> -> vector<1x4xf32>
    %cst_5 = arith.constant 3.906250e-03 : f32
    %7 = vector.broadcast %cst_5 : f32 to vector<1x4xf32>
    %8 = arith.mulf %6, %7 : vector<1x4xf32>
    %c0_6 = arith.constant 0 : index
    %c0_7 = arith.constant 0 : index
    %9 = vector.load %arg3[%c0_6, %c0_7] : memref<4x16xf32, #tpu.memory_space<vmem>>, vector<4x16xf32>
    %cst_8 = arith.constant dense<0.000000e+00> : vector<1x16xf32>
    %10 = tpu.matmul %8, %9, %cst_8 {dimension_numbers = #tpu.dot_dimension_numbers<[1], [0], [0], [1], [0, 0, 1, 1], [], []>} : vector<1x4xf32>, vector<4x16xf32>, vector<1x16xf32> -> vector<1x16xf32>
    %11 = vector.broadcast %10 : vector<1x16xf32> to vector<64x16xf32>
    %12 = arith.subf %2, %11 : vector<64x16xf32>
    %13 = arith.mulf %12, %12 : vector<64x16xf32>
    %cst_9 = arith.constant dense<0.000000e+00> : vector<16xf32>
    %14 = vector.multi_reduction <add>, %13, %cst_9 [0] : vector<64x16xf32> to vector<16xf32>
    %15 = vector.shape_cast %14 : vector<16xf32> to vector<1x16xf32>
    %c0_10 = arith.constant 0 : index
    %c0_11 = arith.constant 0 : index
    %16 = vector.load %arg2[%c0_10, %c0_11] : memref<16x4xf32, #tpu.memory_space<vmem>>, vector<16x4xf32>
    %cst_12 = arith.constant dense<0.000000e+00> : vector<1x4xf32>
    %17 = tpu.matmul %15, %16, %cst_12 {dimension_numbers = #tpu.dot_dimension_numbers<[1], [0], [0], [1], [0, 0, 1, 1], [], []>} : vector<1x16xf32>, vector<16x4xf32>, vector<1x4xf32> -> vector<1x4xf32>
    %cst_13 = arith.constant 3.906250e-03 : f32
    %18 = vector.broadcast %cst_13 : f32 to vector<1x4xf32>
    %19 = arith.mulf %17, %18 : vector<1x4xf32>
    %cst_14 = arith.constant 9.99999974E-6 : f32
    %20 = vector.broadcast %cst_14 : f32 to vector<1x4xf32>
    %21 = arith.addf %19, %20 : vector<1x4xf32>
    %22 = math.rsqrt %21 : vector<1x4xf32>
    %c0_15 = arith.constant 0 : index
    %c0_16 = arith.constant 0 : index
    %23 = vector.load %arg3[%c0_15, %c0_16] : memref<4x16xf32, #tpu.memory_space<vmem>>, vector<4x16xf32>
    %cst_17 = arith.constant dense<0.000000e+00> : vector<1x16xf32>
    %24 = tpu.matmul %22, %23, %cst_17 {dimension_numbers = #tpu.dot_dimension_numbers<[1], [0], [0], [1], [0, 0, 1, 1], [], []>} : vector<1x4xf32>, vector<4x16xf32>, vector<1x16xf32> -> vector<1x16xf32>
    %25 = vector.broadcast %24 : vector<1x16xf32> to vector<64x16xf32>
    %26 = arith.mulf %12, %25 : vector<64x16xf32>
    %c0_18 = arith.constant 0 : index
    %c0_19 = arith.constant 0 : index
    %27 = vector.load %arg4[%c0_18, %c0_19] : memref<1x16xf32, #tpu.memory_space<vmem>>, vector<1x16xf32>
    %28 = vector.broadcast %27 : vector<1x16xf32> to vector<64x16xf32>
    %29 = arith.mulf %26, %28 : vector<64x16xf32>
    %c0_20 = arith.constant 0 : index
    %c0_21 = arith.constant 0 : index
    %30 = vector.load %arg5[%c0_20, %c0_21] : memref<1x16xf32, #tpu.memory_space<vmem>>, vector<1x16xf32>
    %31 = vector.broadcast %30 : vector<1x16xf32> to vector<64x16xf32>
    %32 = arith.addf %29, %31 : vector<64x16xf32>
    %cst_22 = arith.constant 0.000000e+00 : f32
    %33 = vector.broadcast %cst_22 : f32 to vector<64x16xf32>
    %34 = arith.maximumf %32, %33 : vector<64x16xf32>
    %35 = arith.truncf %34 : vector<64x16xf32> to vector<64x16xbf16>
    %c0_23 = arith.constant 0 : index
    %c0_24 = arith.constant 0 : index
    %c0_25 = arith.constant 0 : index
    %36 = vector.load %arg6[%c0_23, %c0_24, %c0_25] : memref<1x64x16xbf16, #tpu.memory_space<vmem>>, vector<1x64x16xbf16>
    %37 = vector.shape_cast %36 : vector<1x64x16xbf16> to vector<64x16xbf16>
    %38 = vector.shape_cast %35 : vector<64x16xbf16> to vector<1x64x16xbf16>
    tpu.vector_store %arg6[%c0_23, %c0_24, %c0_25], %38 {strides = array<i32>} : memref<1x64x16xbf16, #tpu.memory_space<vmem>>, vector<1x64x16xbf16>,
    return
  }
  func.func @transform_0(%arg0: i32) -> (i32, i32, i32) {
    %c0_i32 = arith.constant 0 : i32
    %c0_i32_0 = arith.constant 0 : i32
    %c0_i32_1 = arith.constant 0 : i32
    return %arg0, %c0_i32, %c0_i32_0 : i32, i32, i32
  }
  func.func @transform_1(%arg0: i32) -> (i32, i32) {
    %c0_i32 = arith.constant 0 : i32
    %c0_i32_0 = arith.constant 0 : i32
    %c0_i32_1 = arith.constant 0 : i32
    return %c0_i32, %c0_i32_0 : i32, i32
  }
  func.func @transform_2(%arg0: i32) -> (i32, i32) {
    %c0_i32 = arith.constant 0 : i32
    %c0_i32_0 = arith.constant 0 : i32
    %c0_i32_1 = arith.constant 0 : i32
    return %c0_i32, %c0_i32_0 : i32, i32
  }
  func.func @transform_3(%arg0: i32) -> (i32, i32) {
    %c0_i32 = arith.constant 0 : i32
    %c0_i32_0 = arith.constant 0 : i32
    %c0_i32_1 = arith.constant 0 : i32
    return %c0_i32, %c0_i32_0 : i32, i32
  }
  func.func @transform_4(%arg0: i32) -> (i32, i32) {
    %c0_i32 = arith.constant 0 : i32
    %c0_i32_0 = arith.constant 0 : i32
    %c0_i32_1 = arith.constant 0 : i32
    return %c0_i32, %c0_i32_0 : i32, i32
  }
  func.func @transform_5(%arg0: i32) -> (i32, i32, i32) {
    %c0_i32 = arith.constant 0 : i32
    %c0_i32_0 = arith.constant 0 : i32
    %c0_i32_1 = arith.constant 0 : i32
    return %arg0, %c0_i32, %c0_i32_0 : i32, i32, i32
  }
}

module attributes {stable_mosaic.version = 11 : i64} {
  func.func @_mm_kernel_k1(%arg0: i32, %arg1: i32, %arg2: memref<128x144xbf16, #tpu.memory_space<vmem>>, %arg3: memref<144x128xbf16, #tpu.memory_space<vmem>>, %arg4: memref<128x128xbf16, #tpu.memory_space<vmem>>) attributes {dimension_semantics = [#tpu.dimension_semantics<parallel>, #tpu.dimension_semantics<parallel>], iteration_bounds = array<i64: 1, 1>, scalar_prefetch = 0 : i64, scratch_operands = 0 : i64, tpu.core_type = #tpu.core_type<tc>, window_params = [{transform_indices = @transform_0, window_bounds = array<i64: 128, 144>}, {transform_indices = @transform_1, window_bounds = array<i64: 144, 128>}, {transform_indices = @transform_2, window_bounds = array<i64: 128, 128>}]} {
    %c0 = arith.constant 0 : index
    %c0_0 = arith.constant 0 : index
    %0 = vector.load %arg2[%c0, %c0_0] : memref<128x144xbf16, #tpu.memory_space<vmem>>, vector<128x144xbf16>
    %c0_1 = arith.constant 0 : index
    %c0_2 = arith.constant 0 : index
    %1 = vector.load %arg3[%c0_1, %c0_2] : memref<144x128xbf16, #tpu.memory_space<vmem>>, vector<144x128xbf16>
    %cst = arith.constant dense<0.000000e+00> : vector<128x128xf32>
    %2 = tpu.matmul %0, %1, %cst {dimension_numbers = #tpu.dot_dimension_numbers<[1], [0], [0], [1], [0, 0, 1, 1], [], []>} : vector<128x144xbf16>, vector<144x128xbf16>, vector<128x128xf32> -> vector<128x128xf32>
    %3 = arith.truncf %2 : vector<128x128xf32> to vector<128x128xbf16>
    %c0_3 = arith.constant 0 : index
    %c0_4 = arith.constant 0 : index
    %4 = vector.load %arg4[%c0_3, %c0_4] : memref<128x128xbf16, #tpu.memory_space<vmem>>, vector<128x128xbf16>
    tpu.vector_store %arg4[%c0_3, %c0_4], %3 {strides = array<i32>} : memref<128x128xbf16, #tpu.memory_space<vmem>>, vector<128x128xbf16>,
    return
  }
  func.func @transform_0(%arg0: i32, %arg1: i32) -> (i32, i32) {
    %c0_i32 = arith.constant 0 : i32
    %c0_i32_0 = arith.constant 0 : i32
    return %arg0, %c0_i32 : i32, i32
  }
  func.func @transform_1(%arg0: i32, %arg1: i32) -> (i32, i32) {
    %c0_i32 = arith.constant 0 : i32
    %c0_i32_0 = arith.constant 0 : i32
    return %c0_i32, %arg1 : i32, i32
  }
  func.func @transform_2(%arg0: i32, %arg1: i32) -> (i32, i32) {
    %c0_i32 = arith.constant 0 : i32
    return %arg0, %arg1 : i32, i32
  }
}

module attributes {stable_mosaic.version = 11 : i64} {
  func.func @_mm_kernel_k1(%arg0: i32, %arg1: i32, %arg2: memref<128x16xbf16, #tpu.memory_space<vmem>>, %arg3: memref<16x128xbf16, #tpu.memory_space<vmem>>, %arg4: memref<128x128xbf16, #tpu.memory_space<vmem>>) attributes {dimension_semantics = [#tpu.dimension_semantics<parallel>, #tpu.dimension_semantics<parallel>], iteration_bounds = array<i64: 1, 1>, scalar_prefetch = 0 : i64, scratch_operands = 0 : i64, tpu.core_type = #tpu.core_type<tc>, window_params = [{transform_indices = @transform_0, window_bounds = array<i64: 128, 16>}, {transform_indices = @transform_1, window_bounds = array<i64: 16, 128>}, {transform_indices = @transform_2, window_bounds = array<i64: 128, 128>}]} {
    %c0 = arith.constant 0 : index
    %c0_0 = arith.constant 0 : index
    %0 = vector.load %arg2[%c0, %c0_0] : memref<128x16xbf16, #tpu.memory_space<vmem>>, vector<128x16xbf16>
    %c0_1 = arith.constant 0 : index
    %c0_2 = arith.constant 0 : index
    %1 = vector.load %arg3[%c0_1, %c0_2] : memref<16x128xbf16, #tpu.memory_space<vmem>>, vector<16x128xbf16>
    %cst = arith.constant dense<0.000000e+00> : vector<128x128xf32>
    %2 = tpu.matmul %0, %1, %cst {dimension_numbers = #tpu.dot_dimension_numbers<[1], [0], [0], [1], [0, 0, 1, 1], [], []>} : vector<128x16xbf16>, vector<16x128xbf16>, vector<128x128xf32> -> vector<128x128xf32>
    %3 = arith.truncf %2 : vector<128x128xf32> to vector<128x128xbf16>
    %c0_3 = arith.constant 0 : index
    %c0_4 = arith.constant 0 : index
    %4 = vector.load %arg4[%c0_3, %c0_4] : memref<128x128xbf16, #tpu.memory_space<vmem>>, vector<128x128xbf16>
    tpu.vector_store %arg4[%c0_3, %c0_4], %3 {strides = array<i32>} : memref<128x128xbf16, #tpu.memory_space<vmem>>, vector<128x128xbf16>,
    return
  }
  func.func @transform_0(%arg0: i32, %arg1: i32) -> (i32, i32) {
    %c0_i32 = arith.constant 0 : i32
    %c0_i32_0 = arith.constant 0 : i32
    return %arg0, %c0_i32 : i32, i32
  }
  func.func @transform_1(%arg0: i32, %arg1: i32) -> (i32, i32) {
    %c0_i32 = arith.constant 0 : i32
    %c0_i32_0 = arith.constant 0 : i32
    return %c0_i32, %arg1 : i32, i32
  }
  func.func @transform_2(%arg0: i32, %arg1: i32) -> (i32, i32) {
    %c0_i32 = arith.constant 0 : i32
    return %arg0, %arg1 : i32, i32
  }
}

module attributes {stable_mosaic.version = 11 : i64} {
  func.func @kernel(%arg0: i32, %arg1: memref<1x64x16xbf16, #tpu.memory_space<vmem>>, %arg2: memref<16x4xf32, #tpu.memory_space<vmem>>, %arg3: memref<4x16xf32, #tpu.memory_space<vmem>>, %arg4: memref<1x16xf32, #tpu.memory_space<vmem>>, %arg5: memref<1x16xf32, #tpu.memory_space<vmem>>, %arg6: memref<1x64x16xbf16, #tpu.memory_space<vmem>>) attributes {dimension_semantics = [#tpu.dimension_semantics<parallel>], iteration_bounds = array<i64: 2>, scalar_prefetch = 0 : i64, scratch_operands = 0 : i64, tpu.core_type = #tpu.core_type<tc>, window_params = [{transform_indices = @transform_0, window_bounds = array<i64: 1, 64, 16>}, {pipeline_mode = #tpu.pipeline_mode<synchronous>, transform_indices = @transform_1, window_bounds = array<i64: 16, 4>}, {pipeline_mode = #tpu.pipeline_mode<synchronous>, transform_indices = @transform_2, window_bounds = array<i64: 4, 16>}, {pipeline_mode = #tpu.pipeline_mode<synchronous>, transform_indices = @transform_3, window_bounds = array<i64: 1, 16>}, {pipeline_mode = #tpu.pipeline_mode<synchronous>, transform_indices = @transform_4, window_bounds = array<i64: 1, 16>}, {transform_indices = @transform_5, window_bounds = array<i64: 1, 64, 16>}]} {
    %c0 = arith.constant 0 : index
    %c0_0 = arith.constant 0 : index
    %c0_1 = arith.constant 0 : index
    %0 = vector.load %arg1[%c0, %c0_0, %c0_1] : memref<1x64x16xbf16, #tpu.memory_space<vmem>>, vector<1x64x16xbf16>
    %1 = vector.shape_cast %0 : vector<1x64x16xbf16> to vector<64x16xbf16>
    %2 = arith.extf %1 : vector<64x16xbf16> to vector<64x16xf32>
    %cst = arith.constant dense<0.000000e+00> : vector<16xf32>
    %3 = vector.multi_reduction <add>, %2, %cst [0] : vector<64x16xf32> to vector<16xf32>
    %4 = vector.shape_cast %3 : vector<16xf32> to vector<1x16xf32>
    %c0_2 = arith.constant 0 : index
    %c0_3 = arith.constant 0 : index
    %5 = vector.load %arg2[%c0_2, %c0_3] : memref<16x4xf32, #tpu.memory_space<vmem>>, vector<16x4xf32>
    %cst_4 = arith.constant dense<0.000000e+00> : vector<1x4xf32>
    %6 = tpu.matmul %4, %5, %cst_4 {dimension_numbers = #tpu.dot_dimension_numbers<[1], [0], [0], [1], [0, 0, 1, 1], [], []>} : vector<1x16xf32>, vector<16x4xf32>, vector<1x4xf32> -> vector<1x4xf32>
    %cst_5 = arith.constant 3.906250e-03 : f32
    %7 = vector.broadcast %cst_5 : f32 to vector<1x4xf32>
    %8 = arith.mulf %6, %7 : vector<1x4xf32>
    %c0_6 = arith.constant 0 : index
    %c0_7 = arith.constant 0 : index
    %9 = vector.load %arg3[%c0_6, %c0_7] : memref<4x16xf32, #tpu.memory_space<vmem>>, vector<4x16xf32>
    %cst_8 = arith.constant dense<0.000000e+00> : vector<1x16xf32>
    %10 = tpu.matmul %8, %9, %cst_8 {dimension_numbers = #tpu.dot_dimension_numbers<[1], [0], [0], [1], [0, 0, 1, 1], [], []>} : vector<1x4xf32>, vector<4x16xf32>, vector<1x16xf32> -> vector<1x16xf32>
    %11 = vector.broadcast %10 : vector<1x16xf32> to vector<64x16xf32>
    %12 = arith.subf %2, %11 : vector<64x16xf32>
    %13 = arith.mulf %12, %12 : vector<64x16xf32>
    %cst_9 = arith.constant dense<0.000000e+00> : vector<16xf32>
    %14 = vector.multi_reduction <add>, %13, %cst_9 [0] : vector<64x16xf32> to vector<16xf32>
    %15 = vector.shape_cast %14 : vector<16xf32> to vector<1x16xf32>
    %c0_10 = arith.constant 0 : index
    %c0_11 = arith.constant 0 : index
    %16 = vector.load %arg2[%c0_10, %c0_11] : memref<16x4xf32, #tpu.memory_space<vmem>>, vector<16x4xf32>
    %cst_12 = arith.constant dense<0.000000e+00> : vector<1x4xf32>
    %17 = tpu.matmul %15, %16, %cst_12 {dimension_numbers = #tpu.dot_dimension_numbers<[1], [0], [0], [1], [0, 0, 1, 1], [], []>} : vector<1x16xf32>, vector<16x4xf32>, vector<1x4xf32> -> vector<1x4xf32>
    %cst_13 = arith.constant 3.906250e-03 : f32
    %18 = vector.broadcast %cst_13 : f32 to vector<1x4xf32>
    %19 = arith.mulf %17, %18 : vector<1x4xf32>
    %cst_14 = arith.constant 9.99999974E-6 : f32
    %20 = vector.broadcast %cst_14 : f32 to vector<1x4xf32>
    %21 = arith.addf %19, %20 : vector<1x4xf32>
    %22 = math.rsqrt %21 : vector<1x4xf32>
    %c0_15 = arith.constant 0 : index
    %c0_16 = arith.constant 0 : index
    %23 = vector.load %arg3[%c0_15, %c0_16] : memref<4x16xf32, #tpu.memory_space<vmem>>, vector<4x16xf32>
    %cst_17 = arith.constant dense<0.000000e+00> : vector<1x16xf32>
    %24 = tpu.matmul %22, %23, %cst_17 {dimension_numbers = #tpu.dot_dimension_numbers<[1], [0], [0], [1], [0, 0, 1, 1], [], []>} : vector<1x4xf32>, vector<4x16xf32>, vector<1x16xf32> -> vector<1x16xf32>
    %25 = vector.broadcast %24 : vector<1x16xf32> to vector<64x16xf32>
    %26 = arith.mulf %12, %25 : vector<64x16xf32>
    %c0_18 = arith.constant 0 : index
    %c0_19 = arith.constant 0 : index
    %27 = vector.load %arg4[%c0_18, %c0_19] : memref<1x16xf32, #tpu.memory_space<vmem>>, vector<1x16xf32>
    %28 = vector.broadcast %27 : vector<1x16xf32> to vector<64x16xf32>
    %29 = arith.mulf %26, %28 : vector<64x16xf32>
    %c0_20 = arith.constant 0 : index
    %c0_21 = arith.constant 0 : index
    %30 = vector.load %arg5[%c0_20, %c0_21] : memref<1x16xf32, #tpu.memory_space<vmem>>, vector<1x16xf32>
    %31 = vector.broadcast %30 : vector<1x16xf32> to vector<64x16xf32>
    %32 = arith.addf %29, %31 : vector<64x16xf32>
    %33 = arith.truncf %32 : vector<64x16xf32> to vector<64x16xbf16>
    %c0_22 = arith.constant 0 : index
    %c0_23 = arith.constant 0 : index
    %c0_24 = arith.constant 0 : index
    %34 = vector.load %arg6[%c0_22, %c0_23, %c0_24] : memref<1x64x16xbf16, #tpu.memory_space<vmem>>, vector<1x64x16xbf16>
    %35 = vector.shape_cast %34 : vector<1x64x16xbf16> to vector<64x16xbf16>
    %36 = vector.shape_cast %33 : vector<64x16xbf16> to vector<1x64x16xbf16>
    tpu.vector_store %arg6[%c0_22, %c0_23, %c0_24], %36 {strides = array<i32>} : memref<1x64x16xbf16, #tpu.memory_space<vmem>>, vector<1x64x16xbf16>,
    return
  }
  func.func @transform_0(%arg0: i32) -> (i32, i32, i32) {
    %c0_i32 = arith.constant 0 : i32
    %c0_i32_0 = arith.constant 0 : i32
    %c0_i32_1 = arith.constant 0 : i32
    return %arg0, %c0_i32, %c0_i32_0 : i32, i32, i32
  }
  func.func @transform_1(%arg0: i32) -> (i32, i32) {
    %c0_i32 = arith.constant 0 : i32
    %c0_i32_0 = arith.constant 0 : i32
    %c0_i32_1 = arith.constant 0 : i32
    return %c0_i32, %c0_i32_0 : i32, i32
  }
  func.func @transform_2(%arg0: i32) -> (i32, i32) {
    %c0_i32 = arith.constant 0 : i32
    %c0_i32_0 = arith.constant 0 : i32
    %c0_i32_1 = arith.constant 0 : i32
    return %c0_i32, %c0_i32_0 : i32, i32
  }
  func.func @transform_3(%arg0: i32) -> (i32, i32) {
    %c0_i32 = arith.constant 0 : i32
    %c0_i32_0 = arith.constant 0 : i32
    %c0_i32_1 = arith.constant 0 : i32
    return %c0_i32, %c0_i32_0 : i32, i32
  }
  func.func @transform_4(%arg0: i32) -> (i32, i32) {
    %c0_i32 = arith.constant 0 : i32
    %c0_i32_0 = arith.constant 0 : i32
    %c0_i32_1 = arith.constant 0 : i32
    return %c0_i32, %c0_i32_0 : i32, i32
  }
  func.func @transform_5(%arg0: i32) -> (i32, i32, i32) {
    %c0_i32 = arith.constant 0 : i32
    %c0_i32_0 = arith.constant 0 : i32
    %c0_i32_1 = arith.constant 0 : i32
    return %arg0, %c0_i32, %c0_i32_0 : i32, i32, i32
  }
}

module attributes {stable_mosaic.version = 11 : i64} {
  func.func @kernel(%arg0: i32, %arg1: memref<1x64x16xbf16, #tpu.memory_space<vmem>>, %arg2: memref<16x4xf32, #tpu.memory_space<vmem>>, %arg3: memref<4x16xf32, #tpu.memory_space<vmem>>, %arg4: memref<1x16xf32, #tpu.memory_space<vmem>>, %arg5: memref<1x16xf32, #tpu.memory_space<vmem>>, %arg6: memref<1x64x16xbf16, #tpu.memory_space<vmem>>, %arg7: memref<1x64x16xbf16, #tpu.memory_space<vmem>>) attributes {dimension_semantics = [#tpu.dimension_semantics<parallel>], iteration_bounds = array<i64: 2>, scalar_prefetch = 0 : i64, scratch_operands = 0 : i64, tpu.core_type = #tpu.core_type<tc>, window_params = [{transform_indices = @transform_0, window_bounds = array<i64: 1, 64, 16>}, {pipeline_mode = #tpu.pipeline_mode<synchronous>, transform_indices = @transform_1, window_bounds = array<i64: 16, 4>}, {pipeline_mode = #tpu.pipeline_mode<synchronous>, transform_indices = @transform_2, window_bounds = array<i64: 4, 16>}, {pipeline_mode = #tpu.pipeline_mode<synchronous>, transform_indices = @transform_3, window_bounds = array<i64: 1, 16>}, {pipeline_mode = #tpu.pipeline_mode<synchronous>, transform_indices = @transform_4, window_bounds = array<i64: 1, 16>}, {transform_indices = @transform_5, window_bounds = array<i64: 1, 64, 16>}, {transform_indices = @transform_6, window_bounds = array<i64: 1, 64, 16>}]} {
    %c0 = arith.constant 0 : index
    %c0_0 = arith.constant 0 : index
    %c0_1 = arith.constant 0 : index
    %0 = vector.load %arg1[%c0, %c0_0, %c0_1] : memref<1x64x16xbf16, #tpu.memory_space<vmem>>, vector<1x64x16xbf16>
    %1 = vector.shape_cast %0 : vector<1x64x16xbf16> to vector<64x16xbf16>
    %2 = arith.extf %1 : vector<64x16xbf16> to vector<64x16xf32>
    %cst = arith.constant dense<0.000000e+00> : vector<16xf32>
    %3 = vector.multi_reduction <add>, %2, %cst [0] : vector<64x16xf32> to vector<16xf32>
    %4 = vector.shape_cast %3 : vector<16xf32> to vector<1x16xf32>
    %c0_2 = arith.constant 0 : index
    %c0_3 = arith.constant 0 : index
    %5 = vector.load %arg2[%c0_2, %c0_3] : memref<16x4xf32, #tpu.memory_space<vmem>>, vector<16x4xf32>
    %cst_4 = arith.constant dense<0.000000e+00> : vector<1x4xf32>
    %6 = tpu.matmul %4, %5, %cst_4 {dimension_numbers = #tpu.dot_dimension_numbers<[1], [0], [0], [1], [0, 0, 1, 1], [], []>} : vector<1x16xf32>, vector<16x4xf32>, vector<1x4xf32> -> vector<1x4xf32>
    %cst_5 = arith.constant 3.906250e-03 : f32
    %7 = vector.broadcast %cst_5 : f32 to vector<1x4xf32>
    %8 = arith.mulf %6, %7 : vector<1x4xf32>
    %c0_6 = arith.constant 0 : index
    %c0_7 = arith.constant 0 : index
    %9 = vector.load %arg3[%c0_6, %c0_7] : memref<4x16xf32, #tpu.memory_space<vmem>>, vector<4x16xf32>
    %cst_8 = arith.constant dense<0.000000e+00> : vector<1x16xf32>
    %10 = tpu.matmul %8, %9, %cst_8 {dimension_numbers = #tpu.dot_dimension_numbers<[1], [0], [0], [1], [0, 0, 1, 1], [], []>} : vector<1x4xf32>, vector<4x16xf32>, vector<1x16xf32> -> vector<1x16xf32>
    %11 = vector.broadcast %10 : vector<1x16xf32> to vector<64x16xf32>
    %12 = arith.subf %2, %11 : vector<64x16xf32>
    %13 = arith.mulf %12, %12 : vector<64x16xf32>
    %cst_9 = arith.constant dense<0.000000e+00> : vector<16xf32>
    %14 = vector.multi_reduction <add>, %13, %cst_9 [0] : vector<64x16xf32> to vector<16xf32>
    %15 = vector.shape_cast %14 : vector<16xf32> to vector<1x16xf32>
    %c0_10 = arith.constant 0 : index
    %c0_11 = arith.constant 0 : index
    %16 = vector.load %arg2[%c0_10, %c0_11] : memref<16x4xf32, #tpu.memory_space<vmem>>, vector<16x4xf32>
    %cst_12 = arith.constant dense<0.000000e+00> : vector<1x4xf32>
    %17 = tpu.matmul %15, %16, %cst_12 {dimension_numbers = #tpu.dot_dimension_numbers<[1], [0], [0], [1], [0, 0, 1, 1], [], []>} : vector<1x16xf32>, vector<16x4xf32>, vector<1x4xf32> -> vector<1x4xf32>
    %cst_13 = arith.constant 3.906250e-03 : f32
    %18 = vector.broadcast %cst_13 : f32 to vector<1x4xf32>
    %19 = arith.mulf %17, %18 : vector<1x4xf32>
    %cst_14 = arith.constant 9.99999974E-6 : f32
    %20 = vector.broadcast %cst_14 : f32 to vector<1x4xf32>
    %21 = arith.addf %19, %20 : vector<1x4xf32>
    %22 = math.rsqrt %21 : vector<1x4xf32>
    %c0_15 = arith.constant 0 : index
    %c0_16 = arith.constant 0 : index
    %23 = vector.load %arg3[%c0_15, %c0_16] : memref<4x16xf32, #tpu.memory_space<vmem>>, vector<4x16xf32>
    %cst_17 = arith.constant dense<0.000000e+00> : vector<1x16xf32>
    %24 = tpu.matmul %22, %23, %cst_17 {dimension_numbers = #tpu.dot_dimension_numbers<[1], [0], [0], [1], [0, 0, 1, 1], [], []>} : vector<1x4xf32>, vector<4x16xf32>, vector<1x16xf32> -> vector<1x16xf32>
    %25 = vector.broadcast %24 : vector<1x16xf32> to vector<64x16xf32>
    %26 = arith.mulf %12, %25 : vector<64x16xf32>
    %c0_18 = arith.constant 0 : index
    %c0_19 = arith.constant 0 : index
    %27 = vector.load %arg4[%c0_18, %c0_19] : memref<1x16xf32, #tpu.memory_space<vmem>>, vector<1x16xf32>
    %28 = vector.broadcast %27 : vector<1x16xf32> to vector<64x16xf32>
    %29 = arith.mulf %26, %28 : vector<64x16xf32>
    %c0_20 = arith.constant 0 : index
    %c0_21 = arith.constant 0 : index
    %30 = vector.load %arg5[%c0_20, %c0_21] : memref<1x16xf32, #tpu.memory_space<vmem>>, vector<1x16xf32>
    %31 = vector.broadcast %30 : vector<1x16xf32> to vector<64x16xf32>
    %32 = arith.addf %29, %31 : vector<64x16xf32>
    %c0_22 = arith.constant 0 : index
    %c0_23 = arith.constant 0 : index
    %c0_24 = arith.constant 0 : index
    %33 = vector.load %arg6[%c0_22, %c0_23, %c0_24] : memref<1x64x16xbf16, #tpu.memory_space<vmem>>, vector<1x64x16xbf16>
    %34 = vector.shape_cast %33 : vector<1x64x16xbf16> to vector<64x16xbf16>
    %35 = arith.extf %34 : vector<64x16xbf16> to vector<64x16xf32>
    %36 = arith.addf %32, %35 : vector<64x16xf32>
    %cst_25 = arith.constant 0.000000e+00 : f32
    %37 = vector.broadcast %cst_25 : f32 to vector<64x16xf32>
    %38 = arith.maximumf %36, %37 : vector<64x16xf32>
    %39 = arith.truncf %38 : vector<64x16xf32> to vector<64x16xbf16>
    %c0_26 = arith.constant 0 : index
    %c0_27 = arith.constant 0 : index
    %c0_28 = arith.constant 0 : index
    %40 = vector.load %arg7[%c0_26, %c0_27, %c0_28] : memref<1x64x16xbf16, #tpu.memory_space<vmem>>, vector<1x64x16xbf16>
    %41 = vector.shape_cast %40 : vector<1x64x16xbf16> to vector<64x16xbf16>
    %42 = vector.shape_cast %39 : vector<64x16xbf16> to vector<1x64x16xbf16>
    tpu.vector_store %arg7[%c0_26, %c0_27, %c0_28], %42 {strides = array<i32>} : memref<1x64x16xbf16, #tpu.memory_space<vmem>>, vector<1x64x16xbf16>,
    return
  }
  func.func @transform_0(%arg0: i32) -> (i32, i32, i32) {
    %c0_i32 = arith.constant 0 : i32
    %c0_i32_0 = arith.constant 0 : i32
    %c0_i32_1 = arith.constant 0 : i32
    return %arg0, %c0_i32, %c0_i32_0 : i32, i32, i32
  }
  func.func @transform_1(%arg0: i32) -> (i32, i32) {
    %c0_i32 = arith.constant 0 : i32
    %c0_i32_0 = arith.constant 0 : i32
    %c0_i32_1 = arith.constant 0 : i32
    return %c0_i32, %c0_i32_0 : i32, i32
  }
  func.func @transform_2(%arg0: i32) -> (i32, i32) {
    %c0_i32 = arith.constant 0 : i32
    %c0_i32_0 = arith.constant 0 : i32
    %c0_i32_1 = arith.constant 0 : i32
    return %c0_i32, %c0_i32_0 : i32, i32
  }
  func.func @transform_3(%arg0: i32) -> (i32, i32) {
    %c0_i32 = arith.constant 0 : i32
    %c0_i32_0 = arith.constant 0 : i32
    %c0_i32_1 = arith.constant 0 : i32
    return %c0_i32, %c0_i32_0 : i32, i32
  }
  func.func @transform_4(%arg0: i32) -> (i32, i32) {
    %c0_i32 = arith.constant 0 : i32
    %c0_i32_0 = arith.constant 0 : i32
    %c0_i32_1 = arith.constant 0 : i32
    return %c0_i32, %c0_i32_0 : i32, i32
  }
  func.func @transform_5(%arg0: i32) -> (i32, i32, i32) {
    %c0_i32 = arith.constant 0 : i32
    %c0_i32_0 = arith.constant 0 : i32
    %c0_i32_1 = arith.constant 0 : i32
    return %arg0, %c0_i32, %c0_i32_0 : i32, i32, i32
  }
  func.func @transform_6(%arg0: i32) -> (i32, i32, i32) {
    %c0_i32 = arith.constant 0 : i32
    %c0_i32_0 = arith.constant 0 : i32
    %c0_i32_1 = arith.constant 0 : i32
    return %arg0, %c0_i32, %c0_i32_0 : i32, i32, i32
  }
}

module attributes {stable_mosaic.version = 11 : i64} {
  func.func @_mm_kernel_k1(%arg0: i32, %arg1: i32, %arg2: memref<32x144xbf16, #tpu.memory_space<vmem>>, %arg3: memref<144x128xbf16, #tpu.memory_space<vmem>>, %arg4: memref<32x128xbf16, #tpu.memory_space<vmem>>) attributes {dimension_semantics = [#tpu.dimension_semantics<parallel>, #tpu.dimension_semantics<parallel>], iteration_bounds = array<i64: 1, 1>, scalar_prefetch = 0 : i64, scratch_operands = 0 : i64, tpu.core_type = #tpu.core_type<tc>, window_params = [{transform_indices = @transform_0, window_bounds = array<i64: 32, 144>}, {transform_indices = @transform_1, window_bounds = array<i64: 144, 128>}, {transform_indices = @transform_2, window_bounds = array<i64: 32, 128>}]} {
    %c0 = arith.constant 0 : index
    %c0_0 = arith.constant 0 : index
    %0 = vector.load %arg2[%c0, %c0_0] : memref<32x144xbf16, #tpu.memory_space<vmem>>, vector<32x144xbf16>
    %c0_1 = arith.constant 0 : index
    %c0_2 = arith.constant 0 : index
    %1 = vector.load %arg3[%c0_1, %c0_2] : memref<144x128xbf16, #tpu.memory_space<vmem>>, vector<144x128xbf16>
    %cst = arith.constant dense<0.000000e+00> : vector<32x128xf32>
    %2 = tpu.matmul %0, %1, %cst {dimension_numbers = #tpu.dot_dimension_numbers<[1], [0], [0], [1], [0, 0, 1, 1], [], []>} : vector<32x144xbf16>, vector<144x128xbf16>, vector<32x128xf32> -> vector<32x128xf32>
    %3 = arith.truncf %2 : vector<32x128xf32> to vector<32x128xbf16>
    %c0_3 = arith.constant 0 : index
    %c0_4 = arith.constant 0 : index
    %4 = vector.load %arg4[%c0_3, %c0_4] : memref<32x128xbf16, #tpu.memory_space<vmem>>, vector<32x128xbf16>
    tpu.vector_store %arg4[%c0_3, %c0_4], %3 {strides = array<i32>} : memref<32x128xbf16, #tpu.memory_space<vmem>>, vector<32x128xbf16>,
    return
  }
  func.func @transform_0(%arg0: i32, %arg1: i32) -> (i32, i32) {
    %c0_i32 = arith.constant 0 : i32
    %c0_i32_0 = arith.constant 0 : i32
    return %arg0, %c0_i32 : i32, i32
  }
  func.func @transform_1(%arg0: i32, %arg1: i32) -> (i32, i32) {
    %c0_i32 = arith.constant 0 : i32
    %c0_i32_0 = arith.constant 0 : i32
    return %c0_i32, %arg1 : i32, i32
  }
  func.func @transform_2(%arg0: i32, %arg1: i32) -> (i32, i32) {
    %c0_i32 = arith.constant 0 : i32
    return %arg0, %arg1 : i32, i32
  }
}

module attributes {stable_mosaic.version = 11 : i64} {
  func.func @kernel(%arg0: i32, %arg1: memref<1x16x32xbf16, #tpu.memory_space<vmem>>, %arg2: memref<32x8xf32, #tpu.memory_space<vmem>>, %arg3: memref<8x32xf32, #tpu.memory_space<vmem>>, %arg4: memref<1x32xf32, #tpu.memory_space<vmem>>, %arg5: memref<1x32xf32, #tpu.memory_space<vmem>>, %arg6: memref<1x16x32xbf16, #tpu.memory_space<vmem>>) attributes {dimension_semantics = [#tpu.dimension_semantics<parallel>], iteration_bounds = array<i64: 2>, scalar_prefetch = 0 : i64, scratch_operands = 0 : i64, tpu.core_type = #tpu.core_type<tc>, window_params = [{transform_indices = @transform_0, window_bounds = array<i64: 1, 16, 32>}, {pipeline_mode = #tpu.pipeline_mode<synchronous>, transform_indices = @transform_1, window_bounds = array<i64: 32, 8>}, {pipeline_mode = #tpu.pipeline_mode<synchronous>, transform_indices = @transform_2, window_bounds = array<i64: 8, 32>}, {pipeline_mode = #tpu.pipeline_mode<synchronous>, transform_indices = @transform_3, window_bounds = array<i64: 1, 32>}, {pipeline_mode = #tpu.pipeline_mode<synchronous>, transform_indices = @transform_4, window_bounds = array<i64: 1, 32>}, {transform_indices = @transform_5, window_bounds = array<i64: 1, 16, 32>}]} {
    %c0 = arith.constant 0 : index
    %c0_0 = arith.constant 0 : index
    %c0_1 = arith.constant 0 : index
    %0 = vector.load %arg1[%c0, %c0_0, %c0_1] : memref<1x16x32xbf16, #tpu.memory_space<vmem>>, vector<1x16x32xbf16>
    %1 = vector.shape_cast %0 : vector<1x16x32xbf16> to vector<16x32xbf16>
    %2 = arith.extf %1 : vector<16x32xbf16> to vector<16x32xf32>
    %cst = arith.constant dense<0.000000e+00> : vector<32xf32>
    %3 = vector.multi_reduction <add>, %2, %cst [0] : vector<16x32xf32> to vector<32xf32>
    %4 = vector.shape_cast %3 : vector<32xf32> to vector<1x32xf32>
    %c0_2 = arith.constant 0 : index
    %c0_3 = arith.constant 0 : index
    %5 = vector.load %arg2[%c0_2, %c0_3] : memref<32x8xf32, #tpu.memory_space<vmem>>, vector<32x8xf32>
    %cst_4 = arith.constant dense<0.000000e+00> : vector<1x8xf32>
    %6 = tpu.matmul %4, %5, %cst_4 {dimension_numbers = #tpu.dot_dimension_numbers<[1], [0], [0], [1], [0, 0, 1, 1], [], []>} : vector<1x32xf32>, vector<32x8xf32>, vector<1x8xf32> -> vector<1x8xf32>
    %cst_5 = arith.constant 1.562500e-02 : f32
    %7 = vector.broadcast %cst_5 : f32 to vector<1x8xf32>
    %8 = arith.mulf %6, %7 : vector<1x8xf32>
    %c0_6 = arith.constant 0 : index
    %c0_7 = arith.constant 0 : index
    %9 = vector.load %arg3[%c0_6, %c0_7] : memref<8x32xf32, #tpu.memory_space<vmem>>, vector<8x32xf32>
    %cst_8 = arith.constant dense<0.000000e+00> : vector<1x32xf32>
    %10 = tpu.matmul %8, %9, %cst_8 {dimension_numbers = #tpu.dot_dimension_numbers<[1], [0], [0], [1], [0, 0, 1, 1], [], []>} : vector<1x8xf32>, vector<8x32xf32>, vector<1x32xf32> -> vector<1x32xf32>
    %11 = vector.broadcast %10 : vector<1x32xf32> to vector<16x32xf32>
    %12 = arith.subf %2, %11 : vector<16x32xf32>
    %13 = arith.mulf %12, %12 : vector<16x32xf32>
    %cst_9 = arith.constant dense<0.000000e+00> : vector<32xf32>
    %14 = vector.multi_reduction <add>, %13, %cst_9 [0] : vector<16x32xf32> to vector<32xf32>
    %15 = vector.shape_cast %14 : vector<32xf32> to vector<1x32xf32>
    %c0_10 = arith.constant 0 : index
    %c0_11 = arith.constant 0 : index
    %16 = vector.load %arg2[%c0_10, %c0_11] : memref<32x8xf32, #tpu.memory_space<vmem>>, vector<32x8xf32>
    %cst_12 = arith.constant dense<0.000000e+00> : vector<1x8xf32>
    %17 = tpu.matmul %15, %16, %cst_12 {dimension_numbers = #tpu.dot_dimension_numbers<[1], [0], [0], [1], [0, 0, 1, 1], [], []>} : vector<1x32xf32>, vector<32x8xf32>, vector<1x8xf32> -> vector<1x8xf32>
    %cst_13 = arith.constant 1.562500e-02 : f32
    %18 = vector.broadcast %cst_13 : f32 to vector<1x8xf32>
    %19 = arith.mulf %17, %18 : vector<1x8xf32>
    %cst_14 = arith.constant 9.99999974E-6 : f32
    %20 = vector.broadcast %cst_14 : f32 to vector<1x8xf32>
    %21 = arith.addf %19, %20 : vector<1x8xf32>
    %22 = math.rsqrt %21 : vector<1x8xf32>
    %c0_15 = arith.constant 0 : index
    %c0_16 = arith.constant 0 : index
    %23 = vector.load %arg3[%c0_15, %c0_16] : memref<8x32xf32, #tpu.memory_space<vmem>>, vector<8x32xf32>
    %cst_17 = arith.constant dense<0.000000e+00> : vector<1x32xf32>
    %24 = tpu.matmul %22, %23, %cst_17 {dimension_numbers = #tpu.dot_dimension_numbers<[1], [0], [0], [1], [0, 0, 1, 1], [], []>} : vector<1x8xf32>, vector<8x32xf32>, vector<1x32xf32> -> vector<1x32xf32>
    %25 = vector.broadcast %24 : vector<1x32xf32> to vector<16x32xf32>
    %26 = arith.mulf %12, %25 : vector<16x32xf32>
    %c0_18 = arith.constant 0 : index
    %c0_19 = arith.constant 0 : index
    %27 = vector.load %arg4[%c0_18, %c0_19] : memref<1x32xf32, #tpu.memory_space<vmem>>, vector<1x32xf32>
    %28 = vector.broadcast %27 : vector<1x32xf32> to vector<16x32xf32>
    %29 = arith.mulf %26, %28 : vector<16x32xf32>
    %c0_20 = arith.constant 0 : index
    %c0_21 = arith.constant 0 : index
    %30 = vector.load %arg5[%c0_20, %c0_21] : memref<1x32xf32, #tpu.memory_space<vmem>>, vector<1x32xf32>
    %31 = vector.broadcast %30 : vector<1x32xf32> to vector<16x32xf32>
    %32 = arith.addf %29, %31 : vector<16x32xf32>
    %cst_22 = arith.constant 0.000000e+00 : f32
    %33 = vector.broadcast %cst_22 : f32 to vector<16x32xf32>
    %34 = arith.maximumf %32, %33 : vector<16x32xf32>
    %35 = arith.truncf %34 : vector<16x32xf32> to vector<16x32xbf16>
    %c0_23 = arith.constant 0 : index
    %c0_24 = arith.constant 0 : index
    %c0_25 = arith.constant 0 : index
    %36 = vector.load %arg6[%c0_23, %c0_24, %c0_25] : memref<1x16x32xbf16, #tpu.memory_space<vmem>>, vector<1x16x32xbf16>
    %37 = vector.shape_cast %36 : vector<1x16x32xbf16> to vector<16x32xbf16>
    %38 = vector.shape_cast %35 : vector<16x32xbf16> to vector<1x16x32xbf16>
    tpu.vector_store %arg6[%c0_23, %c0_24, %c0_25], %38 {strides = array<i32>} : memref<1x16x32xbf16, #tpu.memory_space<vmem>>, vector<1x16x32xbf16>,
    return
  }
  func.func @transform_0(%arg0: i32) -> (i32, i32, i32) {
    %c0_i32 = arith.constant 0 : i32
    %c0_i32_0 = arith.constant 0 : i32
    %c0_i32_1 = arith.constant 0 : i32
    return %arg0, %c0_i32, %c0_i32_0 : i32, i32, i32
  }
  func.func @transform_1(%arg0: i32) -> (i32, i32) {
    %c0_i32 = arith.constant 0 : i32
    %c0_i32_0 = arith.constant 0 : i32
    %c0_i32_1 = arith.constant 0 : i32
    return %c0_i32, %c0_i32_0 : i32, i32
  }
  func.func @transform_2(%arg0: i32) -> (i32, i32) {
    %c0_i32 = arith.constant 0 : i32
    %c0_i32_0 = arith.constant 0 : i32
    %c0_i32_1 = arith.constant 0 : i32
    return %c0_i32, %c0_i32_0 : i32, i32
  }
  func.func @transform_3(%arg0: i32) -> (i32, i32) {
    %c0_i32 = arith.constant 0 : i32
    %c0_i32_0 = arith.constant 0 : i32
    %c0_i32_1 = arith.constant 0 : i32
    return %c0_i32, %c0_i32_0 : i32, i32
  }
  func.func @transform_4(%arg0: i32) -> (i32, i32) {
    %c0_i32 = arith.constant 0 : i32
    %c0_i32_0 = arith.constant 0 : i32
    %c0_i32_1 = arith.constant 0 : i32
    return %c0_i32, %c0_i32_0 : i32, i32
  }
  func.func @transform_5(%arg0: i32) -> (i32, i32, i32) {
    %c0_i32 = arith.constant 0 : i32
    %c0_i32_0 = arith.constant 0 : i32
    %c0_i32_1 = arith.constant 0 : i32
    return %arg0, %c0_i32, %c0_i32_0 : i32, i32, i32
  }
}

module attributes {stable_mosaic.version = 11 : i64} {
  func.func @_mm_kernel_k1(%arg0: i32, %arg1: i32, %arg2: memref<32x288xbf16, #tpu.memory_space<vmem>>, %arg3: memref<288x128xbf16, #tpu.memory_space<vmem>>, %arg4: memref<32x128xbf16, #tpu.memory_space<vmem>>) attributes {dimension_semantics = [#tpu.dimension_semantics<parallel>, #tpu.dimension_semantics<parallel>], iteration_bounds = array<i64: 1, 1>, scalar_prefetch = 0 : i64, scratch_operands = 0 : i64, tpu.core_type = #tpu.core_type<tc>, window_params = [{transform_indices = @transform_0, window_bounds = array<i64: 32, 288>}, {transform_indices = @transform_1, window_bounds = array<i64: 288, 128>}, {transform_indices = @transform_2, window_bounds = array<i64: 32, 128>}]} {
    %c0 = arith.constant 0 : index
    %c0_0 = arith.constant 0 : index
    %0 = vector.load %arg2[%c0, %c0_0] : memref<32x288xbf16, #tpu.memory_space<vmem>>, vector<32x288xbf16>
    %c0_1 = arith.constant 0 : index
    %c0_2 = arith.constant 0 : index
    %1 = vector.load %arg3[%c0_1, %c0_2] : memref<288x128xbf16, #tpu.memory_space<vmem>>, vector<288x128xbf16>
    %cst = arith.constant dense<0.000000e+00> : vector<32x128xf32>
    %2 = tpu.matmul %0, %1, %cst {dimension_numbers = #tpu.dot_dimension_numbers<[1], [0], [0], [1], [0, 0, 1, 1], [], []>} : vector<32x288xbf16>, vector<288x128xbf16>, vector<32x128xf32> -> vector<32x128xf32>
    %3 = arith.truncf %2 : vector<32x128xf32> to vector<32x128xbf16>
    %c0_3 = arith.constant 0 : index
    %c0_4 = arith.constant 0 : index
    %4 = vector.load %arg4[%c0_3, %c0_4] : memref<32x128xbf16, #tpu.memory_space<vmem>>, vector<32x128xbf16>
    tpu.vector_store %arg4[%c0_3, %c0_4], %3 {strides = array<i32>} : memref<32x128xbf16, #tpu.memory_space<vmem>>, vector<32x128xbf16>,
    return
  }
  func.func @transform_0(%arg0: i32, %arg1: i32) -> (i32, i32) {
    %c0_i32 = arith.constant 0 : i32
    %c0_i32_0 = arith.constant 0 : i32
    return %arg0, %c0_i32 : i32, i32
  }
  func.func @transform_1(%arg0: i32, %arg1: i32) -> (i32, i32) {
    %c0_i32 = arith.constant 0 : i32
    %c0_i32_0 = arith.constant 0 : i32
    return %c0_i32, %arg1 : i32, i32
  }
  func.func @transform_2(%arg0: i32, %arg1: i32) -> (i32, i32) {
    %c0_i32 = arith.constant 0 : i32
    return %arg0, %arg1 : i32, i32
  }
}

module attributes {stable_mosaic.version = 11 : i64} {
  func.func @kernel(%arg0: i32, %arg1: memref<1x16x32xbf16, #tpu.memory_space<vmem>>, %arg2: memref<32x8xf32, #tpu.memory_space<vmem>>, %arg3: memref<8x32xf32, #tpu.memory_space<vmem>>, %arg4: memref<1x32xf32, #tpu.memory_space<vmem>>, %arg5: memref<1x32xf32, #tpu.memory_space<vmem>>, %arg6: memref<1x16x32xbf16, #tpu.memory_space<vmem>>, %arg7: memref<1x16x32xbf16, #tpu.memory_space<vmem>>) attributes {dimension_semantics = [#tpu.dimension_semantics<parallel>], iteration_bounds = array<i64: 2>, scalar_prefetch = 0 : i64, scratch_operands = 0 : i64, tpu.core_type = #tpu.core_type<tc>, window_params = [{transform_indices = @transform_0, window_bounds = array<i64: 1, 16, 32>}, {pipeline_mode = #tpu.pipeline_mode<synchronous>, transform_indices = @transform_1, window_bounds = array<i64: 32, 8>}, {pipeline_mode = #tpu.pipeline_mode<synchronous>, transform_indices = @transform_2, window_bounds = array<i64: 8, 32>}, {pipeline_mode = #tpu.pipeline_mode<synchronous>, transform_indices = @transform_3, window_bounds = array<i64: 1, 32>}, {pipeline_mode = #tpu.pipeline_mode<synchronous>, transform_indices = @transform_4, window_bounds = array<i64: 1, 32>}, {transform_indices = @transform_5, window_bounds = array<i64: 1, 16, 32>}, {transform_indices = @transform_6, window_bounds = array<i64: 1, 16, 32>}]} {
    %c0 = arith.constant 0 : index
    %c0_0 = arith.constant 0 : index
    %c0_1 = arith.constant 0 : index
    %0 = vector.load %arg1[%c0, %c0_0, %c0_1] : memref<1x16x32xbf16, #tpu.memory_space<vmem>>, vector<1x16x32xbf16>
    %1 = vector.shape_cast %0 : vector<1x16x32xbf16> to vector<16x32xbf16>
    %2 = arith.extf %1 : vector<16x32xbf16> to vector<16x32xf32>
    %cst = arith.constant dense<0.000000e+00> : vector<32xf32>
    %3 = vector.multi_reduction <add>, %2, %cst [0] : vector<16x32xf32> to vector<32xf32>
    %4 = vector.shape_cast %3 : vector<32xf32> to vector<1x32xf32>
    %c0_2 = arith.constant 0 : index
    %c0_3 = arith.constant 0 : index
    %5 = vector.load %arg2[%c0_2, %c0_3] : memref<32x8xf32, #tpu.memory_space<vmem>>, vector<32x8xf32>
    %cst_4 = arith.constant dense<0.000000e+00> : vector<1x8xf32>
    %6 = tpu.matmul %4, %5, %cst_4 {dimension_numbers = #tpu.dot_dimension_numbers<[1], [0], [0], [1], [0, 0, 1, 1], [], []>} : vector<1x32xf32>, vector<32x8xf32>, vector<1x8xf32> -> vector<1x8xf32>
    %cst_5 = arith.constant 1.562500e-02 : f32
    %7 = vector.broadcast %cst_5 : f32 to vector<1x8xf32>
    %8 = arith.mulf %6, %7 : vector<1x8xf32>
    %c0_6 = arith.constant 0 : index
    %c0_7 = arith.constant 0 : index
    %9 = vector.load %arg3[%c0_6, %c0_7] : memref<8x32xf32, #tpu.memory_space<vmem>>, vector<8x32xf32>
    %cst_8 = arith.constant dense<0.000000e+00> : vector<1x32xf32>
    %10 = tpu.matmul %8, %9, %cst_8 {dimension_numbers = #tpu.dot_dimension_numbers<[1], [0], [0], [1], [0, 0, 1, 1], [], []>} : vector<1x8xf32>, vector<8x32xf32>, vector<1x32xf32> -> vector<1x32xf32>
    %11 = vector.broadcast %10 : vector<1x32xf32> to vector<16x32xf32>
    %12 = arith.subf %2, %11 : vector<16x32xf32>
    %13 = arith.mulf %12, %12 : vector<16x32xf32>
    %cst_9 = arith.constant dense<0.000000e+00> : vector<32xf32>
    %14 = vector.multi_reduction <add>, %13, %cst_9 [0] : vector<16x32xf32> to vector<32xf32>
    %15 = vector.shape_cast %14 : vector<32xf32> to vector<1x32xf32>
    %c0_10 = arith.constant 0 : index
    %c0_11 = arith.constant 0 : index
    %16 = vector.load %arg2[%c0_10, %c0_11] : memref<32x8xf32, #tpu.memory_space<vmem>>, vector<32x8xf32>
    %cst_12 = arith.constant dense<0.000000e+00> : vector<1x8xf32>
    %17 = tpu.matmul %15, %16, %cst_12 {dimension_numbers = #tpu.dot_dimension_numbers<[1], [0], [0], [1], [0, 0, 1, 1], [], []>} : vector<1x32xf32>, vector<32x8xf32>, vector<1x8xf32> -> vector<1x8xf32>
    %cst_13 = arith.constant 1.562500e-02 : f32
    %18 = vector.broadcast %cst_13 : f32 to vector<1x8xf32>
    %19 = arith.mulf %17, %18 : vector<1x8xf32>
    %cst_14 = arith.constant 9.99999974E-6 : f32
    %20 = vector.broadcast %cst_14 : f32 to vector<1x8xf32>
    %21 = arith.addf %19, %20 : vector<1x8xf32>
    %22 = math.rsqrt %21 : vector<1x8xf32>
    %c0_15 = arith.constant 0 : index
    %c0_16 = arith.constant 0 : index
    %23 = vector.load %arg3[%c0_15, %c0_16] : memref<8x32xf32, #tpu.memory_space<vmem>>, vector<8x32xf32>
    %cst_17 = arith.constant dense<0.000000e+00> : vector<1x32xf32>
    %24 = tpu.matmul %22, %23, %cst_17 {dimension_numbers = #tpu.dot_dimension_numbers<[1], [0], [0], [1], [0, 0, 1, 1], [], []>} : vector<1x8xf32>, vector<8x32xf32>, vector<1x32xf32> -> vector<1x32xf32>
    %25 = vector.broadcast %24 : vector<1x32xf32> to vector<16x32xf32>
    %26 = arith.mulf %12, %25 : vector<16x32xf32>
    %c0_18 = arith.constant 0 : index
    %c0_19 = arith.constant 0 : index
    %27 = vector.load %arg4[%c0_18, %c0_19] : memref<1x32xf32, #tpu.memory_space<vmem>>, vector<1x32xf32>
    %28 = vector.broadcast %27 : vector<1x32xf32> to vector<16x32xf32>
    %29 = arith.mulf %26, %28 : vector<16x32xf32>
    %c0_20 = arith.constant 0 : index
    %c0_21 = arith.constant 0 : index
    %30 = vector.load %arg5[%c0_20, %c0_21] : memref<1x32xf32, #tpu.memory_space<vmem>>, vector<1x32xf32>
    %31 = vector.broadcast %30 : vector<1x32xf32> to vector<16x32xf32>
    %32 = arith.addf %29, %31 : vector<16x32xf32>
    %c0_22 = arith.constant 0 : index
    %c0_23 = arith.constant 0 : index
    %c0_24 = arith.constant 0 : index
    %33 = vector.load %arg6[%c0_22, %c0_23, %c0_24] : memref<1x16x32xbf16, #tpu.memory_space<vmem>>, vector<1x16x32xbf16>
    %34 = vector.shape_cast %33 : vector<1x16x32xbf16> to vector<16x32xbf16>
    %35 = arith.extf %34 : vector<16x32xbf16> to vector<16x32xf32>
    %36 = arith.addf %32, %35 : vector<16x32xf32>
    %cst_25 = arith.constant 0.000000e+00 : f32
    %37 = vector.broadcast %cst_25 : f32 to vector<16x32xf32>
    %38 = arith.maximumf %36, %37 : vector<16x32xf32>
    %39 = arith.truncf %38 : vector<16x32xf32> to vector<16x32xbf16>
    %c0_26 = arith.constant 0 : index
    %c0_27 = arith.constant 0 : index
    %c0_28 = arith.constant 0 : index
    %40 = vector.load %arg7[%c0_26, %c0_27, %c0_28] : memref<1x16x32xbf16, #tpu.memory_space<vmem>>, vector<1x16x32xbf16>
    %41 = vector.shape_cast %40 : vector<1x16x32xbf16> to vector<16x32xbf16>
    %42 = vector.shape_cast %39 : vector<16x32xbf16> to vector<1x16x32xbf16>
    tpu.vector_store %arg7[%c0_26, %c0_27, %c0_28], %42 {strides = array<i32>} : memref<1x16x32xbf16, #tpu.memory_space<vmem>>, vector<1x16x32xbf16>,
    return
  }
  func.func @transform_0(%arg0: i32) -> (i32, i32, i32) {
    %c0_i32 = arith.constant 0 : i32
    %c0_i32_0 = arith.constant 0 : i32
    %c0_i32_1 = arith.constant 0 : i32
    return %arg0, %c0_i32, %c0_i32_0 : i32, i32, i32
  }
  func.func @transform_1(%arg0: i32) -> (i32, i32) {
    %c0_i32 = arith.constant 0 : i32
    %c0_i32_0 = arith.constant 0 : i32
    %c0_i32_1 = arith.constant 0 : i32
    return %c0_i32, %c0_i32_0 : i32, i32
  }
  func.func @transform_2(%arg0: i32) -> (i32, i32) {
    %c0_i32 = arith.constant 0 : i32
    %c0_i32_0 = arith.constant 0 : i32
    %c0_i32_1 = arith.constant 0 : i32
    return %c0_i32, %c0_i32_0 : i32, i32
  }
  func.func @transform_3(%arg0: i32) -> (i32, i32) {
    %c0_i32 = arith.constant 0 : i32
    %c0_i32_0 = arith.constant 0 : i32
    %c0_i32_1 = arith.constant 0 : i32
    return %c0_i32, %c0_i32_0 : i32, i32
  }
  func.func @transform_4(%arg0: i32) -> (i32, i32) {
    %c0_i32 = arith.constant 0 : i32
    %c0_i32_0 = arith.constant 0 : i32
    %c0_i32_1 = arith.constant 0 : i32
    return %c0_i32, %c0_i32_0 : i32, i32
  }
  func.func @transform_5(%arg0: i32) -> (i32, i32, i32) {
    %c0_i32 = arith.constant 0 : i32
    %c0_i32_0 = arith.constant 0 : i32
    %c0_i32_1 = arith.constant 0 : i32
    return %arg0, %c0_i32, %c0_i32_0 : i32, i32, i32
  }
  func.func @transform_6(%arg0: i32) -> (i32, i32, i32) {
    %c0_i32 = arith.constant 0 : i32
    %c0_i32_0 = arith.constant 0 : i32
    %c0_i32_1 = arith.constant 0 : i32
    return %arg0, %c0_i32, %c0_i32_0 : i32, i32, i32
  }
}

module attributes {stable_mosaic.version = 11 : i64} {
  func.func @_mm_kernel_k1(%arg0: i32, %arg1: i32, %arg2: memref<32x16xbf16, #tpu.memory_space<vmem>>, %arg3: memref<16x128xbf16, #tpu.memory_space<vmem>>, %arg4: memref<32x128xbf16, #tpu.memory_space<vmem>>) attributes {dimension_semantics = [#tpu.dimension_semantics<parallel>, #tpu.dimension_semantics<parallel>], iteration_bounds = array<i64: 1, 1>, scalar_prefetch = 0 : i64, scratch_operands = 0 : i64, tpu.core_type = #tpu.core_type<tc>, window_params = [{transform_indices = @transform_0, window_bounds = array<i64: 32, 16>}, {transform_indices = @transform_1, window_bounds = array<i64: 16, 128>}, {transform_indices = @transform_2, window_bounds = array<i64: 32, 128>}]} {
    %c0 = arith.constant 0 : index
    %c0_0 = arith.constant 0 : index
    %0 = vector.load %arg2[%c0, %c0_0] : memref<32x16xbf16, #tpu.memory_space<vmem>>, vector<32x16xbf16>
    %c0_1 = arith.constant 0 : index
    %c0_2 = arith.constant 0 : index
    %1 = vector.load %arg3[%c0_1, %c0_2] : memref<16x128xbf16, #tpu.memory_space<vmem>>, vector<16x128xbf16>
    %cst = arith.constant dense<0.000000e+00> : vector<32x128xf32>
    %2 = tpu.matmul %0, %1, %cst {dimension_numbers = #tpu.dot_dimension_numbers<[1], [0], [0], [1], [0, 0, 1, 1], [], []>} : vector<32x16xbf16>, vector<16x128xbf16>, vector<32x128xf32> -> vector<32x128xf32>
    %3 = arith.truncf %2 : vector<32x128xf32> to vector<32x128xbf16>
    %c0_3 = arith.constant 0 : index
    %c0_4 = arith.constant 0 : index
    %4 = vector.load %arg4[%c0_3, %c0_4] : memref<32x128xbf16, #tpu.memory_space<vmem>>, vector<32x128xbf16>
    tpu.vector_store %arg4[%c0_3, %c0_4], %3 {strides = array<i32>} : memref<32x128xbf16, #tpu.memory_space<vmem>>, vector<32x128xbf16>,
    return
  }
  func.func @transform_0(%arg0: i32, %arg1: i32) -> (i32, i32) {
    %c0_i32 = arith.constant 0 : i32
    %c0_i32_0 = arith.constant 0 : i32
    return %arg0, %c0_i32 : i32, i32
  }
  func.func @transform_1(%arg0: i32, %arg1: i32) -> (i32, i32) {
    %c0_i32 = arith.constant 0 : i32
    %c0_i32_0 = arith.constant 0 : i32
    return %c0_i32, %arg1 : i32, i32
  }
  func.func @transform_2(%arg0: i32, %arg1: i32) -> (i32, i32) {
    %c0_i32 = arith.constant 0 : i32
    return %arg0, %arg1 : i32, i32
  }
}

module attributes {stable_mosaic.version = 11 : i64} {
  func.func @kernel(%arg0: i32, %arg1: memref<1x16x32xbf16, #tpu.memory_space<vmem>>, %arg2: memref<32x8xf32, #tpu.memory_space<vmem>>, %arg3: memref<8x32xf32, #tpu.memory_space<vmem>>, %arg4: memref<1x32xf32, #tpu.memory_space<vmem>>, %arg5: memref<1x32xf32, #tpu.memory_space<vmem>>, %arg6: memref<1x16x32xbf16, #tpu.memory_space<vmem>>) attributes {dimension_semantics = [#tpu.dimension_semantics<parallel>], iteration_bounds = array<i64: 2>, scalar_prefetch = 0 : i64, scratch_operands = 0 : i64, tpu.core_type = #tpu.core_type<tc>, window_params = [{transform_indices = @transform_0, window_bounds = array<i64: 1, 16, 32>}, {pipeline_mode = #tpu.pipeline_mode<synchronous>, transform_indices = @transform_1, window_bounds = array<i64: 32, 8>}, {pipeline_mode = #tpu.pipeline_mode<synchronous>, transform_indices = @transform_2, window_bounds = array<i64: 8, 32>}, {pipeline_mode = #tpu.pipeline_mode<synchronous>, transform_indices = @transform_3, window_bounds = array<i64: 1, 32>}, {pipeline_mode = #tpu.pipeline_mode<synchronous>, transform_indices = @transform_4, window_bounds = array<i64: 1, 32>}, {transform_indices = @transform_5, window_bounds = array<i64: 1, 16, 32>}]} {
    %c0 = arith.constant 0 : index
    %c0_0 = arith.constant 0 : index
    %c0_1 = arith.constant 0 : index
    %0 = vector.load %arg1[%c0, %c0_0, %c0_1] : memref<1x16x32xbf16, #tpu.memory_space<vmem>>, vector<1x16x32xbf16>
    %1 = vector.shape_cast %0 : vector<1x16x32xbf16> to vector<16x32xbf16>
    %2 = arith.extf %1 : vector<16x32xbf16> to vector<16x32xf32>
    %cst = arith.constant dense<0.000000e+00> : vector<32xf32>
    %3 = vector.multi_reduction <add>, %2, %cst [0] : vector<16x32xf32> to vector<32xf32>
    %4 = vector.shape_cast %3 : vector<32xf32> to vector<1x32xf32>
    %c0_2 = arith.constant 0 : index
    %c0_3 = arith.constant 0 : index
    %5 = vector.load %arg2[%c0_2, %c0_3] : memref<32x8xf32, #tpu.memory_space<vmem>>, vector<32x8xf32>
    %cst_4 = arith.constant dense<0.000000e+00> : vector<1x8xf32>
    %6 = tpu.matmul %4, %5, %cst_4 {dimension_numbers = #tpu.dot_dimension_numbers<[1], [0], [0], [1], [0, 0, 1, 1], [], []>} : vector<1x32xf32>, vector<32x8xf32>, vector<1x8xf32> -> vector<1x8xf32>
    %cst_5 = arith.constant 1.562500e-02 : f32
    %7 = vector.broadcast %cst_5 : f32 to vector<1x8xf32>
    %8 = arith.mulf %6, %7 : vector<1x8xf32>
    %c0_6 = arith.constant 0 : index
    %c0_7 = arith.constant 0 : index
    %9 = vector.load %arg3[%c0_6, %c0_7] : memref<8x32xf32, #tpu.memory_space<vmem>>, vector<8x32xf32>
    %cst_8 = arith.constant dense<0.000000e+00> : vector<1x32xf32>
    %10 = tpu.matmul %8, %9, %cst_8 {dimension_numbers = #tpu.dot_dimension_numbers<[1], [0], [0], [1], [0, 0, 1, 1], [], []>} : vector<1x8xf32>, vector<8x32xf32>, vector<1x32xf32> -> vector<1x32xf32>
    %11 = vector.broadcast %10 : vector<1x32xf32> to vector<16x32xf32>
    %12 = arith.subf %2, %11 : vector<16x32xf32>
    %13 = arith.mulf %12, %12 : vector<16x32xf32>
    %cst_9 = arith.constant dense<0.000000e+00> : vector<32xf32>
    %14 = vector.multi_reduction <add>, %13, %cst_9 [0] : vector<16x32xf32> to vector<32xf32>
    %15 = vector.shape_cast %14 : vector<32xf32> to vector<1x32xf32>
    %c0_10 = arith.constant 0 : index
    %c0_11 = arith.constant 0 : index
    %16 = vector.load %arg2[%c0_10, %c0_11] : memref<32x8xf32, #tpu.memory_space<vmem>>, vector<32x8xf32>
    %cst_12 = arith.constant dense<0.000000e+00> : vector<1x8xf32>
    %17 = tpu.matmul %15, %16, %cst_12 {dimension_numbers = #tpu.dot_dimension_numbers<[1], [0], [0], [1], [0, 0, 1, 1], [], []>} : vector<1x32xf32>, vector<32x8xf32>, vector<1x8xf32> -> vector<1x8xf32>
    %cst_13 = arith.constant 1.562500e-02 : f32
    %18 = vector.broadcast %cst_13 : f32 to vector<1x8xf32>
    %19 = arith.mulf %17, %18 : vector<1x8xf32>
    %cst_14 = arith.constant 9.99999974E-6 : f32
    %20 = vector.broadcast %cst_14 : f32 to vector<1x8xf32>
    %21 = arith.addf %19, %20 : vector<1x8xf32>
    %22 = math.rsqrt %21 : vector<1x8xf32>
    %c0_15 = arith.constant 0 : index
    %c0_16 = arith.constant 0 : index
    %23 = vector.load %arg3[%c0_15, %c0_16] : memref<8x32xf32, #tpu.memory_space<vmem>>, vector<8x32xf32>
    %cst_17 = arith.constant dense<0.000000e+00> : vector<1x32xf32>
    %24 = tpu.matmul %22, %23, %cst_17 {dimension_numbers = #tpu.dot_dimension_numbers<[1], [0], [0], [1], [0, 0, 1, 1], [], []>} : vector<1x8xf32>, vector<8x32xf32>, vector<1x32xf32> -> vector<1x32xf32>
    %25 = vector.broadcast %24 : vector<1x32xf32> to vector<16x32xf32>
    %26 = arith.mulf %12, %25 : vector<16x32xf32>
    %c0_18 = arith.constant 0 : index
    %c0_19 = arith.constant 0 : index
    %27 = vector.load %arg4[%c0_18, %c0_19] : memref<1x32xf32, #tpu.memory_space<vmem>>, vector<1x32xf32>
    %28 = vector.broadcast %27 : vector<1x32xf32> to vector<16x32xf32>
    %29 = arith.mulf %26, %28 : vector<16x32xf32>
    %c0_20 = arith.constant 0 : index
    %c0_21 = arith.constant 0 : index
    %30 = vector.load %arg5[%c0_20, %c0_21] : memref<1x32xf32, #tpu.memory_space<vmem>>, vector<1x32xf32>
    %31 = vector.broadcast %30 : vector<1x32xf32> to vector<16x32xf32>
    %32 = arith.addf %29, %31 : vector<16x32xf32>
    %33 = arith.truncf %32 : vector<16x32xf32> to vector<16x32xbf16>
    %c0_22 = arith.constant 0 : index
    %c0_23 = arith.constant 0 : index
    %c0_24 = arith.constant 0 : index
    %34 = vector.load %arg6[%c0_22, %c0_23, %c0_24] : memref<1x16x32xbf16, #tpu.memory_space<vmem>>, vector<1x16x32xbf16>
    %35 = vector.shape_cast %34 : vector<1x16x32xbf16> to vector<16x32xbf16>
    %36 = vector.shape_cast %33 : vector<16x32xbf16> to vector<1x16x32xbf16>
    tpu.vector_store %arg6[%c0_22, %c0_23, %c0_24], %36 {strides = array<i32>} : memref<1x16x32xbf16, #tpu.memory_space<vmem>>, vector<1x16x32xbf16>,
    return
  }
  func.func @transform_0(%arg0: i32) -> (i32, i32, i32) {
    %c0_i32 = arith.constant 0 : i32
    %c0_i32_0 = arith.constant 0 : i32
    %c0_i32_1 = arith.constant 0 : i32
    return %arg0, %c0_i32, %c0_i32_0 : i32, i32, i32
  }
  func.func @transform_1(%arg0: i32) -> (i32, i32) {
    %c0_i32 = arith.constant 0 : i32
    %c0_i32_0 = arith.constant 0 : i32
    %c0_i32_1 = arith.constant 0 : i32
    return %c0_i32, %c0_i32_0 : i32, i32
  }
  func.func @transform_2(%arg0: i32) -> (i32, i32) {
    %c0_i32 = arith.constant 0 : i32
    %c0_i32_0 = arith.constant 0 : i32
    %c0_i32_1 = arith.constant 0 : i32
    return %c0_i32, %c0_i32_0 : i32, i32
  }
  func.func @transform_3(%arg0: i32) -> (i32, i32) {
    %c0_i32 = arith.constant 0 : i32
    %c0_i32_0 = arith.constant 0 : i32
    %c0_i32_1 = arith.constant 0 : i32
    return %c0_i32, %c0_i32_0 : i32, i32
  }
  func.func @transform_4(%arg0: i32) -> (i32, i32) {
    %c0_i32 = arith.constant 0 : i32
    %c0_i32_0 = arith.constant 0 : i32
    %c0_i32_1 = arith.constant 0 : i32
    return %c0_i32, %c0_i32_0 : i32, i32
  }
  func.func @transform_5(%arg0: i32) -> (i32, i32, i32) {
    %c0_i32 = arith.constant 0 : i32
    %c0_i32_0 = arith.constant 0 : i32
    %c0_i32_1 = arith.constant 0 : i32
    return %arg0, %c0_i32, %c0_i32_0 : i32, i32, i32
  }
}

module attributes {stable_mosaic.version = 11 : i64} {
  func.func @_mm_kernel_k1(%arg0: i32, %arg1: i32, %arg2: memref<16x288xbf16, #tpu.memory_space<vmem>>, %arg3: memref<288x128xbf16, #tpu.memory_space<vmem>>, %arg4: memref<16x128xbf16, #tpu.memory_space<vmem>>) attributes {dimension_semantics = [#tpu.dimension_semantics<parallel>, #tpu.dimension_semantics<parallel>], iteration_bounds = array<i64: 1, 1>, scalar_prefetch = 0 : i64, scratch_operands = 0 : i64, tpu.core_type = #tpu.core_type<tc>, window_params = [{transform_indices = @transform_0, window_bounds = array<i64: 16, 288>}, {transform_indices = @transform_1, window_bounds = array<i64: 288, 128>}, {transform_indices = @transform_2, window_bounds = array<i64: 16, 128>}]} {
    %c0 = arith.constant 0 : index
    %c0_0 = arith.constant 0 : index
    %0 = vector.load %arg2[%c0, %c0_0] : memref<16x288xbf16, #tpu.memory_space<vmem>>, vector<16x288xbf16>
    %c0_1 = arith.constant 0 : index
    %c0_2 = arith.constant 0 : index
    %1 = vector.load %arg3[%c0_1, %c0_2] : memref<288x128xbf16, #tpu.memory_space<vmem>>, vector<288x128xbf16>
    %cst = arith.constant dense<0.000000e+00> : vector<16x128xf32>
    %2 = tpu.matmul %0, %1, %cst {dimension_numbers = #tpu.dot_dimension_numbers<[1], [0], [0], [1], [0, 0, 1, 1], [], []>} : vector<16x288xbf16>, vector<288x128xbf16>, vector<16x128xf32> -> vector<16x128xf32>
    %3 = arith.truncf %2 : vector<16x128xf32> to vector<16x128xbf16>
    %c0_3 = arith.constant 0 : index
    %c0_4 = arith.constant 0 : index
    %4 = vector.load %arg4[%c0_3, %c0_4] : memref<16x128xbf16, #tpu.memory_space<vmem>>, vector<16x128xbf16>
    tpu.vector_store %arg4[%c0_3, %c0_4], %3 {strides = array<i32>} : memref<16x128xbf16, #tpu.memory_space<vmem>>, vector<16x128xbf16>,
    return
  }
  func.func @transform_0(%arg0: i32, %arg1: i32) -> (i32, i32) {
    %c0_i32 = arith.constant 0 : i32
    %c0_i32_0 = arith.constant 0 : i32
    return %arg0, %c0_i32 : i32, i32
  }
  func.func @transform_1(%arg0: i32, %arg1: i32) -> (i32, i32) {
    %c0_i32 = arith.constant 0 : i32
    %c0_i32_0 = arith.constant 0 : i32
    return %c0_i32, %arg1 : i32, i32
  }
  func.func @transform_2(%arg0: i32, %arg1: i32) -> (i32, i32) {
    %c0_i32 = arith.constant 0 : i32
    return %arg0, %arg1 : i32, i32
  }
}

module attributes {stable_mosaic.version = 11 : i64} {
  func.func @kernel(%arg0: i32, %arg1: memref<1x4x64xbf16, #tpu.memory_space<vmem>>, %arg2: memref<64x16xf32, #tpu.memory_space<vmem>>, %arg3: memref<16x64xf32, #tpu.memory_space<vmem>>, %arg4: memref<1x64xf32, #tpu.memory_space<vmem>>, %arg5: memref<1x64xf32, #tpu.memory_space<vmem>>, %arg6: memref<1x4x64xbf16, #tpu.memory_space<vmem>>) attributes {dimension_semantics = [#tpu.dimension_semantics<parallel>], iteration_bounds = array<i64: 2>, scalar_prefetch = 0 : i64, scratch_operands = 0 : i64, tpu.core_type = #tpu.core_type<tc>, window_params = [{transform_indices = @transform_0, window_bounds = array<i64: 1, 4, 64>}, {pipeline_mode = #tpu.pipeline_mode<synchronous>, transform_indices = @transform_1, window_bounds = array<i64: 64, 16>}, {pipeline_mode = #tpu.pipeline_mode<synchronous>, transform_indices = @transform_2, window_bounds = array<i64: 16, 64>}, {pipeline_mode = #tpu.pipeline_mode<synchronous>, transform_indices = @transform_3, window_bounds = array<i64: 1, 64>}, {pipeline_mode = #tpu.pipeline_mode<synchronous>, transform_indices = @transform_4, window_bounds = array<i64: 1, 64>}, {transform_indices = @transform_5, window_bounds = array<i64: 1, 4, 64>}]} {
    %c0 = arith.constant 0 : index
    %c0_0 = arith.constant 0 : index
    %c0_1 = arith.constant 0 : index
    %0 = vector.load %arg1[%c0, %c0_0, %c0_1] : memref<1x4x64xbf16, #tpu.memory_space<vmem>>, vector<1x4x64xbf16>
    %1 = vector.shape_cast %0 : vector<1x4x64xbf16> to vector<4x64xbf16>
    %2 = arith.extf %1 : vector<4x64xbf16> to vector<4x64xf32>
    %cst = arith.constant dense<0.000000e+00> : vector<64xf32>
    %3 = vector.multi_reduction <add>, %2, %cst [0] : vector<4x64xf32> to vector<64xf32>
    %4 = vector.shape_cast %3 : vector<64xf32> to vector<1x64xf32>
    %c0_2 = arith.constant 0 : index
    %c0_3 = arith.constant 0 : index
    %5 = vector.load %arg2[%c0_2, %c0_3] : memref<64x16xf32, #tpu.memory_space<vmem>>, vector<64x16xf32>
    %cst_4 = arith.constant dense<0.000000e+00> : vector<1x16xf32>
    %6 = tpu.matmul %4, %5, %cst_4 {dimension_numbers = #tpu.dot_dimension_numbers<[1], [0], [0], [1], [0, 0, 1, 1], [], []>} : vector<1x64xf32>, vector<64x16xf32>, vector<1x16xf32> -> vector<1x16xf32>
    %cst_5 = arith.constant 6.250000e-02 : f32
    %7 = vector.broadcast %cst_5 : f32 to vector<1x16xf32>
    %8 = arith.mulf %6, %7 : vector<1x16xf32>
    %c0_6 = arith.constant 0 : index
    %c0_7 = arith.constant 0 : index
    %9 = vector.load %arg3[%c0_6, %c0_7] : memref<16x64xf32, #tpu.memory_space<vmem>>, vector<16x64xf32>
    %cst_8 = arith.constant dense<0.000000e+00> : vector<1x64xf32>
    %10 = tpu.matmul %8, %9, %cst_8 {dimension_numbers = #tpu.dot_dimension_numbers<[1], [0], [0], [1], [0, 0, 1, 1], [], []>} : vector<1x16xf32>, vector<16x64xf32>, vector<1x64xf32> -> vector<1x64xf32>
    %11 = vector.broadcast %10 : vector<1x64xf32> to vector<4x64xf32>
    %12 = arith.subf %2, %11 : vector<4x64xf32>
    %13 = arith.mulf %12, %12 : vector<4x64xf32>
    %cst_9 = arith.constant dense<0.000000e+00> : vector<64xf32>
    %14 = vector.multi_reduction <add>, %13, %cst_9 [0] : vector<4x64xf32> to vector<64xf32>
    %15 = vector.shape_cast %14 : vector<64xf32> to vector<1x64xf32>
    %c0_10 = arith.constant 0 : index
    %c0_11 = arith.constant 0 : index
    %16 = vector.load %arg2[%c0_10, %c0_11] : memref<64x16xf32, #tpu.memory_space<vmem>>, vector<64x16xf32>
    %cst_12 = arith.constant dense<0.000000e+00> : vector<1x16xf32>
    %17 = tpu.matmul %15, %16, %cst_12 {dimension_numbers = #tpu.dot_dimension_numbers<[1], [0], [0], [1], [0, 0, 1, 1], [], []>} : vector<1x64xf32>, vector<64x16xf32>, vector<1x16xf32> -> vector<1x16xf32>
    %cst_13 = arith.constant 6.250000e-02 : f32
    %18 = vector.broadcast %cst_13 : f32 to vector<1x16xf32>
    %19 = arith.mulf %17, %18 : vector<1x16xf32>
    %cst_14 = arith.constant 9.99999974E-6 : f32
    %20 = vector.broadcast %cst_14 : f32 to vector<1x16xf32>
    %21 = arith.addf %19, %20 : vector<1x16xf32>
    %22 = math.rsqrt %21 : vector<1x16xf32>
    %c0_15 = arith.constant 0 : index
    %c0_16 = arith.constant 0 : index
    %23 = vector.load %arg3[%c0_15, %c0_16] : memref<16x64xf32, #tpu.memory_space<vmem>>, vector<16x64xf32>
    %cst_17 = arith.constant dense<0.000000e+00> : vector<1x64xf32>
    %24 = tpu.matmul %22, %23, %cst_17 {dimension_numbers = #tpu.dot_dimension_numbers<[1], [0], [0], [1], [0, 0, 1, 1], [], []>} : vector<1x16xf32>, vector<16x64xf32>, vector<1x64xf32> -> vector<1x64xf32>
    %25 = vector.broadcast %24 : vector<1x64xf32> to vector<4x64xf32>
    %26 = arith.mulf %12, %25 : vector<4x64xf32>
    %c0_18 = arith.constant 0 : index
    %c0_19 = arith.constant 0 : index
    %27 = vector.load %arg4[%c0_18, %c0_19] : memref<1x64xf32, #tpu.memory_space<vmem>>, vector<1x64xf32>
    %28 = vector.broadcast %27 : vector<1x64xf32> to vector<4x64xf32>
    %29 = arith.mulf %26, %28 : vector<4x64xf32>
    %c0_20 = arith.constant 0 : index
    %c0_21 = arith.constant 0 : index
    %30 = vector.load %arg5[%c0_20, %c0_21] : memref<1x64xf32, #tpu.memory_space<vmem>>, vector<1x64xf32>
    %31 = vector.broadcast %30 : vector<1x64xf32> to vector<4x64xf32>
    %32 = arith.addf %29, %31 : vector<4x64xf32>
    %cst_22 = arith.constant 0.000000e+00 : f32
    %33 = vector.broadcast %cst_22 : f32 to vector<4x64xf32>
    %34 = arith.maximumf %32, %33 : vector<4x64xf32>
    %35 = arith.truncf %34 : vector<4x64xf32> to vector<4x64xbf16>
    %c0_23 = arith.constant 0 : index
    %c0_24 = arith.constant 0 : index
    %c0_25 = arith.constant 0 : index
    %36 = vector.load %arg6[%c0_23, %c0_24, %c0_25] : memref<1x4x64xbf16, #tpu.memory_space<vmem>>, vector<1x4x64xbf16>
    %37 = vector.shape_cast %36 : vector<1x4x64xbf16> to vector<4x64xbf16>
    %38 = vector.shape_cast %35 : vector<4x64xbf16> to vector<1x4x64xbf16>
    tpu.vector_store %arg6[%c0_23, %c0_24, %c0_25], %38 {strides = array<i32>} : memref<1x4x64xbf16, #tpu.memory_space<vmem>>, vector<1x4x64xbf16>,
    return
  }
  func.func @transform_0(%arg0: i32) -> (i32, i32, i32) {
    %c0_i32 = arith.constant 0 : i32
    %c0_i32_0 = arith.constant 0 : i32
    %c0_i32_1 = arith.constant 0 : i32
    return %arg0, %c0_i32, %c0_i32_0 : i32, i32, i32
  }
  func.func @transform_1(%arg0: i32) -> (i32, i32) {
    %c0_i32 = arith.constant 0 : i32
    %c0_i32_0 = arith.constant 0 : i32
    %c0_i32_1 = arith.constant 0 : i32
    return %c0_i32, %c0_i32_0 : i32, i32
  }
  func.func @transform_2(%arg0: i32) -> (i32, i32) {
    %c0_i32 = arith.constant 0 : i32
    %c0_i32_0 = arith.constant 0 : i32
    %c0_i32_1 = arith.constant 0 : i32
    return %c0_i32, %c0_i32_0 : i32, i32
  }
  func.func @transform_3(%arg0: i32) -> (i32, i32) {
    %c0_i32 = arith.constant 0 : i32
    %c0_i32_0 = arith.constant 0 : i32
    %c0_i32_1 = arith.constant 0 : i32
    return %c0_i32, %c0_i32_0 : i32, i32
  }
  func.func @transform_4(%arg0: i32) -> (i32, i32) {
    %c0_i32 = arith.constant 0 : i32
    %c0_i32_0 = arith.constant 0 : i32
    %c0_i32_1 = arith.constant 0 : i32
    return %c0_i32, %c0_i32_0 : i32, i32
  }
  func.func @transform_5(%arg0: i32) -> (i32, i32, i32) {
    %c0_i32 = arith.constant 0 : i32
    %c0_i32_0 = arith.constant 0 : i32
    %c0_i32_1 = arith.constant 0 : i32
    return %arg0, %c0_i32, %c0_i32_0 : i32, i32, i32
  }
}

module attributes {stable_mosaic.version = 11 : i64} {
  func.func @_mm_kernel_k1(%arg0: i32, %arg1: i32, %arg2: memref<16x576xbf16, #tpu.memory_space<vmem>>, %arg3: memref<576x128xbf16, #tpu.memory_space<vmem>>, %arg4: memref<16x128xbf16, #tpu.memory_space<vmem>>) attributes {dimension_semantics = [#tpu.dimension_semantics<parallel>, #tpu.dimension_semantics<parallel>], iteration_bounds = array<i64: 1, 1>, scalar_prefetch = 0 : i64, scratch_operands = 0 : i64, tpu.core_type = #tpu.core_type<tc>, window_params = [{transform_indices = @transform_0, window_bounds = array<i64: 16, 576>}, {transform_indices = @transform_1, window_bounds = array<i64: 576, 128>}, {transform_indices = @transform_2, window_bounds = array<i64: 16, 128>}]} {
    %c0 = arith.constant 0 : index
    %c0_0 = arith.constant 0 : index
    %0 = vector.load %arg2[%c0, %c0_0] : memref<16x576xbf16, #tpu.memory_space<vmem>>, vector<16x576xbf16>
    %c0_1 = arith.constant 0 : index
    %c0_2 = arith.constant 0 : index
    %1 = vector.load %arg3[%c0_1, %c0_2] : memref<576x128xbf16, #tpu.memory_space<vmem>>, vector<576x128xbf16>
    %cst = arith.constant dense<0.000000e+00> : vector<16x128xf32>
    %2 = tpu.matmul %0, %1, %cst {dimension_numbers = #tpu.dot_dimension_numbers<[1], [0], [0], [1], [0, 0, 1, 1], [], []>} : vector<16x576xbf16>, vector<576x128xbf16>, vector<16x128xf32> -> vector<16x128xf32>
    %3 = arith.truncf %2 : vector<16x128xf32> to vector<16x128xbf16>
    %c0_3 = arith.constant 0 : index
    %c0_4 = arith.constant 0 : index
    %4 = vector.load %arg4[%c0_3, %c0_4] : memref<16x128xbf16, #tpu.memory_space<vmem>>, vector<16x128xbf16>
    tpu.vector_store %arg4[%c0_3, %c0_4], %3 {strides = array<i32>} : memref<16x128xbf16, #tpu.memory_space<vmem>>, vector<16x128xbf16>,
    return
  }
  func.func @transform_0(%arg0: i32, %arg1: i32) -> (i32, i32) {
    %c0_i32 = arith.constant 0 : i32
    %c0_i32_0 = arith.constant 0 : i32
    return %arg0, %c0_i32 : i32, i32
  }
  func.func @transform_1(%arg0: i32, %arg1: i32) -> (i32, i32) {
    %c0_i32 = arith.constant 0 : i32
    %c0_i32_0 = arith.constant 0 : i32
    return %c0_i32, %arg1 : i32, i32
  }
  func.func @transform_2(%arg0: i32, %arg1: i32) -> (i32, i32) {
    %c0_i32 = arith.constant 0 : i32
    return %arg0, %arg1 : i32, i32
  }
}

module attributes {stable_mosaic.version = 11 : i64} {
  func.func @_mm_kernel_k1(%arg0: i32, %arg1: i32, %arg2: memref<16x32xbf16, #tpu.memory_space<vmem>>, %arg3: memref<32x128xbf16, #tpu.memory_space<vmem>>, %arg4: memref<16x128xbf16, #tpu.memory_space<vmem>>) attributes {dimension_semantics = [#tpu.dimension_semantics<parallel>, #tpu.dimension_semantics<parallel>], iteration_bounds = array<i64: 1, 1>, scalar_prefetch = 0 : i64, scratch_operands = 0 : i64, tpu.core_type = #tpu.core_type<tc>, window_params = [{transform_indices = @transform_0, window_bounds = array<i64: 16, 32>}, {transform_indices = @transform_1, window_bounds = array<i64: 32, 128>}, {transform_indices = @transform_2, window_bounds = array<i64: 16, 128>}]} {
    %c0 = arith.constant 0 : index
    %c0_0 = arith.constant 0 : index
    %0 = vector.load %arg2[%c0, %c0_0] : memref<16x32xbf16, #tpu.memory_space<vmem>>, vector<16x32xbf16>
    %c0_1 = arith.constant 0 : index
    %c0_2 = arith.constant 0 : index
    %1 = vector.load %arg3[%c0_1, %c0_2] : memref<32x128xbf16, #tpu.memory_space<vmem>>, vector<32x128xbf16>
    %cst = arith.constant dense<0.000000e+00> : vector<16x128xf32>
    %2 = tpu.matmul %0, %1, %cst {dimension_numbers = #tpu.dot_dimension_numbers<[1], [0], [0], [1], [0, 0, 1, 1], [], []>} : vector<16x32xbf16>, vector<32x128xbf16>, vector<16x128xf32> -> vector<16x128xf32>
    %3 = arith.truncf %2 : vector<16x128xf32> to vector<16x128xbf16>
    %c0_3 = arith.constant 0 : index
    %c0_4 = arith.constant 0 : index
    %4 = vector.load %arg4[%c0_3, %c0_4] : memref<16x128xbf16, #tpu.memory_space<vmem>>, vector<16x128xbf16>
    tpu.vector_store %arg4[%c0_3, %c0_4], %3 {strides = array<i32>} : memref<16x128xbf16, #tpu.memory_space<vmem>>, vector<16x128xbf16>,
    return
  }
  func.func @transform_0(%arg0: i32, %arg1: i32) -> (i32, i32) {
    %c0_i32 = arith.constant 0 : i32
    %c0_i32_0 = arith.constant 0 : i32
    return %arg0, %c0_i32 : i32, i32
  }
  func.func @transform_1(%arg0: i32, %arg1: i32) -> (i32, i32) {
    %c0_i32 = arith.constant 0 : i32
    %c0_i32_0 = arith.constant 0 : i32
    return %c0_i32, %arg1 : i32, i32
  }
  func.func @transform_2(%arg0: i32, %arg1: i32) -> (i32, i32) {
    %c0_i32 = arith.constant 0 : i32
    return %arg0, %arg1 : i32, i32
  }
}

module attributes {stable_mosaic.version = 11 : i64} {
  func.func @kernel(%arg0: i32, %arg1: memref<1x4x64xbf16, #tpu.memory_space<vmem>>, %arg2: memref<64x16xf32, #tpu.memory_space<vmem>>, %arg3: memref<16x64xf32, #tpu.memory_space<vmem>>, %arg4: memref<1x64xf32, #tpu.memory_space<vmem>>, %arg5: memref<1x64xf32, #tpu.memory_space<vmem>>, %arg6: memref<1x4x64xbf16, #tpu.memory_space<vmem>>, %arg7: memref<1x4x64xbf16, #tpu.memory_space<vmem>>) attributes {dimension_semantics = [#tpu.dimension_semantics<parallel>], iteration_bounds = array<i64: 2>, scalar_prefetch = 0 : i64, scratch_operands = 0 : i64, tpu.core_type = #tpu.core_type<tc>, window_params = [{transform_indices = @transform_0, window_bounds = array<i64: 1, 4, 64>}, {pipeline_mode = #tpu.pipeline_mode<synchronous>, transform_indices = @transform_1, window_bounds = array<i64: 64, 16>}, {pipeline_mode = #tpu.pipeline_mode<synchronous>, transform_indices = @transform_2, window_bounds = array<i64: 16, 64>}, {pipeline_mode = #tpu.pipeline_mode<synchronous>, transform_indices = @transform_3, window_bounds = array<i64: 1, 64>}, {pipeline_mode = #tpu.pipeline_mode<synchronous>, transform_indices = @transform_4, window_bounds = array<i64: 1, 64>}, {transform_indices = @transform_5, window_bounds = array<i64: 1, 4, 64>}, {transform_indices = @transform_6, window_bounds = array<i64: 1, 4, 64>}]} {
    %c0 = arith.constant 0 : index
    %c0_0 = arith.constant 0 : index
    %c0_1 = arith.constant 0 : index
    %0 = vector.load %arg1[%c0, %c0_0, %c0_1] : memref<1x4x64xbf16, #tpu.memory_space<vmem>>, vector<1x4x64xbf16>
    %1 = vector.shape_cast %0 : vector<1x4x64xbf16> to vector<4x64xbf16>
    %2 = arith.extf %1 : vector<4x64xbf16> to vector<4x64xf32>
    %cst = arith.constant dense<0.000000e+00> : vector<64xf32>
    %3 = vector.multi_reduction <add>, %2, %cst [0] : vector<4x64xf32> to vector<64xf32>
    %4 = vector.shape_cast %3 : vector<64xf32> to vector<1x64xf32>
    %c0_2 = arith.constant 0 : index
    %c0_3 = arith.constant 0 : index
    %5 = vector.load %arg2[%c0_2, %c0_3] : memref<64x16xf32, #tpu.memory_space<vmem>>, vector<64x16xf32>
    %cst_4 = arith.constant dense<0.000000e+00> : vector<1x16xf32>
    %6 = tpu.matmul %4, %5, %cst_4 {dimension_numbers = #tpu.dot_dimension_numbers<[1], [0], [0], [1], [0, 0, 1, 1], [], []>} : vector<1x64xf32>, vector<64x16xf32>, vector<1x16xf32> -> vector<1x16xf32>
    %cst_5 = arith.constant 6.250000e-02 : f32
    %7 = vector.broadcast %cst_5 : f32 to vector<1x16xf32>
    %8 = arith.mulf %6, %7 : vector<1x16xf32>
    %c0_6 = arith.constant 0 : index
    %c0_7 = arith.constant 0 : index
    %9 = vector.load %arg3[%c0_6, %c0_7] : memref<16x64xf32, #tpu.memory_space<vmem>>, vector<16x64xf32>
    %cst_8 = arith.constant dense<0.000000e+00> : vector<1x64xf32>
    %10 = tpu.matmul %8, %9, %cst_8 {dimension_numbers = #tpu.dot_dimension_numbers<[1], [0], [0], [1], [0, 0, 1, 1], [], []>} : vector<1x16xf32>, vector<16x64xf32>, vector<1x64xf32> -> vector<1x64xf32>
    %11 = vector.broadcast %10 : vector<1x64xf32> to vector<4x64xf32>
    %12 = arith.subf %2, %11 : vector<4x64xf32>
    %13 = arith.mulf %12, %12 : vector<4x64xf32>
    %cst_9 = arith.constant dense<0.000000e+00> : vector<64xf32>
    %14 = vector.multi_reduction <add>, %13, %cst_9 [0] : vector<4x64xf32> to vector<64xf32>
    %15 = vector.shape_cast %14 : vector<64xf32> to vector<1x64xf32>
    %c0_10 = arith.constant 0 : index
    %c0_11 = arith.constant 0 : index
    %16 = vector.load %arg2[%c0_10, %c0_11] : memref<64x16xf32, #tpu.memory_space<vmem>>, vector<64x16xf32>
    %cst_12 = arith.constant dense<0.000000e+00> : vector<1x16xf32>
    %17 = tpu.matmul %15, %16, %cst_12 {dimension_numbers = #tpu.dot_dimension_numbers<[1], [0], [0], [1], [0, 0, 1, 1], [], []>} : vector<1x64xf32>, vector<64x16xf32>, vector<1x16xf32> -> vector<1x16xf32>
    %cst_13 = arith.constant 6.250000e-02 : f32
    %18 = vector.broadcast %cst_13 : f32 to vector<1x16xf32>
    %19 = arith.mulf %17, %18 : vector<1x16xf32>
    %cst_14 = arith.constant 9.99999974E-6 : f32
    %20 = vector.broadcast %cst_14 : f32 to vector<1x16xf32>
    %21 = arith.addf %19, %20 : vector<1x16xf32>
    %22 = math.rsqrt %21 : vector<1x16xf32>
    %c0_15 = arith.constant 0 : index
    %c0_16 = arith.constant 0 : index
    %23 = vector.load %arg3[%c0_15, %c0_16] : memref<16x64xf32, #tpu.memory_space<vmem>>, vector<16x64xf32>
    %cst_17 = arith.constant dense<0.000000e+00> : vector<1x64xf32>
    %24 = tpu.matmul %22, %23, %cst_17 {dimension_numbers = #tpu.dot_dimension_numbers<[1], [0], [0], [1], [0, 0, 1, 1], [], []>} : vector<1x16xf32>, vector<16x64xf32>, vector<1x64xf32> -> vector<1x64xf32>
    %25 = vector.broadcast %24 : vector<1x64xf32> to vector<4x64xf32>
    %26 = arith.mulf %12, %25 : vector<4x64xf32>
    %c0_18 = arith.constant 0 : index
    %c0_19 = arith.constant 0 : index
    %27 = vector.load %arg4[%c0_18, %c0_19] : memref<1x64xf32, #tpu.memory_space<vmem>>, vector<1x64xf32>
    %28 = vector.broadcast %27 : vector<1x64xf32> to vector<4x64xf32>
    %29 = arith.mulf %26, %28 : vector<4x64xf32>
    %c0_20 = arith.constant 0 : index
    %c0_21 = arith.constant 0 : index
    %30 = vector.load %arg5[%c0_20, %c0_21] : memref<1x64xf32, #tpu.memory_space<vmem>>, vector<1x64xf32>
    %31 = vector.broadcast %30 : vector<1x64xf32> to vector<4x64xf32>
    %32 = arith.addf %29, %31 : vector<4x64xf32>
    %c0_22 = arith.constant 0 : index
    %c0_23 = arith.constant 0 : index
    %c0_24 = arith.constant 0 : index
    %33 = vector.load %arg6[%c0_22, %c0_23, %c0_24] : memref<1x4x64xbf16, #tpu.memory_space<vmem>>, vector<1x4x64xbf16>
    %34 = vector.shape_cast %33 : vector<1x4x64xbf16> to vector<4x64xbf16>
    %35 = arith.extf %34 : vector<4x64xbf16> to vector<4x64xf32>
    %36 = arith.addf %32, %35 : vector<4x64xf32>
    %cst_25 = arith.constant 0.000000e+00 : f32
    %37 = vector.broadcast %cst_25 : f32 to vector<4x64xf32>
    %38 = arith.maximumf %36, %37 : vector<4x64xf32>
    %39 = arith.truncf %38 : vector<4x64xf32> to vector<4x64xbf16>
    %c0_26 = arith.constant 0 : index
    %c0_27 = arith.constant 0 : index
    %c0_28 = arith.constant 0 : index
    %40 = vector.load %arg7[%c0_26, %c0_27, %c0_28] : memref<1x4x64xbf16, #tpu.memory_space<vmem>>, vector<1x4x64xbf16>
    %41 = vector.shape_cast %40 : vector<1x4x64xbf16> to vector<4x64xbf16>
    %42 = vector.shape_cast %39 : vector<4x64xbf16> to vector<1x4x64xbf16>
    tpu.vector_store %arg7[%c0_26, %c0_27, %c0_28], %42 {strides = array<i32>} : memref<1x4x64xbf16, #tpu.memory_space<vmem>>, vector<1x4x64xbf16>,
    return
  }
  func.func @transform_0(%arg0: i32) -> (i32, i32, i32) {
    %c0_i32 = arith.constant 0 : i32
    %c0_i32_0 = arith.constant 0 : i32
    %c0_i32_1 = arith.constant 0 : i32
    return %arg0, %c0_i32, %c0_i32_0 : i32, i32, i32
  }
  func.func @transform_1(%arg0: i32) -> (i32, i32) {
    %c0_i32 = arith.constant 0 : i32
    %c0_i32_0 = arith.constant 0 : i32
    %c0_i32_1 = arith.constant 0 : i32
    return %c0_i32, %c0_i32_0 : i32, i32
  }
  func.func @transform_2(%arg0: i32) -> (i32, i32) {
    %c0_i32 = arith.constant 0 : i32
    %c0_i32_0 = arith.constant 0 : i32
    %c0_i32_1 = arith.constant 0 : i32
    return %c0_i32, %c0_i32_0 : i32, i32
  }
  func.func @transform_3(%arg0: i32) -> (i32, i32) {
    %c0_i32 = arith.constant 0 : i32
    %c0_i32_0 = arith.constant 0 : i32
    %c0_i32_1 = arith.constant 0 : i32
    return %c0_i32, %c0_i32_0 : i32, i32
  }
  func.func @transform_4(%arg0: i32) -> (i32, i32) {
    %c0_i32 = arith.constant 0 : i32
    %c0_i32_0 = arith.constant 0 : i32
    %c0_i32_1 = arith.constant 0 : i32
    return %c0_i32, %c0_i32_0 : i32, i32
  }
  func.func @transform_5(%arg0: i32) -> (i32, i32, i32) {
    %c0_i32 = arith.constant 0 : i32
    %c0_i32_0 = arith.constant 0 : i32
    %c0_i32_1 = arith.constant 0 : i32
    return %arg0, %c0_i32, %c0_i32_0 : i32, i32, i32
  }
  func.func @transform_6(%arg0: i32) -> (i32, i32, i32) {
    %c0_i32 = arith.constant 0 : i32
    %c0_i32_0 = arith.constant 0 : i32
    %c0_i32_1 = arith.constant 0 : i32
    return %arg0, %c0_i32, %c0_i32_0 : i32, i32, i32
  }
}

module attributes {stable_mosaic.version = 11 : i64} {
  func.func @kernel(%arg0: i32, %arg1: memref<1x4x64xbf16, #tpu.memory_space<vmem>>, %arg2: memref<64x16xf32, #tpu.memory_space<vmem>>, %arg3: memref<16x64xf32, #tpu.memory_space<vmem>>, %arg4: memref<1x64xf32, #tpu.memory_space<vmem>>, %arg5: memref<1x64xf32, #tpu.memory_space<vmem>>, %arg6: memref<1x4x64xbf16, #tpu.memory_space<vmem>>) attributes {dimension_semantics = [#tpu.dimension_semantics<parallel>], iteration_bounds = array<i64: 2>, scalar_prefetch = 0 : i64, scratch_operands = 0 : i64, tpu.core_type = #tpu.core_type<tc>, window_params = [{transform_indices = @transform_0, window_bounds = array<i64: 1, 4, 64>}, {pipeline_mode = #tpu.pipeline_mode<synchronous>, transform_indices = @transform_1, window_bounds = array<i64: 64, 16>}, {pipeline_mode = #tpu.pipeline_mode<synchronous>, transform_indices = @transform_2, window_bounds = array<i64: 16, 64>}, {pipeline_mode = #tpu.pipeline_mode<synchronous>, transform_indices = @transform_3, window_bounds = array<i64: 1, 64>}, {pipeline_mode = #tpu.pipeline_mode<synchronous>, transform_indices = @transform_4, window_bounds = array<i64: 1, 64>}, {transform_indices = @transform_5, window_bounds = array<i64: 1, 4, 64>}]} {
    %c0 = arith.constant 0 : index
    %c0_0 = arith.constant 0 : index
    %c0_1 = arith.constant 0 : index
    %0 = vector.load %arg1[%c0, %c0_0, %c0_1] : memref<1x4x64xbf16, #tpu.memory_space<vmem>>, vector<1x4x64xbf16>
    %1 = vector.shape_cast %0 : vector<1x4x64xbf16> to vector<4x64xbf16>
    %2 = arith.extf %1 : vector<4x64xbf16> to vector<4x64xf32>
    %cst = arith.constant dense<0.000000e+00> : vector<64xf32>
    %3 = vector.multi_reduction <add>, %2, %cst [0] : vector<4x64xf32> to vector<64xf32>
    %4 = vector.shape_cast %3 : vector<64xf32> to vector<1x64xf32>
    %c0_2 = arith.constant 0 : index
    %c0_3 = arith.constant 0 : index
    %5 = vector.load %arg2[%c0_2, %c0_3] : memref<64x16xf32, #tpu.memory_space<vmem>>, vector<64x16xf32>
    %cst_4 = arith.constant dense<0.000000e+00> : vector<1x16xf32>
    %6 = tpu.matmul %4, %5, %cst_4 {dimension_numbers = #tpu.dot_dimension_numbers<[1], [0], [0], [1], [0, 0, 1, 1], [], []>} : vector<1x64xf32>, vector<64x16xf32>, vector<1x16xf32> -> vector<1x16xf32>
    %cst_5 = arith.constant 6.250000e-02 : f32
    %7 = vector.broadcast %cst_5 : f32 to vector<1x16xf32>
    %8 = arith.mulf %6, %7 : vector<1x16xf32>
    %c0_6 = arith.constant 0 : index
    %c0_7 = arith.constant 0 : index
    %9 = vector.load %arg3[%c0_6, %c0_7] : memref<16x64xf32, #tpu.memory_space<vmem>>, vector<16x64xf32>
    %cst_8 = arith.constant dense<0.000000e+00> : vector<1x64xf32>
    %10 = tpu.matmul %8, %9, %cst_8 {dimension_numbers = #tpu.dot_dimension_numbers<[1], [0], [0], [1], [0, 0, 1, 1], [], []>} : vector<1x16xf32>, vector<16x64xf32>, vector<1x64xf32> -> vector<1x64xf32>
    %11 = vector.broadcast %10 : vector<1x64xf32> to vector<4x64xf32>
    %12 = arith.subf %2, %11 : vector<4x64xf32>
    %13 = arith.mulf %12, %12 : vector<4x64xf32>
    %cst_9 = arith.constant dense<0.000000e+00> : vector<64xf32>
    %14 = vector.multi_reduction <add>, %13, %cst_9 [0] : vector<4x64xf32> to vector<64xf32>
    %15 = vector.shape_cast %14 : vector<64xf32> to vector<1x64xf32>
    %c0_10 = arith.constant 0 : index
    %c0_11 = arith.constant 0 : index
    %16 = vector.load %arg2[%c0_10, %c0_11] : memref<64x16xf32, #tpu.memory_space<vmem>>, vector<64x16xf32>
    %cst_12 = arith.constant dense<0.000000e+00> : vector<1x16xf32>
    %17 = tpu.matmul %15, %16, %cst_12 {dimension_numbers = #tpu.dot_dimension_numbers<[1], [0], [0], [1], [0, 0, 1, 1], [], []>} : vector<1x64xf32>, vector<64x16xf32>, vector<1x16xf32> -> vector<1x16xf32>
    %cst_13 = arith.constant 6.250000e-02 : f32
    %18 = vector.broadcast %cst_13 : f32 to vector<1x16xf32>
    %19 = arith.mulf %17, %18 : vector<1x16xf32>
    %cst_14 = arith.constant 9.99999974E-6 : f32
    %20 = vector.broadcast %cst_14 : f32 to vector<1x16xf32>
    %21 = arith.addf %19, %20 : vector<1x16xf32>
    %22 = math.rsqrt %21 : vector<1x16xf32>
    %c0_15 = arith.constant 0 : index
    %c0_16 = arith.constant 0 : index
    %23 = vector.load %arg3[%c0_15, %c0_16] : memref<16x64xf32, #tpu.memory_space<vmem>>, vector<16x64xf32>
    %cst_17 = arith.constant dense<0.000000e+00> : vector<1x64xf32>
    %24 = tpu.matmul %22, %23, %cst_17 {dimension_numbers = #tpu.dot_dimension_numbers<[1], [0], [0], [1], [0, 0, 1, 1], [], []>} : vector<1x16xf32>, vector<16x64xf32>, vector<1x64xf32> -> vector<1x64xf32>
    %25 = vector.broadcast %24 : vector<1x64xf32> to vector<4x64xf32>
    %26 = arith.mulf %12, %25 : vector<4x64xf32>
    %c0_18 = arith.constant 0 : index
    %c0_19 = arith.constant 0 : index
    %27 = vector.load %arg4[%c0_18, %c0_19] : memref<1x64xf32, #tpu.memory_space<vmem>>, vector<1x64xf32>
    %28 = vector.broadcast %27 : vector<1x64xf32> to vector<4x64xf32>
    %29 = arith.mulf %26, %28 : vector<4x64xf32>
    %c0_20 = arith.constant 0 : index
    %c0_21 = arith.constant 0 : index
    %30 = vector.load %arg5[%c0_20, %c0_21] : memref<1x64xf32, #tpu.memory_space<vmem>>, vector<1x64xf32>
    %31 = vector.broadcast %30 : vector<1x64xf32> to vector<4x64xf32>
    %32 = arith.addf %29, %31 : vector<4x64xf32>
    %33 = arith.truncf %32 : vector<4x64xf32> to vector<4x64xbf16>
    %c0_22 = arith.constant 0 : index
    %c0_23 = arith.constant 0 : index
    %c0_24 = arith.constant 0 : index
    %34 = vector.load %arg6[%c0_22, %c0_23, %c0_24] : memref<1x4x64xbf16, #tpu.memory_space<vmem>>, vector<1x4x64xbf16>
    %35 = vector.shape_cast %34 : vector<1x4x64xbf16> to vector<4x64xbf16>
    %36 = vector.shape_cast %33 : vector<4x64xbf16> to vector<1x4x64xbf16>
    tpu.vector_store %arg6[%c0_22, %c0_23, %c0_24], %36 {strides = array<i32>} : memref<1x4x64xbf16, #tpu.memory_space<vmem>>, vector<1x4x64xbf16>,
    return
  }
  func.func @transform_0(%arg0: i32) -> (i32, i32, i32) {
    %c0_i32 = arith.constant 0 : i32
    %c0_i32_0 = arith.constant 0 : i32
    %c0_i32_1 = arith.constant 0 : i32
    return %arg0, %c0_i32, %c0_i32_0 : i32, i32, i32
  }
  func.func @transform_1(%arg0: i32) -> (i32, i32) {
    %c0_i32 = arith.constant 0 : i32
    %c0_i32_0 = arith.constant 0 : i32
    %c0_i32_1 = arith.constant 0 : i32
    return %c0_i32, %c0_i32_0 : i32, i32
  }
  func.func @transform_2(%arg0: i32) -> (i32, i32) {
    %c0_i32 = arith.constant 0 : i32
    %c0_i32_0 = arith.constant 0 : i32
    %c0_i32_1 = arith.constant 0 : i32
    return %c0_i32, %c0_i32_0 : i32, i32
  }
  func.func @transform_3(%arg0: i32) -> (i32, i32) {
    %c0_i32 = arith.constant 0 : i32
    %c0_i32_0 = arith.constant 0 : i32
    %c0_i32_1 = arith.constant 0 : i32
    return %c0_i32, %c0_i32_0 : i32, i32
  }
  func.func @transform_4(%arg0: i32) -> (i32, i32) {
    %c0_i32 = arith.constant 0 : i32
    %c0_i32_0 = arith.constant 0 : i32
    %c0_i32_1 = arith.constant 0 : i32
    return %c0_i32, %c0_i32_0 : i32, i32
  }
  func.func @transform_5(%arg0: i32) -> (i32, i32, i32) {
    %c0_i32 = arith.constant 0 : i32
    %c0_i32_0 = arith.constant 0 : i32
    %c0_i32_1 = arith.constant 0 : i32
    return %arg0, %c0_i32, %c0_i32_0 : i32, i32, i32
  }
}

module attributes {stable_mosaic.version = 11 : i64} {
  func.func @kernel(%arg0: i32, %arg1: memref<1x4x64xbf16, #tpu.memory_space<vmem>>, %arg2: memref<64x8xf32, #tpu.memory_space<vmem>>, %arg3: memref<8x64xf32, #tpu.memory_space<vmem>>, %arg4: memref<1x64xf32, #tpu.memory_space<vmem>>, %arg5: memref<1x64xf32, #tpu.memory_space<vmem>>, %arg6: memref<1x4x64xbf16, #tpu.memory_space<vmem>>) attributes {dimension_semantics = [#tpu.dimension_semantics<parallel>], iteration_bounds = array<i64: 2>, scalar_prefetch = 0 : i64, scratch_operands = 0 : i64, tpu.core_type = #tpu.core_type<tc>, window_params = [{transform_indices = @transform_0, window_bounds = array<i64: 1, 4, 64>}, {pipeline_mode = #tpu.pipeline_mode<synchronous>, transform_indices = @transform_1, window_bounds = array<i64: 64, 8>}, {pipeline_mode = #tpu.pipeline_mode<synchronous>, transform_indices = @transform_2, window_bounds = array<i64: 8, 64>}, {pipeline_mode = #tpu.pipeline_mode<synchronous>, transform_indices = @transform_3, window_bounds = array<i64: 1, 64>}, {pipeline_mode = #tpu.pipeline_mode<synchronous>, transform_indices = @transform_4, window_bounds = array<i64: 1, 64>}, {transform_indices = @transform_5, window_bounds = array<i64: 1, 4, 64>}]} {
    %c0 = arith.constant 0 : index
    %c0_0 = arith.constant 0 : index
    %c0_1 = arith.constant 0 : index
    %0 = vector.load %arg1[%c0, %c0_0, %c0_1] : memref<1x4x64xbf16, #tpu.memory_space<vmem>>, vector<1x4x64xbf16>
    %1 = vector.shape_cast %0 : vector<1x4x64xbf16> to vector<4x64xbf16>
    %2 = arith.extf %1 : vector<4x64xbf16> to vector<4x64xf32>
    %cst = arith.constant dense<0.000000e+00> : vector<64xf32>
    %3 = vector.multi_reduction <add>, %2, %cst [0] : vector<4x64xf32> to vector<64xf32>
    %4 = vector.shape_cast %3 : vector<64xf32> to vector<1x64xf32>
    %c0_2 = arith.constant 0 : index
    %c0_3 = arith.constant 0 : index
    %5 = vector.load %arg2[%c0_2, %c0_3] : memref<64x8xf32, #tpu.memory_space<vmem>>, vector<64x8xf32>
    %cst_4 = arith.constant dense<0.000000e+00> : vector<1x8xf32>
    %6 = tpu.matmul %4, %5, %cst_4 {dimension_numbers = #tpu.dot_dimension_numbers<[1], [0], [0], [1], [0, 0, 1, 1], [], []>} : vector<1x64xf32>, vector<64x8xf32>, vector<1x8xf32> -> vector<1x8xf32>
    %cst_5 = arith.constant 3.125000e-02 : f32
    %7 = vector.broadcast %cst_5 : f32 to vector<1x8xf32>
    %8 = arith.mulf %6, %7 : vector<1x8xf32>
    %c0_6 = arith.constant 0 : index
    %c0_7 = arith.constant 0 : index
    %9 = vector.load %arg3[%c0_6, %c0_7] : memref<8x64xf32, #tpu.memory_space<vmem>>, vector<8x64xf32>
    %cst_8 = arith.constant dense<0.000000e+00> : vector<1x64xf32>
    %10 = tpu.matmul %8, %9, %cst_8 {dimension_numbers = #tpu.dot_dimension_numbers<[1], [0], [0], [1], [0, 0, 1, 1], [], []>} : vector<1x8xf32>, vector<8x64xf32>, vector<1x64xf32> -> vector<1x64xf32>
    %11 = vector.broadcast %10 : vector<1x64xf32> to vector<4x64xf32>
    %12 = arith.subf %2, %11 : vector<4x64xf32>
    %13 = arith.mulf %12, %12 : vector<4x64xf32>
    %cst_9 = arith.constant dense<0.000000e+00> : vector<64xf32>
    %14 = vector.multi_reduction <add>, %13, %cst_9 [0] : vector<4x64xf32> to vector<64xf32>
    %15 = vector.shape_cast %14 : vector<64xf32> to vector<1x64xf32>
    %c0_10 = arith.constant 0 : index
    %c0_11 = arith.constant 0 : index
    %16 = vector.load %arg2[%c0_10, %c0_11] : memref<64x8xf32, #tpu.memory_space<vmem>>, vector<64x8xf32>
    %cst_12 = arith.constant dense<0.000000e+00> : vector<1x8xf32>
    %17 = tpu.matmul %15, %16, %cst_12 {dimension_numbers = #tpu.dot_dimension_numbers<[1], [0], [0], [1], [0, 0, 1, 1], [], []>} : vector<1x64xf32>, vector<64x8xf32>, vector<1x8xf32> -> vector<1x8xf32>
    %cst_13 = arith.constant 3.125000e-02 : f32
    %18 = vector.broadcast %cst_13 : f32 to vector<1x8xf32>
    %19 = arith.mulf %17, %18 : vector<1x8xf32>
    %cst_14 = arith.constant 9.99999974E-6 : f32
    %20 = vector.broadcast %cst_14 : f32 to vector<1x8xf32>
    %21 = arith.addf %19, %20 : vector<1x8xf32>
    %22 = math.rsqrt %21 : vector<1x8xf32>
    %c0_15 = arith.constant 0 : index
    %c0_16 = arith.constant 0 : index
    %23 = vector.load %arg3[%c0_15, %c0_16] : memref<8x64xf32, #tpu.memory_space<vmem>>, vector<8x64xf32>
    %cst_17 = arith.constant dense<0.000000e+00> : vector<1x64xf32>
    %24 = tpu.matmul %22, %23, %cst_17 {dimension_numbers = #tpu.dot_dimension_numbers<[1], [0], [0], [1], [0, 0, 1, 1], [], []>} : vector<1x8xf32>, vector<8x64xf32>, vector<1x64xf32> -> vector<1x64xf32>
    %25 = vector.broadcast %24 : vector<1x64xf32> to vector<4x64xf32>
    %26 = arith.mulf %12, %25 : vector<4x64xf32>
    %c0_18 = arith.constant 0 : index
    %c0_19 = arith.constant 0 : index
    %27 = vector.load %arg4[%c0_18, %c0_19] : memref<1x64xf32, #tpu.memory_space<vmem>>, vector<1x64xf32>
    %28 = vector.broadcast %27 : vector<1x64xf32> to vector<4x64xf32>
    %29 = arith.mulf %26, %28 : vector<4x64xf32>
    %c0_20 = arith.constant 0 : index
    %c0_21 = arith.constant 0 : index
    %30 = vector.load %arg5[%c0_20, %c0_21] : memref<1x64xf32, #tpu.memory_space<vmem>>, vector<1x64xf32>
    %31 = vector.broadcast %30 : vector<1x64xf32> to vector<4x64xf32>
    %32 = arith.addf %29, %31 : vector<4x64xf32>
    %cst_22 = arith.constant 0.000000e+00 : f32
    %33 = vector.broadcast %cst_22 : f32 to vector<4x64xf32>
    %34 = arith.maximumf %32, %33 : vector<4x64xf32>
    %35 = arith.truncf %34 : vector<4x64xf32> to vector<4x64xbf16>
    %c0_23 = arith.constant 0 : index
    %c0_24 = arith.constant 0 : index
    %c0_25 = arith.constant 0 : index
    %36 = vector.load %arg6[%c0_23, %c0_24, %c0_25] : memref<1x4x64xbf16, #tpu.memory_space<vmem>>, vector<1x4x64xbf16>
    %37 = vector.shape_cast %36 : vector<1x4x64xbf16> to vector<4x64xbf16>
    %38 = vector.shape_cast %35 : vector<4x64xbf16> to vector<1x4x64xbf16>
    tpu.vector_store %arg6[%c0_23, %c0_24, %c0_25], %38 {strides = array<i32>} : memref<1x4x64xbf16, #tpu.memory_space<vmem>>, vector<1x4x64xbf16>,
    return
  }
  func.func @transform_0(%arg0: i32) -> (i32, i32, i32) {
    %c0_i32 = arith.constant 0 : i32
    %c0_i32_0 = arith.constant 0 : i32
    %c0_i32_1 = arith.constant 0 : i32
    return %arg0, %c0_i32, %c0_i32_0 : i32, i32, i32
  }
  func.func @transform_1(%arg0: i32) -> (i32, i32) {
    %c0_i32 = arith.constant 0 : i32
    %c0_i32_0 = arith.constant 0 : i32
    %c0_i32_1 = arith.constant 0 : i32
    return %c0_i32, %c0_i32_0 : i32, i32
  }
  func.func @transform_2(%arg0: i32) -> (i32, i32) {
    %c0_i32 = arith.constant 0 : i32
    %c0_i32_0 = arith.constant 0 : i32
    %c0_i32_1 = arith.constant 0 : i32
    return %c0_i32, %c0_i32_0 : i32, i32
  }
  func.func @transform_3(%arg0: i32) -> (i32, i32) {
    %c0_i32 = arith.constant 0 : i32
    %c0_i32_0 = arith.constant 0 : i32
    %c0_i32_1 = arith.constant 0 : i32
    return %c0_i32, %c0_i32_0 : i32, i32
  }
  func.func @transform_4(%arg0: i32) -> (i32, i32) {
    %c0_i32 = arith.constant 0 : i32
    %c0_i32_0 = arith.constant 0 : i32
    %c0_i32_1 = arith.constant 0 : i32
    return %c0_i32, %c0_i32_0 : i32, i32
  }
  func.func @transform_5(%arg0: i32) -> (i32, i32, i32) {
    %c0_i32 = arith.constant 0 : i32
    %c0_i32_0 = arith.constant 0 : i32
    %c0_i32_1 = arith.constant 0 : i32
    return %arg0, %c0_i32, %c0_i32_0 : i32, i32, i32
  }
}

module attributes {stable_mosaic.version = 11 : i64} {
  func.func @_mm_bias_kernel_k1(%arg0: i32, %arg1: i32, %arg2: memref<16x256xbf16, #tpu.memory_space<vmem>>, %arg3: memref<256x128xbf16, #tpu.memory_space<vmem>>, %arg4: memref<1x128xf32, #tpu.memory_space<vmem>>, %arg5: memref<16x128xf32, #tpu.memory_space<vmem>>) attributes {dimension_semantics = [#tpu.dimension_semantics<parallel>, #tpu.dimension_semantics<parallel>], iteration_bounds = array<i64: 1, 1>, scalar_prefetch = 0 : i64, scratch_operands = 0 : i64, tpu.core_type = #tpu.core_type<tc>, window_params = [{transform_indices = @transform_0, window_bounds = array<i64: 16, 256>}, {transform_indices = @transform_1, window_bounds = array<i64: 256, 128>}, {transform_indices = @transform_2, window_bounds = array<i64: 1, 128>}, {transform_indices = @transform_3, window_bounds = array<i64: 16, 128>}]} {
    %c0 = arith.constant 0 : index
    %c0_0 = arith.constant 0 : index
    %0 = vector.load %arg2[%c0, %c0_0] : memref<16x256xbf16, #tpu.memory_space<vmem>>, vector<16x256xbf16>
    %c0_1 = arith.constant 0 : index
    %c0_2 = arith.constant 0 : index
    %1 = vector.load %arg3[%c0_1, %c0_2] : memref<256x128xbf16, #tpu.memory_space<vmem>>, vector<256x128xbf16>
    %cst = arith.constant dense<0.000000e+00> : vector<16x128xf32>
    %2 = tpu.matmul %0, %1, %cst {dimension_numbers = #tpu.dot_dimension_numbers<[1], [0], [0], [1], [0, 0, 1, 1], [], []>} : vector<16x256xbf16>, vector<256x128xbf16>, vector<16x128xf32> -> vector<16x128xf32>
    %c0_3 = arith.constant 0 : index
    %c0_4 = arith.constant 0 : index
    %3 = vector.load %arg4[%c0_3, %c0_4] : memref<1x128xf32, #tpu.memory_space<vmem>>, vector<1x128xf32>
    %4 = vector.broadcast %3 : vector<1x128xf32> to vector<16x128xf32>
    %5 = arith.addf %2, %4 : vector<16x128xf32>
    %c0_5 = arith.constant 0 : index
    %c0_6 = arith.constant 0 : index
    %6 = vector.load %arg5[%c0_5, %c0_6] : memref<16x128xf32, #tpu.memory_space<vmem>>, vector<16x128xf32>
    tpu.vector_store %arg5[%c0_5, %c0_6], %5 {strides = array<i32>} : memref<16x128xf32, #tpu.memory_space<vmem>>, vector<16x128xf32>,
    return
  }
  func.func @transform_0(%arg0: i32, %arg1: i32) -> (i32, i32) {
    %c0_i32 = arith.constant 0 : i32
    %c0_i32_0 = arith.constant 0 : i32
    return %arg0, %c0_i32 : i32, i32
  }
  func.func @transform_1(%arg0: i32, %arg1: i32) -> (i32, i32) {
    %c0_i32 = arith.constant 0 : i32
    %c0_i32_0 = arith.constant 0 : i32
    return %c0_i32, %arg1 : i32, i32
  }
  func.func @transform_2(%arg0: i32, %arg1: i32) -> (i32, i32) {
    %c0_i32 = arith.constant 0 : i32
    %c0_i32_0 = arith.constant 0 : i32
    return %c0_i32, %arg1 : i32, i32
  }
  func.func @transform_3(%arg0: i32, %arg1: i32) -> (i32, i32) {
    %c0_i32 = arith.constant 0 : i32
    return %arg0, %arg1 : i32, i32
  }
}

</mosaic_0001>

<bundles_post_ra>
// kernel: resnet_forward.26
= control target key start
LH: loop header
LB: loop body
LE: loop exit
PB: predicated region body
PF: predicated region fallthrough
CT: control target
= control target key end

     0   :  { %s1132_s9 = smov 0   ;;  %s1134_s10 = smov 0   ;;  %s1233_s0 = inlined_call_operand.vmem [shape: bf16[512,48], index: 0, kind: input, shape index: {}]   ;;  %s1234_s1 = inlined_call_operand.vmem [shape: bf16[48,128], index: 1, kind: input, shape index: {}]   ;;  %s1235_s2 = inlined_call_operand.vmem [shape: bf16[512,128], index: 2, kind: output, shape index: {}]  }
   0x1   :  { %s1136_s11 = smov 0  }
   0x2 LB: > { %s24_s12 = sadd.s32 1, %s1111_s10  ;;  %p786_p0 = scmp.ge.s32.totalorder %s1115_s11, 1  ;;  %s1115_s11 = sphi %s1136_s11, %s12_s11   ;;  %s1111_s10 = sphi %s1134_s10, %s1237_s10   ;;  %s1107_s9 = sphi %s1132_s9, %s1236_s9  }
   0x3   : > { %p26_p1 = scmp.ge.s32.totalorder %s24_s12, 2  ;;  %p136_p2 = scmp.lt.s32.totalorder %s1115_s11, 3 }
   0x5   : > { %s1239_s12 = smov (%p26_p1, %s24_s12), 0  ;;  %p137_p3 = pnand %p786_p0, %p136_p2 }
   0x6   : > { %s787_s15 = sshll.u32 (!%p137_p3), %s1107_s9, 5 }
   0x7   : > { %140 = sbr.rel (%p137_p3) target bundleno = 251 (0xfb), region = 28  ;;  %p166_p4 = scmp.lt.s32.totalorder (!%p137_p3), %s787_s15, 63 }
   0xc   : > { %v1074_v0 = vld [vmem:[%s1234_s1 + $0x10] sm:$0xff]   ;;  %v1075_v1 = vld [vmem:[%s1234_s1 + $0x8] sm:$0xff]   ;;  %s1241_s15 = smov (!%p166_p4, %s787_s15), 63  ;;  %v1076_v2 = vld [vmem:[%s1234_s1] sm:$0xff]   ;;  %vm321_vm0 = vcmask 392192  }
   0xd   : > { %1006 = vmatprep.subr.bf16.mxu0 %v1074_v0  ;;  %1044 = vmatprep.subr.bf16.mxu1 %v1074_v0  ;;  %s788_s20 = sshll.u32 %s1241_s15, 2 }
   0xe   : > { %1007 = vmatpush3.bf16.msra.mxu0 %v1074_v0  ;;  %1047 = vmatpush3.bf16.msra.mxu1 %v1074_v0  ;;  %s1167_s23 = scalar_lea.vmem %s1233_s0, %s788_s20  ;;  %s1206_s26 = scalar_lea.vmem %s1235_s2, %s788_s20 }
   0xf   : > { %1008 = vmatprep.subr.bf16.mxu0 %v1075_v1  ;;  %1045 = vmatprep.subr.bf16.mxu1 %v1075_v1  ;;  %v1077_v3 = vld [vmem:[%s1167_s23] sm:$0xff]   ;;  %v1079_v5 = vld [vmem:[%s1167_s23 + $0x8] sm:$0xff]   ;;  %v1081_v7 = vld [vmem:[%s1167_s23 + $0x10] sm:$0xff]  }
  0x10   : > { %v1078_v4 = vld [vmem:[%s1167_s23 + $0x40] sm:$0xff]   ;;  %1012 = vmatprep.mubr.msk.bf16.mxu0 %vm321_vm0, %v1077_v3  ;;  %v1080_v6 = vld [vmem:[%s1167_s23 + $0x48] sm:$0xff]   ;;  %v1082_v8 = vld [vmem:[%s1167_s23 + $0x50] sm:$0xff]  }
  0x11   : > { %1028 = vmatprep.mubr.msk.bf16.mxu1 %vm321_vm0, %v1078_v4  ;;  %v1083_v9 = vld [vmem:[%s1167_s23 + $0x18] sm:$0xff]   ;;  %v1085_v11 = vld [vmem:[%s1167_s23 + $0x20] sm:$0xff]   ;;  %v1087_v13 = vld [vmem:[%s1167_s23 + $0x28] sm:$0xff]  }
  0x12   : > { %1009 = vmatpush3.bf16.msra.mxu0 %v1075_v1  ;;  %1048 = vmatpush3.bf16.msra.mxu1 %v1075_v1  ;;  %v1084_v10 = vld [vmem:[%s1167_s23 + $0x58] sm:$0xff]   ;;  %v1086_v12 = vld [vmem:[%s1167_s23 + $0x60] sm:$0xff]   ;;  %v1088_v14 = vld [vmem:[%s1167_s23 + $0x68] sm:$0xff]  }
  0x13   : > { %1010 = vmatprep.subr.bf16.mxu0 %v1076_v2  ;;  %1046 = vmatprep.subr.bf16.mxu1 %v1076_v2  ;;  %v1089_v15 = vld [vmem:[%s1167_s23 + $0x30] sm:$0xff]   ;;  %v1091_v17 = vld [vmem:[%s1167_s23 + $0x38] sm:$0xff]  }
  0x14   : > { %v1090_v16 = vld [vmem:[%s1167_s23 + $0x70] sm:$0xff]   ;;  %v1092_v18 = vld [vmem:[%s1167_s23 + $0x78] sm:$0xff]  }
  0x16   : > { %1011 = vmatpush3.bf16.msra.mxu0 %v1076_v2  ;;  %1049 = vmatpush3.bf16.msra.mxu1 %v1076_v2 }
  0x19   : > { %1013 = vmatmul.mubr.msk.bf16.vlgmr.msra.gmra.mxu0 %vm321_vm0, %v1079_v5  ;;  %1029 = vmatmul.mubr.msk.bf16.vlgmr.msra.gmra.mxu1 %vm321_vm0, %v1080_v6 }
  0x1a   : > { %1016 = vmatprep.mubr.msk.bf16.mxu0 %vm321_vm0, %v1081_v7  ;;  %1032 = vmatprep.mubr.msk.bf16.mxu1 %vm321_vm0, %v1082_v8 }
  0x21   : > { %1017 = vmatmul.mubr.msk.bf16.gmra.mxu0 %vm321_vm0, %v1083_v9  ;;  %1033 = vmatmul.mubr.msk.bf16.gmra.mxu1 %vm321_vm0, %v1084_v10 }
  0x22   : > { %1020 = vmatprep.mubr.msk.bf16.mxu0 %vm321_vm0, %v1085_v11  ;;  %1036 = vmatprep.mubr.msk.bf16.mxu1 %vm321_vm0, %v1086_v12 }
  0x29   : > { %1021 = vmatmul.mubr.msk.bf16.gmra.mxu0 %vm321_vm0, %v1087_v13  ;;  %1037 = vmatmul.mubr.msk.bf16.gmra.mxu1 %vm321_vm0, %v1088_v14 }
  0x2a   : > { %1024 = vmatprep.mubr.msk.bf16.mxu0 %vm321_vm0, %v1089_v15  ;;  %1040 = vmatprep.mubr.msk.bf16.mxu1 %vm321_vm0, %v1090_v16 }
  0x31   : > { %1025 = vmatmul.mubr.msk.bf16.gmra.mxu0 %vm321_vm0, %v1091_v17  ;;  %1041 = vmatmul.mubr.msk.bf16.gmra.mxu1 %vm321_vm0, %v1092_v18 }
  0xd9   : > { %v1014_v19 = vpop.f32.mrf.mxu0  ;;  %v1030_v20 = vpop.f32.mrf.mxu1 }
  0xdb   : > { %v404_v21 = vpop.f32.mrf.mxu0  ;;  %v468_v22 = vpop.f32.mrf.mxu1 }
  0xdd   : > { %v1015_v23 = vpop.f32.mrf.mxu0  ;;  %v1031_v24 = vpop.f32.mrf.mxu1 }
  0xde   : > { %v900_v25 = vpack.c.bf16 %v1015_v23, %v1014_v19  ;;  %v940_v26 = vpack.c.bf16 %v1031_v24, %v1030_v20 }
  0xdf   : > { %v407_v27 = vpop.f32.mrf.mxu0  ;;  %v471_v28 = vpop.f32.mrf.mxu1 }
  0xe0   : > { %972 = vst [vmem:[%s1206_s26 + $0x8] sm:$0xff] %v900_v25   ;;  %980 = vst [vmem:[%s1206_s26 + $0x48] sm:$0xff] %v940_v26   ;;  %v895_v29 = vpack.c.bf16 %v407_v27, %v404_v21  ;;  %v935_v30 = vpack.c.bf16 %v471_v28, %v468_v22 }
  0xe1   : > { %v1018_v31 = vpop.f32.mrf.mxu0  ;;  %v1034_v32 = vpop.f32.mrf.mxu1 }
  0xe2   : > { %896 = vst [vmem:[%s1206_s26] sm:$0xff] %v895_v29   ;;  %979 = vst [vmem:[%s1206_s26 + $0x40] sm:$0xff] %v935_v30  }
  0xe3   : > { %v420_v33 = vpop.f32.mrf.mxu0  ;;  %v484_v34 = vpop.f32.mrf.mxu1 }
  0xe5   : > { %v1019_v35 = vpop.f32.mrf.mxu0  ;;  %v1035_v36 = vpop.f32.mrf.mxu1 }
  0xe6   : > { %v910_v37 = vpack.c.bf16 %v1019_v35, %v1018_v31  ;;  %v950_v38 = vpack.c.bf16 %v1035_v36, %v1034_v32 }
  0xe7   : > { %v423_v39 = vpop.f32.mrf.mxu0  ;;  %v487_v40 = vpop.f32.mrf.mxu1 }
  0xe8   : > { %974 = vst [vmem:[%s1206_s26 + $0x18] sm:$0xff] %v910_v37   ;;  %982 = vst [vmem:[%s1206_s26 + $0x58] sm:$0xff] %v950_v38   ;;  %v905_v41 = vpack.c.bf16 %v423_v39, %v420_v33  ;;  %v945_v42 = vpack.c.bf16 %v487_v40, %v484_v34 }
  0xe9   : > { %v1022_v43 = vpop.f32.mrf.mxu0  ;;  %v1038_v44 = vpop.f32.mrf.mxu1 }
  0xea   : > { %973 = vst [vmem:[%s1206_s26 + $0x10] sm:$0xff] %v905_v41   ;;  %981 = vst [vmem:[%s1206_s26 + $0x50] sm:$0xff] %v945_v42  }
  0xeb   : > { %v436_v45 = vpop.f32.mrf.mxu0  ;;  %v500_v46 = vpop.f32.mrf.mxu1 }
  0xed   : > { %v1023_v47 = vpop.f32.mrf.mxu0  ;;  %v1039_v48 = vpop.f32.mrf.mxu1 }
  0xee   : > { %v920_v49 = vpack.c.bf16 %v1023_v47, %v1022_v43  ;;  %v960_v50 = vpack.c.bf16 %v1039_v48, %v1038_v44 }
  0xef   : > { %v439_v51 = vpop.f32.mrf.mxu0  ;;  %v503_v52 = vpop.f32.mrf.mxu1 }
  0xf0   : > { %976 = vst [vmem:[%s1206_s26 + $0x28] sm:$0xff] %v920_v49   ;;  %984 = vst [vmem:[%s1206_s26 + $0x68] sm:$0xff] %v960_v50   ;;  %v915_v53 = vpack.c.bf16 %v439_v51, %v436_v45  ;;  %v955_v54 = vpack.c.bf16 %v503_v52, %v500_v46 }
  0xf1   : > { %v1026_v55 = vpop.f32.mrf.mxu0  ;;  %v1042_v56 = vpop.f32.mrf.mxu1 }
  0xf2   : > { %975 = vst [vmem:[%s1206_s26 + $0x20] sm:$0xff] %v915_v53   ;;  %983 = vst [vmem:[%s1206_s26 + $0x60] sm:$0xff] %v955_v54  }
  0xf3   : > { %v452_v57 = vpop.f32.mrf.mxu0  ;;  %v516_v58 = vpop.f32.mrf.mxu1 }
  0xf5   : > { %v1027_v59 = vpop.f32.mrf.mxu0  ;;  %v1043_v60 = vpop.f32.mrf.mxu1 }
  0xf6   : > { %v930_v61 = vpack.c.bf16 %v1027_v59, %v1026_v55  ;;  %v970_v62 = vpack.c.bf16 %v1043_v60, %v1042_v56 }
  0xf7   : > { %v455_v63 = vpop.f32.mrf.mxu0  ;;  %v519_v0 = vpop.f32.mrf.mxu1 }
  0xf8   : > { %978 = vst [vmem:[%s1206_s26 + $0x38] sm:$0xff] %v930_v61   ;;  %986 = vst [vmem:[%s1206_s26 + $0x78] sm:$0xff] %v970_v62   ;;  %v925_v1 = vpack.c.bf16 %v455_v63, %v452_v57  ;;  %v965_v2 = vpack.c.bf16 %v519_v0, %v516_v58 }
  0xfa   : > { %977 = vst [vmem:[%s1206_s26 + $0x30] sm:$0xff] %v925_v1   ;;  %985 = vst [vmem:[%s1206_s26 + $0x70] sm:$0xff] %v965_v2  }
  0xfb PF: > { %s12_s11 = sadd.s32 1, %s1115_s11   ;;  %s1236_s9 = smov %s1111_s10 }
  0xfc   : > { %p9_p5 = scmp.ge.s32.totalorder %s12_s11, 4   ;;  %s1237_s10 = smov %s1239_s12 }
  0xfe   :  { %11 = sbr.rel (!%p9_p5) target bundleno = 2 (0x2), region = 61 }

// kernel: resnet_forward.27
= control target key start
LH: loop header
LB: loop body
LE: loop exit
PB: predicated region body
PF: predicated region fallthrough
CT: control target
= control target key end

     0   :  { %s1405_s18 = smov 0   ;;  %s2098_s0 = inlined_call_operand.vmem [shape: bf16[2,256,8], index: 0, kind: input, shape index: {}]   ;;  %s2099_s1 = inlined_call_operand.vmem [shape: f32[8,2], index: 1, kind: input, shape index: {}]   ;;  %s2100_s2 = inlined_call_operand.vmem [shape: f32[2,8], index: 2, kind: input, shape index: {}]   ;;  %s2101_s3 = inlined_call_operand.vmem [shape: f32[1,8], index: 3, kind: input, shape index: {}]   ;;  %s2102_s4 = inlined_call_operand.vmem [shape: f32[1,8], index: 4, kind: input, shape index: {}]   ;;  %s2103_s5 = inlined_call_operand.vmem [shape: bf16[2,256,8], index: 5, kind: output, shape index: {}]  }
   0x1 LB: > { %s1161_s19 = sadd.s32 4294967295, %s1371_s18   ;;  %p1165_p0 = scmp.ge.s32.totalorder %s1371_s18, 1  ;;  %s1371_s18 = sphi %s1405_s18, %s15_s18  }
   0x2   : > { %p187_p1 = scmp.lt.s32.totalorder %s1371_s18, 3 }
   0x4   : > { %p188_p2 = pnand %p1165_p0, %p187_p1 }
   0x5   : > { %p215_p3 = scmp.lt.s32.totalorder (!%p188_p2), %s1161_s19, 1 }
   0x6   : > { %191 = sbr.rel (%p188_p2) target bundleno = 1018 (0x3fa), region = 40 }
   0xb   : > { %v1416_v0 = vld [vmem:[%s2099_s1] sm:$0xff]  ;;  %v1373_v1 = vmov 0.0   ;;  %vm1374_vm0 = vmmov 0   ;;  %s2107_s19 = smov (!%p215_p3, %s1161_s19), 1  ;;  %vm289_vm1 = vcmask 64512   ;;  %vm439_vm2 = vcmask 1041408  }
   0xc   : > { %1333 = vmatprep.subr.mxu0 %v1373_v1  ;;  %1335 = vmatprep.mubr.msk.f32.mxu0 %vm1374_vm0, %v1373_v1  ;;  %s1212_s22 = sshll.u32 %s2107_s19, 7  ;;  %vm435_vm3 = vcmask 15360   ;;  %vm1073_vm4 = vcmask 60416  }
   0xd   : > { %1334 = vmatpush3.msra.mxu0 %v1416_v0  ;;  %1338 = vmatprep.subr.mxu1 %v1373_v1  ;;  %s1434_s25 = scalar_lea.vmem %s2098_s0, %s1212_s22  ;;  %s2025_s9 = scalar_lea.vmem %s2103_s5, %s1212_s22 }
   0xe   : > { %1340 = vmatprep.mubr.msk.f32.mxu1 %vm1374_vm0, %v1373_v1  ;;  %1343 = vmatprep.subr.mxu0 %v1373_v1  ;;  %v1437_v2 = vld [vmem:[%s1434_s25] sm:$0xff]   ;;  %v1440_v3 = vld [vmem:[%s1434_s25 + $0x8] sm:$0xff]   ;;  %v1446_v7 = vld [vmem:[%s1434_s25 + $0x10] sm:$0xff]  }
   0xf   : > { %v1248_v4 = vunpack.c.l.bf16 %v1437_v2  ;;  %v1249_v5 = vunpack.c.h.bf16 %v1437_v2  ;;  %v1252_v6 = vunpack.c.l.bf16 %v1440_v3  ;;  %v1253_v8 = vunpack.c.h.bf16 %v1440_v3  ;;  %v1460_v13 = vld [vmem:[%s1434_s25 + $0x18] sm:$0xff]   ;;  %v1471_v20 = vld [vmem:[%s1434_s25 + $0x20] sm:$0xff]   ;;  %v1482_v27 = vld [vmem:[%s1434_s25 + $0x28] sm:$0xff]  }
  0x10   : > { %v1256_v9 = vunpack.c.l.bf16 %v1446_v7  ;;  %v1257_v15 = vunpack.c.h.bf16 %v1446_v7  ;;  %v1260_v18 = vunpack.c.l.bf16 %v1460_v13  ;;  %v1261_v22 = vunpack.c.h.bf16 %v1460_v13  ;;  %v1493_v34 = vld [vmem:[%s1434_s25 + $0x30] sm:$0xff]   ;;  %v1504_v41 = vld [vmem:[%s1434_s25 + $0x38] sm:$0xff]   ;;  %v1515_v48 = vld [vmem:[%s1434_s25 + $0x40] sm:$0xff]  }
  0x11   : > { %v290_v10 = vsel %vm289_vm1, %v1248_v4, 0.0  ;;  %v291_v11 = vsel %vm289_vm1, %v1249_v5, 0.0  ;;  %v293_v12 = vsel %vm289_vm1, %v1252_v6, 0.0  ;;  %v295_v16 = vsel %vm289_vm1, %v1253_v8, 0.0  ;;  %v1526_v55 = vld [vmem:[%s1434_s25 + $0x48] sm:$0xff]   ;;  %v1537_v62 = vld [vmem:[%s1434_s25 + $0x50] sm:$0xff]  }
  0x12   : > { %v292_v14 = vadd.f32 %v291_v11, %v290_v10  ;;  %v297_v19 = vsel %vm289_vm1, %v1256_v9, 0.0  ;;  %v299_v23 = vsel %vm289_vm1, %v1257_v15, 0.0  ;;  %v1264_v25 = vunpack.c.l.bf16 %v1471_v20 }
  0x13   : > { %v301_v26 = vsel %vm289_vm1, %v1260_v18, 0.0  ;;  %v1265_v29 = vunpack.c.h.bf16 %v1471_v20  ;;  %v303_v30 = vsel %vm289_vm1, %v1261_v22, 0.0  ;;  %v1268_v32 = vunpack.c.l.bf16 %v1482_v27 }
  0x14   : > { %v294_v17 = vadd.f32 %v293_v12, %v292_v14  ;;  %v305_v33 = vsel %vm289_vm1, %v1264_v25, 0.0  ;;  %v1269_v36 = vunpack.c.h.bf16 %v1482_v27  ;;  %v1272_v39 = vunpack.c.l.bf16 %v1493_v34 }
  0x15   : > { %v307_v37 = vsel %vm289_vm1, %v1265_v29, 0.0  ;;  %v309_v40 = vsel %vm289_vm1, %v1268_v32, 0.0  ;;  %v1273_v43 = vunpack.c.h.bf16 %v1493_v34  ;;  %v1276_v46 = vunpack.c.l.bf16 %v1504_v41 }
  0x16   : > { %v296_v21 = vadd.f32 %v295_v16, %v294_v17  ;;  %v311_v44 = vsel %vm289_vm1, %v1269_v36, 0.0  ;;  %v313_v47 = vsel %vm289_vm1, %v1272_v39, 0.0  ;;  %v1277_v50 = vunpack.c.h.bf16 %v1504_v41  ;;  %v1548_v17 = vld [vmem:[%s1434_s25 + $0x58] sm:$0xff]  }
  0x17   : > { %v315_v51 = vsel %vm289_vm1, %v1273_v43, 0.0  ;;  %v1280_v53 = vunpack.c.l.bf16 %v1515_v48  ;;  %v317_v54 = vsel %vm289_vm1, %v1276_v46, 0.0  ;;  %v1281_v57 = vunpack.c.h.bf16 %v1515_v48 }
  0x18   : > { %v298_v24 = vadd.f32 %v297_v19, %v296_v21  ;;  %v319_v58 = vsel %vm289_vm1, %v1277_v50, 0.0  ;;  %v1284_v60 = vunpack.c.l.bf16 %v1526_v55  ;;  %v1285_v10 = vunpack.c.h.bf16 %v1526_v55 }
  0x19   : > { %v321_v61 = vsel %vm289_vm1, %v1280_v53, 0.0  ;;  %v323_v11 = vsel %vm289_vm1, %v1281_v57, 0.0  ;;  %v1288_v14 = vunpack.c.l.bf16 %v1537_v62  ;;  %v1289_v21 = vunpack.c.h.bf16 %v1537_v62 }
  0x1a   : > { %v300_v28 = vadd.f32 %v299_v23, %v298_v24  ;;  %v325_v16 = vsel %vm289_vm1, %v1284_v60, 0.0  ;;  %v327_v23 = vsel %vm289_vm1, %v1285_v10, 0.0 }
  0x1c   : > { %v302_v31 = vadd.f32 %v301_v26, %v300_v28  ;;  %v1292_v26 = vunpack.c.l.bf16 %v1548_v17  ;;  %v329_v28 = vsel %vm289_vm1, %v1288_v14, 0.0 }
  0x1e   : > { %v304_v35 = vadd.f32 %v303_v30, %v302_v31  ;;  %v1559_v30 = vld [vmem:[%s1434_s25 + $0x60] sm:$0xff]  }
  0x20   : > { %v306_v38 = vadd.f32 %v305_v33, %v304_v35  ;;  %v1293_v33 = vunpack.c.h.bf16 %v1548_v17  ;;  %v331_v35 = vsel %vm289_vm1, %v1289_v21, 0.0 }
  0x22   : > { %v308_v42 = vadd.f32 %v307_v37, %v306_v38  ;;  %v1296_v38 = vunpack.c.l.bf16 %v1559_v30 }
  0x24   : > { %v310_v45 = vadd.f32 %v309_v40, %v308_v42  ;;  %v333_v40 = vsel %vm289_vm1, %v1292_v26, 0.0  ;;  %v1570_v42 = vld [vmem:[%s1434_s25 + $0x68] sm:$0xff]  }
  0x26   : > { %v312_v49 = vadd.f32 %v311_v44, %v310_v45  ;;  %v1297_v45 = vunpack.c.h.bf16 %v1559_v30 }
  0x28   : > { %v314_v52 = vadd.f32 %v313_v47, %v312_v49  ;;  %v335_v47 = vsel %vm289_vm1, %v1293_v33, 0.0 }
  0x2a   : > { %v316_v56 = vadd.f32 %v315_v51, %v314_v52  ;;  %v1300_v51 = vunpack.c.l.bf16 %v1570_v42  ;;  %v337_v52 = vsel %vm289_vm1, %v1296_v38, 0.0 }
  0x2c   : > { %v318_v59 = vadd.f32 %v317_v54, %v316_v56  ;;  %v1581_v54 = vld [vmem:[%s1434_s25 + $0x70] sm:$0xff]  }
  0x2e   : > { %v320_v63 = vadd.f32 %v319_v58, %v318_v59  ;;  %v1301_v58 = vunpack.c.h.bf16 %v1570_v42  ;;  %v339_v59 = vsel %vm289_vm1, %v1297_v45, 0.0 }
  0x30   : > { %v322_v12 = vadd.f32 %v321_v61, %v320_v63  ;;  %v2104_v63 = vunpack.c.l.bf16 %v1581_v54 }
  0x32   : > { %v324_v19 = vadd.f32 %v323_v11, %v322_v12  ;;  %v341_v11 = vsel %vm289_vm1, %v1300_v51, 0.0  ;;  %v1592_v12 = vld [vmem:[%s1434_s25 + $0x78] sm:$0xff]  }
  0x34   : > { %v326_v24 = vadd.f32 %v325_v16, %v324_v19  ;;  %v1305_v19 = vunpack.c.h.bf16 %v1581_v54 }
  0x36   : > { %v328_v31 = vadd.f32 %v327_v23, %v326_v24  ;;  %v343_v23 = vsel %vm289_vm1, %v1301_v58, 0.0 }
  0x38   : > { %v330_v37 = vadd.f32 %v329_v28, %v328_v31  ;;  %v1308_v28 = vunpack.c.l.bf16 %v1592_v12  ;;  %v345_v31 = vsel %vm289_vm1, %v2104_v63, 0.0 }
  0x3a   : > { %v332_v44 = vadd.f32 %v331_v35, %v330_v37  ;;  %v1309_v37 = vunpack.c.h.bf16 %v1592_v12 }
  0x3c   : > { %v334_v49 = vadd.f32 %v333_v40, %v332_v44  ;;  %v347_v40 = vsel %vm289_vm1, %v1305_v19, 0.0 }
  0x3e   : > { %v336_v56 = vadd.f32 %v335_v47, %v334_v49  ;;  %v349_v47 = vsel %vm289_vm1, %v1308_v28, 0.0 }
  0x40   : > { %v338_v61 = vadd.f32 %v337_v52, %v336_v56  ;;  %v351_v52 = vsel %vm289_vm1, %v1309_v37, 0.0 }
  0x42   : > { %v340_v16 = vadd.f32 %v339_v59, %v338_v61 }
  0x44   : > { %v342_v24 = vadd.f32 %v341_v11, %v340_v16 }
  0x46   : > { %v344_v35 = vadd.f32 %v343_v23, %v342_v24 }
  0x48   : > { %v346_v44 = vadd.f32 %v345_v31, %v344_v35  ;;  %v434_v31 = vld [vmem:[%s2100_s2] sm:$0x3] }
  0x49   : > { %1339 = vmatpush3.msk.msra.mxu1 %vm439_vm2, %v434_v31 }
  0x4a   : > { %v348_v49 = vadd.f32 %v347_v40, %v346_v44  ;;  %1348 = vmatprep.subr.mxu1 %v1373_v1 }
  0x4c   : > { %v350_v56 = vadd.f32 %v349_v47, %v348_v49 }
  0x4e   : > { %v352_v59 = vadd.f32 %v351_v52, %v350_v56 }
  0x50   : > { %v353_v61 = vrot.slane %v352_v59, 4 }
  0x52   : > { %v354_v11 = vadd.f32 %v353_v61, %v352_v59 }
  0x54   : > { %v355_v16 = vrot.slane %v354_v11, 2 }
  0x56   : > { %v356_v23 = vadd.f32 %v355_v16, %v354_v11 }
  0x58   : > { %v357_v24 = vrot.slane %v356_v23, 1 }
  0x5a   : > { %v358_v63 = vadd.f32 %v357_v24, %v356_v23 }
  0x5c   : > { %1336 = vmatmul.mubr.msk.f32.vlgmr.msra.gmra.mxu0 %vm289_vm1, %v358_v63 }
  0x5d   : > { %1344 = vmatpush3.msra.mxu0 %v1416_v0  ;;  %1345 = vmatprep.mubr.msk.f32.mxu0 %vm1374_vm0, %v1373_v1  ;;  %v513_v0 = vlaneseq }
  0x5f   : > { %v1623_v63 = vshrl.u32 %v513_v0, 7 }
  0x61   : > { %v515_v52 = vsub.s32 0, %v1623_v63 }
 0x11c   : > { %v429_v35 = vpop.f32.mrf.mxu0 }
 0x11d   : > { %v433_v40 = vmul.f32 0.0009765625, %v429_v35 }
 0x11e   : > { %v1337_v44 = vpop.f32.mrf.mxu0 }
 0x11f   : > { %1341 = vmatmul.mubr.msk.f32.vlgmr.msra.gmra.mxu1 %vm435_vm3, %v433_v40 }
 0x120   : > { %1349 = vmatpush3.msk.msra.mxu1 %vm439_vm2, %v434_v31  ;;  %1350 = vmatprep.mubr.msk.f32.mxu1 %vm1374_vm0, %v1373_v1 }
 0x1df   : > { %v509_v47 = vpop.f32.mrf.mxu1 }
 0x1e0   : > { %v1628_v56 = vrot.slane %v509_v47, %v515_v52 }
 0x1e1   : > { %v1342_v49 = vpop.f32.mrf.mxu1 }
 0x1e2   : > { %v1633_v59 = vsub.f32 %v1248_v4, %v1628_v56  ;;  %v1638_v1 = vsub.f32 %v1249_v5, %v1628_v56  ;;  %v1643_v61 = vsub.f32 %v1252_v6, %v1628_v56  ;;  %v1648_v11 = vsub.f32 %v1253_v8, %v1628_v56 }
 0x1e3   : > { %v1657_v2 = vsub.f32 %v1256_v9, %v1628_v56  ;;  %v1664_v3 = vsub.f32 %v1257_v15, %v1628_v56  ;;  %v1673_v9 = vsub.f32 %v1260_v18, %v1628_v56  ;;  %v1681_v35 = vsub.f32 %v1261_v22, %v1628_v56 }
 0x1e4   : > { %v549_v16 = vmul.f32 %v1633_v59, %v1633_v59  ;;  %v550_v4 = vmul.f32 %v1638_v1, %v1638_v1  ;;  %v551_v5 = vmul.f32 %v1643_v61, %v1643_v61  ;;  %v552_v6 = vmul.f32 %v1648_v11, %v1648_v11 }
 0x1e5   : > { %v553_v31 = vmul.f32 %v1657_v2, %v1657_v2  ;;  %v554_v40 = vmul.f32 %v1664_v3, %v1664_v3  ;;  %v1689_v18 = vsub.f32 %v1264_v25, %v1628_v56  ;;  %v555_v47 = vmul.f32 %v1673_v9, %v1673_v9 }
 0x1e6   : > { %v581_v8 = vsel %vm289_vm1, %v549_v16, 0.0  ;;  %v582_v23 = vsel %vm289_vm1, %v550_v4, 0.0  ;;  %v584_v7 = vsel %vm289_vm1, %v551_v5, 0.0  ;;  %v586_v44 = vsel %vm289_vm1, %v552_v6, 0.0 }
 0x1e7   : > { %v583_v24 = vadd.f32 %v582_v23, %v581_v8  ;;  %v588_v49 = vsel %vm289_vm1, %v553_v31, 0.0  ;;  %v1697_v13 = vsub.f32 %v1265_v29, %v1628_v56  ;;  %v556_v22 = vmul.f32 %v1681_v35, %v1681_v35 }
 0x1e8   : > { %v590_v4 = vsel %vm289_vm1, %v554_v40, 0.0  ;;  %v1705_v25 = vsub.f32 %v1268_v32, %v1628_v56  ;;  %v557_v6 = vmul.f32 %v1689_v18, %v1689_v18  ;;  %v592_v8 = vsel %vm289_vm1, %v555_v47, 0.0 }
 0x1e9   : > { %v585_v15 = vadd.f32 %v584_v7, %v583_v24  ;;  %v1713_v20 = vsub.f32 %v1269_v36, %v1628_v56  ;;  %v558_v29 = vmul.f32 %v1697_v13, %v1697_v13  ;;  %v594_v24 = vsel %vm289_vm1, %v556_v22, 0.0 }
 0x1ea   : > { %v1721_v32 = vsub.f32 %v1272_v39, %v1628_v56  ;;  %v559_v7 = vmul.f32 %v1705_v25, %v1705_v25  ;;  %v1729_v27 = vsub.f32 %v1273_v43, %v1628_v56  ;;  %v1737_v39 = vsub.f32 %v1276_v46, %v1628_v56 }
 0x1eb   : > { %v587_v0 = vadd.f32 %v586_v44, %v585_v15  ;;  %v596_v15 = vsel %vm289_vm1, %v557_v6, 0.0  ;;  %v560_v36 = vmul.f32 %v1713_v20, %v1713_v20  ;;  %v598_v44 = vsel %vm289_vm1, %v558_v29, 0.0 }
 0x1ec   : > { %v561_v47 = vmul.f32 %v1721_v32, %v1721_v32  ;;  %v1745_v34 = vsub.f32 %v1277_v50, %v1628_v56  ;;  %v562_v43 = vmul.f32 %v1729_v27, %v1729_v27  ;;  %v1753_v46 = vsub.f32 %v1280_v53, %v1628_v56 }
 0x1ed   : > { %v589_v16 = vadd.f32 %v588_v49, %v587_v0  ;;  %v600_v49 = vsel %vm289_vm1, %v559_v7, 0.0  ;;  %v602_v22 = vsel %vm289_vm1, %v560_v36, 0.0  ;;  %v1761_v41 = vsub.f32 %v1281_v57, %v1628_v56 }
 0x1ee   : > { %v604_v6 = vsel %vm289_vm1, %v561_v47, 0.0  ;;  %v564_v50 = vmul.f32 %v1745_v34, %v1745_v34  ;;  %v1769_v53 = vsub.f32 %v1284_v60, %v1628_v56  ;;  %v1777_v48 = vsub.f32 %v1285_v10, %v1628_v56 }
 0x1ef   : > { %v591_v5 = vadd.f32 %v590_v4, %v589_v16  ;;  %v566_v57 = vmul.f32 %v1761_v41, %v1761_v41  ;;  %v1785_v60 = vsub.f32 %v1288_v14, %v1628_v56  ;;  %v1793_v55 = vsub.f32 %v1289_v21, %v1628_v56 }
 0x1f0   : > { %v567_v36 = vmul.f32 %v1769_v53, %v1769_v53  ;;  %v568_v10 = vmul.f32 %v1777_v48, %v1777_v48  ;;  %v1801_v14 = vsub.f32 %v1292_v26, %v1628_v56  ;;  %v1809_v62 = vsub.f32 %v1293_v33, %v1628_v56 }
 0x1f1   : > { %v593_v23 = vadd.f32 %v592_v8, %v591_v5  ;;  %v563_v5 = vmul.f32 %v1737_v39, %v1737_v39  ;;  %v614_v47 = vsel %vm289_vm1, %v566_v57, 0.0  ;;  %v570_v21 = vmul.f32 %v1793_v55, %v1793_v55 }
 0x1f2   : > { %v1817_v26 = vsub.f32 %v1296_v38, %v1628_v56  ;;  %v1825_v17 = vsub.f32 %v1297_v45, %v1628_v56  ;;  %v572_v33 = vmul.f32 %v1809_v62, %v1809_v62  ;;  %v1833_v38 = vsub.f32 %v1300_v51, %v1628_v56 }
 0x1f3   : > { %v595_v31 = vadd.f32 %v594_v24, %v593_v23  ;;  %v606_v23 = vsel %vm289_vm1, %v562_v43, 0.0  ;;  %v565_v24 = vmul.f32 %v1753_v46, %v1753_v46  ;;  %v616_v43 = vsel %vm289_vm1, %v567_v36, 0.0 }
 0x1f4   : > { %v1841_v30 = vsub.f32 %v1301_v58, %v1628_v56  ;;  %v574_v45 = vmul.f32 %v1825_v17, %v1825_v17  ;;  %v626_v57 = vsel %vm289_vm1, %v572_v33, 0.0  ;;  %v2105_v51 = vunpack.c.l.bf16 %v1581_v54 }
 0x1f5   : > { %v597_v40 = vadd.f32 %v596_v15, %v595_v31  ;;  %v608_v31 = vsel %vm289_vm1, %v563_v5, 0.0  ;;  %v610_v15 = vsel %vm289_vm1, %v564_v50, 0.0  ;;  %v575_v36 = vmul.f32 %v1833_v38, %v1833_v38 }
 0x1f6   : > { %v1857_v42 = vsub.f32 %v1305_v19, %v1628_v56  ;;  %v576_v58 = vmul.f32 %v1841_v30, %v1841_v30  ;;  %v1873_v54 = vsub.f32 %v1309_v37, %v1628_v56 }
 0x1f7   : > { %v599_v0 = vadd.f32 %v598_v44, %v597_v40  ;;  %v612_v44 = vsel %vm289_vm1, %v565_v24, 0.0  ;;  %v573_v24 = vmul.f32 %v1817_v26, %v1817_v26 }
 0x1f8   : > { %v578_v19 = vmul.f32 %v1857_v42, %v1857_v42 }
 0x1f9   : > { %v601_v16 = vadd.f32 %v600_v49, %v599_v0 }
 0x1fb   : > { %v603_v4 = vadd.f32 %v602_v22, %v601_v16  ;;  %v569_v16 = vmul.f32 %v1785_v60, %v1785_v60 }
 0x1fd   : > { %v605_v8 = vadd.f32 %v604_v6, %v603_v4  ;;  %v618_v4 = vsel %vm289_vm1, %v568_v10, 0.0  ;;  %v571_v6 = vmul.f32 %v1801_v14, %v1801_v14  ;;  %v630_v10 = vsel %vm289_vm1, %v574_v45, 0.0 }
 0x1ff   : > { %v607_v29 = vadd.f32 %v606_v23, %v605_v8  ;;  %v620_v8 = vsel %vm289_vm1, %v569_v16, 0.0  ;;  %v622_v23 = vsel %vm289_vm1, %v570_v21, 0.0  ;;  %v634_v21 = vsel %vm289_vm1, %v576_v58, 0.0 }
 0x201   : > { %v609_v7 = vadd.f32 %v608_v31, %v607_v29  ;;  %v624_v31 = vsel %vm289_vm1, %v571_v6, 0.0 }
 0x203   : > { %v611_v40 = vadd.f32 %v610_v15, %v609_v7 }
 0x205   : > { %v613_v0 = vadd.f32 %v612_v44, %v611_v40  ;;  %v1849_v40 = vsub.f32 %v2105_v51, %v1628_v56  ;;  %v628_v44 = vsel %vm289_vm1, %v573_v24, 0.0 }
 0x207   : > { %v615_v49 = vadd.f32 %v614_v47, %v613_v0  ;;  %v577_v16 = vmul.f32 %v1849_v40, %v1849_v40 }
 0x209   : > { %v617_v22 = vadd.f32 %v616_v43, %v615_v49  ;;  %v1865_v49 = vsub.f32 %v1308_v28, %v1628_v56  ;;  %v632_v43 = vsel %vm289_vm1, %v575_v36, 0.0 }
 0x20b   : > { %v619_v5 = vadd.f32 %v618_v4, %v617_v22  ;;  %v579_v28 = vmul.f32 %v1865_v49, %v1865_v49 }
 0x20d   : > { %v621_v50 = vadd.f32 %v620_v8, %v619_v5  ;;  %v636_v5 = vsel %vm289_vm1, %v577_v16, 0.0  ;;  %v580_v8 = vmul.f32 %v1873_v54, %v1873_v54  ;;  %v640_v37 = vsel %vm289_vm1, %v579_v28, 0.0 }
 0x20f   : > { %v623_v29 = vadd.f32 %v622_v23, %v621_v50  ;;  %v638_v50 = vsel %vm289_vm1, %v578_v19, 0.0  ;;  %v642_v33 = vsel %vm289_vm1, %v580_v8, 0.0 }
 0x211   : > { %v625_v7 = vadd.f32 %v624_v31, %v623_v29 }
 0x213   : > { %v627_v15 = vadd.f32 %v626_v57, %v625_v7 }
 0x215   : > { %v629_v0 = vadd.f32 %v628_v44, %v627_v15 }
 0x217   : > { %v631_v47 = vadd.f32 %v630_v10, %v629_v0 }
 0x219   : > { %v633_v22 = vadd.f32 %v632_v43, %v631_v47 }
 0x21b   : > { %v635_v4 = vadd.f32 %v634_v21, %v633_v22 }
 0x21d   : > { %v637_v6 = vadd.f32 %v636_v5, %v635_v4 }
 0x21f   : > { %v639_v12 = vadd.f32 %v638_v50, %v637_v6 }
 0x221   : > { %v641_v56 = vadd.f32 %v640_v37, %v639_v12 }
 0x223   : > { %v643_v23 = vadd.f32 %v642_v33, %v641_v56 }
 0x225   : > { %v644_v29 = vrot.slane %v643_v23, 4 }
 0x227   : > { %v645_v24 = vadd.f32 %v644_v29, %v643_v23 }
 0x229   : > { %v646_v31 = vrot.slane %v645_v24, 2 }
 0x22b   : > { %v647_v7 = vadd.f32 %v646_v31, %v645_v24 }
 0x22d   : > { %v648_v45 = vrot.slane %v647_v7, 1 }
 0x22f   : > { %v649_v57 = vadd.f32 %v648_v45, %v647_v7 }
 0x231   : > { %1346 = vmatmul.mubr.msk.f32.vlgmr.msra.gmra.mxu0 %vm289_vm1, %v649_v57 }
 0x2f1   : > { %v719_v15 = vpop.f32.mrf.mxu0 }
 0x2f2   : > { %v723_v51 = vmul.f32 0.0009765625, %v719_v15 }
 0x2f3   : > { %v1347_v36 = vpop.f32.mrf.mxu0 }
 0x2f4   : > { %v724_v44 = vadd.f32 1e-05, %v723_v51  ;;  %v1177_v51 = vld [vmem:[%s2102_s4] ss:$0 sm:$0xff] }
 0x2f6   : > { %1363 = vrsqrt.f32 %v724_v44 }
 0x303   : > { %v1364_v0 = vpop.eup %1363 }
 0x304   : > { %1351 = vmatmul.mubr.msk.f32.vlgmr.msra.gmra.mxu1 %vm435_vm3, %v1364_v0 }
 0x3c4   : > { %v795_v58 = vpop.f32.mrf.mxu1 }
 0x3c5   : > { %v802_v10 = vrot.slane %v795_v58, %v515_v52 }
 0x3c6   : > { %v1352_v47 = vpop.f32.mrf.mxu1 }
 0x3c7   : > { %v803_v16 = vmul.f32 %v802_v10, %v1633_v59  ;;  %v804_v43 = vmul.f32 %v802_v10, %v1638_v1  ;;  %v805_v22 = vmul.f32 %v802_v10, %v1643_v61  ;;  %v806_v19 = vmul.f32 %v802_v10, %v1648_v11 }
 0x3c8   : > { %v807_v21 = vmul.f32 %v802_v10, %v1657_v2  ;;  %v808_v4 = vmul.f32 %v802_v10, %v1664_v3  ;;  %v809_v28 = vmul.f32 %v802_v10, %v1673_v9  ;;  %v810_v5 = vmul.f32 %v802_v10, %v1681_v35 }
 0x3c9   : > { %v811_v63 = vmul.f32 %v802_v10, %v1689_v18  ;;  %v812_v52 = vmul.f32 %v802_v10, %v1697_v13  ;;  %v813_v59 = vmul.f32 %v802_v10, %v1705_v25  ;;  %v814_v1 = vmul.f32 %v802_v10, %v1713_v20 }
 0x3ca   : > { %v815_v61 = vmul.f32 %v802_v10, %v1721_v32  ;;  %v816_v11 = vmul.f32 %v802_v10, %v1729_v27  ;;  %v817_v2 = vmul.f32 %v802_v10, %v1737_v39  ;;  %v818_v3 = vmul.f32 %v802_v10, %v1745_v34  ;;  %v1176_v39 = vld [vmem:[%s2101_s3] ss:$0 sm:$0xff] }
 0x3cb   : > { %v819_v9 = vmul.f32 %v802_v10, %v1753_v46  ;;  %v820_v35 = vmul.f32 %v802_v10, %v1761_v41  ;;  %v821_v18 = vmul.f32 %v802_v10, %v1769_v53  ;;  %v822_v13 = vmul.f32 %v802_v10, %v1777_v48 }
 0x3cc   : > { %v823_v25 = vmul.f32 %v802_v10, %v1785_v60  ;;  %v824_v20 = vmul.f32 %v802_v10, %v1793_v55  ;;  %v825_v32 = vmul.f32 %v802_v10, %v1801_v14  ;;  %v826_v27 = vmul.f32 %v802_v10, %v1809_v62 }
 0x3cd   : > { %v827_v34 = vmul.f32 %v802_v10, %v1817_v26  ;;  %v828_v46 = vmul.f32 %v802_v10, %v1825_v17  ;;  %v829_v41 = vmul.f32 %v802_v10, %v1833_v38  ;;  %v830_v53 = vmul.f32 %v802_v10, %v1841_v30 }
 0x3ce   : > { %v831_v48 = vmul.f32 %v802_v10, %v1849_v40  ;;  %v832_v60 = vmul.f32 %v802_v10, %v1857_v42  ;;  %v833_v55 = vmul.f32 %v802_v10, %v1865_v49  ;;  %v834_v14 = vmul.f32 %v802_v10, %v1873_v54 }
 0x3cf   : > { %v842_v62 = vmul.f32 %v1176_v39, %v803_v16  ;;  %v843_v6 = vmul.f32 %v1176_v39, %v804_v43  ;;  %v844_v8 = vmul.f32 %v1176_v39, %v805_v22  ;;  %v845_v50 = vmul.f32 %v1176_v39, %v806_v19 }
 0x3d0   : > { %v846_v12 = vmul.f32 %v1176_v39, %v807_v21  ;;  %v847_v26 = vmul.f32 %v1176_v39, %v808_v4  ;;  %v848_v37 = vmul.f32 %v1176_v39, %v809_v28  ;;  %v849_v17 = vmul.f32 %v1176_v39, %v810_v5 }
 0x3d1   : > { %v850_v56 = vmul.f32 %v1176_v39, %v811_v63  ;;  %v851_v38 = vmul.f32 %v1176_v39, %v812_v52  ;;  %v852_v33 = vmul.f32 %v1176_v39, %v813_v59  ;;  %v853_v30 = vmul.f32 %v1176_v39, %v814_v1 }
 0x3d2   : > { %v854_v23 = vmul.f32 %v1176_v39, %v815_v61  ;;  %v855_v40 = vmul.f32 %v1176_v39, %v816_v11  ;;  %v856_v29 = vmul.f32 %v1176_v39, %v817_v2  ;;  %v857_v42 = vmul.f32 %v1176_v39, %v818_v3 }
 0x3d3   : > { %v858_v24 = vmul.f32 %v1176_v39, %v819_v9  ;;  %v859_v49 = vmul.f32 %v1176_v39, %v820_v35  ;;  %v860_v31 = vmul.f32 %v1176_v39, %v821_v18  ;;  %v861_v54 = vmul.f32 %v1176_v39, %v822_v13 }
 0x3d4   : > { %v862_v7 = vmul.f32 %v1176_v39, %v823_v25  ;;  %v863_v45 = vmul.f32 %v1176_v39, %v824_v20  ;;  %v864_v57 = vmul.f32 %v1176_v39, %v825_v32  ;;  %v865_v15 = vmul.f32 %v1176_v39, %v826_v27 }
 0x3d5   : > { %v866_v36 = vmul.f32 %v1176_v39, %v827_v34  ;;  %v867_v44 = vmul.f32 %v1176_v39, %v828_v46  ;;  %v868_v0 = vmul.f32 %v1176_v39, %v829_v41  ;;  %v869_v58 = vmul.f32 %v1176_v39, %v830_v53 }
 0x3d6   : > { %v870_v10 = vmul.f32 %v1176_v39, %v831_v48  ;;  %v871_v47 = vmul.f32 %v1176_v39, %v832_v60  ;;  %v872_v16 = vmul.f32 %v1176_v39, %v833_v55  ;;  %v873_v43 = vmul.f32 %v1176_v39, %v834_v14 }
 0x3d7   : > { %v1928_v22 = vadd.f32 %v1177_v51, %v842_v62  ;;  %v1930_v19 = vadd.f32 %v1177_v51, %v843_v6  ;;  %v1932_v21 = vadd.f32 %v1177_v51, %v844_v8  ;;  %v1934_v4 = vadd.f32 %v1177_v51, %v845_v50 }
 0x3d8   : > { %v1936_v28 = vadd.f32 %v1177_v51, %v846_v12  ;;  %v1938_v5 = vadd.f32 %v1177_v51, %v847_v26  ;;  %v1940_v63 = vadd.f32 %v1177_v51, %v848_v37  ;;  %v1942_v52 = vadd.f32 %v1177_v51, %v849_v17 }
 0x3d9   : > { %v1944_v59 = vadd.f32 %v1177_v51, %v850_v56  ;;  %v1946_v1 = vadd.f32 %v1177_v51, %v851_v38  ;;  %v1948_v61 = vadd.f32 %v1177_v51, %v852_v33  ;;  %v1950_v11 = vadd.f32 %v1177_v51, %v853_v30 }
 0x3da   : > { %v1952_v2 = vadd.f32 %v1177_v51, %v854_v23  ;;  %v1954_v3 = vadd.f32 %v1177_v51, %v855_v40  ;;  %v1956_v9 = vadd.f32 %v1177_v51, %v856_v29  ;;  %v1958_v35 = vadd.f32 %v1177_v51, %v857_v42 }
 0x3db   : > { %v1960_v18 = vadd.f32 %v1177_v51, %v858_v24  ;;  %v1962_v13 = vadd.f32 %v1177_v51, %v859_v49  ;;  %v1964_v25 = vadd.f32 %v1177_v51, %v860_v31  ;;  %v1966_v20 = vadd.f32 %v1177_v51, %v861_v54 }
 0x3dc   : > { %v1968_v32 = vadd.f32 %v1177_v51, %v862_v7  ;;  %v1970_v27 = vadd.f32 %v1177_v51, %v863_v45  ;;  %v1972_v39 = vadd.f32 %v1177_v51, %v864_v57  ;;  %v1974_v34 = vadd.f32 %v1177_v51, %v865_v15 }
 0x3dd   : > { %v1976_v46 = vadd.f32 %v1177_v51, %v866_v36  ;;  %v1978_v41 = vadd.f32 %v1177_v51, %v867_v44  ;;  %v1980_v53 = vadd.f32 %v1177_v51, %v868_v0  ;;  %v1982_v48 = vadd.f32 %v1177_v51, %v869_v58 }
 0x3de   : > { %v1984_v60 = vadd.f32 %v1177_v51, %v870_v10  ;;  %v1986_v55 = vadd.f32 %v1177_v51, %v871_v47  ;;  %v1988_v14 = vadd.f32 %v1177_v51, %v872_v16  ;;  %v1990_v62 = vadd.f32 %v1177_v51, %v873_v43 }
 0x3df   : > { %v913_v6 = vmax.f32 %v1928_v22, 0.0  ;;  %v914_v8 = vmax.f32 %v1930_v19, 0.0  ;;  %v915_v50 = vmax.f32 %v1932_v21, 0.0  ;;  %v916_v12 = vmax.f32 %v1934_v4, 0.0 }
 0x3e0   : > { %v917_v26 = vmax.f32 %v1936_v28, 0.0  ;;  %v918_v37 = vmax.f32 %v1938_v5, 0.0  ;;  %v919_v17 = vmax.f32 %v1940_v63, 0.0  ;;  %v920_v56 = vmax.f32 %v1942_v52, 0.0 }
 0x3e1   : > { %v921_v38 = vmax.f32 %v1944_v59, 0.0  ;;  %v922_v33 = vmax.f32 %v1946_v1, 0.0  ;;  %v923_v30 = vmax.f32 %v1948_v61, 0.0  ;;  %v924_v23 = vmax.f32 %v1950_v11, 0.0 }
 0x3e2   : > { %v925_v40 = vmax.f32 %v1952_v2, 0.0  ;;  %v926_v29 = vmax.f32 %v1954_v3, 0.0  ;;  %v927_v42 = vmax.f32 %v1956_v9, 0.0  ;;  %v928_v24 = vmax.f32 %v1958_v35, 0.0 }
 0x3e3   : > { %v929_v49 = vmax.f32 %v1960_v18, 0.0  ;;  %v930_v31 = vmax.f32 %v1962_v13, 0.0  ;;  %v931_v54 = vmax.f32 %v1964_v25, 0.0  ;;  %v932_v7 = vmax.f32 %v1966_v20, 0.0 }
 0x3e4   : > { %v933_v45 = vmax.f32 %v1968_v32, 0.0  ;;  %v934_v57 = vmax.f32 %v1970_v27, 0.0  ;;  %v935_v15 = vmax.f32 %v1972_v39, 0.0  ;;  %v936_v51 = vmax.f32 %v1974_v34, 0.0 }
 0x3e5   : > { %v937_v36 = vmax.f32 %v1976_v46, 0.0  ;;  %v938_v44 = vmax.f32 %v1978_v41, 0.0  ;;  %v939_v0 = vmax.f32 %v1980_v53, 0.0  ;;  %v940_v58 = vmax.f32 %v1982_v48, 0.0 }
 0x3e6   : > { %v941_v10 = vmax.f32 %v1984_v60, 0.0  ;;  %v942_v47 = vmax.f32 %v1986_v55, 0.0  ;;  %v943_v16 = vmax.f32 %v1988_v14, 0.0  ;;  %v944_v43 = vmax.f32 %v1990_v62, 0.0 }
 0x3e7   : > { %v1214_v22 = vpack.c.bf16 %v913_v6, %v913_v6  ;;  %v1215_v19 = vpack.c.bf16 %v914_v8, %v914_v8  ;;  %v1216_v21 = vpack.c.bf16 %v915_v50, %v915_v50  ;;  %v1217_v4 = vpack.c.bf16 %v916_v12, %v916_v12 }
 0x3e8   : > { %v1218_v28 = vpack.c.bf16 %v917_v26, %v917_v26  ;;  %v1219_v5 = vpack.c.bf16 %v918_v37, %v918_v37  ;;  %v1220_v63 = vpack.c.bf16 %v919_v17, %v919_v17  ;;  %v1221_v52 = vpack.c.bf16 %v920_v56, %v920_v56 }
 0x3e9   : > { %v1222_v59 = vpack.c.bf16 %v921_v38, %v921_v38  ;;  %v1223_v1 = vpack.c.bf16 %v922_v33, %v922_v33  ;;  %v1224_v61 = vpack.c.bf16 %v923_v30, %v923_v30  ;;  %v1225_v11 = vpack.c.bf16 %v924_v23, %v924_v23  ;;  %1074 = vst.msk [vmem:[%s2025_s9] sm:$0xf] %vm1073_vm4, %v1214_v22 }
 0x3ea   : > { %1075 = vst.msk [vmem:[%s2025_s9 + $0x4] sm:$0xf] %vm1073_vm4, %v1215_v19  ;;  %1076 = vst.msk [vmem:[%s2025_s9 + $0x8] sm:$0xf] %vm1073_vm4, %v1216_v21  ;;  %v1226_v2 = vpack.c.bf16 %v925_v40, %v925_v40  ;;  %v1227_v3 = vpack.c.bf16 %v926_v29, %v926_v29  ;;  %v1228_v9 = vpack.c.bf16 %v927_v42, %v927_v42 }
 0x3eb   : > { %1077 = vst.msk [vmem:[%s2025_s9 + $0xc] sm:$0xf] %vm1073_vm4, %v1217_v4  ;;  %v1229_v35 = vpack.c.bf16 %v928_v24, %v928_v24  ;;  %1078 = vst.msk [vmem:[%s2025_s9 + $0x10] sm:$0xf] %vm1073_vm4, %v1218_v28  ;;  %v1230_v18 = vpack.c.bf16 %v929_v49, %v929_v49  ;;  %v1231_v13 = vpack.c.bf16 %v930_v31, %v930_v31 }
 0x3ec   : > { %1079 = vst.msk [vmem:[%s2025_s9 + $0x14] sm:$0xf] %vm1073_vm4, %v1219_v5  ;;  %1080 = vst.msk [vmem:[%s2025_s9 + $0x18] sm:$0xf] %vm1073_vm4, %v1220_v63  ;;  %v1232_v25 = vpack.c.bf16 %v931_v54, %v931_v54  ;;  %v1233_v20 = vpack.c.bf16 %v932_v7, %v932_v7  ;;  %v1234_v32 = vpack.c.bf16 %v933_v45, %v933_v45 }
 0x3ed   : > { %1081 = vst.msk [vmem:[%s2025_s9 + $0x1c] sm:$0xf] %vm1073_vm4, %v1221_v52  ;;  %1082 = vst.msk [vmem:[%s2025_s9 + $0x20] sm:$0xf] %vm1073_vm4, %v1222_v59  ;;  %v1235_v27 = vpack.c.bf16 %v934_v57, %v934_v57  ;;  %v1236_v39 = vpack.c.bf16 %v935_v15, %v935_v15  ;;  %v1237_v34 = vpack.c.bf16 %v936_v51, %v936_v51 }
 0x3ee   : > { %1083 = vst.msk [vmem:[%s2025_s9 + $0x24] sm:$0xf] %vm1073_vm4, %v1223_v1  ;;  %1084 = vst.msk [vmem:[%s2025_s9 + $0x28] sm:$0xf] %vm1073_vm4, %v1224_v61  ;;  %v1238_v46 = vpack.c.bf16 %v937_v36, %v937_v36  ;;  %v1239_v41 = vpack.c.bf16 %v938_v44, %v938_v44  ;;  %v1240_v53 = vpack.c.bf16 %v939_v0, %v939_v0 }
 0x3ef   : > { %1085 = vst.msk [vmem:[%s2025_s9 + $0x2c] sm:$0xf] %vm1073_vm4, %v1225_v11  ;;  %1086 = vst.msk [vmem:[%s2025_s9 + $0x30] sm:$0xf] %vm1073_vm4, %v1226_v2  ;;  %v1241_v48 = vpack.c.bf16 %v940_v58, %v940_v58  ;;  %v1242_v60 = vpack.c.bf16 %v941_v10, %v941_v10  ;;  %v1243_v55 = vpack.c.bf16 %v942_v47, %v942_v47 }
 0x3f0   : > { %1087 = vst.msk [vmem:[%s2025_s9 + $0x34] sm:$0xf] %vm1073_vm4, %v1227_v3  ;;  %1088 = vst.msk [vmem:[%s2025_s9 + $0x38] sm:$0xf] %vm1073_vm4, %v1228_v9  ;;  %v1244_v14 = vpack.c.bf16 %v943_v16, %v943_v16  ;;  %v1245_v62 = vpack.c.bf16 %v944_v43, %v944_v43 }
 0x3f1   : > { %1089 = vst.msk [vmem:[%s2025_s9 + $0x3c] sm:$0xf] %vm1073_vm4, %v1229_v35  ;;  %1090 = vst.msk [vmem:[%s2025_s9 + $0x40] sm:$0xf] %vm1073_vm4, %v1230_v18 }
 0x3f2   : > { %1091 = vst.msk [vmem:[%s2025_s9 + $0x44] sm:$0xf] %vm1073_vm4, %v1231_v13  ;;  %1092 = vst.msk [vmem:[%s2025_s9 + $0x48] sm:$0xf] %vm1073_vm4, %v1232_v25 }
 0x3f3   : > { %1093 = vst.msk [vmem:[%s2025_s9 + $0x4c] sm:$0xf] %vm1073_vm4, %v1233_v20  ;;  %1094 = vst.msk [vmem:[%s2025_s9 + $0x50] sm:$0xf] %vm1073_vm4, %v1234_v32 }
 0x3f4   : > { %1095 = vst.msk [vmem:[%s2025_s9 + $0x54] sm:$0xf] %vm1073_vm4, %v1235_v27  ;;  %1096 = vst.msk [vmem:[%s2025_s9 + $0x58] sm:$0xf] %vm1073_vm4, %v1236_v39 }
 0x3f5   : > { %1097 = vst.msk [vmem:[%s2025_s9 + $0x5c] sm:$0xf] %vm1073_vm4, %v1237_v34  ;;  %1098 = vst.msk [vmem:[%s2025_s9 + $0x60] sm:$0xf] %vm1073_vm4, %v1238_v46 }
 0x3f6   : > { %1099 = vst.msk [vmem:[%s2025_s9 + $0x64] sm:$0xf] %vm1073_vm4, %v1239_v41  ;;  %1100 = vst.msk [vmem:[%s2025_s9 + $0x68] sm:$0xf] %vm1073_vm4, %v1240_v53 }
 0x3f7   : > { %1101 = vst.msk [vmem:[%s2025_s9 + $0x6c] sm:$0xf] %vm1073_vm4, %v1241_v48  ;;  %1102 = vst.msk [vmem:[%s2025_s9 + $0x70] sm:$0xf] %vm1073_vm4, %v1242_v60 }
 0x3f8   : > { %1103 = vst.msk [vmem:[%s2025_s9 + $0x74] sm:$0xf] %vm1073_vm4, %v1243_v55  ;;  %1104 = vst.msk [vmem:[%s2025_s9 + $0x78] sm:$0xf] %vm1073_vm4, %v1244_v14 }
 0x3f9   : > { %1105 = vst.msk [vmem:[%s2025_s9 + $0x7c] sm:$0xf] %vm1073_vm4, %v1245_v62 }
 0x3fa PF: > { %s15_s18 = sadd.s32 1, %s1371_s18  }
 0x3fb   : > { %p12_p4 = scmp.ge.s32.totalorder %s15_s18, 4  }
 0x3fd   :  { %14 = sbr.rel (!%p12_p4) target bundleno = 1 (0x1), region = 70 }

// kernel: resnet_forward.28
= control target key start
LH: loop header
LB: loop body
LE: loop exit
PB: predicated region body
PF: predicated region fallthrough
CT: control target
= control target key end

     0   :  { %s1162_s9 = smov 0   ;;  %s1164_s10 = smov 0   ;;  %s1269_s0 = inlined_call_operand.vmem [shape: bf16[512,80], index: 0, kind: input, shape index: {}]   ;;  %s1270_s1 = inlined_call_operand.vmem [shape: bf16[80,128], index: 1, kind: input, shape index: {}]   ;;  %s1271_s2 = inlined_call_operand.vmem [shape: bf16[512,128], index: 2, kind: output, shape index: {}]  }
   0x1   :  { %s1166_s11 = smov 0  }
   0x2 LB: > { %s24_s12 = sadd.s32 1, %s1141_s10  ;;  %p802_p0 = scmp.ge.s32.totalorder %s1145_s11, 1  ;;  %s1145_s11 = sphi %s1166_s11, %s12_s11   ;;  %s1141_s10 = sphi %s1164_s10, %s1273_s10   ;;  %s1137_s9 = sphi %s1162_s9, %s1272_s9  }
   0x3   : > { %p26_p1 = scmp.ge.s32.totalorder %s24_s12, 2  ;;  %p136_p2 = scmp.lt.s32.totalorder %s1145_s11, 3 }
   0x5   : > { %s1275_s12 = smov (%p26_p1, %s24_s12), 0  ;;  %p137_p3 = pnand %p802_p0, %p136_p2 }
   0x6   : > { %s803_s15 = sshll.u32 (!%p137_p3), %s1137_s9, 5 }
   0x7   : > { %140 = sbr.rel (%p137_p3) target bundleno = 259 (0x103), region = 28  ;;  %p166_p4 = scmp.lt.s32.totalorder (!%p137_p3), %s803_s15, 63 }
   0xc   : > { %v1102_v0 = vld [vmem:[%s1270_s1 + $0x20] sm:$0xff]   ;;  %v1103_v1 = vld [vmem:[%s1270_s1 + $0x18] sm:$0xff]   ;;  %s1277_s15 = smov (!%p166_p4, %s803_s15), 63  ;;  %v1104_v2 = vld [vmem:[%s1270_s1 + $0x10] sm:$0xff]   ;;  %vm337_vm0 = vcmask 654336  }
   0xd   : > { %1026 = vmatprep.subr.bf16.mxu0 %v1102_v0  ;;  %1068 = vmatprep.subr.bf16.mxu1 %v1102_v0  ;;  %s804_s20 = sshll.u32 %s1277_s15, 2  ;;  %v1105_v3 = vld [vmem:[%s1270_s1 + $0x8] sm:$0xff]   ;;  %v1106_v6 = vld [vmem:[%s1270_s1] sm:$0xff]  }
   0xe   : > { %1027 = vmatpush3.bf16.msra.mxu0 %v1102_v0  ;;  %1073 = vmatpush3.bf16.msra.mxu1 %v1102_v0  ;;  %s1200_s25 = scalar_lea.vmem %s1269_s0, %s804_s20  ;;  %s1242_s30 = scalar_lea.vmem %s1271_s2, %s804_s20 }
   0xf   : > { %1028 = vmatprep.subr.bf16.mxu0 %v1103_v1  ;;  %1069 = vmatprep.subr.bf16.mxu1 %v1103_v1  ;;  %v1107_v4 = vld [vmem:[%s1200_s25] sm:$0xff]   ;;  %v1109_v7 = vld [vmem:[%s1200_s25 + $0x8] sm:$0xff]   ;;  %v1111_v9 = vld [vmem:[%s1200_s25 + $0x10] sm:$0xff]  }
  0x10   : > { %v1108_v5 = vld [vmem:[%s1200_s25 + $0x40] sm:$0xff]   ;;  %1036 = vmatprep.mubr.msk.bf16.mxu0 %vm337_vm0, %v1107_v4  ;;  %v1110_v8 = vld [vmem:[%s1200_s25 + $0x48] sm:$0xff]   ;;  %v1112_v10 = vld [vmem:[%s1200_s25 + $0x50] sm:$0xff]  }
  0x11   : > { %1052 = vmatprep.mubr.msk.bf16.mxu1 %vm337_vm0, %v1108_v5  ;;  %v1113_v11 = vld [vmem:[%s1200_s25 + $0x18] sm:$0xff]   ;;  %v1115_v13 = vld [vmem:[%s1200_s25 + $0x20] sm:$0xff]   ;;  %v1117_v15 = vld [vmem:[%s1200_s25 + $0x28] sm:$0xff]  }
  0x12   : > { %1029 = vmatpush3.bf16.msra.mxu0 %v1103_v1  ;;  %1074 = vmatpush3.bf16.msra.mxu1 %v1103_v1  ;;  %v1114_v12 = vld [vmem:[%s1200_s25 + $0x58] sm:$0xff]   ;;  %v1116_v14 = vld [vmem:[%s1200_s25 + $0x60] sm:$0xff]   ;;  %v1118_v16 = vld [vmem:[%s1200_s25 + $0x68] sm:$0xff]  }
  0x13   : > { %1030 = vmatprep.subr.bf16.mxu0 %v1104_v2  ;;  %1070 = vmatprep.subr.bf16.mxu1 %v1104_v2  ;;  %v1119_v17 = vld [vmem:[%s1200_s25 + $0x30] sm:$0xff]   ;;  %v1121_v19 = vld [vmem:[%s1200_s25 + $0x38] sm:$0xff]  }
  0x14   : > { %v1120_v18 = vld [vmem:[%s1200_s25 + $0x70] sm:$0xff]   ;;  %v1122_v20 = vld [vmem:[%s1200_s25 + $0x78] sm:$0xff]  }
  0x16   : > { %1031 = vmatpush3.bf16.msra.mxu0 %v1104_v2  ;;  %1075 = vmatpush3.bf16.msra.mxu1 %v1104_v2 }
  0x17   : > { %1032 = vmatprep.subr.bf16.mxu0 %v1105_v3  ;;  %1071 = vmatprep.subr.bf16.mxu1 %v1105_v3 }
  0x1a   : > { %1033 = vmatpush3.bf16.msra.mxu0 %v1105_v3  ;;  %1076 = vmatpush3.bf16.msra.mxu1 %v1105_v3 }
  0x1b   : > { %1034 = vmatprep.subr.bf16.mxu0 %v1106_v6  ;;  %1072 = vmatprep.subr.bf16.mxu1 %v1106_v6 }
  0x1e   : > { %1035 = vmatpush3.bf16.msra.mxu0 %v1106_v6  ;;  %1077 = vmatpush3.bf16.msra.mxu1 %v1106_v6 }
  0x21   : > { %1037 = vmatmul.mubr.msk.bf16.vlgmr.msra.gmra.mxu0 %vm337_vm0, %v1109_v7  ;;  %1053 = vmatmul.mubr.msk.bf16.vlgmr.msra.gmra.mxu1 %vm337_vm0, %v1110_v8 }
  0x22   : > { %1040 = vmatprep.mubr.msk.bf16.mxu0 %vm337_vm0, %v1111_v9  ;;  %1056 = vmatprep.mubr.msk.bf16.mxu1 %vm337_vm0, %v1112_v10 }
  0x29   : > { %1041 = vmatmul.mubr.msk.bf16.gmra.mxu0 %vm337_vm0, %v1113_v11  ;;  %1057 = vmatmul.mubr.msk.bf16.gmra.mxu1 %vm337_vm0, %v1114_v12 }
  0x2a   : > { %1044 = vmatprep.mubr.msk.bf16.mxu0 %vm337_vm0, %v1115_v13  ;;  %1060 = vmatprep.mubr.msk.bf16.mxu1 %vm337_vm0, %v1116_v14 }
  0x31   : > { %1045 = vmatmul.mubr.msk.bf16.gmra.mxu0 %vm337_vm0, %v1117_v15  ;;  %1061 = vmatmul.mubr.msk.bf16.gmra.mxu1 %vm337_vm0, %v1118_v16 }
  0x32   : > { %1048 = vmatprep.mubr.msk.bf16.mxu0 %vm337_vm0, %v1119_v17  ;;  %1064 = vmatprep.mubr.msk.bf16.mxu1 %vm337_vm0, %v1120_v18 }
  0x39   : > { %1049 = vmatmul.mubr.msk.bf16.gmra.mxu0 %vm337_vm0, %v1121_v19  ;;  %1065 = vmatmul.mubr.msk.bf16.gmra.mxu1 %vm337_vm0, %v1122_v20 }
  0xe1   : > { %v1038_v21 = vpop.f32.mrf.mxu0  ;;  %v1054_v22 = vpop.f32.mrf.mxu1 }
  0xe3   : > { %v420_v23 = vpop.f32.mrf.mxu0  ;;  %v484_v24 = vpop.f32.mrf.mxu1 }
  0xe5   : > { %v1039_v25 = vpop.f32.mrf.mxu0  ;;  %v1055_v26 = vpop.f32.mrf.mxu1 }
  0xe6   : > { %v918_v27 = vpack.c.bf16 %v1039_v25, %v1038_v21  ;;  %v958_v28 = vpack.c.bf16 %v1055_v26, %v1054_v22 }
  0xe7   : > { %v423_v29 = vpop.f32.mrf.mxu0  ;;  %v487_v30 = vpop.f32.mrf.mxu1 }
  0xe8   : > { %990 = vst [vmem:[%s1242_s30 + $0x8] sm:$0xff] %v918_v27   ;;  %998 = vst [vmem:[%s1242_s30 + $0x48] sm:$0xff] %v958_v28   ;;  %v913_v31 = vpack.c.bf16 %v423_v29, %v420_v23  ;;  %v953_v32 = vpack.c.bf16 %v487_v30, %v484_v24 }
  0xe9   : > { %v1042_v33 = vpop.f32.mrf.mxu0  ;;  %v1058_v34 = vpop.f32.mrf.mxu1 }
  0xea   : > { %914 = vst [vmem:[%s1242_s30] sm:$0xff] %v913_v31   ;;  %997 = vst [vmem:[%s1242_s30 + $0x40] sm:$0xff] %v953_v32  }
  0xeb   : > { %v436_v35 = vpop.f32.mrf.mxu0  ;;  %v500_v36 = vpop.f32.mrf.mxu1 }
  0xed   : > { %v1043_v37 = vpop.f32.mrf.mxu0  ;;  %v1059_v38 = vpop.f32.mrf.mxu1 }
  0xee   : > { %v928_v39 = vpack.c.bf16 %v1043_v37, %v1042_v33  ;;  %v968_v40 = vpack.c.bf16 %v1059_v38, %v1058_v34 }
  0xef   : > { %v439_v41 = vpop.f32.mrf.mxu0  ;;  %v503_v42 = vpop.f32.mrf.mxu1 }
  0xf0   : > { %992 = vst [vmem:[%s1242_s30 + $0x18] sm:$0xff] %v928_v39   ;;  %1000 = vst [vmem:[%s1242_s30 + $0x58] sm:$0xff] %v968_v40   ;;  %v923_v43 = vpack.c.bf16 %v439_v41, %v436_v35  ;;  %v963_v44 = vpack.c.bf16 %v503_v42, %v500_v36 }
  0xf1   : > { %v1046_v45 = vpop.f32.mrf.mxu0  ;;  %v1062_v46 = vpop.f32.mrf.mxu1 }
  0xf2   : > { %991 = vst [vmem:[%s1242_s30 + $0x10] sm:$0xff] %v923_v43   ;;  %999 = vst [vmem:[%s1242_s30 + $0x50] sm:$0xff] %v963_v44  }
  0xf3   : > { %v452_v47 = vpop.f32.mrf.mxu0  ;;  %v516_v48 = vpop.f32.mrf.mxu1 }
  0xf5   : > { %v1047_v49 = vpop.f32.mrf.mxu0  ;;  %v1063_v50 = vpop.f32.mrf.mxu1 }
  0xf6   : > { %v938_v51 = vpack.c.bf16 %v1047_v49, %v1046_v45  ;;  %v978_v52 = vpack.c.bf16 %v1063_v50, %v1062_v46 }
  0xf7   : > { %v455_v53 = vpop.f32.mrf.mxu0  ;;  %v519_v54 = vpop.f32.mrf.mxu1 }
  0xf8   : > { %994 = vst [vmem:[%s1242_s30 + $0x28] sm:$0xff] %v938_v51   ;;  %1002 = vst [vmem:[%s1242_s30 + $0x68] sm:$0xff] %v978_v52   ;;  %v933_v55 = vpack.c.bf16 %v455_v53, %v452_v47  ;;  %v973_v56 = vpack.c.bf16 %v519_v54, %v516_v48 }
  0xf9   : > { %v1050_v57 = vpop.f32.mrf.mxu0  ;;  %v1066_v58 = vpop.f32.mrf.mxu1 }
  0xfa   : > { %993 = vst [vmem:[%s1242_s30 + $0x20] sm:$0xff] %v933_v55   ;;  %1001 = vst [vmem:[%s1242_s30 + $0x60] sm:$0xff] %v973_v56  }
  0xfb   : > { %v468_v59 = vpop.f32.mrf.mxu0  ;;  %v532_v60 = vpop.f32.mrf.mxu1 }
  0xfd   : > { %v1051_v61 = vpop.f32.mrf.mxu0  ;;  %v1067_v62 = vpop.f32.mrf.mxu1 }
  0xfe   : > { %v948_v63 = vpack.c.bf16 %v1051_v61, %v1050_v57  ;;  %v988_v0 = vpack.c.bf16 %v1067_v62, %v1066_v58 }
  0xff   : > { %v471_v1 = vpop.f32.mrf.mxu0  ;;  %v535_v2 = vpop.f32.mrf.mxu1 }
 0x100   : > { %996 = vst [vmem:[%s1242_s30 + $0x38] sm:$0xff] %v948_v63   ;;  %1004 = vst [vmem:[%s1242_s30 + $0x78] sm:$0xff] %v988_v0   ;;  %v943_v3 = vpack.c.bf16 %v471_v1, %v468_v59  ;;  %v983_v4 = vpack.c.bf16 %v535_v2, %v532_v60 }
 0x102   : > { %995 = vst [vmem:[%s1242_s30 + $0x30] sm:$0xff] %v943_v3   ;;  %1003 = vst [vmem:[%s1242_s30 + $0x70] sm:$0xff] %v983_v4  }
 0x103 PF: > { %s12_s11 = sadd.s32 1, %s1145_s11   ;;  %s1272_s9 = smov %s1141_s10 }
 0x104   : > { %p9_p5 = scmp.ge.s32.totalorder %s12_s11, 4   ;;  %s1273_s10 = smov %s1275_s12 }
 0x106   :  { %11 = sbr.rel (!%p9_p5) target bundleno = 2 (0x2), region = 61 }

// kernel: resnet_forward.31
= control target key start
LH: loop header
LB: loop body
LE: loop exit
PB: predicated region body
PF: predicated region fallthrough
CT: control target
= control target key end

     0   :  { %s1647_s21 = smov 0   ;;  %s2487_s0 = inlined_call_operand.vmem [shape: bf16[2,256,8], index: 0, kind: input, shape index: {}]   ;;  %s2488_s1 = inlined_call_operand.vmem [shape: f32[8,2], index: 1, kind: input, shape index: {}]   ;;  %s2489_s2 = inlined_call_operand.vmem [shape: f32[2,8], index: 2, kind: input, shape index: {}]   ;;  %s2490_s3 = inlined_call_operand.vmem [shape: f32[1,8], index: 3, kind: input, shape index: {}]   ;;  %s2491_s4 = inlined_call_operand.vmem [shape: f32[1,8], index: 4, kind: input, shape index: {}]   ;;  %s2492_s5 = inlined_call_operand.vmem [shape: bf16[2,256,8], index: 5, kind: input, shape index: {}]   ;;  %s2493_s6 = inlined_call_operand.vmem [shape: bf16[2,256,8], index: 6, kind: output, shape index: {}]  }
   0x1 LB: > { %s1316_s22 = sadd.s32 4294967295, %s1608_s21   ;;  %p1320_p0 = scmp.ge.s32.totalorder %s1608_s21, 1  ;;  %s1608_s21 = sphi %s1647_s21, %s16_s21  }
   0x2   : > { %p222_p1 = scmp.lt.s32.totalorder %s1608_s21, 3 }
   0x4   : > { %p223_p2 = pnand %p1320_p0, %p222_p1 }
   0x6   : > { %226 = sbr.rel (%p223_p2) target bundleno = 1036 (0x40c), region = 44 }
   0xb   : > { %v1658_v0 = vld [vmem:[%s2488_s1] sm:$0xff]  ;;  %p257_p3 = scmp.lt.s32.totalorder %s1316_s22, 1  ;;  %v1610_v1 = vmov 0.0   ;;  %vm1611_vm0 = vmmov 0   ;;  %vm336_vm1 = vcmask 64512   ;;  %vm486_vm2 = vcmask 1041408  }
   0xc   : > { %1570 = vmatprep.subr.mxu0 %v1610_v1  ;;  %1572 = vmatprep.mubr.msk.f32.mxu0 %vm1611_vm0, %v1610_v1  ;;  %vm482_vm3 = vcmask 15360   ;;  %vm1216_vm4 = vcmask 60416  }
   0xd   : > { %1571 = vmatpush3.msra.mxu0 %v1658_v0  ;;  %s2553_s22 = smov (!%p257_p3, %s1316_s22), 1  ;;  %1575 = vmatprep.subr.mxu1 %v1610_v1 }
   0xe   : > { %1577 = vmatprep.mubr.msk.f32.mxu1 %vm1611_vm0, %v1610_v1  ;;  %1580 = vmatprep.subr.mxu0 %v1610_v1  ;;  %s1668_s25 = sshll.u32 %s2553_s22, 7 }
   0xf   : > { %s1674_s28 = scalar_lea.vmem %s2487_s0, %s1668_s25  ;;  %s2132_s9 = scalar_lea.vmem %s2492_s5, %s1668_s25 }
  0x10   : > { %v1677_v2 = vld [vmem:[%s1674_s28] sm:$0xff]   ;;  %v1680_v3 = vld [vmem:[%s1674_s28 + $0x8] sm:$0xff]   ;;  %v1686_v7 = vld [vmem:[%s1674_s28 + $0x10] sm:$0xff]   ;;  %s2414_s16 = scalar_lea.vmem %s2493_s6, %s1668_s25 }
  0x11   : > { %v1406_v4 = vunpack.c.l.bf16 %v1677_v2  ;;  %v1407_v5 = vunpack.c.h.bf16 %v1677_v2  ;;  %v1410_v6 = vunpack.c.l.bf16 %v1680_v3  ;;  %v1411_v8 = vunpack.c.h.bf16 %v1680_v3  ;;  %v1700_v13 = vld [vmem:[%s1674_s28 + $0x18] sm:$0xff]   ;;  %v1711_v20 = vld [vmem:[%s1674_s28 + $0x20] sm:$0xff]   ;;  %v1722_v27 = vld [vmem:[%s1674_s28 + $0x28] sm:$0xff]  }
  0x12   : > { %v1414_v9 = vunpack.c.l.bf16 %v1686_v7  ;;  %v1415_v15 = vunpack.c.h.bf16 %v1686_v7  ;;  %v1418_v18 = vunpack.c.l.bf16 %v1700_v13  ;;  %v1419_v22 = vunpack.c.h.bf16 %v1700_v13  ;;  %v1733_v34 = vld [vmem:[%s1674_s28 + $0x30] sm:$0xff]   ;;  %v1744_v41 = vld [vmem:[%s1674_s28 + $0x38] sm:$0xff]   ;;  %v1755_v48 = vld [vmem:[%s1674_s28 + $0x40] sm:$0xff]  }
  0x13   : > { %v337_v10 = vsel %vm336_vm1, %v1406_v4, 0.0  ;;  %v338_v11 = vsel %vm336_vm1, %v1407_v5, 0.0  ;;  %v340_v12 = vsel %vm336_vm1, %v1410_v6, 0.0  ;;  %v342_v16 = vsel %vm336_vm1, %v1411_v8, 0.0  ;;  %v1766_v55 = vld [vmem:[%s1674_s28 + $0x48] sm:$0xff]   ;;  %v1777_v62 = vld [vmem:[%s1674_s28 + $0x50] sm:$0xff]  }
  0x14   : > { %v339_v14 = vadd.f32 %v338_v11, %v337_v10  ;;  %v344_v19 = vsel %vm336_vm1, %v1414_v9, 0.0  ;;  %v346_v23 = vsel %vm336_vm1, %v1415_v15, 0.0  ;;  %v1422_v25 = vunpack.c.l.bf16 %v1711_v20 }
  0x15   : > { %v348_v26 = vsel %vm336_vm1, %v1418_v18, 0.0  ;;  %v1423_v29 = vunpack.c.h.bf16 %v1711_v20  ;;  %v350_v30 = vsel %vm336_vm1, %v1419_v22, 0.0  ;;  %v1426_v32 = vunpack.c.l.bf16 %v1722_v27 }
  0x16   : > { %v341_v17 = vadd.f32 %v340_v12, %v339_v14  ;;  %v352_v33 = vsel %vm336_vm1, %v1422_v25, 0.0  ;;  %v1427_v36 = vunpack.c.h.bf16 %v1722_v27  ;;  %v1430_v39 = vunpack.c.l.bf16 %v1733_v34 }
  0x17   : > { %v354_v37 = vsel %vm336_vm1, %v1423_v29, 0.0  ;;  %v356_v40 = vsel %vm336_vm1, %v1426_v32, 0.0  ;;  %v1431_v43 = vunpack.c.h.bf16 %v1733_v34  ;;  %v1434_v46 = vunpack.c.l.bf16 %v1744_v41 }
  0x18   : > { %v343_v21 = vadd.f32 %v342_v16, %v341_v17  ;;  %v358_v44 = vsel %vm336_vm1, %v1427_v36, 0.0  ;;  %v360_v47 = vsel %vm336_vm1, %v1430_v39, 0.0  ;;  %v1435_v50 = vunpack.c.h.bf16 %v1744_v41  ;;  %v1788_v17 = vld [vmem:[%s1674_s28 + $0x58] sm:$0xff]  }
  0x19   : > { %v362_v51 = vsel %vm336_vm1, %v1431_v43, 0.0  ;;  %v1438_v53 = vunpack.c.l.bf16 %v1755_v48  ;;  %v364_v54 = vsel %vm336_vm1, %v1434_v46, 0.0  ;;  %v1439_v57 = vunpack.c.h.bf16 %v1755_v48 }
  0x1a   : > { %v345_v24 = vadd.f32 %v344_v19, %v343_v21  ;;  %v366_v58 = vsel %vm336_vm1, %v1435_v50, 0.0  ;;  %v1442_v60 = vunpack.c.l.bf16 %v1766_v55  ;;  %v1443_v10 = vunpack.c.h.bf16 %v1766_v55 }
  0x1b   : > { %v368_v61 = vsel %vm336_vm1, %v1438_v53, 0.0  ;;  %v370_v11 = vsel %vm336_vm1, %v1439_v57, 0.0  ;;  %v1446_v14 = vunpack.c.l.bf16 %v1777_v62  ;;  %v1447_v21 = vunpack.c.h.bf16 %v1777_v62 }
  0x1c   : > { %v347_v28 = vadd.f32 %v346_v23, %v345_v24  ;;  %v372_v16 = vsel %vm336_vm1, %v1442_v60, 0.0  ;;  %v374_v23 = vsel %vm336_vm1, %v1443_v10, 0.0 }
  0x1e   : > { %v349_v31 = vadd.f32 %v348_v26, %v347_v28  ;;  %v1450_v26 = vunpack.c.l.bf16 %v1788_v17  ;;  %v376_v28 = vsel %vm336_vm1, %v1446_v14, 0.0 }
  0x20   : > { %v351_v35 = vadd.f32 %v350_v30, %v349_v31  ;;  %v1799_v30 = vld [vmem:[%s1674_s28 + $0x60] sm:$0xff]  }
  0x22   : > { %v353_v38 = vadd.f32 %v352_v33, %v351_v35  ;;  %v1451_v33 = vunpack.c.h.bf16 %v1788_v17  ;;  %v378_v35 = vsel %vm336_vm1, %v1447_v21, 0.0 }
  0x24   : > { %v355_v42 = vadd.f32 %v354_v37, %v353_v38  ;;  %v1454_v38 = vunpack.c.l.bf16 %v1799_v30 }
  0x26   : > { %v357_v45 = vadd.f32 %v356_v40, %v355_v42  ;;  %v380_v40 = vsel %vm336_vm1, %v1450_v26, 0.0  ;;  %v1810_v42 = vld [vmem:[%s1674_s28 + $0x68] sm:$0xff]  }
  0x28   : > { %v359_v49 = vadd.f32 %v358_v44, %v357_v45  ;;  %v1455_v45 = vunpack.c.h.bf16 %v1799_v30 }
  0x2a   : > { %v361_v52 = vadd.f32 %v360_v47, %v359_v49  ;;  %v382_v47 = vsel %vm336_vm1, %v1451_v33, 0.0 }
  0x2c   : > { %v363_v56 = vadd.f32 %v362_v51, %v361_v52  ;;  %v1458_v51 = vunpack.c.l.bf16 %v1810_v42  ;;  %v384_v52 = vsel %vm336_vm1, %v1454_v38, 0.0 }
  0x2e   : > { %v365_v59 = vadd.f32 %v364_v54, %v363_v56  ;;  %v1821_v54 = vld [vmem:[%s1674_s28 + $0x70] sm:$0xff]  }
  0x30   : > { %v367_v63 = vadd.f32 %v366_v58, %v365_v59  ;;  %v1459_v58 = vunpack.c.h.bf16 %v1810_v42  ;;  %v386_v59 = vsel %vm336_vm1, %v1455_v45, 0.0 }
  0x32   : > { %v369_v12 = vadd.f32 %v368_v61, %v367_v63  ;;  %v2494_v63 = vunpack.c.l.bf16 %v1821_v54 }
  0x34   : > { %v371_v19 = vadd.f32 %v370_v11, %v369_v12  ;;  %v388_v11 = vsel %vm336_vm1, %v1458_v51, 0.0  ;;  %v1832_v12 = vld [vmem:[%s1674_s28 + $0x78] sm:$0xff]  }
  0x36   : > { %v373_v24 = vadd.f32 %v372_v16, %v371_v19  ;;  %v1463_v19 = vunpack.c.h.bf16 %v1821_v54 }
  0x38   : > { %v375_v31 = vadd.f32 %v374_v23, %v373_v24  ;;  %v390_v23 = vsel %vm336_vm1, %v1459_v58, 0.0 }
  0x3a   : > { %v377_v37 = vadd.f32 %v376_v28, %v375_v31  ;;  %v1466_v28 = vunpack.c.l.bf16 %v1832_v12  ;;  %v392_v31 = vsel %vm336_vm1, %v2494_v63, 0.0 }
  0x3c   : > { %v379_v44 = vadd.f32 %v378_v35, %v377_v37  ;;  %v1467_v37 = vunpack.c.h.bf16 %v1832_v12 }
  0x3e   : > { %v381_v49 = vadd.f32 %v380_v40, %v379_v44  ;;  %v394_v40 = vsel %vm336_vm1, %v1463_v19, 0.0 }
  0x40   : > { %v383_v56 = vadd.f32 %v382_v47, %v381_v49  ;;  %v396_v47 = vsel %vm336_vm1, %v1466_v28, 0.0 }
  0x42   : > { %v385_v61 = vadd.f32 %v384_v52, %v383_v56  ;;  %v398_v52 = vsel %vm336_vm1, %v1467_v37, 0.0 }
  0x44   : > { %v387_v16 = vadd.f32 %v386_v59, %v385_v61 }
  0x46   : > { %v389_v24 = vadd.f32 %v388_v11, %v387_v16 }
  0x48   : > { %v391_v35 = vadd.f32 %v390_v23, %v389_v24 }
  0x4a   : > { %v393_v44 = vadd.f32 %v392_v31, %v391_v35  ;;  %v481_v31 = vld [vmem:[%s2489_s2] sm:$0x3] }
  0x4b   : > { %1576 = vmatpush3.msk.msra.mxu1 %vm486_vm2, %v481_v31 }
  0x4c   : > { %v395_v49 = vadd.f32 %v394_v40, %v393_v44  ;;  %1585 = vmatprep.subr.mxu1 %v1610_v1 }
  0x4e   : > { %v397_v56 = vadd.f32 %v396_v47, %v395_v49 }
  0x50   : > { %v399_v59 = vadd.f32 %v398_v52, %v397_v56 }
  0x52   : > { %v400_v61 = vrot.slane %v399_v59, 4 }
  0x54   : > { %v401_v11 = vadd.f32 %v400_v61, %v399_v59 }
  0x56   : > { %v402_v16 = vrot.slane %v401_v11, 2 }
  0x58   : > { %v403_v23 = vadd.f32 %v402_v16, %v401_v11 }
  0x5a   : > { %v404_v24 = vrot.slane %v403_v23, 1 }
  0x5c   : > { %v405_v63 = vadd.f32 %v404_v24, %v403_v23 }
  0x5e   : > { %1573 = vmatmul.mubr.msk.f32.vlgmr.msra.gmra.mxu0 %vm336_vm1, %v405_v63 }
  0x5f   : > { %1581 = vmatpush3.msra.mxu0 %v1658_v0  ;;  %1582 = vmatprep.mubr.msk.f32.mxu0 %vm1611_vm0, %v1610_v1  ;;  %v560_v0 = vlaneseq }
  0x61   : > { %v1863_v63 = vshrl.u32 %v560_v0, 7 }
  0x63   : > { %v562_v52 = vsub.s32 0, %v1863_v63 }
 0x11e   : > { %v476_v35 = vpop.f32.mrf.mxu0 }
 0x11f   : > { %v480_v40 = vmul.f32 0.0009765625, %v476_v35 }
 0x120   : > { %v1574_v44 = vpop.f32.mrf.mxu0 }
 0x121   : > { %1578 = vmatmul.mubr.msk.f32.vlgmr.msra.gmra.mxu1 %vm482_vm3, %v480_v40 }
 0x122   : > { %1586 = vmatpush3.msk.msra.mxu1 %vm486_vm2, %v481_v31  ;;  %1587 = vmatprep.mubr.msk.f32.mxu1 %vm1611_vm0, %v1610_v1 }
 0x1e1   : > { %v556_v47 = vpop.f32.mrf.mxu1 }
 0x1e2   : > { %v1868_v56 = vrot.slane %v556_v47, %v562_v52 }
 0x1e3   : > { %v1579_v49 = vpop.f32.mrf.mxu1 }
 0x1e4   : > { %v1873_v59 = vsub.f32 %v1406_v4, %v1868_v56  ;;  %v1878_v1 = vsub.f32 %v1407_v5, %v1868_v56  ;;  %v1883_v61 = vsub.f32 %v1410_v6, %v1868_v56  ;;  %v1888_v11 = vsub.f32 %v1411_v8, %v1868_v56 }
 0x1e5   : > { %v1897_v2 = vsub.f32 %v1414_v9, %v1868_v56  ;;  %v1904_v3 = vsub.f32 %v1415_v15, %v1868_v56  ;;  %v1913_v9 = vsub.f32 %v1418_v18, %v1868_v56  ;;  %v1921_v35 = vsub.f32 %v1419_v22, %v1868_v56 }
 0x1e6   : > { %v596_v16 = vmul.f32 %v1873_v59, %v1873_v59  ;;  %v597_v4 = vmul.f32 %v1878_v1, %v1878_v1  ;;  %v598_v5 = vmul.f32 %v1883_v61, %v1883_v61  ;;  %v599_v6 = vmul.f32 %v1888_v11, %v1888_v11 }
 0x1e7   : > { %v600_v31 = vmul.f32 %v1897_v2, %v1897_v2  ;;  %v601_v40 = vmul.f32 %v1904_v3, %v1904_v3  ;;  %v1929_v18 = vsub.f32 %v1422_v25, %v1868_v56  ;;  %v602_v47 = vmul.f32 %v1913_v9, %v1913_v9 }
 0x1e8   : > { %v628_v8 = vsel %vm336_vm1, %v596_v16, 0.0  ;;  %v629_v23 = vsel %vm336_vm1, %v597_v4, 0.0  ;;  %v631_v7 = vsel %vm336_vm1, %v598_v5, 0.0  ;;  %v633_v44 = vsel %vm336_vm1, %v599_v6, 0.0 }
 0x1e9   : > { %v630_v24 = vadd.f32 %v629_v23, %v628_v8  ;;  %v635_v49 = vsel %vm336_vm1, %v600_v31, 0.0  ;;  %v1937_v13 = vsub.f32 %v1423_v29, %v1868_v56  ;;  %v603_v22 = vmul.f32 %v1921_v35, %v1921_v35 }
 0x1ea   : > { %v637_v4 = vsel %vm336_vm1, %v601_v40, 0.0  ;;  %v1945_v25 = vsub.f32 %v1426_v32, %v1868_v56  ;;  %v604_v6 = vmul.f32 %v1929_v18, %v1929_v18  ;;  %v639_v8 = vsel %vm336_vm1, %v602_v47, 0.0 }
 0x1eb   : > { %v632_v15 = vadd.f32 %v631_v7, %v630_v24  ;;  %v1953_v20 = vsub.f32 %v1427_v36, %v1868_v56  ;;  %v605_v29 = vmul.f32 %v1937_v13, %v1937_v13  ;;  %v641_v24 = vsel %vm336_vm1, %v603_v22, 0.0 }
 0x1ec   : > { %v1961_v32 = vsub.f32 %v1430_v39, %v1868_v56  ;;  %v606_v7 = vmul.f32 %v1945_v25, %v1945_v25  ;;  %v1969_v27 = vsub.f32 %v1431_v43, %v1868_v56  ;;  %v1977_v39 = vsub.f32 %v1434_v46, %v1868_v56 }
 0x1ed   : > { %v634_v0 = vadd.f32 %v633_v44, %v632_v15  ;;  %v643_v15 = vsel %vm336_vm1, %v604_v6, 0.0  ;;  %v607_v36 = vmul.f32 %v1953_v20, %v1953_v20  ;;  %v645_v44 = vsel %vm336_vm1, %v605_v29, 0.0 }
 0x1ee   : > { %v608_v47 = vmul.f32 %v1961_v32, %v1961_v32  ;;  %v1985_v34 = vsub.f32 %v1435_v50, %v1868_v56  ;;  %v609_v43 = vmul.f32 %v1969_v27, %v1969_v27  ;;  %v1993_v46 = vsub.f32 %v1438_v53, %v1868_v56 }
 0x1ef   : > { %v636_v16 = vadd.f32 %v635_v49, %v634_v0  ;;  %v647_v49 = vsel %vm336_vm1, %v606_v7, 0.0  ;;  %v649_v22 = vsel %vm336_vm1, %v607_v36, 0.0  ;;  %v2001_v41 = vsub.f32 %v1439_v57, %v1868_v56 }
 0x1f0   : > { %v651_v6 = vsel %vm336_vm1, %v608_v47, 0.0  ;;  %v611_v50 = vmul.f32 %v1985_v34, %v1985_v34  ;;  %v2009_v53 = vsub.f32 %v1442_v60, %v1868_v56  ;;  %v2017_v48 = vsub.f32 %v1443_v10, %v1868_v56 }
 0x1f1   : > { %v638_v5 = vadd.f32 %v637_v4, %v636_v16  ;;  %v613_v57 = vmul.f32 %v2001_v41, %v2001_v41  ;;  %v2025_v60 = vsub.f32 %v1446_v14, %v1868_v56  ;;  %v2033_v55 = vsub.f32 %v1447_v21, %v1868_v56 }
 0x1f2   : > { %v614_v36 = vmul.f32 %v2009_v53, %v2009_v53  ;;  %v615_v10 = vmul.f32 %v2017_v48, %v2017_v48  ;;  %v2041_v14 = vsub.f32 %v1450_v26, %v1868_v56  ;;  %v2049_v62 = vsub.f32 %v1451_v33, %v1868_v56 }
 0x1f3   : > { %v640_v23 = vadd.f32 %v639_v8, %v638_v5  ;;  %v610_v5 = vmul.f32 %v1977_v39, %v1977_v39  ;;  %v661_v47 = vsel %vm336_vm1, %v613_v57, 0.0  ;;  %v617_v21 = vmul.f32 %v2033_v55, %v2033_v55 }
 0x1f4   : > { %v2057_v26 = vsub.f32 %v1454_v38, %v1868_v56  ;;  %v2065_v17 = vsub.f32 %v1455_v45, %v1868_v56  ;;  %v619_v33 = vmul.f32 %v2049_v62, %v2049_v62  ;;  %v2073_v38 = vsub.f32 %v1458_v51, %v1868_v56 }
 0x1f5   : > { %v642_v31 = vadd.f32 %v641_v24, %v640_v23  ;;  %v653_v23 = vsel %vm336_vm1, %v609_v43, 0.0  ;;  %v612_v24 = vmul.f32 %v1993_v46, %v1993_v46  ;;  %v663_v43 = vsel %vm336_vm1, %v614_v36, 0.0 }
 0x1f6   : > { %v2081_v30 = vsub.f32 %v1459_v58, %v1868_v56  ;;  %v621_v45 = vmul.f32 %v2065_v17, %v2065_v17  ;;  %v673_v57 = vsel %vm336_vm1, %v619_v33, 0.0  ;;  %v2507_v51 = vunpack.c.l.bf16 %v1821_v54 }
 0x1f7   : > { %v644_v40 = vadd.f32 %v643_v15, %v642_v31  ;;  %v655_v31 = vsel %vm336_vm1, %v610_v5, 0.0  ;;  %v657_v15 = vsel %vm336_vm1, %v611_v50, 0.0  ;;  %v622_v36 = vmul.f32 %v2073_v38, %v2073_v38 }
 0x1f8   : > { %v2097_v42 = vsub.f32 %v1463_v19, %v1868_v56  ;;  %v623_v58 = vmul.f32 %v2081_v30, %v2081_v30  ;;  %v2113_v54 = vsub.f32 %v1467_v37, %v1868_v56 }
 0x1f9   : > { %v646_v0 = vadd.f32 %v645_v44, %v644_v40  ;;  %v659_v44 = vsel %vm336_vm1, %v612_v24, 0.0  ;;  %v620_v24 = vmul.f32 %v2057_v26, %v2057_v26 }
 0x1fa   : > { %v625_v19 = vmul.f32 %v2097_v42, %v2097_v42 }
 0x1fb   : > { %v648_v16 = vadd.f32 %v647_v49, %v646_v0 }
 0x1fd   : > { %v650_v4 = vadd.f32 %v649_v22, %v648_v16  ;;  %v616_v16 = vmul.f32 %v2025_v60, %v2025_v60 }
 0x1ff   : > { %v652_v8 = vadd.f32 %v651_v6, %v650_v4  ;;  %v665_v4 = vsel %vm336_vm1, %v615_v10, 0.0  ;;  %v618_v6 = vmul.f32 %v2041_v14, %v2041_v14  ;;  %v677_v10 = vsel %vm336_vm1, %v621_v45, 0.0 }
 0x201   : > { %v654_v29 = vadd.f32 %v653_v23, %v652_v8  ;;  %v667_v8 = vsel %vm336_vm1, %v616_v16, 0.0  ;;  %v669_v23 = vsel %vm336_vm1, %v617_v21, 0.0  ;;  %v681_v21 = vsel %vm336_vm1, %v623_v58, 0.0  ;;  %v2135_v58 = vld [vmem:[%s2132_s9] sm:$0xff]  }
 0x203   : > { %v656_v7 = vadd.f32 %v655_v31, %v654_v29  ;;  %v671_v31 = vsel %vm336_vm1, %v618_v6, 0.0 }
 0x205   : > { %v658_v40 = vadd.f32 %v657_v15, %v656_v7 }
 0x207   : > { %v660_v0 = vadd.f32 %v659_v44, %v658_v40  ;;  %v2089_v40 = vsub.f32 %v2507_v51, %v1868_v56  ;;  %v675_v44 = vsel %vm336_vm1, %v620_v24, 0.0 }
 0x209   : > { %v662_v49 = vadd.f32 %v661_v47, %v660_v0  ;;  %v624_v16 = vmul.f32 %v2089_v40, %v2089_v40 }
 0x20b   : > { %v664_v22 = vadd.f32 %v663_v43, %v662_v49  ;;  %v2105_v49 = vsub.f32 %v1466_v28, %v1868_v56  ;;  %v679_v43 = vsel %vm336_vm1, %v622_v36, 0.0 }
 0x20d   : > { %v666_v5 = vadd.f32 %v665_v4, %v664_v22  ;;  %v626_v28 = vmul.f32 %v2105_v49, %v2105_v49 }
 0x20f   : > { %v668_v50 = vadd.f32 %v667_v8, %v666_v5  ;;  %v683_v5 = vsel %vm336_vm1, %v624_v16, 0.0  ;;  %v627_v8 = vmul.f32 %v2113_v54, %v2113_v54  ;;  %v687_v37 = vsel %vm336_vm1, %v626_v28, 0.0  ;;  %v2144_v16 = vld [vmem:[%s2132_s9 + $0x18] sm:$0xff]  }
 0x211   : > { %v670_v29 = vadd.f32 %v669_v23, %v668_v50  ;;  %v685_v50 = vsel %vm336_vm1, %v625_v19, 0.0  ;;  %v689_v33 = vsel %vm336_vm1, %v627_v8, 0.0  ;;  %v2151_v19 = vld [vmem:[%s2132_s9 + $0x28] sm:$0xff]   ;;  %v2161_v8 = vld [vmem:[%s2132_s9 + $0x38] sm:$0xff]  }
 0x213   : > { %v672_v7 = vadd.f32 %v671_v31, %v670_v29 }
 0x215   : > { %v674_v15 = vadd.f32 %v673_v57, %v672_v7 }
 0x217   : > { %v676_v0 = vadd.f32 %v675_v44, %v674_v15 }
 0x219   : > { %v678_v47 = vadd.f32 %v677_v10, %v676_v0  ;;  %v2138_v10 = vld [vmem:[%s2132_s9 + $0x8] sm:$0xff]  }
 0x21b   : > { %v680_v22 = vadd.f32 %v679_v43, %v678_v47  ;;  %v2141_v47 = vld [vmem:[%s2132_s9 + $0x10] sm:$0xff]   ;;  %v2147_v43 = vld [vmem:[%s2132_s9 + $0x20] sm:$0xff]  }
 0x21d   : > { %v682_v4 = vadd.f32 %v681_v21, %v680_v22  ;;  %v2154_v21 = vld [vmem:[%s2132_s9 + $0x30] sm:$0xff]  }
 0x21f   : > { %v684_v6 = vadd.f32 %v683_v5, %v682_v4 }
 0x221   : > { %v686_v12 = vadd.f32 %v685_v50, %v684_v6  ;;  %v2164_v50 = vld [vmem:[%s2132_s9 + $0x40] sm:$0xff]  }
 0x223   : > { %v688_v56 = vadd.f32 %v687_v37, %v686_v12  ;;  %v2201_v37 = vld [vmem:[%s2132_s9 + $0x78] sm:$0xff]  }
 0x224   : > { %2513 = vst [vmem:[#allocation7_spill] sm:$0xff] %v2201_v37 }
 0x225   : > { %v690_v23 = vadd.f32 %v689_v33, %v688_v56  ;;  %v2198_v56 = vld [vmem:[%s2132_s9 + $0x70] sm:$0xff]  }
 0x226   : > { %2512 = vst [vmem:[#allocation6_spill] sm:$0xff] %v2198_v56 }
 0x227   : > { %v691_v29 = vrot.slane %v690_v23, 4 }
 0x229   : > { %v692_v24 = vadd.f32 %v691_v29, %v690_v23  ;;  %v2171_v23 = vld [vmem:[%s2132_s9 + $0x48] sm:$0xff]   ;;  %v2174_v29 = vld [vmem:[%s2132_s9 + $0x50] sm:$0xff]  }
 0x22a   : > { %2508 = vst [vmem:[#allocation2_spill] sm:$0xff] %v2174_v29 }
 0x22b   : > { %v693_v31 = vrot.slane %v692_v24, 2 }
 0x22d   : > { %v694_v7 = vadd.f32 %v693_v31, %v692_v24  ;;  %v2191_v24 = vld [vmem:[%s2132_s9 + $0x68] sm:$0xff]  }
 0x22e   : > { %2511 = vst [vmem:[#allocation5_spill] sm:$0xff] %v2191_v24 }
 0x22f   : > { %v695_v45 = vrot.slane %v694_v7, 1 }
 0x231   : > { %v696_v57 = vadd.f32 %v695_v45, %v694_v7 }
 0x233   : > { %1583 = vmatmul.mubr.msk.f32.vlgmr.msra.gmra.mxu0 %vm336_vm1, %v696_v57  ;;  %v2181_v57 = vld [vmem:[%s2132_s9 + $0x58] sm:$0xff]  }
 0x234   : > { %2509 = vst [vmem:[#allocation3_spill] sm:$0xff] %v2181_v57 }
 0x2f3   : > { %v766_v15 = vpop.f32.mrf.mxu0 }
 0x2f4   : > { %v770_v51 = vmul.f32 0.0009765625, %v766_v15  ;;  %v2184_v15 = vld [vmem:[%s2132_s9 + $0x60] sm:$0xff]  }
 0x2f5   : > { %v1584_v36 = vpop.f32.mrf.mxu0  ;;  %2510 = vst [vmem:[#allocation4_spill] sm:$0xff] %v2184_v15 }
 0x2f6   : > { %v771_v44 = vadd.f32 1e-05, %v770_v51 }
 0x2f8   : > { %1600 = vrsqrt.f32 %v771_v44 }
 0x305   : > { %v1601_v0 = vpop.eup %1600 }
 0x306   : > { %1588 = vmatmul.mubr.msk.f32.vlgmr.msra.gmra.mxu1 %vm482_vm3, %v1601_v0 }
 0x3c6   : > { %v842_v12 = vpop.f32.mrf.mxu1 }
 0x3c7   : > { %v849_v33 = vrot.slane %v842_v12, %v562_v52 }
 0x3c8   : > { %v1589_v5 = vpop.f32.mrf.mxu1 }
 0x3c9   : > { %v850_v51 = vmul.f32 %v849_v33, %v1873_v59  ;;  %v851_v31 = vmul.f32 %v849_v33, %v1878_v1  ;;  %v852_v7 = vmul.f32 %v849_v33, %v1883_v61  ;;  %v853_v45 = vmul.f32 %v849_v33, %v1888_v11 }
 0x3ca   : > { %v854_v63 = vmul.f32 %v849_v33, %v1897_v2  ;;  %v855_v52 = vmul.f32 %v849_v33, %v1904_v3  ;;  %v856_v12 = vmul.f32 %v849_v33, %v1913_v9  ;;  %v857_v36 = vmul.f32 %v849_v33, %v1921_v35 }
 0x3cb   : > { %v858_v44 = vmul.f32 %v849_v33, %v1929_v18  ;;  %v859_v5 = vmul.f32 %v849_v33, %v1937_v13  ;;  %v860_v59 = vmul.f32 %v849_v33, %v1945_v25  ;;  %v861_v1 = vmul.f32 %v849_v33, %v1953_v20 }
 0x3cc   : > { %v862_v61 = vmul.f32 %v849_v33, %v1961_v32  ;;  %v863_v11 = vmul.f32 %v849_v33, %v1969_v27  ;;  %v864_v2 = vmul.f32 %v849_v33, %v1977_v39  ;;  %v865_v3 = vmul.f32 %v849_v33, %v1985_v34  ;;  %v1333_v39 = vld [vmem:[%s2490_s3] ss:$0 sm:$0xff] }
 0x3cd   : > { %v866_v9 = vmul.f32 %v849_v33, %v1993_v46  ;;  %v867_v35 = vmul.f32 %v849_v33, %v2001_v41  ;;  %v868_v18 = vmul.f32 %v849_v33, %v2009_v53  ;;  %v869_v13 = vmul.f32 %v849_v33, %v2017_v48 }
 0x3ce   : > { %v870_v25 = vmul.f32 %v849_v33, %v2025_v60  ;;  %v871_v20 = vmul.f32 %v849_v33, %v2033_v55  ;;  %v872_v32 = vmul.f32 %v849_v33, %v2041_v14  ;;  %v873_v27 = vmul.f32 %v849_v33, %v2049_v62 }
 0x3cf   : > { %v874_v34 = vmul.f32 %v849_v33, %v2057_v26  ;;  %v875_v46 = vmul.f32 %v849_v33, %v2065_v17  ;;  %v876_v41 = vmul.f32 %v849_v33, %v2073_v38  ;;  %v877_v53 = vmul.f32 %v849_v33, %v2081_v30 }
 0x3d0   : > { %v878_v48 = vmul.f32 %v849_v33, %v2089_v40  ;;  %v879_v60 = vmul.f32 %v849_v33, %v2097_v42  ;;  %v880_v55 = vmul.f32 %v849_v33, %v2105_v49  ;;  %v881_v14 = vmul.f32 %v849_v33, %v2113_v54 }
 0x3d1   : > { %v889_v62 = vmul.f32 %v1333_v39, %v850_v51  ;;  %v890_v0 = vmul.f32 %v1333_v39, %v851_v31  ;;  %v891_v6 = vmul.f32 %v1333_v39, %v852_v7  ;;  %v892_v28 = vmul.f32 %v1333_v39, %v853_v45  ;;  %v1334_v51 = vld [vmem:[%s2491_s4] ss:$0 sm:$0xff] }
 0x3d2   : > { %v893_v4 = vmul.f32 %v1333_v39, %v854_v63  ;;  %v894_v26 = vmul.f32 %v1333_v39, %v855_v52  ;;  %v895_v22 = vmul.f32 %v1333_v39, %v856_v12  ;;  %v896_v17 = vmul.f32 %v1333_v39, %v857_v36 }
 0x3d3   : > { %v897_v37 = vmul.f32 %v1333_v39, %v858_v44  ;;  %v898_v38 = vmul.f32 %v1333_v39, %v859_v5  ;;  %v899_v56 = vmul.f32 %v1333_v39, %v860_v59  ;;  %v900_v30 = vmul.f32 %v1333_v39, %v861_v1 }
 0x3d4   : > { %v901_v24 = vmul.f32 %v1333_v39, %v862_v61  ;;  %v902_v40 = vmul.f32 %v1333_v39, %v863_v11  ;;  %v903_v15 = vmul.f32 %v1333_v39, %v864_v2  ;;  %v904_v42 = vmul.f32 %v1333_v39, %v865_v3 }
 0x3d5   : > { %v905_v57 = vmul.f32 %v1333_v39, %v866_v9  ;;  %v906_v49 = vmul.f32 %v1333_v39, %v867_v35  ;;  %v907_v29 = vmul.f32 %v1333_v39, %v868_v18  ;;  %v908_v54 = vmul.f32 %v1333_v39, %v869_v13 }
 0x3d6   : > { %v909_v33 = vmul.f32 %v1333_v39, %v870_v25  ;;  %v910_v31 = vmul.f32 %v1333_v39, %v871_v20  ;;  %v911_v7 = vmul.f32 %v1333_v39, %v872_v32  ;;  %v912_v45 = vmul.f32 %v1333_v39, %v873_v27 }
 0x3d7   : > { %v913_v36 = vmul.f32 %v1333_v39, %v874_v34  ;;  %v914_v44 = vmul.f32 %v1333_v39, %v875_v46  ;;  %v915_v63 = vmul.f32 %v1333_v39, %v876_v41  ;;  %v916_v52 = vmul.f32 %v1333_v39, %v877_v53 }
 0x3d8   : > { %v917_v12 = vmul.f32 %v1333_v39, %v878_v48  ;;  %v918_v5 = vmul.f32 %v1333_v39, %v879_v60  ;;  %v919_v59 = vmul.f32 %v1333_v39, %v880_v55  ;;  %v920_v1 = vmul.f32 %v1333_v39, %v881_v14 }
 0x3d9   : > { %v928_v61 = vadd.f32 %v1334_v51, %v889_v62  ;;  %v929_v11 = vadd.f32 %v1334_v51, %v890_v0  ;;  %v930_v2 = vadd.f32 %v1334_v51, %v891_v6  ;;  %v931_v3 = vadd.f32 %v1334_v51, %v892_v28 }
 0x3da   : > { %v932_v9 = vadd.f32 %v1334_v51, %v893_v4  ;;  %v933_v35 = vadd.f32 %v1334_v51, %v894_v26  ;;  %v934_v18 = vadd.f32 %v1334_v51, %v895_v22  ;;  %v935_v13 = vadd.f32 %v1334_v51, %v896_v17 }
 0x3db   : > { %v936_v25 = vadd.f32 %v1334_v51, %v897_v37  ;;  %v937_v20 = vadd.f32 %v1334_v51, %v898_v38  ;;  %v938_v32 = vadd.f32 %v1334_v51, %v899_v56  ;;  %v939_v27 = vadd.f32 %v1334_v51, %v900_v30 }
 0x3dc   : > { %v940_v34 = vadd.f32 %v1334_v51, %v901_v24  ;;  %v941_v46 = vadd.f32 %v1334_v51, %v902_v40  ;;  %v942_v41 = vadd.f32 %v1334_v51, %v903_v15  ;;  %v943_v53 = vadd.f32 %v1334_v51, %v904_v42 }
 0x3dd   : > { %v944_v48 = vadd.f32 %v1334_v51, %v905_v57  ;;  %v945_v60 = vadd.f32 %v1334_v51, %v906_v49  ;;  %v946_v55 = vadd.f32 %v1334_v51, %v907_v29  ;;  %v947_v39 = vadd.f32 %v1334_v51, %v908_v54 }
 0x3de   : > { %v948_v14 = vadd.f32 %v1334_v51, %v909_v33  ;;  %v949_v0 = vadd.f32 %v1334_v51, %v910_v31  ;;  %v950_v6 = vadd.f32 %v1334_v51, %v911_v7  ;;  %v951_v28 = vadd.f32 %v1334_v51, %v912_v45 }
 0x3df   : > { %v952_v4 = vadd.f32 %v1334_v51, %v913_v36  ;;  %v953_v62 = vadd.f32 %v1334_v51, %v914_v44  ;;  %v954_v22 = vadd.f32 %v1334_v51, %v915_v63  ;;  %v955_v26 = vadd.f32 %v1334_v51, %v916_v52 }
 0x3e0   : > { %v956_v37 = vadd.f32 %v1334_v51, %v917_v12  ;;  %v957_v17 = vadd.f32 %v1334_v51, %v918_v5  ;;  %v958_v56 = vadd.f32 %v1334_v51, %v919_v59  ;;  %v959_v38 = vadd.f32 %v1334_v51, %v920_v1 }
 0x3e1   : > { %v2514_v24 = vunpack.c.l.bf16 %v2135_v58  ;;  %v2515_v57 = vunpack.c.h.bf16 %v2135_v58  ;;  %v2516_v30 = vunpack.c.l.bf16 %v2138_v10  ;;  %v2517_v42 = vunpack.c.h.bf16 %v2138_v10 }
 0x3e2   : > { %v2518_v54 = vunpack.c.l.bf16 %v2141_v47  ;;  %v2519_v31 = vunpack.c.h.bf16 %v2141_v47  ;;  %v2520_v58 = vunpack.c.l.bf16 %v2144_v16  ;;  %v2521_v51 = vunpack.c.h.bf16 %v2144_v16 }
 0x3e3   : > { %v2256_v15 = vadd.f32 %v2514_v24, %v928_v61  ;;  %v2260_v29 = vadd.f32 %v2515_v57, %v929_v11  ;;  %v2264_v40 = vadd.f32 %v2516_v30, %v930_v2  ;;  %v2268_v49 = vadd.f32 %v2517_v42, %v931_v3  ;;  %v2540_v24 = vld [vmem:[#allocation4_spill] sm:$0xff]  ;;  %v2543_v30 = vld [vmem:[#allocation5_spill] sm:$0xff] }
 0x3e4   : > { %v2272_v33 = vadd.f32 %v2518_v54, %v932_v9  ;;  %v2276_v7 = vadd.f32 %v2519_v31, %v933_v35  ;;  %v2280_v45 = vadd.f32 %v2520_v58, %v934_v18  ;;  %v2284_v36 = vadd.f32 %v2521_v51, %v935_v13  ;;  %v2546_v31 = vld [vmem:[#allocation6_spill] sm:$0xff] }
 0x3e5   : > { %v2522_v10 = vunpack.c.l.bf16 %v2147_v43  ;;  %v2523_v63 = vunpack.c.h.bf16 %v2147_v43  ;;  %v2524_v47 = vunpack.c.l.bf16 %v2151_v19  ;;  %v2525_v5 = vunpack.c.h.bf16 %v2151_v19 }
 0x3e6   : > { %v2526_v16 = vunpack.c.l.bf16 %v2154_v21  ;;  %v2527_v61 = vunpack.c.h.bf16 %v2154_v21  ;;  %v2528_v43 = vunpack.c.l.bf16 %v2161_v8  ;;  %v2529_v3 = vunpack.c.h.bf16 %v2161_v8 }
 0x3e7   : > { %v2288_v44 = vadd.f32 %v2522_v10, %v936_v25  ;;  %v2292_v52 = vadd.f32 %v2523_v63, %v937_v20  ;;  %v2296_v12 = vadd.f32 %v2524_v47, %v938_v32  ;;  %v2300_v59 = vadd.f32 %v2525_v5, %v939_v27  ;;  %v2534_v27 = vld [vmem:[#allocation2_spill] sm:$0xff]  ;;  %v2549_v10 = vld [vmem:[#allocation7_spill] sm:$0xff] }
 0x3e8   : > { %v2304_v1 = vadd.f32 %v2526_v16, %v940_v34  ;;  %v2308_v11 = vadd.f32 %v2527_v61, %v941_v46  ;;  %v2312_v2 = vadd.f32 %v2528_v43, %v942_v41  ;;  %v2316_v9 = vadd.f32 %v2529_v3, %v943_v53  ;;  %v2537_v53 = vld [vmem:[#allocation3_spill] sm:$0xff] }
 0x3e9   : > { %v2530_v19 = vunpack.c.l.bf16 %v2164_v50  ;;  %v2531_v18 = vunpack.c.h.bf16 %v2164_v50  ;;  %v2532_v21 = vunpack.c.l.bf16 %v2171_v23  ;;  %v2533_v20 = vunpack.c.h.bf16 %v2171_v23 }
 0x3ea   : > { %v2535_v8 = vunpack.c.l.bf16 %v2534_v27  ;;  %v2536_v46 = vunpack.c.h.bf16 %v2534_v27  ;;  %v2538_v50 = vunpack.c.l.bf16 %v2537_v53  ;;  %v2541_v23 = vunpack.c.l.bf16 %v2540_v24 }
 0x3eb   : > { %v2320_v35 = vadd.f32 %v2530_v19, %v944_v48  ;;  %v2324_v13 = vadd.f32 %v2531_v18, %v945_v60  ;;  %v2328_v25 = vadd.f32 %v2532_v21, %v946_v55  ;;  %v2332_v32 = vadd.f32 %v2533_v20, %v947_v39 }
 0x3ec   : > { %v2336_v34 = vadd.f32 %v2535_v8, %v948_v14  ;;  %v2340_v41 = vadd.f32 %v2536_v46, %v949_v0  ;;  %v2344_v48 = vadd.f32 %v2538_v50, %v950_v6  ;;  %v2539_v60 = vunpack.c.h.bf16 %v2537_v53 }
 0x3ed   : > { %v2352_v39 = vadd.f32 %v2541_v23, %v952_v4  ;;  %v2542_v57 = vunpack.c.h.bf16 %v2540_v24  ;;  %v2544_v42 = vunpack.c.l.bf16 %v2543_v30  ;;  %v2545_v54 = vunpack.c.h.bf16 %v2543_v30 }
 0x3ee   : > { %v2348_v55 = vadd.f32 %v2539_v60, %v951_v28  ;;  %v2547_v58 = vunpack.c.l.bf16 %v2546_v31  ;;  %v2548_v51 = vunpack.c.h.bf16 %v2546_v31  ;;  %v2550_v63 = vunpack.c.l.bf16 %v2549_v10 }
 0x3ef   : > { %v2356_v14 = vadd.f32 %v2542_v57, %v953_v62  ;;  %v2360_v0 = vadd.f32 %v2544_v42, %v954_v22  ;;  %v2364_v6 = vadd.f32 %v2545_v54, %v955_v26  ;;  %v2551_v47 = vunpack.c.h.bf16 %v2549_v10 }
 0x3f0   : > { %v2368_v28 = vadd.f32 %v2547_v58, %v956_v37  ;;  %v2372_v4 = vadd.f32 %v2548_v51, %v957_v17  ;;  %v2376_v62 = vadd.f32 %v2550_v63, %v958_v56  ;;  %v1056_v26 = vmax.f32 %v2256_v15, 0.0 }
 0x3f1   : > { %v2380_v22 = vadd.f32 %v2551_v47, %v959_v38  ;;  %v1057_v5 = vmax.f32 %v2260_v29, 0.0  ;;  %v1058_v37 = vmax.f32 %v2264_v40, 0.0  ;;  %v1059_v16 = vmax.f32 %v2268_v49, 0.0 }
 0x3f2   : > { %v1060_v17 = vmax.f32 %v2272_v33, 0.0  ;;  %v1061_v61 = vmax.f32 %v2276_v7, 0.0  ;;  %v1062_v56 = vmax.f32 %v2280_v45, 0.0  ;;  %v1063_v43 = vmax.f32 %v2284_v36, 0.0 }
 0x3f3   : > { %v1064_v38 = vmax.f32 %v2288_v44, 0.0  ;;  %v1065_v3 = vmax.f32 %v2292_v52, 0.0  ;;  %v1066_v15 = vmax.f32 %v2296_v12, 0.0  ;;  %v1067_v29 = vmax.f32 %v2300_v59, 0.0 }
 0x3f4   : > { %v1068_v40 = vmax.f32 %v2304_v1, 0.0  ;;  %v1069_v49 = vmax.f32 %v2308_v11, 0.0  ;;  %v1070_v33 = vmax.f32 %v2312_v2, 0.0  ;;  %v1071_v7 = vmax.f32 %v2316_v9, 0.0 }
 0x3f5   : > { %v1072_v45 = vmax.f32 %v2320_v35, 0.0  ;;  %v1073_v36 = vmax.f32 %v2324_v13, 0.0  ;;  %v1074_v44 = vmax.f32 %v2328_v25, 0.0  ;;  %v1075_v52 = vmax.f32 %v2332_v32, 0.0 }
 0x3f6   : > { %v1076_v12 = vmax.f32 %v2336_v34, 0.0  ;;  %v1077_v59 = vmax.f32 %v2340_v41, 0.0  ;;  %v1078_v1 = vmax.f32 %v2344_v48, 0.0  ;;  %v1079_v11 = vmax.f32 %v2348_v55, 0.0 }
 0x3f7   : > { %v1080_v2 = vmax.f32 %v2352_v39, 0.0  ;;  %v1081_v9 = vmax.f32 %v2356_v14, 0.0  ;;  %v1082_v19 = vmax.f32 %v2360_v0, 0.0  ;;  %v1083_v35 = vmax.f32 %v2364_v6, 0.0 }
 0x3f8   : > { %v1084_v18 = vmax.f32 %v2368_v28, 0.0  ;;  %v1085_v13 = vmax.f32 %v2372_v4, 0.0  ;;  %v1086_v21 = vmax.f32 %v2376_v62, 0.0  ;;  %v1087_v25 = vmax.f32 %v2380_v22, 0.0 }
 0x3f9   : > { %v1372_v20 = vpack.c.bf16 %v1056_v26, %v1056_v26  ;;  %v1373_v32 = vpack.c.bf16 %v1057_v5, %v1057_v5  ;;  %v1374_v27 = vpack.c.bf16 %v1058_v37, %v1058_v37  ;;  %v1375_v8 = vpack.c.bf16 %v1059_v16, %v1059_v16 }
 0x3fa   : > { %v1376_v34 = vpack.c.bf16 %v1060_v17, %v1060_v17  ;;  %v1377_v46 = vpack.c.bf16 %v1061_v61, %v1061_v61  ;;  %v1378_v41 = vpack.c.bf16 %v1062_v56, %v1062_v56  ;;  %v1379_v53 = vpack.c.bf16 %v1063_v43, %v1063_v43 }
 0x3fb   : > { %v1380_v50 = vpack.c.bf16 %v1064_v38, %v1064_v38  ;;  %v1381_v48 = vpack.c.bf16 %v1065_v3, %v1065_v3  ;;  %v1382_v60 = vpack.c.bf16 %v1066_v15, %v1066_v15  ;;  %v1383_v55 = vpack.c.bf16 %v1067_v29, %v1067_v29  ;;  %1217 = vst.msk [vmem:[%s2414_s16] sm:$0xf] %vm1216_vm4, %v1372_v20 }
 0x3fc   : > { %1218 = vst.msk [vmem:[%s2414_s16 + $0x4] sm:$0xf] %vm1216_vm4, %v1373_v32  ;;  %1219 = vst.msk [vmem:[%s2414_s16 + $0x8] sm:$0xf] %vm1216_vm4, %v1374_v27  ;;  %v1384_v24 = vpack.c.bf16 %v1068_v40, %v1068_v40  ;;  %v1385_v23 = vpack.c.bf16 %v1069_v49, %v1069_v49  ;;  %v1386_v39 = vpack.c.bf16 %v1070_v33, %v1070_v33 }
 0x3fd   : > { %1220 = vst.msk [vmem:[%s2414_s16 + $0xc] sm:$0xf] %vm1216_vm4, %v1375_v8  ;;  %v1387_v57 = vpack.c.bf16 %v1071_v7, %v1071_v7  ;;  %1221 = vst.msk [vmem:[%s2414_s16 + $0x10] sm:$0xf] %vm1216_vm4, %v1376_v34  ;;  %v1388_v14 = vpack.c.bf16 %v1072_v45, %v1072_v45  ;;  %v1389_v30 = vpack.c.bf16 %v1073_v36, %v1073_v36 }
 0x3fe   : > { %1222 = vst.msk [vmem:[%s2414_s16 + $0x14] sm:$0xf] %vm1216_vm4, %v1377_v46  ;;  %1223 = vst.msk [vmem:[%s2414_s16 + $0x18] sm:$0xf] %vm1216_vm4, %v1378_v41  ;;  %v1390_v42 = vpack.c.bf16 %v1074_v44, %v1074_v44  ;;  %v1391_v0 = vpack.c.bf16 %v1075_v52, %v1075_v52  ;;  %v1392_v54 = vpack.c.bf16 %v1076_v12, %v1076_v12 }
 0x3ff   : > { %1224 = vst.msk [vmem:[%s2414_s16 + $0x1c] sm:$0xf] %vm1216_vm4, %v1379_v53  ;;  %1225 = vst.msk [vmem:[%s2414_s16 + $0x20] sm:$0xf] %vm1216_vm4, %v1380_v50  ;;  %v1393_v6 = vpack.c.bf16 %v1077_v59, %v1077_v59  ;;  %v1394_v31 = vpack.c.bf16 %v1078_v1, %v1078_v1  ;;  %v1395_v58 = vpack.c.bf16 %v1079_v11, %v1079_v11 }
 0x400   : > { %1226 = vst.msk [vmem:[%s2414_s16 + $0x24] sm:$0xf] %vm1216_vm4, %v1381_v48  ;;  %1227 = vst.msk [vmem:[%s2414_s16 + $0x28] sm:$0xf] %vm1216_vm4, %v1382_v60  ;;  %v1396_v28 = vpack.c.bf16 %v1080_v2, %v1080_v2  ;;  %v1397_v51 = vpack.c.bf16 %v1081_v9, %v1081_v9  ;;  %v1398_v4 = vpack.c.bf16 %v1082_v19, %v1082_v19 }
 0x401   : > { %1228 = vst.msk [vmem:[%s2414_s16 + $0x2c] sm:$0xf] %vm1216_vm4, %v1383_v55  ;;  %1229 = vst.msk [vmem:[%s2414_s16 + $0x30] sm:$0xf] %vm1216_vm4, %v1384_v24  ;;  %v1399_v10 = vpack.c.bf16 %v1083_v35, %v1083_v35  ;;  %v1400_v63 = vpack.c.bf16 %v1084_v18, %v1084_v18  ;;  %v1401_v62 = vpack.c.bf16 %v1085_v13, %v1085_v13 }
 0x402   : > { %1230 = vst.msk [vmem:[%s2414_s16 + $0x34] sm:$0xf] %vm1216_vm4, %v1385_v23  ;;  %1231 = vst.msk [vmem:[%s2414_s16 + $0x38] sm:$0xf] %vm1216_vm4, %v1386_v39  ;;  %v1402_v47 = vpack.c.bf16 %v1086_v21, %v1086_v21  ;;  %v1403_v22 = vpack.c.bf16 %v1087_v25, %v1087_v25 }
 0x403   : > { %1232 = vst.msk [vmem:[%s2414_s16 + $0x3c] sm:$0xf] %vm1216_vm4, %v1387_v57  ;;  %1233 = vst.msk [vmem:[%s2414_s16 + $0x40] sm:$0xf] %vm1216_vm4, %v1388_v14 }
 0x404   : > { %1234 = vst.msk [vmem:[%s2414_s16 + $0x44] sm:$0xf] %vm1216_vm4, %v1389_v30  ;;  %1235 = vst.msk [vmem:[%s2414_s16 + $0x48] sm:$0xf] %vm1216_vm4, %v1390_v42 }
 0x405   : > { %1236 = vst.msk [vmem:[%s2414_s16 + $0x4c] sm:$0xf] %vm1216_vm4, %v1391_v0  ;;  %1237 = vst.msk [vmem:[%s2414_s16 + $0x50] sm:$0xf] %vm1216_vm4, %v1392_v54 }
 0x406   : > { %1238 = vst.msk [vmem:[%s2414_s16 + $0x54] sm:$0xf] %vm1216_vm4, %v1393_v6  ;;  %1239 = vst.msk [vmem:[%s2414_s16 + $0x58] sm:$0xf] %vm1216_vm4, %v1394_v31 }
 0x407   : > { %1240 = vst.msk [vmem:[%s2414_s16 + $0x5c] sm:$0xf] %vm1216_vm4, %v1395_v58  ;;  %1241 = vst.msk [vmem:[%s2414_s16 + $0x60] sm:$0xf] %vm1216_vm4, %v1396_v28 }
 0x408   : > { %1242 = vst.msk [vmem:[%s2414_s16 + $0x64] sm:$0xf] %vm1216_vm4, %v1397_v51  ;;  %1243 = vst.msk [vmem:[%s2414_s16 + $0x68] sm:$0xf] %vm1216_vm4, %v1398_v4 }
 0x409   : > { %1244 = vst.msk [vmem:[%s2414_s16 + $0x6c] sm:$0xf] %vm1216_vm4, %v1399_v10  ;;  %1245 = vst.msk [vmem:[%s2414_s16 + $0x70] sm:$0xf] %vm1216_vm4, %v1400_v63 }
 0x40a   : > { %1246 = vst.msk [vmem:[%s2414_s16 + $0x74] sm:$0xf] %vm1216_vm4, %v1401_v62  ;;  %1247 = vst.msk [vmem:[%s2414_s16 + $0x78] sm:$0xf] %vm1216_vm4, %v1402_v47 }
 0x40b   : > { %1248 = vst.msk [vmem:[%s2414_s16 + $0x7c] sm:$0xf] %vm1216_vm4, %v1403_v22 }
 0x40c PF: > { %s16_s21 = sadd.s32 1, %s1608_s21  }
 0x40d   : > { %p13_p4 = scmp.ge.s32.totalorder %s16_s21, 4  }
 0x40f   :  { %15 = sbr.rel (!%p13_p4) target bundleno = 1 (0x1), region = 77 }

// kernel: resnet_forward.32
= control target key start
LH: loop header
LB: loop body
LE: loop exit
PB: predicated region body
PF: predicated region fallthrough
CT: control target
= control target key end

     0   :  { %vm108_vm0 = vcmask 654336   ;;  %s562_s1 = inlined_call_operand.vmem [shape: bf16[80,128], index: 1, kind: input, shape index: {}]   ;;  %s563_s0 = inlined_call_operand.vmem [shape: bf16[128,80], index: 0, kind: input, shape index: {}]   ;;  %s564_s2 = inlined_call_operand.vmem [shape: bf16[128,128], index: 2, kind: output, shape index: {}]  }
   0x1   :  { %v463_v0 = vld [vmem:[%s562_s1 + $0x20] sm:$0xff]   ;;  %v464_v1 = vld [vmem:[%s562_s1 + $0x18] sm:$0xff]   ;;  %v465_v2 = vld [vmem:[%s562_s1 + $0x10] sm:$0xff]  }
   0x2   :  { %427 = vmatprep.subr.bf16.mxu0 %v463_v0  ;;  %453 = vmatprep.subr.bf16.mxu1 %v463_v0  ;;  %v468_v3 = vld [vmem:[%s563_s0] sm:$0xff]   ;;  %v466_v5 = vld [vmem:[%s562_s1 + $0x8] sm:$0xff]   ;;  %v472_v9 = vld [vmem:[%s563_s0 + $0x10] sm:$0xff]  }
   0x3   :  { %428 = vmatpush3.bf16.msra.mxu0 %v463_v0  ;;  %458 = vmatpush3.bf16.msra.mxu1 %v463_v0  ;;  %v469_v4 = vld [vmem:[%s563_s0 + $0x20] sm:$0xff]   ;;  %v470_v7 = vld [vmem:[%s563_s0 + $0x8] sm:$0xff]   ;;  %v473_v10 = vld [vmem:[%s563_s0 + $0x30] sm:$0xff]  }
   0x4   :  { %429 = vmatprep.subr.bf16.mxu0 %v464_v1  ;;  %454 = vmatprep.subr.bf16.mxu1 %v464_v1  ;;  %v467_v6 = vld [vmem:[%s562_s1] sm:$0xff]   ;;  %v471_v8 = vld [vmem:[%s563_s0 + $0x28] sm:$0xff]   ;;  %v474_v11 = vld [vmem:[%s563_s0 + $0x18] sm:$0xff]  }
   0x5   :  { %437 = vmatprep.mubr.msk.bf16.mxu0 %vm108_vm0, %v468_v3  ;;  %445 = vmatprep.mubr.msk.bf16.mxu1 %vm108_vm0, %v469_v4  ;;  %v475_v12 = vld [vmem:[%s563_s0 + $0x38] sm:$0xff]  }
   0x7   :  { %430 = vmatpush3.bf16.msra.mxu0 %v464_v1  ;;  %459 = vmatpush3.bf16.msra.mxu1 %v464_v1 }
   0x8   :  { %431 = vmatprep.subr.bf16.mxu0 %v465_v2  ;;  %455 = vmatprep.subr.bf16.mxu1 %v465_v2 }
   0xb   :  { %432 = vmatpush3.bf16.msra.mxu0 %v465_v2  ;;  %460 = vmatpush3.bf16.msra.mxu1 %v465_v2 }
   0xc   :  { %433 = vmatprep.subr.bf16.mxu0 %v466_v5  ;;  %456 = vmatprep.subr.bf16.mxu1 %v466_v5 }
   0xf   :  { %434 = vmatpush3.bf16.msra.mxu0 %v466_v5  ;;  %461 = vmatpush3.bf16.msra.mxu1 %v466_v5 }
  0x10   :  { %435 = vmatprep.subr.bf16.mxu0 %v467_v6  ;;  %457 = vmatprep.subr.bf16.mxu1 %v467_v6 }
  0x13   :  { %436 = vmatpush3.bf16.msra.mxu0 %v467_v6  ;;  %462 = vmatpush3.bf16.msra.mxu1 %v467_v6 }
  0x16   :  { %438 = vmatmul.mubr.msk.bf16.vlgmr.msra.gmra.mxu0 %vm108_vm0, %v470_v7  ;;  %446 = vmatmul.mubr.msk.bf16.vlgmr.msra.gmra.mxu1 %vm108_vm0, %v471_v8 }
  0x17   :  { %441 = vmatprep.mubr.msk.bf16.mxu0 %vm108_vm0, %v472_v9  ;;  %449 = vmatprep.mubr.msk.bf16.mxu1 %vm108_vm0, %v473_v10 }
  0x1e   :  { %442 = vmatmul.mubr.msk.bf16.gmra.mxu0 %vm108_vm0, %v474_v11  ;;  %450 = vmatmul.mubr.msk.bf16.gmra.mxu1 %vm108_vm0, %v475_v12 }
  0xd6   :  { %v439_v13 = vpop.f32.mrf.mxu0  ;;  %v447_v14 = vpop.f32.mrf.mxu1 }
  0xd8   :  { %v167_v15 = vpop.f32.mrf.mxu0  ;;  %v199_v16 = vpop.f32.mrf.mxu1 }
  0xda   :  { %v440_v17 = vpop.f32.mrf.mxu0  ;;  %v448_v18 = vpop.f32.mrf.mxu1 }
  0xdb   :  { %v375_v19 = vpack.c.bf16 %v440_v17, %v439_v13  ;;  %v395_v20 = vpack.c.bf16 %v448_v18, %v447_v14 }
  0xdc   :  { %v170_v21 = vpop.f32.mrf.mxu0  ;;  %v202_v22 = vpop.f32.mrf.mxu1 }
  0xdd   :  { %407 = vst [vmem:[%s564_s2 + $0x8] sm:$0xff] %v375_v19   ;;  %411 = vst [vmem:[%s564_s2 + $0x28] sm:$0xff] %v395_v20   ;;  %v370_v23 = vpack.c.bf16 %v170_v21, %v167_v15  ;;  %v390_v24 = vpack.c.bf16 %v202_v22, %v199_v16 }
  0xde   :  { %v443_v25 = vpop.f32.mrf.mxu0  ;;  %v451_v26 = vpop.f32.mrf.mxu1 }
  0xdf   :  { %371 = vst [vmem:[%s564_s2] sm:$0xff] %v370_v23   ;;  %410 = vst [vmem:[%s564_s2 + $0x20] sm:$0xff] %v390_v24  }
  0xe0   :  { %v183_v27 = vpop.f32.mrf.mxu0  ;;  %v215_v28 = vpop.f32.mrf.mxu1 }
  0xe2   :  { %v444_v29 = vpop.f32.mrf.mxu0  ;;  %v452_v30 = vpop.f32.mrf.mxu1 }
  0xe3   :  { %v385_v31 = vpack.c.bf16 %v444_v29, %v443_v25  ;;  %v405_v32 = vpack.c.bf16 %v452_v30, %v451_v26 }
  0xe4   :  { %v186_v33 = vpop.f32.mrf.mxu0  ;;  %v218_v34 = vpop.f32.mrf.mxu1 }
  0xe5   :  { %409 = vst [vmem:[%s564_s2 + $0x18] sm:$0xff] %v385_v31   ;;  %413 = vst [vmem:[%s564_s2 + $0x38] sm:$0xff] %v405_v32   ;;  %v380_v35 = vpack.c.bf16 %v186_v33, %v183_v27  ;;  %v400_v36 = vpack.c.bf16 %v218_v34, %v215_v28 }
  0xe7   :  { %408 = vst [vmem:[%s564_s2 + $0x10] sm:$0xff] %v380_v35   ;;  %412 = vst [vmem:[%s564_s2 + $0x30] sm:$0xff] %v400_v36  }

// kernel: resnet_forward.33
= control target key start
LH: loop header
LB: loop body
LE: loop exit
PB: predicated region body
PF: predicated region fallthrough
CT: control target
= control target key end

     0   :  { %s896_s18 = smov 0   ;;  %s971_s0 = inlined_call_operand.vmem [shape: bf16[2,64,16], index: 0, kind: input, shape index: {}]   ;;  %s972_s1 = inlined_call_operand.vmem [shape: f32[16,4], index: 1, kind: input, shape index: {}]   ;;  %s973_s2 = inlined_call_operand.vmem [shape: f32[4,16], index: 2, kind: input, shape index: {}]   ;;  %s974_s3 = inlined_call_operand.vmem [shape: f32[1,16], index: 3, kind: input, shape index: {}]   ;;  %s975_s4 = inlined_call_operand.vmem [shape: f32[1,16], index: 4, kind: input, shape index: {}]   ;;  %s976_s5 = inlined_call_operand.vmem [shape: bf16[2,64,16], index: 5, kind: output, shape index: {}]  }
   0x1 LB: > { %s754_s19 = sadd.s32 4294967295, %s862_s18   ;;  %p758_p0 = scmp.ge.s32.totalorder %s862_s18, 1  ;;  %s862_s18 = sphi %s896_s18, %s15_s18  }
   0x2   : > { %p187_p1 = scmp.lt.s32.totalorder %s862_s18, 3 }
   0x4   : > { %p188_p2 = pnand %p758_p0, %p187_p1 }
   0x5   : > { %p215_p3 = scmp.lt.s32.totalorder (!%p188_p2), %s754_s19, 1 }
   0x6   : > { %191 = sbr.rel (%p188_p2) target bundleno = 885 (0x375), region = 40 }
   0xb   : > { %v264_v0 = vld [vmem:[%s972_s1 + $0x8] sm:$0xff]  ;;  %v864_v1 = vmov 0.0   ;;  %v263_v2 = vld [vmem:[%s972_s1] sm:$0xff]  ;;  %vm865_vm0 = vmmov 0   ;;  %s978_s19 = smov (!%p215_p3, %s754_s19), 1  ;;  %vm241_vm1 = vcmask 130048   ;;  %v418_v40 = vlaneseq }
   0xc   : > { %820 = vmatprep.subr.mxu0 %v864_v1  ;;  %824 = vmatprep.mubr.msk.f32.mxu0 %vm865_vm0, %v864_v1  ;;  %s781_s24 = sshll.u32 %s978_s19, 5  ;;  %v339_v36 = vld [vmem:[%s973_s2] sm:$0xf]  ;;  %vm344_vm2 = vcmask 1043456   ;;  %vm340_vm3 = vcmask 31744   ;;  %vm690_vm4 = vcmask 125952  }
   0xd   : > { %821 = vmatpush3.msra.mxu0 %v264_v0  ;;  %827 = vmatprep.subr.mxu1 %v864_v1  ;;  %s219_s27 = scalar_lea.vmem %s971_s0, %s781_s24  ;;  %v419_v41 = vshrl.u32 %v418_v40, 7  ;;  %s224_s11 = scalar_lea.vmem %s976_s5, %s781_s24 }
   0xe   : > { %822 = vmatprep.subr.mxu0 %v864_v1  ;;  %829 = vmatprep.mubr.msk.f32.mxu1 %vm865_vm0, %v864_v1  ;;  %v792_v3 = vld [vmem:[%s219_s27] sm:$0xff]   ;;  %v807_v4 = vld [vmem:[%s219_s27 + $0x8] sm:$0xff]   ;;  %v920_v5 = vld [vmem:[%s219_s27 + $0x10] sm:$0xff]  }
   0xf   : > { %823 = vmatpush3.msra.mxu0 %v263_v2  ;;  %v793_v6 = vunpack.c.l.bf16 %v792_v3  ;;  %v794_v7 = vunpack.c.h.bf16 %v792_v3  ;;  %v797_v8 = vunpack.c.l.bf16 %v807_v4  ;;  %v798_v9 = vunpack.c.h.bf16 %v807_v4  ;;  %v809_v14 = vld [vmem:[%s219_s27 + $0x18] sm:$0xff]   ;;  %828 = vmatpush3.msk.msra.mxu1 %vm344_vm2, %v339_v36 }
  0x10   : > { %839 = vmatprep.subr.mxu0 %v864_v1  ;;  %v801_v10 = vunpack.c.l.bf16 %v920_v5  ;;  %v802_v16 = vunpack.c.h.bf16 %v920_v5  ;;  %v805_v19 = vunpack.c.l.bf16 %v809_v14  ;;  %v806_v22 = vunpack.c.h.bf16 %v809_v14  ;;  %832 = vmatprep.subr.mxu1 %v864_v1 }
  0x11   : > { %v242_v11 = vsel %vm241_vm1, %v793_v6, 0.0  ;;  %v243_v12 = vsel %vm241_vm1, %v794_v7, 0.0  ;;  %v245_v13 = vsel %vm241_vm1, %v797_v8, 0.0  ;;  %v247_v17 = vsel %vm241_vm1, %v798_v9, 0.0 }
  0x12   : > { %v244_v15 = vadd.f32 %v243_v12, %v242_v11  ;;  %v249_v20 = vsel %vm241_vm1, %v801_v10, 0.0  ;;  %v251_v23 = vsel %vm241_vm1, %v802_v16, 0.0  ;;  %v253_v25 = vsel %vm241_vm1, %v805_v19, 0.0 }
  0x13   : > { %v255_v27 = vsel %vm241_vm1, %v806_v22, 0.0  ;;  %v420_v42 = vsub.s32 0, %v419_v41 }
  0x14   : > { %v246_v18 = vadd.f32 %v245_v13, %v244_v15 }
  0x16   : > { %v248_v21 = vadd.f32 %v247_v17, %v246_v18 }
  0x18   : > { %v250_v24 = vadd.f32 %v249_v20, %v248_v21 }
  0x1a   : > { %v252_v26 = vadd.f32 %v251_v23, %v250_v24 }
  0x1c   : > { %v254_v28 = vadd.f32 %v253_v25, %v252_v26  ;;  %v769_v26 = vld [vmem:[%s974_s3] ss:$0 sm:$0xff] }
  0x1e   : > { %v256_v29 = vadd.f32 %v255_v27, %v254_v28 }
  0x20   : > { %v257_v30 = vrot.slane %v256_v29, 4 }
  0x22   : > { %v258_v31 = vadd.f32 %v257_v30, %v256_v29 }
  0x24   : > { %v259_v32 = vrot.slane %v258_v31, 2 }
  0x26   : > { %v260_v33 = vadd.f32 %v259_v32, %v258_v31 }
  0x28   : > { %v261_v34 = vrot.slane %v260_v33, 1 }
  0x2a   : > { %v262_v35 = vadd.f32 %v261_v34, %v260_v33 }
  0x2c   : > { %825 = vmatmul.mubr.msk.f32.vlgmr.msra.gmra.mxu0 %vm241_vm1, %v262_v35 }
  0x2d   : > { %841 = vmatprep.mubr.msk.f32.mxu0 %vm865_vm0, %v864_v1  ;;  %840 = vmatpush3.msk.msra.mxu0 %vm344_vm2, %v339_v36  ;;  %v770_v36 = vld [vmem:[%s975_s4] ss:$0 sm:$0xff] }
  0xec   : > { %v334_v37 = vpop.f32.mrf.mxu0 }
  0xed   : > { %v338_v38 = vmul.f32 0.00390625, %v334_v37 }
  0xee   : > { %v826_v39 = vpop.f32.mrf.mxu0 }
  0xef   : > { %830 = vmatmul.mubr.msk.f32.vlgmr.msra.gmra.mxu1 %vm340_vm3, %v338_v38 }
  0xf0   : > { %833 = vmatpush3.msra.mxu1 %v264_v0  ;;  %836 = vmatprep.mubr.msk.f32.mxu1 %vm865_vm0, %v864_v1 }
  0xf1   : > { %834 = vmatprep.subr.mxu1 %v864_v1 }
  0xf2   : > { %835 = vmatpush3.msra.mxu1 %v263_v2 }
 0x1af   : > { %v414_v43 = vpop.f32.mrf.mxu1 }
 0x1b0   : > { %v421_v44 = vrot.slane %v414_v43, %v420_v42 }
 0x1b1   : > { %v831_v45 = vpop.f32.mrf.mxu1 }
 0x1b2   : > { %v422_v46 = vsub.f32 %v793_v6, %v421_v44  ;;  %v423_v47 = vsub.f32 %v794_v7, %v421_v44  ;;  %v424_v48 = vsub.f32 %v797_v8, %v421_v44  ;;  %v425_v49 = vsub.f32 %v798_v9, %v421_v44 }
 0x1b3   : > { %v426_v50 = vsub.f32 %v801_v10, %v421_v44  ;;  %v427_v54 = vsub.f32 %v802_v16, %v421_v44  ;;  %v428_v59 = vsub.f32 %v805_v19, %v421_v44  ;;  %v429_v63 = vsub.f32 %v806_v22, %v421_v44 }
 0x1b4   : > { %v430_v51 = vmul.f32 %v422_v46, %v422_v46  ;;  %v431_v52 = vmul.f32 %v423_v47, %v423_v47  ;;  %v432_v53 = vmul.f32 %v424_v48, %v424_v48  ;;  %v433_v55 = vmul.f32 %v425_v49, %v425_v49 }
 0x1b5   : > { %v434_v60 = vmul.f32 %v426_v50, %v426_v50  ;;  %v435_v0 = vmul.f32 %v427_v54, %v427_v54  ;;  %v436_v3 = vmul.f32 %v428_v59, %v428_v59  ;;  %v437_v6 = vmul.f32 %v429_v63, %v429_v63 }
 0x1b6   : > { %v438_v56 = vsel %vm241_vm1, %v430_v51, 0.0  ;;  %v439_v57 = vsel %vm241_vm1, %v431_v52, 0.0  ;;  %v441_v61 = vsel %vm241_vm1, %v432_v53, 0.0  ;;  %v443_v1 = vsel %vm241_vm1, %v433_v55, 0.0 }
 0x1b7   : > { %v440_v58 = vadd.f32 %v439_v57, %v438_v56  ;;  %v445_v4 = vsel %vm241_vm1, %v434_v60, 0.0  ;;  %v447_v7 = vsel %vm241_vm1, %v435_v0, 0.0  ;;  %v449_v9 = vsel %vm241_vm1, %v436_v3, 0.0 }
 0x1b8   : > { %v451_v11 = vsel %vm241_vm1, %v437_v6, 0.0 }
 0x1b9   : > { %v442_v62 = vadd.f32 %v441_v61, %v440_v58 }
 0x1bb   : > { %v444_v2 = vadd.f32 %v443_v1, %v442_v62 }
 0x1bd   : > { %v446_v5 = vadd.f32 %v445_v4, %v444_v2 }
 0x1bf   : > { %v448_v8 = vadd.f32 %v447_v7, %v446_v5 }
 0x1c1   : > { %v450_v10 = vadd.f32 %v449_v9, %v448_v8 }
 0x1c3   : > { %v452_v12 = vadd.f32 %v451_v11, %v450_v10 }
 0x1c5   : > { %v453_v13 = vrot.slane %v452_v12, 4 }
 0x1c7   : > { %v454_v14 = vadd.f32 %v453_v13, %v452_v12 }
 0x1c9   : > { %v455_v15 = vrot.slane %v454_v14, 2 }
 0x1cb   : > { %v456_v16 = vadd.f32 %v455_v15, %v454_v14 }
 0x1cd   : > { %v457_v17 = vrot.slane %v456_v16, 1 }
 0x1cf   : > { %v458_v18 = vadd.f32 %v457_v17, %v456_v16 }
 0x1d1   : > { %837 = vmatmul.mubr.msk.f32.vlgmr.msra.gmra.mxu1 %vm241_vm1, %v458_v18 }
 0x291   : > { %v528_v19 = vpop.f32.mrf.mxu1 }
 0x292   : > { %v532_v20 = vmul.f32 0.00390625, %v528_v19 }
 0x293   : > { %v838_v21 = vpop.f32.mrf.mxu1 }
 0x294   : > { %v533_v22 = vadd.f32 1e-05, %v532_v20 }
 0x296   : > { %854 = vrsqrt.f32 %v533_v22 }
 0x2a3   : > { %v855_v23 = vpop.eup %854 }
 0x2a4   : > { %842 = vmatmul.mubr.msk.f32.vlgmr.msra.gmra.mxu0 %vm340_vm3, %v855_v23 }
 0x364   : > { %v604_v24 = vpop.f32.mrf.mxu0 }
 0x365   : > { %v611_v25 = vrot.slane %v604_v24, %v420_v42 }
 0x366   : > { %v843_v27 = vpop.f32.mrf.mxu0 }
 0x367   : > { %v612_v28 = vmul.f32 %v611_v25, %v422_v46  ;;  %v613_v29 = vmul.f32 %v611_v25, %v423_v47  ;;  %v614_v30 = vmul.f32 %v611_v25, %v424_v48  ;;  %v615_v31 = vmul.f32 %v611_v25, %v425_v49 }
 0x368   : > { %v616_v32 = vmul.f32 %v611_v25, %v426_v50  ;;  %v617_v33 = vmul.f32 %v611_v25, %v427_v54  ;;  %v618_v34 = vmul.f32 %v611_v25, %v428_v59  ;;  %v619_v35 = vmul.f32 %v611_v25, %v429_v63 }
 0x369   : > { %v627_v37 = vmul.f32 %v769_v26, %v612_v28  ;;  %v628_v38 = vmul.f32 %v769_v26, %v613_v29  ;;  %v629_v39 = vmul.f32 %v769_v26, %v614_v30  ;;  %v630_v40 = vmul.f32 %v769_v26, %v615_v31 }
 0x36a   : > { %v631_v41 = vmul.f32 %v769_v26, %v616_v32  ;;  %v632_v42 = vmul.f32 %v769_v26, %v617_v33  ;;  %v633_v43 = vmul.f32 %v769_v26, %v618_v34  ;;  %v634_v44 = vmul.f32 %v769_v26, %v619_v35 }
 0x36b   : > { %v642_v45 = vadd.f32 %v770_v36, %v627_v37  ;;  %v643_v46 = vadd.f32 %v770_v36, %v628_v38  ;;  %v644_v47 = vadd.f32 %v770_v36, %v629_v39  ;;  %v645_v48 = vadd.f32 %v770_v36, %v630_v40 }
 0x36c   : > { %v646_v49 = vadd.f32 %v770_v36, %v631_v41  ;;  %v647_v50 = vadd.f32 %v770_v36, %v632_v42  ;;  %v648_v51 = vadd.f32 %v770_v36, %v633_v43  ;;  %v649_v52 = vadd.f32 %v770_v36, %v634_v44 }
 0x36d   : > { %v650_v53 = vmax.f32 %v642_v45, 0.0  ;;  %v651_v54 = vmax.f32 %v643_v46, 0.0  ;;  %v652_v55 = vmax.f32 %v644_v47, 0.0  ;;  %v653_v56 = vmax.f32 %v645_v48, 0.0 }
 0x36e   : > { %v654_v57 = vmax.f32 %v646_v49, 0.0  ;;  %v655_v58 = vmax.f32 %v647_v50, 0.0  ;;  %v656_v59 = vmax.f32 %v648_v51, 0.0  ;;  %v657_v60 = vmax.f32 %v649_v52, 0.0 }
 0x36f   : > { %v783_v61 = vpack.c.bf16 %v650_v53, %v650_v53  ;;  %v784_v62 = vpack.c.bf16 %v651_v54, %v651_v54  ;;  %v785_v63 = vpack.c.bf16 %v652_v55, %v652_v55  ;;  %v786_v0 = vpack.c.bf16 %v653_v56, %v653_v56 }
 0x370   : > { %v787_v1 = vpack.c.bf16 %v654_v57, %v654_v57  ;;  %v788_v2 = vpack.c.bf16 %v655_v58, %v655_v58  ;;  %v789_v3 = vpack.c.bf16 %v656_v59, %v656_v59  ;;  %v790_v4 = vpack.c.bf16 %v657_v60, %v657_v60 }
 0x371   : > { %691 = vst.msk [vmem:[%s224_s11] sm:$0xf] %vm690_vm4, %v783_v61  ;;  %692 = vst.msk [vmem:[%s224_s11 + $0x4] sm:$0xf] %vm690_vm4, %v784_v62 }
 0x372   : > { %693 = vst.msk [vmem:[%s224_s11 + $0x8] sm:$0xf] %vm690_vm4, %v785_v63  ;;  %694 = vst.msk [vmem:[%s224_s11 + $0xc] sm:$0xf] %vm690_vm4, %v786_v0 }
 0x373   : > { %695 = vst.msk [vmem:[%s224_s11 + $0x10] sm:$0xf] %vm690_vm4, %v787_v1  ;;  %696 = vst.msk [vmem:[%s224_s11 + $0x14] sm:$0xf] %vm690_vm4, %v788_v2 }
 0x374   : > { %697 = vst.msk [vmem:[%s224_s11 + $0x18] sm:$0xf] %vm690_vm4, %v789_v3  ;;  %698 = vst.msk [vmem:[%s224_s11 + $0x1c] sm:$0xf] %vm690_vm4, %v790_v4 }
 0x375 PF: > { %s15_s18 = sadd.s32 1, %s862_s18  }
 0x376   : > { %p12_p4 = scmp.ge.s32.totalorder %s15_s18, 4  }
 0x378   :  { %14 = sbr.rel (!%p12_p4) target bundleno = 1 (0x1), region = 70 }

// kernel: resnet_forward.34
= control target key start
LH: loop header
LB: loop body
LE: loop exit
PB: predicated region body
PF: predicated region fallthrough
CT: control target
= control target key end

     0   :  { %v542_v0 = vmov 0   ;;  %vm172_vm0 = vcmask 130048   ;;  %s665_s1 = inlined_call_operand.vmem [shape: bf16[144,128], index: 1, kind: input, shape index: {}]   ;;  %s666_s0 = inlined_call_operand.vmem [shape: bf16[128,144], index: 0, kind: input, shape index: {}]   ;;  %s667_s2 = inlined_call_operand.vmem [shape: bf16[128,128], index: 2, kind: output, shape index: {}]  }
   0x1   :  { %197 = vmatprep.subr.bf16.mxu0 %v542_v0  ;;  %490 = vmatprep.subr.bf16.mxu1 %v542_v0  ;;  %v509_v1 = vld [vmem:[%s665_s1 + $0x38] sm:$0xff]   ;;  %v510_v2 = vld [vmem:[%s665_s1 + $0x30] sm:$0xff]   ;;  %v511_v3 = vld [vmem:[%s665_s1 + $0x28] sm:$0xff]  }
   0x2   :  { %198 = vmatpush1.bf16.msra.mxu0 %v509_v1  ;;  %499 = vmatpush1.bf16.msra.mxu1 %v509_v1  ;;  %v512_v4 = vld [vmem:[%s665_s1 + $0x20] sm:$0xff]   ;;  %v513_v7 = vld [vmem:[%s665_s1 + $0x18] sm:$0xff]   ;;  %v514_v8 = vld [vmem:[%s665_s1 + $0x10] sm:$0xff]  }
   0x3   :  { %199 = vmatprep.subr.bf16.mxu0 %v542_v0  ;;  %491 = vmatprep.subr.bf16.mxu1 %v542_v0  ;;  %v520_v5 = vld [vmem:[%s666_s0 + $0x4] ss:$8 sps:$4 sm:$0xff]   ;;  %v518_v12 = vld [vmem:[%s666_s0] ss:$8 sps:$4 sm:$0xff]   ;;  %v524_v14 = vld [vmem:[%s666_s0 + $0x14] ss:$8 sps:$4 sm:$0xff]  }
   0x4   :  { %v523_v6 = vld [vmem:[%s666_s0 + $0x44] ss:$8 sps:$4 sm:$0xff]   ;;  %403 = vmatprep.mubr.msk.bf16.mxu0 %vm172_vm0, %v520_v5  ;;  %v521_v13 = vld [vmem:[%s666_s0 + $0x40] ss:$8 sps:$4 sm:$0xff]   ;;  %v526_v15 = vld [vmem:[%s666_s0 + $0x54] ss:$8 sps:$4 sm:$0xff]  }
   0x5   :  { %407 = vmatprep.mubr.msk.bf16.mxu1 %vm172_vm0, %v523_v6  ;;  %v515_v9 = vld [vmem:[%s665_s1 + $0x8] sm:$0xff]   ;;  %v516_v10 = vld [vmem:[%s665_s1] sm:$0xff]   ;;  %v528_v16 = vld [vmem:[%s666_s0 + $0x10] ss:$8 sps:$4 sm:$0xff]  }
   0x6   :  { %200 = vmatpush1.bf16.msra.mxu0 %v510_v2  ;;  %500 = vmatpush1.bf16.msra.mxu1 %v510_v2  ;;  %v517_v11 = vld [vmem:[%s665_s1 + $0x40] sm:$0xff]   ;;  %v529_v17 = vld [vmem:[%s666_s0 + $0x50] ss:$8 sps:$4 sm:$0xff]   ;;  %v536_v22 = vld [vmem:[%s666_s0 + $0x34] ss:$8 sps:$4 sm:$0xff]  }
   0x7   :  { %201 = vmatprep.subr.bf16.mxu0 %v542_v0  ;;  %492 = vmatprep.subr.bf16.mxu1 %v542_v0  ;;  %v530_v18 = vld [vmem:[%s666_s0 + $0x24] ss:$8 sps:$4 sm:$0xff]   ;;  %v534_v20 = vld [vmem:[%s666_s0 + $0x20] ss:$8 sps:$4 sm:$0xff]   ;;  %v538_v23 = vld [vmem:[%s666_s0 + $0x74] ss:$8 sps:$4 sm:$0xff]  }
   0x8   :  { %v532_v19 = vld [vmem:[%s666_s0 + $0x64] ss:$8 sps:$4 sm:$0xff]   ;;  %v535_v21 = vld [vmem:[%s666_s0 + $0x60] ss:$8 sps:$4 sm:$0xff]   ;;  %v540_v24 = vld [vmem:[%s666_s0 + $0x30] ss:$8 sps:$4 sm:$0xff]  }
   0x9   :  { %v541_v25 = vld [vmem:[%s666_s0 + $0x70] ss:$8 sps:$4 sm:$0xff]  }
   0xa   :  { %202 = vmatpush1.bf16.msra.mxu0 %v511_v3  ;;  %501 = vmatpush1.bf16.msra.mxu1 %v511_v3 }
   0xb   :  { %203 = vmatprep.subr.bf16.mxu0 %v542_v0  ;;  %493 = vmatprep.subr.bf16.mxu1 %v542_v0 }
   0xe   :  { %204 = vmatpush1.bf16.msra.mxu0 %v512_v4  ;;  %502 = vmatpush1.bf16.msra.mxu1 %v512_v4 }
   0xf   :  { %205 = vmatprep.subr.bf16.mxu0 %v542_v0  ;;  %494 = vmatprep.subr.bf16.mxu1 %v542_v0 }
  0x12   :  { %206 = vmatpush1.bf16.msra.mxu0 %v513_v7  ;;  %503 = vmatpush1.bf16.msra.mxu1 %v513_v7 }
  0x13   :  { %207 = vmatprep.subr.bf16.mxu0 %v542_v0  ;;  %495 = vmatprep.subr.bf16.mxu1 %v542_v0 }
  0x16   :  { %208 = vmatpush1.bf16.msra.mxu0 %v514_v8  ;;  %504 = vmatpush1.bf16.msra.mxu1 %v514_v8 }
  0x17   :  { %209 = vmatprep.subr.bf16.mxu0 %v542_v0  ;;  %496 = vmatprep.subr.bf16.mxu1 %v542_v0 }
  0x1a   :  { %210 = vmatpush1.bf16.msra.mxu0 %v515_v9  ;;  %505 = vmatpush1.bf16.msra.mxu1 %v515_v9 }
  0x1b   :  { %211 = vmatprep.subr.bf16.mxu0 %v542_v0  ;;  %497 = vmatprep.subr.bf16.mxu1 %v542_v0 }
  0x1e   :  { %212 = vmatpush1.bf16.msra.mxu0 %v516_v10  ;;  %506 = vmatpush1.bf16.msra.mxu1 %v516_v10 }
  0x1f   :  { %227 = vmatprep.subr.bf16.mxu0 %v542_v0  ;;  %498 = vmatprep.subr.bf16.mxu1 %v542_v0 }
  0x22   :  { %228 = vmatpush2.bf16.msra.mxu0 %v517_v11  ;;  %507 = vmatpush2.bf16.msra.mxu1 %v517_v11 }
  0x25   :  { %230 = vmatmul.mubr.bf16.vlgmr.msra.gmra.mxu0 %v518_v12  ;;  %262 = vmatmul.mubr.bf16.vlgmr.msra.gmra.mxu1 %v521_v13 }
  0x26   :  { %404 = vmatprep.mubr.msk.bf16.mxu0 %vm172_vm0, %v524_v14  ;;  %408 = vmatprep.mubr.msk.bf16.mxu1 %vm172_vm0, %v526_v15 }
  0x2d   :  { %238 = vmatmul.mubr.bf16.gmra.mxu0 %v528_v16  ;;  %270 = vmatmul.mubr.bf16.gmra.mxu1 %v529_v17 }
  0x2e   :  { %405 = vmatprep.mubr.msk.bf16.mxu0 %vm172_vm0, %v530_v18  ;;  %409 = vmatprep.mubr.msk.bf16.mxu1 %vm172_vm0, %v532_v19 }
  0x35   :  { %246 = vmatmul.mubr.bf16.gmra.mxu0 %v534_v20  ;;  %278 = vmatmul.mubr.bf16.gmra.mxu1 %v535_v21 }
  0x36   :  { %406 = vmatprep.mubr.msk.bf16.mxu0 %vm172_vm0, %v536_v22  ;;  %410 = vmatprep.mubr.msk.bf16.mxu1 %vm172_vm0, %v538_v23 }
  0x3d   :  { %254 = vmatmul.mubr.bf16.gmra.mxu0 %v540_v24  ;;  %286 = vmatmul.mubr.bf16.gmra.mxu1 %v541_v25 }
  0xe5   :  { %v231_v26 = vpop.f32.mrf.mxu0  ;;  %v263_v27 = vpop.f32.mrf.mxu1 }
  0xe7   :  { %v233_v28 = vpop.f32.mrf.mxu0  ;;  %v265_v29 = vpop.f32.mrf.mxu1 }
  0xe9   :  { %v234_v30 = vpop.f32.mrf.mxu0  ;;  %v266_v31 = vpop.f32.mrf.mxu1 }
  0xea   :  { %v446_v32 = vpack.c.bf16 %v234_v30, %v231_v26  ;;  %v466_v33 = vpack.c.bf16 %v266_v31, %v263_v27 }
  0xeb   :  { %v236_v34 = vpop.f32.mrf.mxu0  ;;  %v268_v35 = vpop.f32.mrf.mxu1 }
  0xec   :  { %447 = vst [vmem:[%s667_s2] sm:$0xff] %v446_v32   ;;  %486 = vst [vmem:[%s667_s2 + $0x20] sm:$0xff] %v466_v33  }
  0xed   :  { %v239_v36 = vpop.f32.mrf.mxu0  ;;  %v271_v37 = vpop.f32.mrf.mxu1 }
  0xef   :  { %v241_v38 = vpop.f32.mrf.mxu0  ;;  %v273_v39 = vpop.f32.mrf.mxu1 }
  0xf1   :  { %v242_v40 = vpop.f32.mrf.mxu0  ;;  %v274_v41 = vpop.f32.mrf.mxu1 }
  0xf2   :  { %v451_v42 = vpack.c.bf16 %v242_v40, %v239_v36  ;;  %v471_v43 = vpack.c.bf16 %v274_v41, %v271_v37 }
  0xf3   :  { %v244_v44 = vpop.f32.mrf.mxu0  ;;  %v276_v45 = vpop.f32.mrf.mxu1 }
  0xf4   :  { %483 = vst [vmem:[%s667_s2 + $0x8] sm:$0xff] %v451_v42   ;;  %487 = vst [vmem:[%s667_s2 + $0x28] sm:$0xff] %v471_v43  }
  0xf5   :  { %v247_v46 = vpop.f32.mrf.mxu0  ;;  %v279_v47 = vpop.f32.mrf.mxu1 }
  0xf7   :  { %v249_v48 = vpop.f32.mrf.mxu0  ;;  %v281_v49 = vpop.f32.mrf.mxu1 }
  0xf9   :  { %v250_v50 = vpop.f32.mrf.mxu0  ;;  %v282_v51 = vpop.f32.mrf.mxu1 }
  0xfa   :  { %v456_v52 = vpack.c.bf16 %v250_v50, %v247_v46  ;;  %v476_v53 = vpack.c.bf16 %v282_v51, %v279_v47 }
  0xfb   :  { %v252_v54 = vpop.f32.mrf.mxu0  ;;  %v284_v55 = vpop.f32.mrf.mxu1 }
  0xfc   :  { %484 = vst [vmem:[%s667_s2 + $0x10] sm:$0xff] %v456_v52   ;;  %488 = vst [vmem:[%s667_s2 + $0x30] sm:$0xff] %v476_v53  }
  0xfd   :  { %v255_v56 = vpop.f32.mrf.mxu0  ;;  %v287_v57 = vpop.f32.mrf.mxu1 }
  0xff   :  { %v257_v58 = vpop.f32.mrf.mxu0  ;;  %v289_v59 = vpop.f32.mrf.mxu1 }
 0x101   :  { %v258_v60 = vpop.f32.mrf.mxu0  ;;  %v290_v61 = vpop.f32.mrf.mxu1 }
 0x102   :  { %v461_v62 = vpack.c.bf16 %v258_v60, %v255_v56  ;;  %v481_v63 = vpack.c.bf16 %v290_v61, %v287_v57 }
 0x103   :  { %v260_v0 = vpop.f32.mrf.mxu0  ;;  %v292_v1 = vpop.f32.mrf.mxu1 }
 0x104   :  { %485 = vst [vmem:[%s667_s2 + $0x18] sm:$0xff] %v461_v62   ;;  %489 = vst [vmem:[%s667_s2 + $0x38] sm:$0xff] %v481_v63  }

// kernel: resnet_forward.35
= control target key start
LH: loop header
LB: loop body
LE: loop exit
PB: predicated region body
PF: predicated region fallthrough
CT: control target
= control target key end

     0   :  { %vm76_vm0 = vcmask 130048   ;;  %s490_s1 = inlined_call_operand.vmem [shape: bf16[16,128], index: 1, kind: input, shape index: {}]   ;;  %s491_s0 = inlined_call_operand.vmem [shape: bf16[128,16], index: 0, kind: input, shape index: {}]   ;;  %s492_s2 = inlined_call_operand.vmem [shape: bf16[128,128], index: 2, kind: output, shape index: {}]  }
   0x1   :  { %v407_v0 = vld [vmem:[%s490_s1] sm:$0xff]   ;;  %v410_v3 = vld [vmem:[%s491_s0 + $0x8] sm:$0xff]   ;;  %v412_v5 = vld [vmem:[%s491_s0 + $0x10] sm:$0xff]  }
   0x2   :  { %v408_v1 = vld [vmem:[%s491_s0] sm:$0xff]   ;;  %387 = vmatprep.subr.bf16.mxu0 %v407_v0  ;;  %405 = vmatprep.subr.bf16.mxu1 %v407_v0  ;;  %v411_v4 = vld [vmem:[%s491_s0 + $0x28] sm:$0xff]   ;;  %v413_v6 = vld [vmem:[%s491_s0 + $0x30] sm:$0xff]  }
   0x3   :  { %v409_v2 = vld [vmem:[%s491_s0 + $0x20] sm:$0xff]   ;;  %388 = vmatpush3.bf16.msra.mxu0 %v407_v0  ;;  %406 = vmatpush3.bf16.msra.mxu1 %v407_v0  ;;  %v414_v7 = vld [vmem:[%s491_s0 + $0x18] sm:$0xff]  }
   0x4   :  { %389 = vmatprep.mubr.msk.bf16.mxu0 %vm76_vm0, %v408_v1  ;;  %397 = vmatprep.mubr.msk.bf16.mxu1 %vm76_vm0, %v409_v2  ;;  %v415_v8 = vld [vmem:[%s491_s0 + $0x38] sm:$0xff]  }
   0x6   :  { %390 = vmatmul.mubr.msk.bf16.vlgmr.msra.gmra.mxu0 %vm76_vm0, %v410_v3  ;;  %398 = vmatmul.mubr.msk.bf16.vlgmr.msra.gmra.mxu1 %vm76_vm0, %v411_v4 }
   0x7   :  { %393 = vmatprep.mubr.msk.bf16.mxu0 %vm76_vm0, %v412_v5  ;;  %401 = vmatprep.mubr.msk.bf16.mxu1 %vm76_vm0, %v413_v6 }
   0xe   :  { %394 = vmatmul.mubr.msk.bf16.gmra.mxu0 %vm76_vm0, %v414_v7  ;;  %402 = vmatmul.mubr.msk.bf16.gmra.mxu1 %vm76_vm0, %v415_v8 }
  0xc6   :  { %v391_v9 = vpop.f32.mrf.mxu0  ;;  %v399_v10 = vpop.f32.mrf.mxu1 }
  0xc8   :  { %v135_v11 = vpop.f32.mrf.mxu0  ;;  %v167_v12 = vpop.f32.mrf.mxu1 }
  0xca   :  { %v392_v13 = vpop.f32.mrf.mxu0  ;;  %v400_v14 = vpop.f32.mrf.mxu1 }
  0xcb   :  { %v339_v15 = vpack.c.bf16 %v392_v13, %v391_v9  ;;  %v359_v16 = vpack.c.bf16 %v400_v14, %v399_v10 }
  0xcc   :  { %v138_v17 = vpop.f32.mrf.mxu0  ;;  %v170_v18 = vpop.f32.mrf.mxu1 }
  0xcd   :  { %371 = vst [vmem:[%s492_s2 + $0x8] sm:$0xff] %v339_v15   ;;  %375 = vst [vmem:[%s492_s2 + $0x28] sm:$0xff] %v359_v16   ;;  %v334_v19 = vpack.c.bf16 %v138_v17, %v135_v11  ;;  %v354_v20 = vpack.c.bf16 %v170_v18, %v167_v12 }
  0xce   :  { %v395_v21 = vpop.f32.mrf.mxu0  ;;  %v403_v22 = vpop.f32.mrf.mxu1 }
  0xcf   :  { %335 = vst [vmem:[%s492_s2] sm:$0xff] %v334_v19   ;;  %374 = vst [vmem:[%s492_s2 + $0x20] sm:$0xff] %v354_v20  }
  0xd0   :  { %v151_v23 = vpop.f32.mrf.mxu0  ;;  %v183_v24 = vpop.f32.mrf.mxu1 }
  0xd2   :  { %v396_v25 = vpop.f32.mrf.mxu0  ;;  %v404_v26 = vpop.f32.mrf.mxu1 }
  0xd3   :  { %v349_v27 = vpack.c.bf16 %v396_v25, %v395_v21  ;;  %v369_v28 = vpack.c.bf16 %v404_v26, %v403_v22 }
  0xd4   :  { %v154_v29 = vpop.f32.mrf.mxu0  ;;  %v186_v30 = vpop.f32.mrf.mxu1 }
  0xd5   :  { %373 = vst [vmem:[%s492_s2 + $0x18] sm:$0xff] %v349_v27   ;;  %377 = vst [vmem:[%s492_s2 + $0x38] sm:$0xff] %v369_v28   ;;  %v344_v31 = vpack.c.bf16 %v154_v29, %v151_v23  ;;  %v364_v32 = vpack.c.bf16 %v186_v30, %v183_v24 }
  0xd7   :  { %372 = vst [vmem:[%s492_s2 + $0x10] sm:$0xff] %v344_v31   ;;  %376 = vst [vmem:[%s492_s2 + $0x30] sm:$0xff] %v364_v32  }

// kernel: resnet_forward.36
= control target key start
LH: loop header
LB: loop body
LE: loop exit
PB: predicated region body
PF: predicated region fallthrough
CT: control target
= control target key end

     0   :  { %s888_s18 = smov 0   ;;  %s963_s0 = inlined_call_operand.vmem [shape: bf16[2,64,16], index: 0, kind: input, shape index: {}]   ;;  %s964_s1 = inlined_call_operand.vmem [shape: f32[16,4], index: 1, kind: input, shape index: {}]   ;;  %s965_s2 = inlined_call_operand.vmem [shape: f32[4,16], index: 2, kind: input, shape index: {}]   ;;  %s966_s3 = inlined_call_operand.vmem [shape: f32[1,16], index: 3, kind: input, shape index: {}]   ;;  %s967_s4 = inlined_call_operand.vmem [shape: f32[1,16], index: 4, kind: input, shape index: {}]   ;;  %s968_s5 = inlined_call_operand.vmem [shape: bf16[2,64,16], index: 5, kind: output, shape index: {}]  }
   0x1 LB: > { %s746_s19 = sadd.s32 4294967295, %s854_s18   ;;  %p750_p0 = scmp.ge.s32.totalorder %s854_s18, 1  ;;  %s854_s18 = sphi %s888_s18, %s15_s18  }
   0x2   : > { %p187_p1 = scmp.lt.s32.totalorder %s854_s18, 3 }
   0x4   : > { %p188_p2 = pnand %p750_p0, %p187_p1 }
   0x5   : > { %p215_p3 = scmp.lt.s32.totalorder (!%p188_p2), %s746_s19, 1 }
   0x6   : > { %191 = sbr.rel (%p188_p2) target bundleno = 883 (0x373), region = 40 }
   0xb   : > { %v264_v0 = vld [vmem:[%s964_s1 + $0x8] sm:$0xff]  ;;  %v856_v1 = vmov 0.0   ;;  %v263_v2 = vld [vmem:[%s964_s1] sm:$0xff]  ;;  %vm857_vm0 = vmmov 0   ;;  %s970_s19 = smov (!%p215_p3, %s746_s19), 1  ;;  %vm241_vm1 = vcmask 130048   ;;  %v418_v40 = vlaneseq }
   0xc   : > { %812 = vmatprep.subr.mxu0 %v856_v1  ;;  %816 = vmatprep.mubr.msk.f32.mxu0 %vm857_vm0, %v856_v1  ;;  %s773_s24 = sshll.u32 %s970_s19, 5  ;;  %v339_v36 = vld [vmem:[%s965_s2] sm:$0xf]  ;;  %vm344_vm2 = vcmask 1043456   ;;  %vm340_vm3 = vcmask 31744   ;;  %vm682_vm4 = vcmask 125952  }
   0xd   : > { %813 = vmatpush3.msra.mxu0 %v264_v0  ;;  %819 = vmatprep.subr.mxu1 %v856_v1  ;;  %s219_s27 = scalar_lea.vmem %s963_s0, %s773_s24  ;;  %v419_v41 = vshrl.u32 %v418_v40, 7  ;;  %s224_s11 = scalar_lea.vmem %s968_s5, %s773_s24 }
   0xe   : > { %814 = vmatprep.subr.mxu0 %v856_v1  ;;  %821 = vmatprep.mubr.msk.f32.mxu1 %vm857_vm0, %v856_v1  ;;  %v784_v3 = vld [vmem:[%s219_s27] sm:$0xff]   ;;  %v799_v4 = vld [vmem:[%s219_s27 + $0x8] sm:$0xff]   ;;  %v912_v5 = vld [vmem:[%s219_s27 + $0x10] sm:$0xff]  }
   0xf   : > { %815 = vmatpush3.msra.mxu0 %v263_v2  ;;  %v785_v6 = vunpack.c.l.bf16 %v784_v3  ;;  %v786_v7 = vunpack.c.h.bf16 %v784_v3  ;;  %v789_v8 = vunpack.c.l.bf16 %v799_v4  ;;  %v790_v9 = vunpack.c.h.bf16 %v799_v4  ;;  %v801_v14 = vld [vmem:[%s219_s27 + $0x18] sm:$0xff]   ;;  %820 = vmatpush3.msk.msra.mxu1 %vm344_vm2, %v339_v36 }
  0x10   : > { %831 = vmatprep.subr.mxu0 %v856_v1  ;;  %v793_v10 = vunpack.c.l.bf16 %v912_v5  ;;  %v794_v16 = vunpack.c.h.bf16 %v912_v5  ;;  %v797_v19 = vunpack.c.l.bf16 %v801_v14  ;;  %v798_v22 = vunpack.c.h.bf16 %v801_v14  ;;  %824 = vmatprep.subr.mxu1 %v856_v1 }
  0x11   : > { %v242_v11 = vsel %vm241_vm1, %v785_v6, 0.0  ;;  %v243_v12 = vsel %vm241_vm1, %v786_v7, 0.0  ;;  %v245_v13 = vsel %vm241_vm1, %v789_v8, 0.0  ;;  %v247_v17 = vsel %vm241_vm1, %v790_v9, 0.0 }
  0x12   : > { %v244_v15 = vadd.f32 %v243_v12, %v242_v11  ;;  %v249_v20 = vsel %vm241_vm1, %v793_v10, 0.0  ;;  %v251_v23 = vsel %vm241_vm1, %v794_v16, 0.0  ;;  %v253_v25 = vsel %vm241_vm1, %v797_v19, 0.0 }
  0x13   : > { %v255_v27 = vsel %vm241_vm1, %v798_v22, 0.0  ;;  %v420_v42 = vsub.s32 0, %v419_v41 }
  0x14   : > { %v246_v18 = vadd.f32 %v245_v13, %v244_v15 }
  0x16   : > { %v248_v21 = vadd.f32 %v247_v17, %v246_v18 }
  0x18   : > { %v250_v24 = vadd.f32 %v249_v20, %v248_v21 }
  0x1a   : > { %v252_v26 = vadd.f32 %v251_v23, %v250_v24 }
  0x1c   : > { %v254_v28 = vadd.f32 %v253_v25, %v252_v26  ;;  %v761_v26 = vld [vmem:[%s966_s3] ss:$0 sm:$0xff] }
  0x1e   : > { %v256_v29 = vadd.f32 %v255_v27, %v254_v28 }
  0x20   : > { %v257_v30 = vrot.slane %v256_v29, 4 }
  0x22   : > { %v258_v31 = vadd.f32 %v257_v30, %v256_v29 }
  0x24   : > { %v259_v32 = vrot.slane %v258_v31, 2 }
  0x26   : > { %v260_v33 = vadd.f32 %v259_v32, %v258_v31 }
  0x28   : > { %v261_v34 = vrot.slane %v260_v33, 1 }
  0x2a   : > { %v262_v35 = vadd.f32 %v261_v34, %v260_v33 }
  0x2c   : > { %817 = vmatmul.mubr.msk.f32.vlgmr.msra.gmra.mxu0 %vm241_vm1, %v262_v35 }
  0x2d   : > { %833 = vmatprep.mubr.msk.f32.mxu0 %vm857_vm0, %v856_v1  ;;  %832 = vmatpush3.msk.msra.mxu0 %vm344_vm2, %v339_v36  ;;  %v762_v36 = vld [vmem:[%s967_s4] ss:$0 sm:$0xff] }
  0xec   : > { %v334_v37 = vpop.f32.mrf.mxu0 }
  0xed   : > { %v338_v38 = vmul.f32 0.00390625, %v334_v37 }
  0xee   : > { %v818_v39 = vpop.f32.mrf.mxu0 }
  0xef   : > { %822 = vmatmul.mubr.msk.f32.vlgmr.msra.gmra.mxu1 %vm340_vm3, %v338_v38 }
  0xf0   : > { %825 = vmatpush3.msra.mxu1 %v264_v0  ;;  %828 = vmatprep.mubr.msk.f32.mxu1 %vm857_vm0, %v856_v1 }
  0xf1   : > { %826 = vmatprep.subr.mxu1 %v856_v1 }
  0xf2   : > { %827 = vmatpush3.msra.mxu1 %v263_v2 }
 0x1af   : > { %v414_v43 = vpop.f32.mrf.mxu1 }
 0x1b0   : > { %v421_v44 = vrot.slane %v414_v43, %v420_v42 }
 0x1b1   : > { %v823_v45 = vpop.f32.mrf.mxu1 }
 0x1b2   : > { %v422_v46 = vsub.f32 %v785_v6, %v421_v44  ;;  %v423_v47 = vsub.f32 %v786_v7, %v421_v44  ;;  %v424_v48 = vsub.f32 %v789_v8, %v421_v44  ;;  %v425_v49 = vsub.f32 %v790_v9, %v421_v44 }
 0x1b3   : > { %v426_v50 = vsub.f32 %v793_v10, %v421_v44  ;;  %v427_v54 = vsub.f32 %v794_v16, %v421_v44  ;;  %v428_v59 = vsub.f32 %v797_v19, %v421_v44  ;;  %v429_v63 = vsub.f32 %v798_v22, %v421_v44 }
 0x1b4   : > { %v430_v51 = vmul.f32 %v422_v46, %v422_v46  ;;  %v431_v52 = vmul.f32 %v423_v47, %v423_v47  ;;  %v432_v53 = vmul.f32 %v424_v48, %v424_v48  ;;  %v433_v55 = vmul.f32 %v425_v49, %v425_v49 }
 0x1b5   : > { %v434_v60 = vmul.f32 %v426_v50, %v426_v50  ;;  %v435_v0 = vmul.f32 %v427_v54, %v427_v54  ;;  %v436_v3 = vmul.f32 %v428_v59, %v428_v59  ;;  %v437_v6 = vmul.f32 %v429_v63, %v429_v63 }
 0x1b6   : > { %v438_v56 = vsel %vm241_vm1, %v430_v51, 0.0  ;;  %v439_v57 = vsel %vm241_vm1, %v431_v52, 0.0  ;;  %v441_v61 = vsel %vm241_vm1, %v432_v53, 0.0  ;;  %v443_v1 = vsel %vm241_vm1, %v433_v55, 0.0 }
 0x1b7   : > { %v440_v58 = vadd.f32 %v439_v57, %v438_v56  ;;  %v445_v4 = vsel %vm241_vm1, %v434_v60, 0.0  ;;  %v447_v7 = vsel %vm241_vm1, %v435_v0, 0.0  ;;  %v449_v9 = vsel %vm241_vm1, %v436_v3, 0.0 }
 0x1b8   : > { %v451_v11 = vsel %vm241_vm1, %v437_v6, 0.0 }
 0x1b9   : > { %v442_v62 = vadd.f32 %v441_v61, %v440_v58 }
 0x1bb   : > { %v444_v2 = vadd.f32 %v443_v1, %v442_v62 }
 0x1bd   : > { %v446_v5 = vadd.f32 %v445_v4, %v444_v2 }
 0x1bf   : > { %v448_v8 = vadd.f32 %v447_v7, %v446_v5 }
 0x1c1   : > { %v450_v10 = vadd.f32 %v449_v9, %v448_v8 }
 0x1c3   : > { %v452_v12 = vadd.f32 %v451_v11, %v450_v10 }
 0x1c5   : > { %v453_v13 = vrot.slane %v452_v12, 4 }
 0x1c7   : > { %v454_v14 = vadd.f32 %v453_v13, %v452_v12 }
 0x1c9   : > { %v455_v15 = vrot.slane %v454_v14, 2 }
 0x1cb   : > { %v456_v16 = vadd.f32 %v455_v15, %v454_v14 }
 0x1cd   : > { %v457_v17 = vrot.slane %v456_v16, 1 }
 0x1cf   : > { %v458_v18 = vadd.f32 %v457_v17, %v456_v16 }
 0x1d1   : > { %829 = vmatmul.mubr.msk.f32.vlgmr.msra.gmra.mxu1 %vm241_vm1, %v458_v18 }
 0x291   : > { %v528_v19 = vpop.f32.mrf.mxu1 }
 0x292   : > { %v532_v20 = vmul.f32 0.00390625, %v528_v19 }
 0x293   : > { %v830_v21 = vpop.f32.mrf.mxu1 }
 0x294   : > { %v533_v22 = vadd.f32 1e-05, %v532_v20 }
 0x296   : > { %846 = vrsqrt.f32 %v533_v22 }
 0x2a3   : > { %v847_v23 = vpop.eup %846 }
 0x2a4   : > { %834 = vmatmul.mubr.msk.f32.vlgmr.msra.gmra.mxu0 %vm340_vm3, %v847_v23 }
 0x364   : > { %v604_v24 = vpop.f32.mrf.mxu0 }
 0x365   : > { %v611_v25 = vrot.slane %v604_v24, %v420_v42 }
 0x366   : > { %v835_v27 = vpop.f32.mrf.mxu0 }
 0x367   : > { %v612_v28 = vmul.f32 %v611_v25, %v422_v46  ;;  %v613_v29 = vmul.f32 %v611_v25, %v423_v47  ;;  %v614_v30 = vmul.f32 %v611_v25, %v424_v48  ;;  %v615_v31 = vmul.f32 %v611_v25, %v425_v49 }
 0x368   : > { %v616_v32 = vmul.f32 %v611_v25, %v426_v50  ;;  %v617_v33 = vmul.f32 %v611_v25, %v427_v54  ;;  %v618_v34 = vmul.f32 %v611_v25, %v428_v59  ;;  %v619_v35 = vmul.f32 %v611_v25, %v429_v63 }
 0x369   : > { %v627_v37 = vmul.f32 %v761_v26, %v612_v28  ;;  %v628_v38 = vmul.f32 %v761_v26, %v613_v29  ;;  %v629_v39 = vmul.f32 %v761_v26, %v614_v30  ;;  %v630_v40 = vmul.f32 %v761_v26, %v615_v31 }
 0x36a   : > { %v631_v41 = vmul.f32 %v761_v26, %v616_v32  ;;  %v632_v42 = vmul.f32 %v761_v26, %v617_v33  ;;  %v633_v43 = vmul.f32 %v761_v26, %v618_v34  ;;  %v634_v44 = vmul.f32 %v761_v26, %v619_v35 }
 0x36b   : > { %v642_v45 = vadd.f32 %v762_v36, %v627_v37  ;;  %v643_v46 = vadd.f32 %v762_v36, %v628_v38  ;;  %v644_v47 = vadd.f32 %v762_v36, %v629_v39  ;;  %v645_v48 = vadd.f32 %v762_v36, %v630_v40 }
 0x36c   : > { %v646_v49 = vadd.f32 %v762_v36, %v631_v41  ;;  %v647_v50 = vadd.f32 %v762_v36, %v632_v42  ;;  %v648_v51 = vadd.f32 %v762_v36, %v633_v43  ;;  %v649_v52 = vadd.f32 %v762_v36, %v634_v44 }
 0x36d   : > { %v775_v53 = vpack.c.bf16 %v642_v45, %v642_v45  ;;  %v776_v54 = vpack.c.bf16 %v643_v46, %v643_v46  ;;  %v777_v55 = vpack.c.bf16 %v644_v47, %v644_v47  ;;  %v778_v56 = vpack.c.bf16 %v645_v48, %v645_v48 }
 0x36e   : > { %v779_v57 = vpack.c.bf16 %v646_v49, %v646_v49  ;;  %v780_v58 = vpack.c.bf16 %v647_v50, %v647_v50  ;;  %v781_v59 = vpack.c.bf16 %v648_v51, %v648_v51  ;;  %v782_v60 = vpack.c.bf16 %v649_v52, %v649_v52 }
 0x36f   : > { %683 = vst.msk [vmem:[%s224_s11] sm:$0xf] %vm682_vm4, %v775_v53  ;;  %684 = vst.msk [vmem:[%s224_s11 + $0x4] sm:$0xf] %vm682_vm4, %v776_v54 }
 0x370   : > { %685 = vst.msk [vmem:[%s224_s11 + $0x8] sm:$0xf] %vm682_vm4, %v777_v55  ;;  %686 = vst.msk [vmem:[%s224_s11 + $0xc] sm:$0xf] %vm682_vm4, %v778_v56 }
 0x371   : > { %687 = vst.msk [vmem:[%s224_s11 + $0x10] sm:$0xf] %vm682_vm4, %v779_v57  ;;  %688 = vst.msk [vmem:[%s224_s11 + $0x14] sm:$0xf] %vm682_vm4, %v780_v58 }
 0x372   : > { %689 = vst.msk [vmem:[%s224_s11 + $0x18] sm:$0xf] %vm682_vm4, %v781_v59  ;;  %690 = vst.msk [vmem:[%s224_s11 + $0x1c] sm:$0xf] %vm682_vm4, %v782_v60 }
 0x373 PF: > { %s15_s18 = sadd.s32 1, %s854_s18  }
 0x374   : > { %p12_p4 = scmp.ge.s32.totalorder %s15_s18, 4  }
 0x376   :  { %14 = sbr.rel (!%p12_p4) target bundleno = 1 (0x1), region = 70 }

// kernel: resnet_forward.37
= control target key start
LH: loop header
LB: loop body
LE: loop exit
PB: predicated region body
PF: predicated region fallthrough
CT: control target
= control target key end

     0   :  { %s1006_s21 = smov 0   ;;  %s1082_s0 = inlined_call_operand.vmem [shape: bf16[2,64,16], index: 0, kind: input, shape index: {}]   ;;  %s1083_s1 = inlined_call_operand.vmem [shape: f32[16,4], index: 1, kind: input, shape index: {}]   ;;  %s1084_s2 = inlined_call_operand.vmem [shape: f32[4,16], index: 2, kind: input, shape index: {}]   ;;  %s1085_s3 = inlined_call_operand.vmem [shape: f32[1,16], index: 3, kind: input, shape index: {}]   ;;  %s1086_s4 = inlined_call_operand.vmem [shape: f32[1,16], index: 4, kind: input, shape index: {}]   ;;  %s1087_s5 = inlined_call_operand.vmem [shape: bf16[2,64,16], index: 5, kind: input, shape index: {}]   ;;  %s1088_s6 = inlined_call_operand.vmem [shape: bf16[2,64,16], index: 6, kind: output, shape index: {}]  }
   0x1 LB: > { %s837_s22 = sadd.s32 4294967295, %s967_s21   ;;  %p841_p0 = scmp.ge.s32.totalorder %s967_s21, 1  ;;  %s967_s21 = sphi %s1006_s21, %s16_s21  }
   0x2   : > { %p222_p1 = scmp.lt.s32.totalorder %s967_s21, 3 }
   0x4   : > { %p223_p2 = pnand %p841_p0, %p222_p1 }
   0x5   : > { %p257_p3 = scmp.lt.s32.totalorder (!%p223_p2), %s837_s22, 1 }
   0x6   : > { %226 = sbr.rel (%p223_p2) target bundleno = 887 (0x377), region = 44 }
   0xb   : > { %v311_v0 = vld [vmem:[%s1083_s1 + $0x8] sm:$0xff]  ;;  %v969_v1 = vmov 0.0   ;;  %v310_v2 = vld [vmem:[%s1083_s1] sm:$0xff]  ;;  %vm970_vm0 = vmmov 0   ;;  %s1090_s22 = smov (!%p257_p3, %s837_s22), 1  ;;  %vm288_vm1 = vcmask 130048   ;;  %v465_v40 = vlaneseq }
   0xc   : > { %925 = vmatprep.subr.mxu0 %v969_v1  ;;  %929 = vmatprep.mubr.msk.f32.mxu0 %vm970_vm0, %v969_v1  ;;  %s1022_s27 = sshll.u32 %s1090_s22, 5  ;;  %v386_v36 = vld [vmem:[%s1084_s2] sm:$0xf]  ;;  %vm391_vm2 = vcmask 1043456   ;;  %vm387_vm3 = vcmask 31744   ;;  %vm761_vm4 = vcmask 125952  }
   0xd   : > { %926 = vmatpush3.msra.mxu0 %v311_v0  ;;  %932 = vmatprep.subr.mxu1 %v969_v1  ;;  %s261_s30 = scalar_lea.vmem %s1082_s0, %s1022_s27  ;;  %v466_v41 = vshrl.u32 %v465_v40, 7  ;;  %s266_s11 = scalar_lea.vmem %s1087_s5, %s1022_s27 }
   0xe   : > { %927 = vmatprep.subr.mxu0 %v969_v1  ;;  %934 = vmatprep.mubr.msk.f32.mxu1 %vm970_vm0, %v969_v1  ;;  %v878_v3 = vld [vmem:[%s261_s30] sm:$0xff]   ;;  %v909_v4 = vld [vmem:[%s261_s30 + $0x8] sm:$0xff]   ;;  %v1028_v5 = vld [vmem:[%s261_s30 + $0x10] sm:$0xff]   ;;  %s271_s18 = scalar_lea.vmem %s1088_s6, %s1022_s27 }
   0xf   : > { %928 = vmatpush3.msra.mxu0 %v310_v2  ;;  %v879_v6 = vunpack.c.l.bf16 %v878_v3  ;;  %v880_v7 = vunpack.c.h.bf16 %v878_v3  ;;  %v883_v8 = vunpack.c.l.bf16 %v909_v4  ;;  %v884_v9 = vunpack.c.h.bf16 %v909_v4  ;;  %v911_v14 = vld [vmem:[%s261_s30 + $0x18] sm:$0xff]   ;;  %933 = vmatpush3.msk.msra.mxu1 %vm391_vm2, %v386_v36 }
  0x10   : > { %944 = vmatprep.subr.mxu0 %v969_v1  ;;  %v887_v10 = vunpack.c.l.bf16 %v1028_v5  ;;  %v888_v16 = vunpack.c.h.bf16 %v1028_v5  ;;  %v891_v19 = vunpack.c.l.bf16 %v911_v14  ;;  %v892_v22 = vunpack.c.h.bf16 %v911_v14  ;;  %937 = vmatprep.subr.mxu1 %v969_v1 }
  0x11   : > { %v289_v11 = vsel %vm288_vm1, %v879_v6, 0.0  ;;  %v290_v12 = vsel %vm288_vm1, %v880_v7, 0.0  ;;  %v292_v13 = vsel %vm288_vm1, %v883_v8, 0.0  ;;  %v294_v17 = vsel %vm288_vm1, %v884_v9, 0.0 }
  0x12   : > { %v291_v15 = vadd.f32 %v290_v12, %v289_v11  ;;  %v296_v20 = vsel %vm288_vm1, %v887_v10, 0.0  ;;  %v298_v23 = vsel %vm288_vm1, %v888_v16, 0.0  ;;  %v300_v25 = vsel %vm288_vm1, %v891_v19, 0.0 }
  0x13   : > { %v302_v27 = vsel %vm288_vm1, %v892_v22, 0.0  ;;  %v467_v42 = vsub.s32 0, %v466_v41 }
  0x14   : > { %v293_v18 = vadd.f32 %v292_v13, %v291_v15 }
  0x16   : > { %v295_v21 = vadd.f32 %v294_v17, %v293_v18 }
  0x18   : > { %v297_v24 = vadd.f32 %v296_v20, %v295_v21 }
  0x1a   : > { %v299_v26 = vadd.f32 %v298_v23, %v297_v24  ;;  %v894_v24 = vld [vmem:[%s266_s11] sm:$0xff]  }
  0x1c   : > { %v301_v28 = vadd.f32 %v300_v25, %v299_v26  ;;  %v912_v25 = vld [vmem:[%s266_s11 + $0x8] sm:$0xff]   ;;  %v913_v26 = vld [vmem:[%s266_s11 + $0x10] sm:$0xff]  }
  0x1e   : > { %v303_v29 = vadd.f32 %v302_v27, %v301_v28  ;;  %v914_v27 = vld [vmem:[%s266_s11 + $0x18] sm:$0xff]   ;;  %v895_v28 = vunpack.c.l.bf16 %v894_v24 }
  0x20   : > { %v304_v30 = vrot.slane %v303_v29, 4 }
  0x22   : > { %v305_v31 = vadd.f32 %v304_v30, %v303_v29  ;;  %v896_v30 = vunpack.c.h.bf16 %v894_v24 }
  0x24   : > { %v306_v32 = vrot.slane %v305_v31, 2 }
  0x26   : > { %v307_v33 = vadd.f32 %v306_v32, %v305_v31  ;;  %v899_v31 = vunpack.c.l.bf16 %v912_v25  ;;  %v900_v32 = vunpack.c.h.bf16 %v912_v25 }
  0x28   : > { %v308_v34 = vrot.slane %v307_v33, 1 }
  0x2a   : > { %v309_v35 = vadd.f32 %v308_v34, %v307_v33  ;;  %v903_v34 = vunpack.c.l.bf16 %v913_v26 }
  0x2c   : > { %930 = vmatmul.mubr.msk.f32.vlgmr.msra.gmra.mxu0 %vm288_vm1, %v309_v35  ;;  %v904_v35 = vunpack.c.h.bf16 %v913_v26 }
  0x2d   : > { %946 = vmatprep.mubr.msk.f32.mxu0 %vm970_vm0, %v969_v1  ;;  %945 = vmatpush3.msk.msra.mxu0 %vm391_vm2, %v386_v36  ;;  %v907_v36 = vunpack.c.l.bf16 %v914_v27 }
  0xec   : > { %v381_v37 = vpop.f32.mrf.mxu0 }
  0xed   : > { %v385_v38 = vmul.f32 0.00390625, %v381_v37  ;;  %v908_v37 = vunpack.c.h.bf16 %v914_v27 }
  0xee   : > { %v931_v39 = vpop.f32.mrf.mxu0 }
  0xef   : > { %935 = vmatmul.mubr.msk.f32.vlgmr.msra.gmra.mxu1 %vm387_vm3, %v385_v38  ;;  %v854_v38 = vld [vmem:[%s1085_s3] ss:$0 sm:$0xff] }
  0xf0   : > { %938 = vmatpush3.msra.mxu1 %v311_v0  ;;  %941 = vmatprep.mubr.msk.f32.mxu1 %vm970_vm0, %v969_v1 }
  0xf1   : > { %939 = vmatprep.subr.mxu1 %v969_v1 }
  0xf2   : > { %940 = vmatpush3.msra.mxu1 %v310_v2 }
 0x1af   : > { %v461_v43 = vpop.f32.mrf.mxu1 }
 0x1b0   : > { %v468_v44 = vrot.slane %v461_v43, %v467_v42 }
 0x1b1   : > { %v936_v45 = vpop.f32.mrf.mxu1 }
 0x1b2   : > { %v469_v46 = vsub.f32 %v879_v6, %v468_v44  ;;  %v470_v47 = vsub.f32 %v880_v7, %v468_v44  ;;  %v471_v48 = vsub.f32 %v883_v8, %v468_v44  ;;  %v472_v49 = vsub.f32 %v884_v9, %v468_v44 }
 0x1b3   : > { %v473_v50 = vsub.f32 %v887_v10, %v468_v44  ;;  %v474_v54 = vsub.f32 %v888_v16, %v468_v44  ;;  %v475_v59 = vsub.f32 %v891_v19, %v468_v44  ;;  %v476_v63 = vsub.f32 %v892_v22, %v468_v44 }
 0x1b4   : > { %v477_v51 = vmul.f32 %v469_v46, %v469_v46  ;;  %v478_v52 = vmul.f32 %v470_v47, %v470_v47  ;;  %v479_v53 = vmul.f32 %v471_v48, %v471_v48  ;;  %v480_v55 = vmul.f32 %v472_v49, %v472_v49 }
 0x1b5   : > { %v481_v60 = vmul.f32 %v473_v50, %v473_v50  ;;  %v482_v0 = vmul.f32 %v474_v54, %v474_v54  ;;  %v483_v3 = vmul.f32 %v475_v59, %v475_v59  ;;  %v484_v6 = vmul.f32 %v476_v63, %v476_v63 }
 0x1b6   : > { %v485_v56 = vsel %vm288_vm1, %v477_v51, 0.0  ;;  %v486_v57 = vsel %vm288_vm1, %v478_v52, 0.0  ;;  %v488_v61 = vsel %vm288_vm1, %v479_v53, 0.0  ;;  %v490_v1 = vsel %vm288_vm1, %v480_v55, 0.0 }
 0x1b7   : > { %v487_v58 = vadd.f32 %v486_v57, %v485_v56  ;;  %v492_v4 = vsel %vm288_vm1, %v481_v60, 0.0  ;;  %v494_v7 = vsel %vm288_vm1, %v482_v0, 0.0  ;;  %v496_v9 = vsel %vm288_vm1, %v483_v3, 0.0 }
 0x1b8   : > { %v498_v11 = vsel %vm288_vm1, %v484_v6, 0.0 }
 0x1b9   : > { %v489_v62 = vadd.f32 %v488_v61, %v487_v58 }
 0x1bb   : > { %v491_v2 = vadd.f32 %v490_v1, %v489_v62 }
 0x1bd   : > { %v493_v5 = vadd.f32 %v492_v4, %v491_v2 }
 0x1bf   : > { %v495_v8 = vadd.f32 %v494_v7, %v493_v5 }
 0x1c1   : > { %v497_v10 = vadd.f32 %v496_v9, %v495_v8 }
 0x1c3   : > { %v499_v12 = vadd.f32 %v498_v11, %v497_v10 }
 0x1c5   : > { %v500_v13 = vrot.slane %v499_v12, 4 }
 0x1c7   : > { %v501_v14 = vadd.f32 %v500_v13, %v499_v12 }
 0x1c9   : > { %v502_v15 = vrot.slane %v501_v14, 2 }
 0x1cb   : > { %v503_v16 = vadd.f32 %v502_v15, %v501_v14 }
 0x1cd   : > { %v504_v17 = vrot.slane %v503_v16, 1 }
 0x1cf   : > { %v505_v18 = vadd.f32 %v504_v17, %v503_v16 }
 0x1d1   : > { %942 = vmatmul.mubr.msk.f32.vlgmr.msra.gmra.mxu1 %vm288_vm1, %v505_v18 }
 0x291   : > { %v575_v19 = vpop.f32.mrf.mxu1 }
 0x292   : > { %v579_v20 = vmul.f32 0.00390625, %v575_v19 }
 0x293   : > { %v943_v21 = vpop.f32.mrf.mxu1 }
 0x294   : > { %v580_v22 = vadd.f32 1e-05, %v579_v20 }
 0x296   : > { %959 = vrsqrt.f32 %v580_v22 }
 0x2a3   : > { %v960_v23 = vpop.eup %959 }
 0x2a4   : > { %947 = vmatmul.mubr.msk.f32.vlgmr.msra.gmra.mxu0 %vm387_vm3, %v960_v23 }
 0x364   : > { %v651_v29 = vpop.f32.mrf.mxu0 }
 0x365   : > { %v658_v33 = vrot.slane %v651_v29, %v467_v42  ;;  %v855_v42 = vld [vmem:[%s1086_s4] ss:$0 sm:$0xff] }
 0x366   : > { %v948_v39 = vpop.f32.mrf.mxu0 }
 0x367   : > { %v659_v40 = vmul.f32 %v658_v33, %v469_v46  ;;  %v660_v41 = vmul.f32 %v658_v33, %v470_v47  ;;  %v661_v43 = vmul.f32 %v658_v33, %v471_v48  ;;  %v662_v44 = vmul.f32 %v658_v33, %v472_v49 }
 0x368   : > { %v663_v45 = vmul.f32 %v658_v33, %v473_v50  ;;  %v664_v51 = vmul.f32 %v658_v33, %v474_v54  ;;  %v665_v52 = vmul.f32 %v658_v33, %v475_v59  ;;  %v666_v53 = vmul.f32 %v658_v33, %v476_v63 }
 0x369   : > { %v674_v55 = vmul.f32 %v854_v38, %v659_v40  ;;  %v675_v56 = vmul.f32 %v854_v38, %v660_v41  ;;  %v676_v57 = vmul.f32 %v854_v38, %v661_v43  ;;  %v677_v58 = vmul.f32 %v854_v38, %v662_v44 }
 0x36a   : > { %v678_v60 = vmul.f32 %v854_v38, %v663_v45  ;;  %v679_v61 = vmul.f32 %v854_v38, %v664_v51  ;;  %v680_v62 = vmul.f32 %v854_v38, %v665_v52  ;;  %v681_v46 = vmul.f32 %v854_v38, %v666_v53 }
 0x36b   : > { %v689_v47 = vadd.f32 %v855_v42, %v674_v55  ;;  %v690_v48 = vadd.f32 %v855_v42, %v675_v56  ;;  %v691_v49 = vadd.f32 %v855_v42, %v676_v57  ;;  %v692_v50 = vadd.f32 %v855_v42, %v677_v58 }
 0x36c   : > { %v693_v54 = vadd.f32 %v855_v42, %v678_v60  ;;  %v694_v59 = vadd.f32 %v855_v42, %v679_v61  ;;  %v695_v63 = vadd.f32 %v855_v42, %v680_v62  ;;  %v696_v0 = vadd.f32 %v855_v42, %v681_v46 }
 0x36d   : > { %v713_v1 = vadd.f32 %v895_v28, %v689_v47  ;;  %v714_v2 = vadd.f32 %v896_v30, %v690_v48  ;;  %v715_v3 = vadd.f32 %v899_v31, %v691_v49  ;;  %v716_v4 = vadd.f32 %v900_v32, %v692_v50 }
 0x36e   : > { %v717_v5 = vadd.f32 %v903_v34, %v693_v54  ;;  %v718_v6 = vadd.f32 %v904_v35, %v694_v59  ;;  %v719_v7 = vadd.f32 %v907_v36, %v695_v63  ;;  %v720_v8 = vadd.f32 %v908_v37, %v696_v0 }
 0x36f   : > { %v721_v9 = vmax.f32 %v713_v1, 0.0  ;;  %v722_v10 = vmax.f32 %v714_v2, 0.0  ;;  %v723_v11 = vmax.f32 %v715_v3, 0.0  ;;  %v724_v12 = vmax.f32 %v716_v4, 0.0 }
 0x370   : > { %v725_v13 = vmax.f32 %v717_v5, 0.0  ;;  %v726_v14 = vmax.f32 %v718_v6, 0.0  ;;  %v727_v15 = vmax.f32 %v719_v7, 0.0  ;;  %v728_v16 = vmax.f32 %v720_v8, 0.0 }
 0x371   : > { %v869_v17 = vpack.c.bf16 %v721_v9, %v721_v9  ;;  %v870_v18 = vpack.c.bf16 %v722_v10, %v722_v10  ;;  %v871_v19 = vpack.c.bf16 %v723_v11, %v723_v11  ;;  %v872_v20 = vpack.c.bf16 %v724_v12, %v724_v12 }
 0x372   : > { %v873_v21 = vpack.c.bf16 %v725_v13, %v725_v13  ;;  %v874_v22 = vpack.c.bf16 %v726_v14, %v726_v14  ;;  %v875_v23 = vpack.c.bf16 %v727_v15, %v727_v15  ;;  %v876_v24 = vpack.c.bf16 %v728_v16, %v728_v16 }
 0x373   : > { %762 = vst.msk [vmem:[%s271_s18] sm:$0xf] %vm761_vm4, %v869_v17  ;;  %763 = vst.msk [vmem:[%s271_s18 + $0x4] sm:$0xf] %vm761_vm4, %v870_v18 }
 0x374   : > { %764 = vst.msk [vmem:[%s271_s18 + $0x8] sm:$0xf] %vm761_vm4, %v871_v19  ;;  %765 = vst.msk [vmem:[%s271_s18 + $0xc] sm:$0xf] %vm761_vm4, %v872_v20 }
 0x375   : > { %766 = vst.msk [vmem:[%s271_s18 + $0x10] sm:$0xf] %vm761_vm4, %v873_v21  ;;  %767 = vst.msk [vmem:[%s271_s18 + $0x14] sm:$0xf] %vm761_vm4, %v874_v22 }
 0x376   : > { %768 = vst.msk [vmem:[%s271_s18 + $0x18] sm:$0xf] %vm761_vm4, %v875_v23  ;;  %769 = vst.msk [vmem:[%s271_s18 + $0x1c] sm:$0xf] %vm761_vm4, %v876_v24 }
 0x377 PF: > { %s16_s21 = sadd.s32 1, %s967_s21  }
 0x378   : > { %p13_p4 = scmp.ge.s32.totalorder %s16_s21, 4  }
 0x37a   :  { %15 = sbr.rel (!%p13_p4) target bundleno = 1 (0x1), region = 77 }

// kernel: resnet_forward.38
= control target key start
LH: loop header
LB: loop body
LE: loop exit
PB: predicated region body
PF: predicated region fallthrough
CT: control target
= control target key end

     0   :  { %v254_v0 = vmov 0   ;;  %vm106_vm0 = vcmask 130048   ;;  %s315_s1 = inlined_call_operand.vmem [shape: bf16[144,128], index: 1, kind: input, shape index: {}]   ;;  %s316_s0 = inlined_call_operand.vmem [shape: bf16[32,144], index: 0, kind: input, shape index: {}]   ;;  %s317_s2 = inlined_call_operand.vmem [shape: bf16[32,128], index: 2, kind: output, shape index: {}]  }
   0x1   :  { %113 = vmatprep.subr.bf16.mxu0 %v254_v0  ;;  %220 = vmatprep.subr.bf16.mxu1 %v254_v0  ;;  %v239_v1 = vld [vmem:[%s315_s1 + $0x38] sm:$0xff]   ;;  %v240_v2 = vld [vmem:[%s315_s1 + $0x30] sm:$0xff]   ;;  %v241_v3 = vld [vmem:[%s315_s1 + $0x28] sm:$0xff]  }
   0x2   :  { %114 = vmatpush1.bf16.msra.mxu0 %v239_v1  ;;  %229 = vmatpush1.bf16.msra.mxu1 %v239_v1  ;;  %v242_v4 = vld [vmem:[%s315_s1 + $0x20] sm:$0xff]   ;;  %v253_v6 = vld [vmem:[%s316_s0 + $0x14] ss:$8 sps:$4 sm:$0xff]   ;;  %v245_v9 = vld [vmem:[%s315_s1 + $0x8] sm:$0xff]  }
   0x3   :  { %115 = vmatprep.subr.bf16.mxu0 %v254_v0  ;;  %221 = vmatprep.subr.bf16.mxu1 %v254_v0  ;;  %v250_v5 = vld [vmem:[%s316_s0 + $0x4] ss:$8 sps:$4 sm:$0xff]   ;;  %v243_v7 = vld [vmem:[%s315_s1 + $0x18] sm:$0xff]   ;;  %v244_v8 = vld [vmem:[%s315_s1 + $0x10] sm:$0xff]  }
   0x4   :  { %199 = vmatprep.mubr.msk.bf16.mxu0 %vm106_vm0, %v250_v5  ;;  %200 = vmatprep.mubr.msk.bf16.mxu1 %vm106_vm0, %v253_v6  ;;  %v246_v10 = vld [vmem:[%s315_s1] sm:$0xff]   ;;  %v251_v13 = vld [vmem:[%s316_s0 + $0x10] ss:$8 sps:$4 sm:$0xff]  }
   0x5   :  { %v247_v11 = vld [vmem:[%s315_s1 + $0x40] sm:$0xff]  }
   0x6   :  { %116 = vmatpush1.bf16.msra.mxu0 %v240_v2  ;;  %230 = vmatpush1.bf16.msra.mxu1 %v240_v2  ;;  %v248_v12 = vld [vmem:[%s316_s0] ss:$8 sps:$4 sm:$0xff]  }
   0x7   :  { %117 = vmatprep.subr.bf16.mxu0 %v254_v0  ;;  %222 = vmatprep.subr.bf16.mxu1 %v254_v0 }
   0xa   :  { %118 = vmatpush1.bf16.msra.mxu0 %v241_v3  ;;  %231 = vmatpush1.bf16.msra.mxu1 %v241_v3 }
   0xb   :  { %119 = vmatprep.subr.bf16.mxu0 %v254_v0  ;;  %223 = vmatprep.subr.bf16.mxu1 %v254_v0 }
   0xe   :  { %120 = vmatpush1.bf16.msra.mxu0 %v242_v4  ;;  %232 = vmatpush1.bf16.msra.mxu1 %v242_v4 }
   0xf   :  { %121 = vmatprep.subr.bf16.mxu0 %v254_v0  ;;  %224 = vmatprep.subr.bf16.mxu1 %v254_v0 }
  0x12   :  { %122 = vmatpush1.bf16.msra.mxu0 %v243_v7  ;;  %233 = vmatpush1.bf16.msra.mxu1 %v243_v7 }
  0x13   :  { %123 = vmatprep.subr.bf16.mxu0 %v254_v0  ;;  %225 = vmatprep.subr.bf16.mxu1 %v254_v0 }
  0x16   :  { %124 = vmatpush1.bf16.msra.mxu0 %v244_v8  ;;  %234 = vmatpush1.bf16.msra.mxu1 %v244_v8 }
  0x17   :  { %125 = vmatprep.subr.bf16.mxu0 %v254_v0  ;;  %226 = vmatprep.subr.bf16.mxu1 %v254_v0 }
  0x1a   :  { %126 = vmatpush1.bf16.msra.mxu0 %v245_v9  ;;  %235 = vmatpush1.bf16.msra.mxu1 %v245_v9 }
  0x1b   :  { %127 = vmatprep.subr.bf16.mxu0 %v254_v0  ;;  %227 = vmatprep.subr.bf16.mxu1 %v254_v0 }
  0x1e   :  { %128 = vmatpush1.bf16.msra.mxu0 %v246_v10  ;;  %236 = vmatpush1.bf16.msra.mxu1 %v246_v10 }
  0x1f   :  { %143 = vmatprep.subr.bf16.mxu0 %v254_v0  ;;  %228 = vmatprep.subr.bf16.mxu1 %v254_v0 }
  0x22   :  { %144 = vmatpush2.bf16.msra.mxu0 %v247_v11  ;;  %237 = vmatpush2.bf16.msra.mxu1 %v247_v11 }
  0x25   :  { %146 = vmatmul.mubr.bf16.vlgmr.msra.gmra.mxu0 %v248_v12  ;;  %154 = vmatmul.mubr.bf16.vlgmr.msra.gmra.mxu1 %v251_v13 }
  0xe5   :  { %v147_v14 = vpop.f32.mrf.mxu0  ;;  %v155_v15 = vpop.f32.mrf.mxu1 }
  0xe7   :  { %v149_v16 = vpop.f32.mrf.mxu0  ;;  %v157_v17 = vpop.f32.mrf.mxu1 }
  0xe9   :  { %v150_v18 = vpop.f32.mrf.mxu0  ;;  %v158_v19 = vpop.f32.mrf.mxu1 }
  0xea   :  { %v212_v20 = vpack.c.bf16 %v150_v18, %v147_v14  ;;  %v217_v21 = vpack.c.bf16 %v158_v19, %v155_v15 }
  0xeb   :  { %v152_v22 = vpop.f32.mrf.mxu0  ;;  %v160_v23 = vpop.f32.mrf.mxu1 }
  0xec   :  { %213 = vst [vmem:[%s317_s2] sm:$0xff] %v212_v20   ;;  %219 = vst [vmem:[%s317_s2 + $0x8] sm:$0xff] %v217_v21  }

// kernel: resnet_forward.39
= control target key start
LH: loop header
LB: loop body
LE: loop exit
PB: predicated region body
PF: predicated region fallthrough
CT: control target
= control target key end

     0   :  { %s775_s18 = smov 0   ;;  %s832_s0 = inlined_call_operand.vmem [shape: bf16[2,16,32], index: 0, kind: input, shape index: {}]   ;;  %s833_s1 = inlined_call_operand.vmem [shape: f32[32,8], index: 1, kind: input, shape index: {}]   ;;  %s834_s2 = inlined_call_operand.vmem [shape: f32[8,32], index: 2, kind: input, shape index: {}]   ;;  %s835_s3 = inlined_call_operand.vmem [shape: f32[1,32], index: 3, kind: input, shape index: {}]   ;;  %s836_s4 = inlined_call_operand.vmem [shape: f32[1,32], index: 4, kind: input, shape index: {}]   ;;  %s837_s5 = inlined_call_operand.vmem [shape: bf16[2,16,32], index: 5, kind: output, shape index: {}]  }
   0x1 LB: > { %s650_s19 = sadd.s32 4294967295, %s741_s18   ;;  %p654_p0 = scmp.ge.s32.totalorder %s741_s18, 1  ;;  %s741_s18 = sphi %s775_s18, %s15_s18  }
   0x2   : > { %p187_p1 = scmp.lt.s32.totalorder %s741_s18, 3 }
   0x4   : > { %p188_p2 = pnand %p654_p0, %p187_p1 }
   0x5   : > { %p215_p3 = scmp.lt.s32.totalorder (!%p188_p2), %s650_s19, 1 }
   0x6   : > { %191 = sbr.rel (%p188_p2) target bundleno = 858 (0x35a), region = 40 }
   0xb   : > { %v242_v0 = vld [vmem:[%s833_s1 + $0x18] sm:$0xff]  ;;  %v743_v1 = vmov 0.0   ;;  %v241_v2 = vld [vmem:[%s833_s1 + $0x10] sm:$0xff]  ;;  %vm744_vm0 = vmmov 0   ;;  %s839_s19 = smov (!%p215_p3, %s650_s19), 1  ;;  %v240_v3 = vld [vmem:[%s833_s1 + $0x8] sm:$0xff]  ;;  %v392_v21 = vlaneseq }
   0xc   : > { %691 = vmatprep.subr.mxu0 %v743_v1  ;;  %699 = vmatprep.mubr.msk.f32.mxu0 %vm744_vm0, %v743_v1  ;;  %s669_s26 = sshll.u32 %s839_s19, 3  ;;  %v239_v4 = vld [vmem:[%s833_s1] sm:$0xff]  ;;  %vm229_vm1 = vcmask 261120   ;;  %vm318_vm2 = vcmask 64512   ;;  %vm592_vm3 = vcmask 257024  }
   0xd   : > { %692 = vmatpush3.msra.mxu0 %v242_v0  ;;  %702 = vmatprep.subr.mxu1 %v743_v1  ;;  %s219_s6 = scalar_lea.vmem %s832_s0, %s669_s26  ;;  %v317_v17 = vld [vmem:[%s834_s2] sm:$0xff]  ;;  %v393_v22 = vshrl.u32 %v392_v21, 7  ;;  %s224_s15 = scalar_lea.vmem %s837_s5, %s669_s26 }
   0xe   : > { %693 = vmatprep.subr.mxu0 %v743_v1  ;;  %704 = vmatprep.mubr.msk.f32.mxu1 %vm744_vm0, %v743_v1  ;;  %v674_v5 = vld [vmem:[%s219_s6] sm:$0xff]  }
   0xf   : > { %694 = vmatpush3.msra.mxu0 %v241_v2  ;;  %v675_v6 = vunpack.c.l.bf16 %v674_v5  ;;  %v676_v7 = vunpack.c.h.bf16 %v674_v5  ;;  %703 = vmatpush3.msra.mxu1 %v317_v17  ;;  %v394_v23 = vsub.s32 0, %v393_v22  ;;  %v663_v47 = vld [vmem:[%s835_s3] ss:$0 sm:$0xff] }
  0x10   : > { %695 = vmatprep.subr.mxu0 %v743_v1  ;;  %707 = vmatprep.subr.mxu1 %v743_v1  ;;  %v664_v51 = vld [vmem:[%s836_s4] ss:$0 sm:$0xff] }
  0x11   : > { %696 = vmatpush3.msra.mxu0 %v240_v3  ;;  %v230_v8 = vsel %vm229_vm1, %v675_v6, 0.0  ;;  %v231_v9 = vsel %vm229_vm1, %v676_v7, 0.0 }
  0x12   : > { %697 = vmatprep.subr.mxu0 %v743_v1  ;;  %v232_v10 = vadd.f32 %v231_v9, %v230_v8 }
  0x13   : > { %698 = vmatpush3.msra.mxu0 %v239_v4 }
  0x14   : > { %718 = vmatprep.subr.mxu0 %v743_v1  ;;  %v233_v11 = vrot.slane %v232_v10, 4 }
  0x16   : > { %v234_v12 = vadd.f32 %v233_v11, %v232_v10 }
  0x18   : > { %v235_v13 = vrot.slane %v234_v12, 2 }
  0x1a   : > { %v236_v14 = vadd.f32 %v235_v13, %v234_v12 }
  0x1c   : > { %v237_v15 = vrot.slane %v236_v14, 1 }
  0x1e   : > { %v238_v16 = vadd.f32 %v237_v15, %v236_v14 }
  0x20   : > { %700 = vmatmul.mubr.msk.f32.vlgmr.msra.gmra.mxu0 %vm229_vm1, %v238_v16 }
  0x21   : > { %720 = vmatprep.mubr.msk.f32.mxu0 %vm744_vm0, %v743_v1  ;;  %719 = vmatpush3.msra.mxu0 %v317_v17 }
  0xe0   : > { %v312_v18 = vpop.f32.mrf.mxu0 }
  0xe1   : > { %v316_v19 = vmul.f32 0.015625, %v312_v18 }
  0xe2   : > { %v701_v20 = vpop.f32.mrf.mxu0 }
  0xe3   : > { %705 = vmatmul.mubr.msk.f32.vlgmr.msra.gmra.mxu1 %vm318_vm2, %v316_v19 }
  0xe4   : > { %708 = vmatpush3.msra.mxu1 %v242_v0  ;;  %715 = vmatprep.mubr.msk.f32.mxu1 %vm744_vm0, %v743_v1 }
  0xe5   : > { %709 = vmatprep.subr.mxu1 %v743_v1 }
  0xe6   : > { %710 = vmatpush3.msra.mxu1 %v241_v2 }
  0xe7   : > { %711 = vmatprep.subr.mxu1 %v743_v1 }
  0xe8   : > { %712 = vmatpush3.msra.mxu1 %v240_v3 }
  0xe9   : > { %713 = vmatprep.subr.mxu1 %v743_v1 }
  0xea   : > { %714 = vmatpush3.msra.mxu1 %v239_v4 }
 0x1a3   : > { %v388_v24 = vpop.f32.mrf.mxu1 }
 0x1a4   : > { %v395_v25 = vrot.slane %v388_v24, %v394_v23 }
 0x1a5   : > { %v706_v26 = vpop.f32.mrf.mxu1 }
 0x1a6   : > { %v396_v27 = vsub.f32 %v675_v6, %v395_v25  ;;  %v397_v28 = vsub.f32 %v676_v7, %v395_v25 }
 0x1a8   : > { %v398_v29 = vmul.f32 %v396_v27, %v396_v27  ;;  %v399_v30 = vmul.f32 %v397_v28, %v397_v28 }
 0x1aa   : > { %v400_v31 = vsel %vm229_vm1, %v398_v29, 0.0  ;;  %v401_v32 = vsel %vm229_vm1, %v399_v30, 0.0 }
 0x1ab   : > { %v402_v33 = vadd.f32 %v401_v32, %v400_v31 }
 0x1ad   : > { %v403_v34 = vrot.slane %v402_v33, 4 }
 0x1af   : > { %v404_v35 = vadd.f32 %v403_v34, %v402_v33 }
 0x1b1   : > { %v405_v36 = vrot.slane %v404_v35, 2 }
 0x1b3   : > { %v406_v37 = vadd.f32 %v405_v36, %v404_v35 }
 0x1b5   : > { %v407_v38 = vrot.slane %v406_v37, 1 }
 0x1b7   : > { %v408_v39 = vadd.f32 %v407_v38, %v406_v37 }
 0x1b9   : > { %716 = vmatmul.mubr.msk.f32.vlgmr.msra.gmra.mxu1 %vm229_vm1, %v408_v39 }
 0x279   : > { %v478_v40 = vpop.f32.mrf.mxu1 }
 0x27a   : > { %v482_v41 = vmul.f32 0.015625, %v478_v40 }
 0x27b   : > { %v717_v42 = vpop.f32.mrf.mxu1 }
 0x27c   : > { %v483_v43 = vadd.f32 1e-05, %v482_v41 }
 0x27e   : > { %733 = vrsqrt.f32 %v483_v43 }
 0x28b   : > { %v734_v44 = vpop.eup %733 }
 0x28c   : > { %721 = vmatmul.mubr.msk.f32.vlgmr.msra.gmra.mxu0 %vm318_vm2, %v734_v44 }
 0x34c   : > { %v554_v45 = vpop.f32.mrf.mxu0 }
 0x34d   : > { %v561_v46 = vrot.slane %v554_v45, %v394_v23 }
 0x34e   : > { %v722_v48 = vpop.f32.mrf.mxu0 }
 0x34f   : > { %v562_v49 = vmul.f32 %v561_v46, %v396_v27  ;;  %v563_v50 = vmul.f32 %v561_v46, %v397_v28 }
 0x351   : > { %v571_v52 = vmul.f32 %v663_v47, %v562_v49  ;;  %v572_v53 = vmul.f32 %v663_v47, %v563_v50 }
 0x353   : > { %v580_v54 = vadd.f32 %v664_v51, %v571_v52  ;;  %v581_v55 = vadd.f32 %v664_v51, %v572_v53 }
 0x355   : > { %v582_v56 = vmax.f32 %v580_v54, 0.0  ;;  %v583_v57 = vmax.f32 %v581_v55, 0.0 }
 0x357   : > { %v671_v58 = vpack.c.bf16 %v582_v56, %v582_v56  ;;  %v672_v59 = vpack.c.bf16 %v583_v57, %v583_v57 }
 0x359   : > { %593 = vst.msk [vmem:[%s224_s15] sm:$0xf] %vm592_vm3, %v671_v58  ;;  %594 = vst.msk [vmem:[%s224_s15 + $0x4] sm:$0xf] %vm592_vm3, %v672_v59 }
 0x35a PF: > { %s15_s18 = sadd.s32 1, %s741_s18  }
 0x35b   : > { %p12_p4 = scmp.ge.s32.totalorder %s15_s18, 4  }
 0x35d   :  { %14 = sbr.rel (!%p12_p4) target bundleno = 1 (0x1), region = 70 }

// kernel: resnet_forward.40
= control target key start
LH: loop header
LB: loop body
LE: loop exit
PB: predicated region body
PF: predicated region fallthrough
CT: control target
= control target key end

     0   :  { %vm194_vm0 = vcmask 261120   ;;  %s527_s1 = inlined_call_operand.vmem [shape: bf16[288,128], index: 1, kind: input, shape index: {}]   ;;  %s528_s0 = inlined_call_operand.vmem [shape: bf16[32,288], index: 0, kind: input, shape index: {}]   ;;  %s529_s2 = inlined_call_operand.vmem [shape: bf16[32,128], index: 2, kind: output, shape index: {}]  }
   0x1   :  { %v408_v0 = vld [vmem:[%s527_s1 + $0x78] sm:$0xff]   ;;  %v410_v2 = vld [vmem:[%s527_s1 + $0x70] sm:$0xff]   ;;  %v412_v4 = vld [vmem:[%s527_s1 + $0x68] sm:$0xff]  }
   0x2   :  { %v409_v1 = vld [vmem:[%s527_s1 + $0x38] sm:$0xff]   ;;  %368 = vmatprep.subr.bf16.mxu0 %v408_v0  ;;  %v411_v3 = vld [vmem:[%s527_s1 + $0x30] sm:$0xff]   ;;  %v413_v5 = vld [vmem:[%s527_s1 + $0x28] sm:$0xff]  }
   0x3   :  { %369 = vmatpush3.bf16.msra.mxu0 %v409_v1  ;;  %v414_v6 = vld [vmem:[%s527_s1 + $0x60] sm:$0xff]   ;;  %v416_v8 = vld [vmem:[%s527_s1 + $0x58] sm:$0xff]   ;;  %v422_v9 = vld [vmem:[%s527_s1 + $0x88] sm:$0xff]  }
   0x4   :  { %370 = vmatprep.subr.bf16.mxu0 %v410_v2  ;;  %v415_v7 = vld [vmem:[%s527_s1 + $0x20] sm:$0xff]   ;;  %v417_v10 = vld [vmem:[%s527_s1 + $0x18] sm:$0xff]   ;;  %v418_v11 = vld [vmem:[%s527_s1 + $0x50] sm:$0xff]   ;;  %400 = vmatprep.subr.bf16.mxu1 %v422_v9 }
   0x5   :  { %v419_v12 = vld [vmem:[%s527_s1 + $0x10] sm:$0xff]   ;;  %401 = vmatpush3.bf16.msra.mxu1 %v422_v9  ;;  %v425_v13 = vld [vmem:[%s527_s1 + $0x80] sm:$0xff]   ;;  %v420_v14 = vld [vmem:[%s527_s1 + $0x48] sm:$0xff]  }
   0x6   :  { %402 = vmatprep.subr.bf16.mxu1 %v425_v13  ;;  %v428_v15 = vld [vmem:[%s528_s0 + $0x4] ss:$12 sps:$4 sm:$0xff]   ;;  %v429_v16 = vld [vmem:[%s528_s0 + $0x8] ss:$12 sps:$4 sm:$0xff]   ;;  %v430_v17 = vld [vmem:[%s528_s0 + $0x20] ss:$12 sps:$4 sm:$0xff]  }
   0x7   :  { %371 = vmatpush3.bf16.msra.mxu0 %v411_v3  ;;  %233 = vmatprep.mubr.bf16.mxu0 %v428_v15  ;;  %v421_v18 = vld [vmem:[%s527_s1 + $0x8] sm:$0xff]   ;;  %v423_v19 = vld [vmem:[%s527_s1 + $0x40] sm:$0xff]  }
   0x8   :  { %372 = vmatprep.subr.bf16.mxu0 %v412_v4  ;;  %404 = vmatprep.mubr.msk.bf16.mxu1 %vm194_vm0, %v429_v16  ;;  %v424_v20 = vld [vmem:[%s527_s1] sm:$0xff]   ;;  %v431_v22 = vld [vmem:[%s528_s0 + $0x1c] ss:$12 sps:$4 sm:$0xff]  }
   0x9   :  { %403 = vmatpush3.bf16.msra.mxu1 %v425_v13  ;;  %v426_v21 = vld [vmem:[%s528_s0] ss:$12 sps:$4 sm:$0xff]   ;;  %v433_v23 = vld [vmem:[%s528_s0 + $0x18] ss:$12 sps:$4 sm:$0xff]  }
   0xb   :  { %373 = vmatpush3.bf16.msra.mxu0 %v413_v5 }
   0xc   :  { %374 = vmatprep.subr.bf16.mxu0 %v414_v6  ;;  %405 = vmatmul.mubr.msk.bf16.vlgmr.msra.gmra.mxu1 %vm194_vm0, %v430_v17 }
   0xf   :  { %375 = vmatpush3.bf16.msra.mxu0 %v415_v7 }
  0x10   :  { %376 = vmatprep.subr.bf16.mxu0 %v416_v8 }
  0x13   :  { %377 = vmatpush3.bf16.msra.mxu0 %v417_v10 }
  0x14   :  { %378 = vmatprep.subr.bf16.mxu0 %v418_v11 }
  0x17   :  { %379 = vmatpush3.bf16.msra.mxu0 %v419_v12 }
  0x18   :  { %380 = vmatprep.subr.bf16.mxu0 %v420_v14 }
  0x1b   :  { %381 = vmatpush3.bf16.msra.mxu0 %v421_v18 }
  0x1c   :  { %382 = vmatprep.subr.bf16.mxu0 %v423_v19 }
  0x1f   :  { %383 = vmatpush3.bf16.msra.mxu0 %v424_v20 }
  0x22   :  { %234 = vmatmul.mubr.bf16.vlgmr.msra.gmra.mxu0 %v426_v21 }
  0x23   :  { %241 = vmatprep.mubr.bf16.mxu0 %v431_v22 }
  0x2a   :  { %242 = vmatmul.mubr.bf16.gmra.mxu0 %v433_v23 }
  0xcc   :  { %v406_v24 = vpop.f32.mrf.mxu1 }
  0xce   :  { %v284_v25 = vpop.f32.mrf.mxu1 }
  0xd0   :  { %v407_v28 = vpop.f32.mrf.mxu1 }
  0xd2   :  { %v287_v32 = vpop.f32.mrf.mxu1 }
  0xe2   :  { %v384_v26 = vpop.f32.mrf.mxu0 }
  0xe4   :  { %v385_v27 = vpop.f32.mrf.mxu0 }
  0xe5   :  { %v386_v30 = vadd.f32 %v385_v27, %v384_v26 }
  0xe6   :  { %v387_v29 = vpop.f32.mrf.mxu0 }
  0xe7   :  { %v285_v35 = vadd.f32 %v386_v30, %v284_v25 }
  0xe8   :  { %v388_v31 = vpop.f32.mrf.mxu0 }
  0xe9   :  { %v389_v33 = vadd.f32 %v388_v31, %v387_v29 }
  0xea   :  { %v390_v34 = vpop.f32.mrf.mxu0 }
  0xeb   :  { %v288_v36 = vadd.f32 %v389_v33, %v287_v32 }
  0xec   :  { %v391_v37 = vpop.f32.mrf.mxu0 }
  0xed   :  { %v360_v38 = vpack.c.bf16 %v288_v36, %v285_v35  ;;  %v392_v40 = vadd.f32 %v391_v37, %v390_v34 }
  0xee   :  { %v393_v39 = vpop.f32.mrf.mxu0 }
  0xef   :  { %361 = vst [vmem:[%s529_s2] sm:$0xff] %v360_v38   ;;  %v293_v43 = vadd.f32 %v406_v24, %v392_v40 }
  0xf0   :  { %v394_v41 = vpop.f32.mrf.mxu0 }
  0xf1   :  { %v395_v42 = vadd.f32 %v394_v41, %v393_v39 }
  0xf3   :  { %v296_v44 = vadd.f32 %v407_v28, %v395_v42 }
  0xf5   :  { %v365_v45 = vpack.c.bf16 %v296_v44, %v293_v43 }
  0xf7   :  { %367 = vst [vmem:[%s529_s2 + $0x8] sm:$0xff] %v365_v45  }

// kernel: resnet_forward.41
= control target key start
LH: loop header
LB: loop body
LE: loop exit
PB: predicated region body
PF: predicated region fallthrough
CT: control target
= control target key end

     0   :  { %vm34_vm0 = vcmask 130048   ;;  %s180_s1 = inlined_call_operand.vmem [shape: bf16[16,128], index: 1, kind: input, shape index: {}]   ;;  %s181_s0 = inlined_call_operand.vmem [shape: bf16[32,16], index: 0, kind: input, shape index: {}]   ;;  %s182_s2 = inlined_call_operand.vmem [shape: bf16[32,128], index: 2, kind: output, shape index: {}]  }
   0x1   :  { %v147_v0 = vld [vmem:[%s180_s1] sm:$0xff]   ;;  %v149_v2 = vld [vmem:[%s181_s0 + $0x8] sm:$0xff]  }
   0x2   :  { %v148_v1 = vld [vmem:[%s181_s0] sm:$0xff]   ;;  %141 = vmatprep.subr.bf16.mxu0 %v147_v0 }
   0x3   :  { %142 = vmatpush3.bf16.msra.mxu0 %v147_v0  ;;  %143 = vmatprep.mubr.msk.bf16.mxu0 %vm34_vm0, %v148_v1 }
   0x6   :  { %144 = vmatmul.mubr.msk.bf16.vlgmr.msra.gmra.mxu0 %vm34_vm0, %v149_v2 }
  0xc6   :  { %v145_v3 = vpop.f32.mrf.mxu0 }
  0xc8   :  { %v75_v4 = vpop.f32.mrf.mxu0 }
  0xca   :  { %v146_v5 = vpop.f32.mrf.mxu0 }
  0xcb   :  { %v135_v6 = vpack.c.bf16 %v146_v5, %v145_v3 }
  0xcc   :  { %v78_v7 = vpop.f32.mrf.mxu0 }
  0xcd   :  { %137 = vst [vmem:[%s182_s2 + $0x8] sm:$0xff] %v135_v6   ;;  %v130_v8 = vpack.c.bf16 %v78_v7, %v75_v4 }
  0xcf   :  { %131 = vst [vmem:[%s182_s2] sm:$0xff] %v130_v8  }

// kernel: resnet_forward.42
= control target key start
LH: loop header
LB: loop body
LE: loop exit
PB: predicated region body
PF: predicated region fallthrough
CT: control target
= control target key end

     0   :  { %s773_s18 = smov 0   ;;  %s830_s0 = inlined_call_operand.vmem [shape: bf16[2,16,32], index: 0, kind: input, shape index: {}]   ;;  %s831_s1 = inlined_call_operand.vmem [shape: f32[32,8], index: 1, kind: input, shape index: {}]   ;;  %s832_s2 = inlined_call_operand.vmem [shape: f32[8,32], index: 2, kind: input, shape index: {}]   ;;  %s833_s3 = inlined_call_operand.vmem [shape: f32[1,32], index: 3, kind: input, shape index: {}]   ;;  %s834_s4 = inlined_call_operand.vmem [shape: f32[1,32], index: 4, kind: input, shape index: {}]   ;;  %s835_s5 = inlined_call_operand.vmem [shape: bf16[2,16,32], index: 5, kind: output, shape index: {}]  }
   0x1 LB: > { %s648_s19 = sadd.s32 4294967295, %s739_s18   ;;  %p652_p0 = scmp.ge.s32.totalorder %s739_s18, 1  ;;  %s739_s18 = sphi %s773_s18, %s15_s18  }
   0x2   : > { %p187_p1 = scmp.lt.s32.totalorder %s739_s18, 3 }
   0x4   : > { %p188_p2 = pnand %p652_p0, %p187_p1 }
   0x5   : > { %p215_p3 = scmp.lt.s32.totalorder (!%p188_p2), %s648_s19, 1 }
   0x6   : > { %191 = sbr.rel (%p188_p2) target bundleno = 856 (0x358), region = 40 }
   0xb   : > { %v242_v0 = vld [vmem:[%s831_s1 + $0x18] sm:$0xff]  ;;  %v741_v1 = vmov 0.0   ;;  %v241_v2 = vld [vmem:[%s831_s1 + $0x10] sm:$0xff]  ;;  %vm742_vm0 = vmmov 0   ;;  %s837_s19 = smov (!%p215_p3, %s648_s19), 1  ;;  %v240_v3 = vld [vmem:[%s831_s1 + $0x8] sm:$0xff]  ;;  %v392_v21 = vlaneseq }
   0xc   : > { %689 = vmatprep.subr.mxu0 %v741_v1  ;;  %697 = vmatprep.mubr.msk.f32.mxu0 %vm742_vm0, %v741_v1  ;;  %s667_s26 = sshll.u32 %s837_s19, 3  ;;  %v239_v4 = vld [vmem:[%s831_s1] sm:$0xff]  ;;  %vm229_vm1 = vcmask 261120   ;;  %vm318_vm2 = vcmask 64512   ;;  %vm590_vm3 = vcmask 257024  }
   0xd   : > { %690 = vmatpush3.msra.mxu0 %v242_v0  ;;  %700 = vmatprep.subr.mxu1 %v741_v1  ;;  %s219_s6 = scalar_lea.vmem %s830_s0, %s667_s26  ;;  %v317_v17 = vld [vmem:[%s832_s2] sm:$0xff]  ;;  %v393_v22 = vshrl.u32 %v392_v21, 7  ;;  %s224_s15 = scalar_lea.vmem %s835_s5, %s667_s26 }
   0xe   : > { %691 = vmatprep.subr.mxu0 %v741_v1  ;;  %702 = vmatprep.mubr.msk.f32.mxu1 %vm742_vm0, %v741_v1  ;;  %v672_v5 = vld [vmem:[%s219_s6] sm:$0xff]  }
   0xf   : > { %692 = vmatpush3.msra.mxu0 %v241_v2  ;;  %v673_v6 = vunpack.c.l.bf16 %v672_v5  ;;  %v674_v7 = vunpack.c.h.bf16 %v672_v5  ;;  %701 = vmatpush3.msra.mxu1 %v317_v17  ;;  %v394_v23 = vsub.s32 0, %v393_v22  ;;  %v661_v47 = vld [vmem:[%s833_s3] ss:$0 sm:$0xff] }
  0x10   : > { %693 = vmatprep.subr.mxu0 %v741_v1  ;;  %705 = vmatprep.subr.mxu1 %v741_v1  ;;  %v662_v51 = vld [vmem:[%s834_s4] ss:$0 sm:$0xff] }
  0x11   : > { %694 = vmatpush3.msra.mxu0 %v240_v3  ;;  %v230_v8 = vsel %vm229_vm1, %v673_v6, 0.0  ;;  %v231_v9 = vsel %vm229_vm1, %v674_v7, 0.0 }
  0x12   : > { %695 = vmatprep.subr.mxu0 %v741_v1  ;;  %v232_v10 = vadd.f32 %v231_v9, %v230_v8 }
  0x13   : > { %696 = vmatpush3.msra.mxu0 %v239_v4 }
  0x14   : > { %716 = vmatprep.subr.mxu0 %v741_v1  ;;  %v233_v11 = vrot.slane %v232_v10, 4 }
  0x16   : > { %v234_v12 = vadd.f32 %v233_v11, %v232_v10 }
  0x18   : > { %v235_v13 = vrot.slane %v234_v12, 2 }
  0x1a   : > { %v236_v14 = vadd.f32 %v235_v13, %v234_v12 }
  0x1c   : > { %v237_v15 = vrot.slane %v236_v14, 1 }
  0x1e   : > { %v238_v16 = vadd.f32 %v237_v15, %v236_v14 }
  0x20   : > { %698 = vmatmul.mubr.msk.f32.vlgmr.msra.gmra.mxu0 %vm229_vm1, %v238_v16 }
  0x21   : > { %718 = vmatprep.mubr.msk.f32.mxu0 %vm742_vm0, %v741_v1  ;;  %717 = vmatpush3.msra.mxu0 %v317_v17 }
  0xe0   : > { %v312_v18 = vpop.f32.mrf.mxu0 }
  0xe1   : > { %v316_v19 = vmul.f32 0.015625, %v312_v18 }
  0xe2   : > { %v699_v20 = vpop.f32.mrf.mxu0 }
  0xe3   : > { %703 = vmatmul.mubr.msk.f32.vlgmr.msra.gmra.mxu1 %vm318_vm2, %v316_v19 }
  0xe4   : > { %706 = vmatpush3.msra.mxu1 %v242_v0  ;;  %713 = vmatprep.mubr.msk.f32.mxu1 %vm742_vm0, %v741_v1 }
  0xe5   : > { %707 = vmatprep.subr.mxu1 %v741_v1 }
  0xe6   : > { %708 = vmatpush3.msra.mxu1 %v241_v2 }
  0xe7   : > { %709 = vmatprep.subr.mxu1 %v741_v1 }
  0xe8   : > { %710 = vmatpush3.msra.mxu1 %v240_v3 }
  0xe9   : > { %711 = vmatprep.subr.mxu1 %v741_v1 }
  0xea   : > { %712 = vmatpush3.msra.mxu1 %v239_v4 }
 0x1a3   : > { %v388_v24 = vpop.f32.mrf.mxu1 }
 0x1a4   : > { %v395_v25 = vrot.slane %v388_v24, %v394_v23 }
 0x1a5   : > { %v704_v26 = vpop.f32.mrf.mxu1 }
 0x1a6   : > { %v396_v27 = vsub.f32 %v673_v6, %v395_v25  ;;  %v397_v28 = vsub.f32 %v674_v7, %v395_v25 }
 0x1a8   : > { %v398_v29 = vmul.f32 %v396_v27, %v396_v27  ;;  %v399_v30 = vmul.f32 %v397_v28, %v397_v28 }
 0x1aa   : > { %v400_v31 = vsel %vm229_vm1, %v398_v29, 0.0  ;;  %v401_v32 = vsel %vm229_vm1, %v399_v30, 0.0 }
 0x1ab   : > { %v402_v33 = vadd.f32 %v401_v32, %v400_v31 }
 0x1ad   : > { %v403_v34 = vrot.slane %v402_v33, 4 }
 0x1af   : > { %v404_v35 = vadd.f32 %v403_v34, %v402_v33 }
 0x1b1   : > { %v405_v36 = vrot.slane %v404_v35, 2 }
 0x1b3   : > { %v406_v37 = vadd.f32 %v405_v36, %v404_v35 }
 0x1b5   : > { %v407_v38 = vrot.slane %v406_v37, 1 }
 0x1b7   : > { %v408_v39 = vadd.f32 %v407_v38, %v406_v37 }
 0x1b9   : > { %714 = vmatmul.mubr.msk.f32.vlgmr.msra.gmra.mxu1 %vm229_vm1, %v408_v39 }
 0x279   : > { %v478_v40 = vpop.f32.mrf.mxu1 }
 0x27a   : > { %v482_v41 = vmul.f32 0.015625, %v478_v40 }
 0x27b   : > { %v715_v42 = vpop.f32.mrf.mxu1 }
 0x27c   : > { %v483_v43 = vadd.f32 1e-05, %v482_v41 }
 0x27e   : > { %731 = vrsqrt.f32 %v483_v43 }
 0x28b   : > { %v732_v44 = vpop.eup %731 }
 0x28c   : > { %719 = vmatmul.mubr.msk.f32.vlgmr.msra.gmra.mxu0 %vm318_vm2, %v732_v44 }
 0x34c   : > { %v554_v45 = vpop.f32.mrf.mxu0 }
 0x34d   : > { %v561_v46 = vrot.slane %v554_v45, %v394_v23 }
 0x34e   : > { %v720_v48 = vpop.f32.mrf.mxu0 }
 0x34f   : > { %v562_v49 = vmul.f32 %v561_v46, %v396_v27  ;;  %v563_v50 = vmul.f32 %v561_v46, %v397_v28 }
 0x351   : > { %v571_v52 = vmul.f32 %v661_v47, %v562_v49  ;;  %v572_v53 = vmul.f32 %v661_v47, %v563_v50 }
 0x353   : > { %v580_v54 = vadd.f32 %v662_v51, %v571_v52  ;;  %v581_v55 = vadd.f32 %v662_v51, %v572_v53 }
 0x355   : > { %v669_v56 = vpack.c.bf16 %v580_v54, %v580_v54  ;;  %v670_v57 = vpack.c.bf16 %v581_v55, %v581_v55 }
 0x357   : > { %591 = vst.msk [vmem:[%s224_s15] sm:$0xf] %vm590_vm3, %v669_v56  ;;  %592 = vst.msk [vmem:[%s224_s15 + $0x4] sm:$0xf] %vm590_vm3, %v670_v57 }
 0x358 PF: > { %s15_s18 = sadd.s32 1, %s739_s18  }
 0x359   : > { %p12_p4 = scmp.ge.s32.totalorder %s15_s18, 4  }
 0x35b   :  { %14 = sbr.rel (!%p12_p4) target bundleno = 1 (0x1), region = 70 }

// kernel: resnet_forward.43
= control target key start
LH: loop header
LB: loop body
LE: loop exit
PB: predicated region body
PF: predicated region fallthrough
CT: control target
= control target key end

     0   :  { %s852_s21 = smov 0   ;;  %s910_s0 = inlined_call_operand.vmem [shape: bf16[2,16,32], index: 0, kind: input, shape index: {}]   ;;  %s911_s1 = inlined_call_operand.vmem [shape: f32[32,8], index: 1, kind: input, shape index: {}]   ;;  %s912_s2 = inlined_call_operand.vmem [shape: f32[8,32], index: 2, kind: input, shape index: {}]   ;;  %s913_s3 = inlined_call_operand.vmem [shape: f32[1,32], index: 3, kind: input, shape index: {}]   ;;  %s914_s4 = inlined_call_operand.vmem [shape: f32[1,32], index: 4, kind: input, shape index: {}]   ;;  %s915_s5 = inlined_call_operand.vmem [shape: bf16[2,16,32], index: 5, kind: input, shape index: {}]   ;;  %s916_s6 = inlined_call_operand.vmem [shape: bf16[2,16,32], index: 6, kind: output, shape index: {}]  }
   0x1 LB: > { %s715_s22 = sadd.s32 4294967295, %s813_s21   ;;  %p719_p0 = scmp.ge.s32.totalorder %s813_s21, 1  ;;  %s813_s21 = sphi %s852_s21, %s16_s21  }
   0x2   : > { %p222_p1 = scmp.lt.s32.totalorder %s813_s21, 3 }
   0x4   : > { %p223_p2 = pnand %p719_p0, %p222_p1 }
   0x5   : > { %p257_p3 = scmp.lt.s32.totalorder (!%p223_p2), %s715_s22, 1 }
   0x6   : > { %226 = sbr.rel (%p223_p2) target bundleno = 860 (0x35c), region = 44 }
   0xb   : > { %v289_v0 = vld [vmem:[%s911_s1 + $0x18] sm:$0xff]  ;;  %v815_v1 = vmov 0.0   ;;  %v288_v2 = vld [vmem:[%s911_s1 + $0x10] sm:$0xff]  ;;  %vm816_vm0 = vmmov 0   ;;  %s918_s22 = smov (!%p257_p3, %s715_s22), 1  ;;  %v287_v3 = vld [vmem:[%s911_s1 + $0x8] sm:$0xff]  ;;  %v439_v21 = vlaneseq }
   0xc   : > { %763 = vmatprep.subr.mxu0 %v815_v1  ;;  %771 = vmatprep.mubr.msk.f32.mxu0 %vm816_vm0, %v815_v1  ;;  %s871_s29 = sshll.u32 %s918_s22, 3  ;;  %v286_v4 = vld [vmem:[%s911_s1] sm:$0xff]  ;;  %vm276_vm1 = vcmask 261120   ;;  %vm365_vm2 = vcmask 64512   ;;  %vm645_vm3 = vcmask 257024  }
   0xd   : > { %764 = vmatpush3.msra.mxu0 %v289_v0  ;;  %774 = vmatprep.subr.mxu1 %v815_v1  ;;  %s261_s10 = scalar_lea.vmem %s910_s0, %s871_s29  ;;  %v364_v17 = vld [vmem:[%s912_s2] sm:$0xff]  ;;  %v440_v22 = vshrl.u32 %v439_v21, 7  ;;  %s266_s15 = scalar_lea.vmem %s915_s5, %s871_s29 }
   0xe   : > { %765 = vmatprep.subr.mxu0 %v815_v1  ;;  %776 = vmatprep.mubr.msk.f32.mxu1 %vm816_vm0, %v815_v1  ;;  %v742_v5 = vld [vmem:[%s261_s10] sm:$0xff]   ;;  %s271_s23 = scalar_lea.vmem %s916_s6, %s871_s29 }
   0xf   : > { %766 = vmatpush3.msra.mxu0 %v288_v2  ;;  %v743_v6 = vunpack.c.l.bf16 %v742_v5  ;;  %v744_v7 = vunpack.c.h.bf16 %v742_v5  ;;  %775 = vmatpush3.msra.mxu1 %v364_v17  ;;  %v441_v23 = vsub.s32 0, %v440_v22  ;;  %v730_v47 = vld [vmem:[%s913_s3] ss:$0 sm:$0xff] }
  0x10   : > { %767 = vmatprep.subr.mxu0 %v815_v1  ;;  %779 = vmatprep.subr.mxu1 %v815_v1  ;;  %v746_v48 = vld [vmem:[%s266_s15] sm:$0xff]  }
  0x11   : > { %768 = vmatpush3.msra.mxu0 %v287_v3  ;;  %v277_v8 = vsel %vm276_vm1, %v743_v6, 0.0  ;;  %v278_v9 = vsel %vm276_vm1, %v744_v7, 0.0  ;;  %v731_v52 = vld [vmem:[%s914_s4] ss:$0 sm:$0xff]  ;;  %v747_v55 = vunpack.c.l.bf16 %v746_v48  ;;  %v748_v56 = vunpack.c.h.bf16 %v746_v48 }
  0x12   : > { %769 = vmatprep.subr.mxu0 %v815_v1  ;;  %v279_v10 = vadd.f32 %v278_v9, %v277_v8 }
  0x13   : > { %770 = vmatpush3.msra.mxu0 %v286_v4 }
  0x14   : > { %790 = vmatprep.subr.mxu0 %v815_v1  ;;  %v280_v11 = vrot.slane %v279_v10, 4 }
  0x16   : > { %v281_v12 = vadd.f32 %v280_v11, %v279_v10 }
  0x18   : > { %v282_v13 = vrot.slane %v281_v12, 2 }
  0x1a   : > { %v283_v14 = vadd.f32 %v282_v13, %v281_v12 }
  0x1c   : > { %v284_v15 = vrot.slane %v283_v14, 1 }
  0x1e   : > { %v285_v16 = vadd.f32 %v284_v15, %v283_v14 }
  0x20   : > { %772 = vmatmul.mubr.msk.f32.vlgmr.msra.gmra.mxu0 %vm276_vm1, %v285_v16 }
  0x21   : > { %792 = vmatprep.mubr.msk.f32.mxu0 %vm816_vm0, %v815_v1  ;;  %791 = vmatpush3.msra.mxu0 %v364_v17 }
  0xe0   : > { %v359_v18 = vpop.f32.mrf.mxu0 }
  0xe1   : > { %v363_v19 = vmul.f32 0.015625, %v359_v18 }
  0xe2   : > { %v773_v20 = vpop.f32.mrf.mxu0 }
  0xe3   : > { %777 = vmatmul.mubr.msk.f32.vlgmr.msra.gmra.mxu1 %vm365_vm2, %v363_v19 }
  0xe4   : > { %780 = vmatpush3.msra.mxu1 %v289_v0  ;;  %787 = vmatprep.mubr.msk.f32.mxu1 %vm816_vm0, %v815_v1 }
  0xe5   : > { %781 = vmatprep.subr.mxu1 %v815_v1 }
  0xe6   : > { %782 = vmatpush3.msra.mxu1 %v288_v2 }
  0xe7   : > { %783 = vmatprep.subr.mxu1 %v815_v1 }
  0xe8   : > { %784 = vmatpush3.msra.mxu1 %v287_v3 }
  0xe9   : > { %785 = vmatprep.subr.mxu1 %v815_v1 }
  0xea   : > { %786 = vmatpush3.msra.mxu1 %v286_v4 }
 0x1a3   : > { %v435_v24 = vpop.f32.mrf.mxu1 }
 0x1a4   : > { %v442_v25 = vrot.slane %v435_v24, %v441_v23 }
 0x1a5   : > { %v778_v26 = vpop.f32.mrf.mxu1 }
 0x1a6   : > { %v443_v27 = vsub.f32 %v743_v6, %v442_v25  ;;  %v444_v28 = vsub.f32 %v744_v7, %v442_v25 }
 0x1a8   : > { %v445_v29 = vmul.f32 %v443_v27, %v443_v27  ;;  %v446_v30 = vmul.f32 %v444_v28, %v444_v28 }
 0x1aa   : > { %v447_v31 = vsel %vm276_vm1, %v445_v29, 0.0  ;;  %v448_v32 = vsel %vm276_vm1, %v446_v30, 0.0 }
 0x1ab   : > { %v449_v33 = vadd.f32 %v448_v32, %v447_v31 }
 0x1ad   : > { %v450_v34 = vrot.slane %v449_v33, 4 }
 0x1af   : > { %v451_v35 = vadd.f32 %v450_v34, %v449_v33 }
 0x1b1   : > { %v452_v36 = vrot.slane %v451_v35, 2 }
 0x1b3   : > { %v453_v37 = vadd.f32 %v452_v36, %v451_v35 }
 0x1b5   : > { %v454_v38 = vrot.slane %v453_v37, 1 }
 0x1b7   : > { %v455_v39 = vadd.f32 %v454_v38, %v453_v37 }
 0x1b9   : > { %788 = vmatmul.mubr.msk.f32.vlgmr.msra.gmra.mxu1 %vm276_vm1, %v455_v39 }
 0x279   : > { %v525_v40 = vpop.f32.mrf.mxu1 }
 0x27a   : > { %v529_v41 = vmul.f32 0.015625, %v525_v40 }
 0x27b   : > { %v789_v42 = vpop.f32.mrf.mxu1 }
 0x27c   : > { %v530_v43 = vadd.f32 1e-05, %v529_v41 }
 0x27e   : > { %805 = vrsqrt.f32 %v530_v43 }
 0x28b   : > { %v806_v44 = vpop.eup %805 }
 0x28c   : > { %793 = vmatmul.mubr.msk.f32.vlgmr.msra.gmra.mxu0 %vm365_vm2, %v806_v44 }
 0x34c   : > { %v601_v45 = vpop.f32.mrf.mxu0 }
 0x34d   : > { %v608_v46 = vrot.slane %v601_v45, %v441_v23 }
 0x34e   : > { %v794_v49 = vpop.f32.mrf.mxu0 }
 0x34f   : > { %v609_v50 = vmul.f32 %v608_v46, %v443_v27  ;;  %v610_v51 = vmul.f32 %v608_v46, %v444_v28 }
 0x351   : > { %v618_v53 = vmul.f32 %v730_v47, %v609_v50  ;;  %v619_v54 = vmul.f32 %v730_v47, %v610_v51 }
 0x353   : > { %v627_v57 = vadd.f32 %v731_v52, %v618_v53  ;;  %v628_v58 = vadd.f32 %v731_v52, %v619_v54 }
 0x355   : > { %v633_v59 = vadd.f32 %v747_v55, %v627_v57  ;;  %v634_v60 = vadd.f32 %v748_v56, %v628_v58 }
 0x357   : > { %v635_v61 = vmax.f32 %v633_v59, 0.0  ;;  %v636_v62 = vmax.f32 %v634_v60, 0.0 }
 0x359   : > { %v739_v63 = vpack.c.bf16 %v635_v61, %v635_v61  ;;  %v740_v0 = vpack.c.bf16 %v636_v62, %v636_v62 }
 0x35b   : > { %646 = vst.msk [vmem:[%s271_s23] sm:$0xf] %vm645_vm3, %v739_v63  ;;  %647 = vst.msk [vmem:[%s271_s23 + $0x4] sm:$0xf] %vm645_vm3, %v740_v0 }
 0x35c PF: > { %s16_s21 = sadd.s32 1, %s813_s21  }
 0x35d   : > { %p13_p4 = scmp.ge.s32.totalorder %s16_s21, 4  }
 0x35f   :  { %15 = sbr.rel (!%p13_p4) target bundleno = 1 (0x1), region = 77 }

// kernel: resnet_forward.44
= control target key start
LH: loop header
LB: loop body
LE: loop exit
PB: predicated region body
PF: predicated region fallthrough
CT: control target
= control target key end

     0   :  { %v363_v1 = vmov 0.0   ;;  %vm364_vm0 = vmmov 0   ;;  %vm175_vm1 = vcmask 261120   ;;  %s446_s1 = inlined_call_operand.vmem [shape: bf16[288,128], index: 1, kind: input, shape index: {}]   ;;  %s447_s0 = inlined_call_operand.vmem [shape: bf16[16,288], index: 0, kind: input, shape index: {}]   ;;  %s448_s2 = inlined_call_operand.vmem [shape: bf16[16,128], index: 2, kind: output, shape index: {}]  }
   0x1   :  { %v341_v0 = vld [vmem:[%s446_s1 + $0x78] sm:$0xff]   ;;  %331 = vmatprep.subr.bf16.mxu1 %v363_v1  ;;  %335 = vmatprep.mubr.msk.bf16.mxu1 %vm364_vm0, %v363_v1  ;;  %v343_v3 = vld [vmem:[%s446_s1 + $0x70] sm:$0xff]   ;;  %v345_v5 = vld [vmem:[%s446_s1 + $0x68] sm:$0xff]  }
   0x2   :  { %v342_v2 = vld [vmem:[%s446_s1 + $0x38] sm:$0xff]   ;;  %306 = vmatprep.subr.bf16.mxu0 %v341_v0  ;;  %v344_v4 = vld [vmem:[%s446_s1 + $0x30] sm:$0xff]   ;;  %v346_v6 = vld [vmem:[%s446_s1 + $0x28] sm:$0xff]  }
   0x3   :  { %307 = vmatpush3.bf16.msra.mxu0 %v342_v2  ;;  %v347_v7 = vld [vmem:[%s446_s1 + $0x60] sm:$0xff]   ;;  %v349_v9 = vld [vmem:[%s446_s1 + $0x58] sm:$0xff]   ;;  %v353_v10 = vld [vmem:[%s446_s1 + $0x88] sm:$0xff]  }
   0x4   :  { %308 = vmatprep.subr.bf16.mxu0 %v343_v3  ;;  %v348_v8 = vld [vmem:[%s446_s1 + $0x20] sm:$0xff]   ;;  %v350_v11 = vld [vmem:[%s446_s1 + $0x18] sm:$0xff]   ;;  %332 = vmatpush3.bf16.msra.mxu1 %v353_v10  ;;  %v351_v13 = vld [vmem:[%s446_s1 + $0x50] sm:$0xff]  }
   0x5   :  { %333 = vmatprep.subr.bf16.mxu1 %v363_v1  ;;  %v356_v12 = vld [vmem:[%s446_s1 + $0x80] sm:$0xff]   ;;  %v359_v14 = vld [vmem:[%s447_s0 + $0x8] ss:$12 sps:$4 sm:$0xff]  }
   0x6   :  { %v352_v15 = vld [vmem:[%s446_s1 + $0x10] sm:$0xff]   ;;  %v354_v16 = vld [vmem:[%s446_s1 + $0x48] sm:$0xff]   ;;  %v357_v19 = vld [vmem:[%s446_s1 + $0x40] sm:$0xff]  }
   0x7   :  { %309 = vmatpush3.bf16.msra.mxu0 %v344_v4  ;;  %v362_v17 = vld [vmem:[%s447_s0 + $0x4] ss:$12 sps:$4 sm:$0xff]   ;;  %v355_v18 = vld [vmem:[%s446_s1 + $0x8] sm:$0xff]  }
   0x8   :  { %310 = vmatprep.subr.bf16.mxu0 %v345_v5  ;;  %334 = vmatpush3.bf16.msra.mxu1 %v356_v12  ;;  %v358_v20 = vld [vmem:[%s446_s1] sm:$0xff]  }
   0x9   :  { %211 = vmatprep.mubr.bf16.mxu0 %v362_v17  ;;  %v360_v21 = vld [vmem:[%s447_s0] ss:$12 sps:$4 sm:$0xff]  }
   0xb   :  { %311 = vmatpush3.bf16.msra.mxu0 %v346_v6  ;;  %336 = vmatmul.mubr.msk.bf16.vlgmr.msra.gmra.mxu1 %vm175_vm1, %v359_v14 }
   0xc   :  { %312 = vmatprep.subr.bf16.mxu0 %v347_v7 }
   0xf   :  { %313 = vmatpush3.bf16.msra.mxu0 %v348_v8 }
  0x10   :  { %314 = vmatprep.subr.bf16.mxu0 %v349_v9 }
  0x13   :  { %315 = vmatpush3.bf16.msra.mxu0 %v350_v11 }
  0x14   :  { %316 = vmatprep.subr.bf16.mxu0 %v351_v13 }
  0x17   :  { %317 = vmatpush3.bf16.msra.mxu0 %v352_v15 }
  0x18   :  { %318 = vmatprep.subr.bf16.mxu0 %v354_v16 }
  0x1b   :  { %319 = vmatpush3.bf16.msra.mxu0 %v355_v18 }
  0x1c   :  { %320 = vmatprep.subr.bf16.mxu0 %v357_v19 }
  0x1f   :  { %321 = vmatpush3.bf16.msra.mxu0 %v358_v20 }
  0x22   :  { %212 = vmatmul.mubr.bf16.vlgmr.msra.gmra.mxu0 %v360_v21 }
  0xcb   :  { %v254_v22 = vpop.f32.mrf.mxu1 }
  0xcd   :  { %v337_v23 = vpop.f32.mrf.mxu1 }
  0xcf   :  { %v257_v24 = vpop.f32.mrf.mxu1 }
  0xd1   :  { %v338_v25 = vpop.f32.mrf.mxu1 }
  0xe2   :  { %v322_v26 = vpop.f32.mrf.mxu0 }
  0xe4   :  { %v323_v27 = vpop.f32.mrf.mxu0 }
  0xe5   :  { %v324_v29 = vadd.f32 %v323_v27, %v322_v26 }
  0xe6   :  { %v325_v28 = vpop.f32.mrf.mxu0 }
  0xe7   :  { %v255_v32 = vadd.f32 %v324_v29, %v254_v22 }
  0xe8   :  { %v326_v30 = vpop.f32.mrf.mxu0 }
  0xe9   :  { %v327_v31 = vadd.f32 %v326_v30, %v325_v28 }
  0xeb   :  { %v258_v33 = vadd.f32 %v327_v31, %v257_v24 }
  0xed   :  { %v304_v34 = vpack.c.bf16 %v258_v33, %v255_v32 }
  0xef   :  { %305 = vst [vmem:[%s448_s2] sm:$0xff] %v304_v34  }

// kernel: resnet_forward.45
= control target key start
LH: loop header
LB: loop body
LE: loop exit
PB: predicated region body
PF: predicated region fallthrough
CT: control target
= control target key end

     0   :  { %s772_s18 = smov 0   ;;  %s869_s0 = inlined_call_operand.vmem [shape: bf16[2,4,64], index: 0, kind: input, shape index: {}]   ;;  %s870_s1 = inlined_call_operand.vmem [shape: f32[64,16], index: 1, kind: input, shape index: {}]   ;;  %s871_s2 = inlined_call_operand.vmem [shape: f32[16,64], index: 2, kind: input, shape index: {}]   ;;  %s872_s3 = inlined_call_operand.vmem [shape: f32[1,64], index: 3, kind: input, shape index: {}]   ;;  %s873_s4 = inlined_call_operand.vmem [shape: f32[1,64], index: 4, kind: input, shape index: {}]   ;;  %s874_s5 = inlined_call_operand.vmem [shape: bf16[2,4,64], index: 5, kind: output, shape index: {}]  }
   0x1 LB: > { %s629_s19 = sadd.s32 4294967295, %s738_s18   ;;  %p633_p0 = scmp.ge.s32.totalorder %s738_s18, 1  ;;  %s738_s18 = sphi %s772_s18, %s15_s18  }
   0x2   : > { %p186_p1 = scmp.lt.s32.totalorder %s738_s18, 3 }
   0x4   : > { %p187_p2 = pnand %p633_p0, %p186_p1 }
   0x5   : > { %p212_p3 = scmp.lt.s32.totalorder (!%p187_p2), %s629_s19, 1 }
   0x6   : > { %190 = sbr.rel (%p187_p2) target bundleno = 854 (0x356), region = 40 }
   0xb   : > { %v237_v0 = vld [vmem:[%s870_s1 + $0x38] sm:$0xff]  ;;  %v740_v1 = vmov 0.0   ;;  %v236_v2 = vld [vmem:[%s870_s1 + $0x30] sm:$0xff]  ;;  %vm741_vm0 = vmmov 0   ;;  %s876_s19 = smov (!%p212_p3, %s629_s19), 1  ;;  %v235_v3 = vld [vmem:[%s870_s1 + $0x28] sm:$0xff]  ;;  %v389_v23 = vlaneseq }
   0xc   : > { %668 = vmatprep.subr.mxu0 %v740_v1  ;;  %684 = vmatprep.mubr.msk.f32.mxu0 %vm741_vm0, %v740_v1  ;;  %s634_s26 = sshll.u32 %s876_s19, 1  ;;  %v234_v4 = vld [vmem:[%s870_s1 + $0x20] sm:$0xff]  ;;  %vm222_vm1 = vcmask 519168   ;;  %v233_v6 = vld [vmem:[%s870_s1 + $0x18] sm:$0xff]  ;;  %v232_v8 = vld [vmem:[%s870_s1 + $0x10] sm:$0xff]  ;;  %vm238_vm2 = vcmask 523264  }
   0xd   : > { %669 = vmatpush3.msra.mxu0 %v237_v0  ;;  %687 = vmatprep.subr.mxu1 %v740_v1  ;;  %s215_s6 = scalar_lea.vmem %s869_s0, %s634_s26  ;;  %v231_v11 = vld [vmem:[%s870_s1 + $0x8] sm:$0xff]  ;;  %v230_v13 = vld [vmem:[%s870_s1] sm:$0xff]  ;;  %vm315_vm3 = vcmask 130048   ;;  %v390_v24 = vshrl.u32 %v389_v23, 7  ;;  %s219_s28 = scalar_lea.vmem %s874_s5, %s634_s26  ;;  %vm574_vm4 = vcmask 517120  }
   0xe   : > { %670 = vmatprep.subr.mxu0 %v740_v1  ;;  %691 = vmatprep.mubr.msk.f32.mxu1 %vm741_vm0, %v740_v1  ;;  %v808_v5 = vld [vmem:[%s215_s6] sm:$0x3]  ;;  %v314_v18 = vld [vmem:[%s871_s2 + $0x8] sm:$0xff] }
   0xf   : > { %671 = vmatpush3.msra.mxu0 %v236_v2  ;;  %v221_v7 = vunpack.c.l.bf16 %v808_v5  ;;  %688 = vmatpush3.msra.mxu1 %v314_v18  ;;  %v313_v19 = vld [vmem:[%s871_s2] sm:$0xff]  ;;  %v391_v25 = vsub.s32 0, %v390_v24 }
  0x10   : > { %672 = vmatprep.subr.mxu0 %v740_v1  ;;  %689 = vmatprep.subr.mxu1 %v740_v1  ;;  %v640_v45 = vld [vmem:[%s872_s3] ss:$0 sm:$0xff] }
  0x11   : > { %673 = vmatpush3.msra.mxu0 %v235_v3  ;;  %v223_v9 = vsel %vm222_vm1, %v221_v7, 0.0  ;;  %690 = vmatpush3.msra.mxu1 %v313_v19  ;;  %v641_v48 = vld [vmem:[%s873_s4] ss:$0 sm:$0xff] }
  0x12   : > { %674 = vmatprep.subr.mxu0 %v740_v1  ;;  %v224_v10 = vrot.slane %v223_v9, 4  ;;  %694 = vmatprep.subr.mxu1 %v740_v1 }
  0x13   : > { %675 = vmatpush3.msra.mxu0 %v234_v4 }
  0x14   : > { %676 = vmatprep.subr.mxu0 %v740_v1  ;;  %v225_v12 = vadd.f32 %v224_v10, %v223_v9 }
  0x15   : > { %677 = vmatpush3.msra.mxu0 %v233_v6 }
  0x16   : > { %678 = vmatprep.subr.mxu0 %v740_v1  ;;  %v226_v14 = vrot.slane %v225_v12, 2 }
  0x17   : > { %679 = vmatpush3.msra.mxu0 %v232_v8 }
  0x18   : > { %680 = vmatprep.subr.mxu0 %v740_v1  ;;  %v227_v15 = vadd.f32 %v226_v14, %v225_v12 }
  0x19   : > { %681 = vmatpush3.msra.mxu0 %v231_v11 }
  0x1a   : > { %682 = vmatprep.subr.mxu0 %v740_v1  ;;  %v228_v16 = vrot.slane %v227_v15, 1 }
  0x1b   : > { %683 = vmatpush3.msra.mxu0 %v230_v13 }
  0x1c   : > { %713 = vmatprep.subr.mxu0 %v740_v1  ;;  %v229_v17 = vadd.f32 %v228_v16, %v227_v15 }
  0x1e   : > { %685 = vmatmul.mubr.msk.f32.vlgmr.msra.gmra.mxu0 %vm238_vm2, %v229_v17 }
  0x1f   : > { %717 = vmatprep.mubr.msk.f32.mxu0 %vm741_vm0, %v740_v1  ;;  %714 = vmatpush3.msra.mxu0 %v314_v18 }
  0x20   : > { %715 = vmatprep.subr.mxu0 %v740_v1 }
  0x21   : > { %716 = vmatpush3.msra.mxu0 %v313_v19 }
  0xde   : > { %v308_v20 = vpop.f32.mrf.mxu0 }
  0xdf   : > { %v312_v21 = vmul.f32 0.0625, %v308_v20 }
  0xe0   : > { %v686_v22 = vpop.f32.mrf.mxu0 }
  0xe1   : > { %692 = vmatmul.mubr.msk.f32.vlgmr.msra.gmra.mxu1 %vm315_vm3, %v312_v21 }
  0xe2   : > { %695 = vmatpush3.msra.mxu1 %v237_v0  ;;  %710 = vmatprep.mubr.msk.f32.mxu1 %vm741_vm0, %v740_v1 }
  0xe3   : > { %696 = vmatprep.subr.mxu1 %v740_v1 }
  0xe4   : > { %697 = vmatpush3.msra.mxu1 %v236_v2 }
  0xe5   : > { %698 = vmatprep.subr.mxu1 %v740_v1 }
  0xe6   : > { %699 = vmatpush3.msra.mxu1 %v235_v3 }
  0xe7   : > { %700 = vmatprep.subr.mxu1 %v740_v1 }
  0xe8   : > { %701 = vmatpush3.msra.mxu1 %v234_v4 }
  0xe9   : > { %702 = vmatprep.subr.mxu1 %v740_v1 }
  0xea   : > { %703 = vmatpush3.msra.mxu1 %v233_v6 }
  0xeb   : > { %704 = vmatprep.subr.mxu1 %v740_v1 }
  0xec   : > { %705 = vmatpush3.msra.mxu1 %v232_v8 }
  0xed   : > { %706 = vmatprep.subr.mxu1 %v740_v1 }
  0xee   : > { %707 = vmatpush3.msra.mxu1 %v231_v11 }
  0xef   : > { %708 = vmatprep.subr.mxu1 %v740_v1 }
  0xf0   : > { %709 = vmatpush3.msra.mxu1 %v230_v13 }
 0x1a1   : > { %v385_v26 = vpop.f32.mrf.mxu1 }
 0x1a2   : > { %v392_v27 = vrot.slane %v385_v26, %v391_v25 }
 0x1a3   : > { %v693_v28 = vpop.f32.mrf.mxu1 }
 0x1a4   : > { %v393_v29 = vsub.f32 %v221_v7, %v392_v27 }
 0x1a6   : > { %v394_v30 = vmul.f32 %v393_v29, %v393_v29 }
 0x1a8   : > { %v395_v31 = vsel %vm222_vm1, %v394_v30, 0.0 }
 0x1a9   : > { %v396_v32 = vrot.slane %v395_v31, 4 }
 0x1ab   : > { %v397_v33 = vadd.f32 %v396_v32, %v395_v31 }
 0x1ad   : > { %v398_v34 = vrot.slane %v397_v33, 2 }
 0x1af   : > { %v399_v35 = vadd.f32 %v398_v34, %v397_v33 }
 0x1b1   : > { %v400_v36 = vrot.slane %v399_v35, 1 }
 0x1b3   : > { %v401_v37 = vadd.f32 %v400_v36, %v399_v35 }
 0x1b5   : > { %711 = vmatmul.mubr.msk.f32.vlgmr.msra.gmra.mxu1 %vm238_vm2, %v401_v37 }
 0x275   : > { %v471_v38 = vpop.f32.mrf.mxu1 }
 0x276   : > { %v475_v39 = vmul.f32 0.0625, %v471_v38 }
 0x277   : > { %v712_v40 = vpop.f32.mrf.mxu1 }
 0x278   : > { %v476_v41 = vadd.f32 1e-05, %v475_v39 }
 0x27a   : > { %730 = vrsqrt.f32 %v476_v41 }
 0x287   : > { %v731_v42 = vpop.eup %730 }
 0x288   : > { %718 = vmatmul.mubr.msk.f32.vlgmr.msra.gmra.mxu0 %vm315_vm3, %v731_v42 }
 0x348   : > { %v547_v43 = vpop.f32.mrf.mxu0 }
 0x349   : > { %v554_v44 = vrot.slane %v547_v43, %v391_v25 }
 0x34a   : > { %v719_v46 = vpop.f32.mrf.mxu0 }
 0x34b   : > { %v555_v47 = vmul.f32 %v554_v44, %v393_v29 }
 0x34d   : > { %v563_v49 = vmul.f32 %v640_v45, %v555_v47 }
 0x34f   : > { %v571_v50 = vadd.f32 %v641_v48, %v563_v49 }
 0x351   : > { %v572_v51 = vmax.f32 %v571_v50, 0.0 }
 0x353   : > { %v573_v52 = vpack.c.bf16 %v572_v51, %v572_v51 }
 0x355   : > { %575 = vst.msk [vmem:[%s219_s28] sm:$0x3] %vm574_vm4, %v573_v52 }
 0x356 PF: > { %s15_s18 = sadd.s32 1, %s738_s18  }
 0x357   : > { %p12_p4 = scmp.ge.s32.totalorder %s15_s18, 4  }
 0x359   :  { %14 = sbr.rel (!%p12_p4) target bundleno = 1 (0x1), region = 70 }

// kernel: resnet_forward.47
= control target key start
LH: loop header
LB: loop body
LE: loop exit
PB: predicated region body
PF: predicated region fallthrough
CT: control target
= control target key end

     0   :  { %v123_v0 = vmov 0.0   ;;  %vm124_vm0 = vmmov 0   ;;  %vm35_vm1 = vcmask 261120   ;;  %s152_s1 = inlined_call_operand.vmem [shape: bf16[32,128], index: 1, kind: input, shape index: {}]   ;;  %s153_s0 = inlined_call_operand.vmem [shape: bf16[16,32], index: 0, kind: input, shape index: {}]   ;;  %s154_s2 = inlined_call_operand.vmem [shape: bf16[16,128], index: 2, kind: output, shape index: {}]  }
   0x1   :  { %110 = vmatprep.subr.bf16.mxu0 %v123_v0  ;;  %v120_v1 = vld [vmem:[%s152_s1 + $0x8] sm:$0xff]   ;;  %114 = vmatprep.mubr.msk.bf16.mxu0 %vm124_vm0, %v123_v0  ;;  %v121_v2 = vld [vmem:[%s152_s1] sm:$0xff]  }
   0x2   :  { %111 = vmatpush3.bf16.msra.mxu0 %v120_v1  ;;  %v122_v3 = vld [vmem:[%s153_s0] sm:$0xff]  }
   0x3   :  { %112 = vmatprep.subr.bf16.mxu0 %v123_v0 }
   0x6   :  { %113 = vmatpush3.bf16.msra.mxu0 %v121_v2 }
   0x9   :  { %115 = vmatmul.mubr.msk.bf16.vlgmr.msra.gmra.mxu0 %vm35_vm1, %v122_v3 }
  0xc9   :  { %v73_v4 = vpop.f32.mrf.mxu0 }
  0xcb   :  { %v116_v5 = vpop.f32.mrf.mxu0 }
  0xcd   :  { %v76_v6 = vpop.f32.mrf.mxu0 }
  0xce   :  { %v105_v7 = vpack.c.bf16 %v76_v6, %v73_v4 }
  0xcf   :  { %v117_v8 = vpop.f32.mrf.mxu0 }
  0xd0   :  { %106 = vst [vmem:[%s154_s2] sm:$0xff] %v105_v7  }

// kernel: resnet_forward.49
= control target key start
LH: loop header
LB: loop body
LE: loop exit
PB: predicated region body
PF: predicated region fallthrough
CT: control target
= control target key end

     0   :  { %s837_s21 = smov 0   ;;  %s935_s0 = inlined_call_operand.vmem [shape: bf16[2,4,64], index: 0, kind: input, shape index: {}]   ;;  %s936_s1 = inlined_call_operand.vmem [shape: f32[64,16], index: 1, kind: input, shape index: {}]   ;;  %s937_s2 = inlined_call_operand.vmem [shape: f32[16,64], index: 2, kind: input, shape index: {}]   ;;  %s938_s3 = inlined_call_operand.vmem [shape: f32[1,64], index: 3, kind: input, shape index: {}]   ;;  %s939_s4 = inlined_call_operand.vmem [shape: f32[1,64], index: 4, kind: input, shape index: {}]   ;;  %s940_s5 = inlined_call_operand.vmem [shape: bf16[2,4,64], index: 5, kind: input, shape index: {}]   ;;  %s941_s6 = inlined_call_operand.vmem [shape: bf16[2,4,64], index: 6, kind: output, shape index: {}]  }
   0x1 LB: > { %s688_s22 = sadd.s32 4294967295, %s798_s21   ;;  %p692_p0 = scmp.ge.s32.totalorder %s798_s21, 1  ;;  %s798_s21 = sphi %s837_s21, %s16_s21  }
   0x2   : > { %p220_p1 = scmp.lt.s32.totalorder %s798_s21, 3 }
   0x4   : > { %p221_p2 = pnand %p692_p0, %p220_p1 }
   0x5   : > { %p252_p3 = scmp.lt.s32.totalorder (!%p221_p2), %s688_s22, 1 }
   0x6   : > { %224 = sbr.rel (%p221_p2) target bundleno = 856 (0x358), region = 44 }
   0xb   : > { %v281_v0 = vld [vmem:[%s936_s1 + $0x38] sm:$0xff]  ;;  %v800_v1 = vmov 0.0   ;;  %v280_v2 = vld [vmem:[%s936_s1 + $0x30] sm:$0xff]  ;;  %vm801_vm0 = vmmov 0   ;;  %s943_s22 = smov (!%p252_p3, %s688_s22), 1  ;;  %v279_v3 = vld [vmem:[%s936_s1 + $0x28] sm:$0xff]  ;;  %v433_v23 = vlaneseq }
   0xc   : > { %728 = vmatprep.subr.mxu0 %v800_v1  ;;  %744 = vmatprep.mubr.msk.f32.mxu0 %vm801_vm0, %v800_v1  ;;  %s861_s29 = sshll.u32 %s943_s22, 1  ;;  %v278_v4 = vld [vmem:[%s936_s1 + $0x20] sm:$0xff]  ;;  %vm266_vm1 = vcmask 519168   ;;  %v277_v6 = vld [vmem:[%s936_s1 + $0x18] sm:$0xff]  ;;  %v276_v8 = vld [vmem:[%s936_s1 + $0x10] sm:$0xff]  ;;  %vm282_vm2 = vcmask 523264  }
   0xd   : > { %729 = vmatpush3.msra.mxu0 %v281_v0  ;;  %747 = vmatprep.subr.mxu1 %v800_v1  ;;  %s255_s10 = scalar_lea.vmem %s935_s0, %s861_s29  ;;  %v275_v11 = vld [vmem:[%s936_s1 + $0x8] sm:$0xff]  ;;  %v274_v13 = vld [vmem:[%s936_s1] sm:$0xff]  ;;  %vm359_vm3 = vcmask 130048   ;;  %v434_v24 = vshrl.u32 %v433_v23, 7  ;;  %s259_s26 = scalar_lea.vmem %s940_s5, %s861_s29  ;;  %vm621_vm4 = vcmask 517120  }
   0xe   : > { %730 = vmatprep.subr.mxu0 %v800_v1  ;;  %751 = vmatprep.mubr.msk.f32.mxu1 %vm801_vm0, %v800_v1  ;;  %v871_v5 = vld [vmem:[%s255_s10] sm:$0x3]  ;;  %v358_v18 = vld [vmem:[%s937_s2 + $0x8] sm:$0xff]  ;;  %s263_s10 = scalar_lea.vmem %s941_s6, %s861_s29 }
   0xf   : > { %731 = vmatpush3.msra.mxu0 %v280_v2  ;;  %v265_v7 = vunpack.c.l.bf16 %v871_v5  ;;  %748 = vmatpush3.msra.mxu1 %v358_v18  ;;  %v357_v19 = vld [vmem:[%s937_s2] sm:$0xff]  ;;  %v435_v25 = vsub.s32 0, %v434_v24 }
  0x10   : > { %732 = vmatprep.subr.mxu0 %v800_v1  ;;  %749 = vmatprep.subr.mxu1 %v800_v1  ;;  %v700_v45 = vld [vmem:[%s938_s3] ss:$0 sm:$0xff] }
  0x11   : > { %733 = vmatpush3.msra.mxu0 %v279_v3  ;;  %v267_v9 = vsel %vm266_vm1, %v265_v7, 0.0  ;;  %750 = vmatpush3.msra.mxu1 %v357_v19  ;;  %v616_v46 = vld [vmem:[%s259_s26] sm:$0x3] }
  0x12   : > { %734 = vmatprep.subr.mxu0 %v800_v1  ;;  %v268_v10 = vrot.slane %v267_v9, 4  ;;  %754 = vmatprep.subr.mxu1 %v800_v1  ;;  %v701_v49 = vld [vmem:[%s939_s4] ss:$0 sm:$0xff]  ;;  %v617_v51 = vunpack.c.l.bf16 %v616_v46 }
  0x13   : > { %735 = vmatpush3.msra.mxu0 %v278_v4 }
  0x14   : > { %736 = vmatprep.subr.mxu0 %v800_v1  ;;  %v269_v12 = vadd.f32 %v268_v10, %v267_v9 }
  0x15   : > { %737 = vmatpush3.msra.mxu0 %v277_v6 }
  0x16   : > { %738 = vmatprep.subr.mxu0 %v800_v1  ;;  %v270_v14 = vrot.slane %v269_v12, 2 }
  0x17   : > { %739 = vmatpush3.msra.mxu0 %v276_v8 }
  0x18   : > { %740 = vmatprep.subr.mxu0 %v800_v1  ;;  %v271_v15 = vadd.f32 %v270_v14, %v269_v12 }
  0x19   : > { %741 = vmatpush3.msra.mxu0 %v275_v11 }
  0x1a   : > { %742 = vmatprep.subr.mxu0 %v800_v1  ;;  %v272_v16 = vrot.slane %v271_v15, 1 }
  0x1b   : > { %743 = vmatpush3.msra.mxu0 %v274_v13 }
  0x1c   : > { %773 = vmatprep.subr.mxu0 %v800_v1  ;;  %v273_v17 = vadd.f32 %v272_v16, %v271_v15 }
  0x1e   : > { %745 = vmatmul.mubr.msk.f32.vlgmr.msra.gmra.mxu0 %vm282_vm2, %v273_v17 }
  0x1f   : > { %777 = vmatprep.mubr.msk.f32.mxu0 %vm801_vm0, %v800_v1  ;;  %774 = vmatpush3.msra.mxu0 %v358_v18 }
  0x20   : > { %775 = vmatprep.subr.mxu0 %v800_v1 }
  0x21   : > { %776 = vmatpush3.msra.mxu0 %v357_v19 }
  0xde   : > { %v352_v20 = vpop.f32.mrf.mxu0 }
  0xdf   : > { %v356_v21 = vmul.f32 0.0625, %v352_v20 }
  0xe0   : > { %v746_v22 = vpop.f32.mrf.mxu0 }
  0xe1   : > { %752 = vmatmul.mubr.msk.f32.vlgmr.msra.gmra.mxu1 %vm359_vm3, %v356_v21 }
  0xe2   : > { %755 = vmatpush3.msra.mxu1 %v281_v0  ;;  %770 = vmatprep.mubr.msk.f32.mxu1 %vm801_vm0, %v800_v1 }
  0xe3   : > { %756 = vmatprep.subr.mxu1 %v800_v1 }
  0xe4   : > { %757 = vmatpush3.msra.mxu1 %v280_v2 }
  0xe5   : > { %758 = vmatprep.subr.mxu1 %v800_v1 }
  0xe6   : > { %759 = vmatpush3.msra.mxu1 %v279_v3 }
  0xe7   : > { %760 = vmatprep.subr.mxu1 %v800_v1 }
  0xe8   : > { %761 = vmatpush3.msra.mxu1 %v278_v4 }
  0xe9   : > { %762 = vmatprep.subr.mxu1 %v800_v1 }
  0xea   : > { %763 = vmatpush3.msra.mxu1 %v277_v6 }
  0xeb   : > { %764 = vmatprep.subr.mxu1 %v800_v1 }
  0xec   : > { %765 = vmatpush3.msra.mxu1 %v276_v8 }
  0xed   : > { %766 = vmatprep.subr.mxu1 %v800_v1 }
  0xee   : > { %767 = vmatpush3.msra.mxu1 %v275_v11 }
  0xef   : > { %768 = vmatprep.subr.mxu1 %v800_v1 }
  0xf0   : > { %769 = vmatpush3.msra.mxu1 %v274_v13 }
 0x1a1   : > { %v429_v26 = vpop.f32.mrf.mxu1 }
 0x1a2   : > { %v436_v27 = vrot.slane %v429_v26, %v435_v25 }
 0x1a3   : > { %v753_v28 = vpop.f32.mrf.mxu1 }
 0x1a4   : > { %v437_v29 = vsub.f32 %v265_v7, %v436_v27 }
 0x1a6   : > { %v438_v30 = vmul.f32 %v437_v29, %v437_v29 }
 0x1a8   : > { %v439_v31 = vsel %vm266_vm1, %v438_v30, 0.0 }
 0x1a9   : > { %v440_v32 = vrot.slane %v439_v31, 4 }
 0x1ab   : > { %v441_v33 = vadd.f32 %v440_v32, %v439_v31 }
 0x1ad   : > { %v442_v34 = vrot.slane %v441_v33, 2 }
 0x1af   : > { %v443_v35 = vadd.f32 %v442_v34, %v441_v33 }
 0x1b1   : > { %v444_v36 = vrot.slane %v443_v35, 1 }
 0x1b3   : > { %v445_v37 = vadd.f32 %v444_v36, %v443_v35 }
 0x1b5   : > { %771 = vmatmul.mubr.msk.f32.vlgmr.msra.gmra.mxu1 %vm282_vm2, %v445_v37 }
 0x275   : > { %v515_v38 = vpop.f32.mrf.mxu1 }
 0x276   : > { %v519_v39 = vmul.f32 0.0625, %v515_v38 }
 0x277   : > { %v772_v40 = vpop.f32.mrf.mxu1 }
 0x278   : > { %v520_v41 = vadd.f32 1e-05, %v519_v39 }
 0x27a   : > { %790 = vrsqrt.f32 %v520_v41 }
 0x287   : > { %v791_v42 = vpop.eup %790 }
 0x288   : > { %778 = vmatmul.mubr.msk.f32.vlgmr.msra.gmra.mxu0 %vm359_vm3, %v791_v42 }
 0x348   : > { %v591_v43 = vpop.f32.mrf.mxu0 }
 0x349   : > { %v598_v44 = vrot.slane %v591_v43, %v435_v25 }
 0x34a   : > { %v779_v47 = vpop.f32.mrf.mxu0 }
 0x34b   : > { %v599_v48 = vmul.f32 %v598_v44, %v437_v29 }
 0x34d   : > { %v607_v50 = vmul.f32 %v700_v45, %v599_v48 }
 0x34f   : > { %v615_v52 = vadd.f32 %v701_v49, %v607_v50 }
 0x351   : > { %v618_v53 = vadd.f32 %v617_v51, %v615_v52 }
 0x353   : > { %v619_v54 = vmax.f32 %v618_v53, 0.0 }
 0x355   : > { %v620_v55 = vpack.c.bf16 %v619_v54, %v619_v54 }
 0x357   : > { %622 = vst.msk [vmem:[%s263_s10] sm:$0x3] %vm621_vm4, %v620_v55 }
 0x358 PF: > { %s16_s21 = sadd.s32 1, %s798_s21  }
 0x359   : > { %p13_p4 = scmp.ge.s32.totalorder %s16_s21, 4  }
 0x35b   :  { %15 = sbr.rel (!%p13_p4) target bundleno = 1 (0x1), region = 77 }

// kernel: resnet_forward.48
= control target key start
LH: loop header
LB: loop body
LE: loop exit
PB: predicated region body
PF: predicated region fallthrough
CT: control target
= control target key end

     0   :  { %s771_s18 = smov 0   ;;  %s868_s0 = inlined_call_operand.vmem [shape: bf16[2,4,64], index: 0, kind: input, shape index: {}]   ;;  %s869_s1 = inlined_call_operand.vmem [shape: f32[64,16], index: 1, kind: input, shape index: {}]   ;;  %s870_s2 = inlined_call_operand.vmem [shape: f32[16,64], index: 2, kind: input, shape index: {}]   ;;  %s871_s3 = inlined_call_operand.vmem [shape: f32[1,64], index: 3, kind: input, shape index: {}]   ;;  %s872_s4 = inlined_call_operand.vmem [shape: f32[1,64], index: 4, kind: input, shape index: {}]   ;;  %s873_s5 = inlined_call_operand.vmem [shape: bf16[2,4,64], index: 5, kind: output, shape index: {}]  }
   0x1 LB: > { %s628_s19 = sadd.s32 4294967295, %s737_s18   ;;  %p632_p0 = scmp.ge.s32.totalorder %s737_s18, 1  ;;  %s737_s18 = sphi %s771_s18, %s15_s18  }
   0x2   : > { %p186_p1 = scmp.lt.s32.totalorder %s737_s18, 3 }
   0x4   : > { %p187_p2 = pnand %p632_p0, %p186_p1 }
   0x5   : > { %p212_p3 = scmp.lt.s32.totalorder (!%p187_p2), %s628_s19, 1 }
   0x6   : > { %190 = sbr.rel (%p187_p2) target bundleno = 852 (0x354), region = 40 }
   0xb   : > { %v237_v0 = vld [vmem:[%s869_s1 + $0x38] sm:$0xff]  ;;  %v739_v1 = vmov 0.0   ;;  %v236_v2 = vld [vmem:[%s869_s1 + $0x30] sm:$0xff]  ;;  %vm740_vm0 = vmmov 0   ;;  %s875_s19 = smov (!%p212_p3, %s628_s19), 1  ;;  %v235_v3 = vld [vmem:[%s869_s1 + $0x28] sm:$0xff]  ;;  %v389_v23 = vlaneseq }
   0xc   : > { %667 = vmatprep.subr.mxu0 %v739_v1  ;;  %683 = vmatprep.mubr.msk.f32.mxu0 %vm740_vm0, %v739_v1  ;;  %s633_s26 = sshll.u32 %s875_s19, 1  ;;  %v234_v4 = vld [vmem:[%s869_s1 + $0x20] sm:$0xff]  ;;  %vm222_vm1 = vcmask 519168   ;;  %v233_v6 = vld [vmem:[%s869_s1 + $0x18] sm:$0xff]  ;;  %v232_v8 = vld [vmem:[%s869_s1 + $0x10] sm:$0xff]  ;;  %vm238_vm2 = vcmask 523264  }
   0xd   : > { %668 = vmatpush3.msra.mxu0 %v237_v0  ;;  %686 = vmatprep.subr.mxu1 %v739_v1  ;;  %s215_s6 = scalar_lea.vmem %s868_s0, %s633_s26  ;;  %v231_v11 = vld [vmem:[%s869_s1 + $0x8] sm:$0xff]  ;;  %v230_v13 = vld [vmem:[%s869_s1] sm:$0xff]  ;;  %vm315_vm3 = vcmask 130048   ;;  %v390_v24 = vshrl.u32 %v389_v23, 7  ;;  %s219_s28 = scalar_lea.vmem %s873_s5, %s633_s26  ;;  %vm573_vm4 = vcmask 517120  }
   0xe   : > { %669 = vmatprep.subr.mxu0 %v739_v1  ;;  %690 = vmatprep.mubr.msk.f32.mxu1 %vm740_vm0, %v739_v1  ;;  %v807_v5 = vld [vmem:[%s215_s6] sm:$0x3]  ;;  %v314_v18 = vld [vmem:[%s870_s2 + $0x8] sm:$0xff] }
   0xf   : > { %670 = vmatpush3.msra.mxu0 %v236_v2  ;;  %v221_v7 = vunpack.c.l.bf16 %v807_v5  ;;  %687 = vmatpush3.msra.mxu1 %v314_v18  ;;  %v313_v19 = vld [vmem:[%s870_s2] sm:$0xff]  ;;  %v391_v25 = vsub.s32 0, %v390_v24 }
  0x10   : > { %671 = vmatprep.subr.mxu0 %v739_v1  ;;  %688 = vmatprep.subr.mxu1 %v739_v1  ;;  %v639_v45 = vld [vmem:[%s871_s3] ss:$0 sm:$0xff] }
  0x11   : > { %672 = vmatpush3.msra.mxu0 %v235_v3  ;;  %v223_v9 = vsel %vm222_vm1, %v221_v7, 0.0  ;;  %689 = vmatpush3.msra.mxu1 %v313_v19  ;;  %v640_v48 = vld [vmem:[%s872_s4] ss:$0 sm:$0xff] }
  0x12   : > { %673 = vmatprep.subr.mxu0 %v739_v1  ;;  %v224_v10 = vrot.slane %v223_v9, 4  ;;  %693 = vmatprep.subr.mxu1 %v739_v1 }
  0x13   : > { %674 = vmatpush3.msra.mxu0 %v234_v4 }
  0x14   : > { %675 = vmatprep.subr.mxu0 %v739_v1  ;;  %v225_v12 = vadd.f32 %v224_v10, %v223_v9 }
  0x15   : > { %676 = vmatpush3.msra.mxu0 %v233_v6 }
  0x16   : > { %677 = vmatprep.subr.mxu0 %v739_v1  ;;  %v226_v14 = vrot.slane %v225_v12, 2 }
  0x17   : > { %678 = vmatpush3.msra.mxu0 %v232_v8 }
  0x18   : > { %679 = vmatprep.subr.mxu0 %v739_v1  ;;  %v227_v15 = vadd.f32 %v226_v14, %v225_v12 }
  0x19   : > { %680 = vmatpush3.msra.mxu0 %v231_v11 }
  0x1a   : > { %681 = vmatprep.subr.mxu0 %v739_v1  ;;  %v228_v16 = vrot.slane %v227_v15, 1 }
  0x1b   : > { %682 = vmatpush3.msra.mxu0 %v230_v13 }
  0x1c   : > { %712 = vmatprep.subr.mxu0 %v739_v1  ;;  %v229_v17 = vadd.f32 %v228_v16, %v227_v15 }
  0x1e   : > { %684 = vmatmul.mubr.msk.f32.vlgmr.msra.gmra.mxu0 %vm238_vm2, %v229_v17 }
  0x1f   : > { %716 = vmatprep.mubr.msk.f32.mxu0 %vm740_vm0, %v739_v1  ;;  %713 = vmatpush3.msra.mxu0 %v314_v18 }
  0x20   : > { %714 = vmatprep.subr.mxu0 %v739_v1 }
  0x21   : > { %715 = vmatpush3.msra.mxu0 %v313_v19 }
  0xde   : > { %v308_v20 = vpop.f32.mrf.mxu0 }
  0xdf   : > { %v312_v21 = vmul.f32 0.0625, %v308_v20 }
  0xe0   : > { %v685_v22 = vpop.f32.mrf.mxu0 }
  0xe1   : > { %691 = vmatmul.mubr.msk.f32.vlgmr.msra.gmra.mxu1 %vm315_vm3, %v312_v21 }
  0xe2   : > { %694 = vmatpush3.msra.mxu1 %v237_v0  ;;  %709 = vmatprep.mubr.msk.f32.mxu1 %vm740_vm0, %v739_v1 }
  0xe3   : > { %695 = vmatprep.subr.mxu1 %v739_v1 }
  0xe4   : > { %696 = vmatpush3.msra.mxu1 %v236_v2 }
  0xe5   : > { %697 = vmatprep.subr.mxu1 %v739_v1 }
  0xe6   : > { %698 = vmatpush3.msra.mxu1 %v235_v3 }
  0xe7   : > { %699 = vmatprep.subr.mxu1 %v739_v1 }
  0xe8   : > { %700 = vmatpush3.msra.mxu1 %v234_v4 }
  0xe9   : > { %701 = vmatprep.subr.mxu1 %v739_v1 }
  0xea   : > { %702 = vmatpush3.msra.mxu1 %v233_v6 }
  0xeb   : > { %703 = vmatprep.subr.mxu1 %v739_v1 }
  0xec   : > { %704 = vmatpush3.msra.mxu1 %v232_v8 }
  0xed   : > { %705 = vmatprep.subr.mxu1 %v739_v1 }
  0xee   : > { %706 = vmatpush3.msra.mxu1 %v231_v11 }
  0xef   : > { %707 = vmatprep.subr.mxu1 %v739_v1 }
  0xf0   : > { %708 = vmatpush3.msra.mxu1 %v230_v13 }
 0x1a1   : > { %v385_v26 = vpop.f32.mrf.mxu1 }
 0x1a2   : > { %v392_v27 = vrot.slane %v385_v26, %v391_v25 }
 0x1a3   : > { %v692_v28 = vpop.f32.mrf.mxu1 }
 0x1a4   : > { %v393_v29 = vsub.f32 %v221_v7, %v392_v27 }
 0x1a6   : > { %v394_v30 = vmul.f32 %v393_v29, %v393_v29 }
 0x1a8   : > { %v395_v31 = vsel %vm222_vm1, %v394_v30, 0.0 }
 0x1a9   : > { %v396_v32 = vrot.slane %v395_v31, 4 }
 0x1ab   : > { %v397_v33 = vadd.f32 %v396_v32, %v395_v31 }
 0x1ad   : > { %v398_v34 = vrot.slane %v397_v33, 2 }
 0x1af   : > { %v399_v35 = vadd.f32 %v398_v34, %v397_v33 }
 0x1b1   : > { %v400_v36 = vrot.slane %v399_v35, 1 }
 0x1b3   : > { %v401_v37 = vadd.f32 %v400_v36, %v399_v35 }
 0x1b5   : > { %710 = vmatmul.mubr.msk.f32.vlgmr.msra.gmra.mxu1 %vm238_vm2, %v401_v37 }
 0x275   : > { %v471_v38 = vpop.f32.mrf.mxu1 }
 0x276   : > { %v475_v39 = vmul.f32 0.0625, %v471_v38 }
 0x277   : > { %v711_v40 = vpop.f32.mrf.mxu1 }
 0x278   : > { %v476_v41 = vadd.f32 1e-05, %v475_v39 }
 0x27a   : > { %729 = vrsqrt.f32 %v476_v41 }
 0x287   : > { %v730_v42 = vpop.eup %729 }
 0x288   : > { %717 = vmatmul.mubr.msk.f32.vlgmr.msra.gmra.mxu0 %vm315_vm3, %v730_v42 }
 0x348   : > { %v547_v43 = vpop.f32.mrf.mxu0 }
 0x349   : > { %v554_v44 = vrot.slane %v547_v43, %v391_v25 }
 0x34a   : > { %v718_v46 = vpop.f32.mrf.mxu0 }
 0x34b   : > { %v555_v47 = vmul.f32 %v554_v44, %v393_v29 }
 0x34d   : > { %v563_v49 = vmul.f32 %v639_v45, %v555_v47 }
 0x34f   : > { %v571_v50 = vadd.f32 %v640_v48, %v563_v49 }
 0x351   : > { %v572_v51 = vpack.c.bf16 %v571_v50, %v571_v50 }
 0x353   : > { %574 = vst.msk [vmem:[%s219_s28] sm:$0x3] %vm573_vm4, %v572_v51 }
 0x354 PF: > { %s15_s18 = sadd.s32 1, %s737_s18  }
 0x355   : > { %p12_p4 = scmp.ge.s32.totalorder %s15_s18, 4  }
 0x357   :  { %14 = sbr.rel (!%p12_p4) target bundleno = 1 (0x1), region = 70 }

// kernel: resnet_forward.46
= control target key start
LH: loop header
LB: loop body
LE: loop exit
PB: predicated region body
PF: predicated region fallthrough
CT: control target
= control target key end

     0   :  { %v629_v34 = vmov 0.0   ;;  %vm630_vm0 = vmmov 0   ;;  %vm331_vm1 = vcmask 523264   ;;  %s772_s1 = inlined_call_operand.vmem [shape: bf16[576,128], index: 1, kind: input, shape index: {}]   ;;  %s773_s0 = inlined_call_operand.vmem [shape: bf16[16,576], index: 0, kind: input, shape index: {}]   ;;  %s774_s2 = inlined_call_operand.vmem [shape: bf16[16,128], index: 2, kind: output, shape index: {}]  }
   0x1   :  { %v586_v0 = vld [vmem:[%s772_s1 + $0x78] sm:$0xff]   ;;  %v590_v4 = vld [vmem:[%s772_s1 + $0x70] sm:$0xff]   ;;  %v594_v8 = vld [vmem:[%s772_s1 + $0x68] sm:$0xff]  }
   0x2   :  { %v587_v1 = vld [vmem:[%s772_s1 + $0xf8] sm:$0xff]   ;;  %523 = vmatprep.subr.bf16.mxu0 %v586_v0  ;;  %v591_v5 = vld [vmem:[%s772_s1 + $0xf0] sm:$0xff]   ;;  %v595_v9 = vld [vmem:[%s772_s1 + $0xe8] sm:$0xff]  }
   0x3   :  { %v588_v2 = vld [vmem:[%s772_s1 + $0x38] sm:$0xff]   ;;  %545 = vmatprep.subr.bf16.mxu1 %v587_v1  ;;  %v592_v6 = vld [vmem:[%s772_s1 + $0x30] sm:$0xff]   ;;  %v596_v10 = vld [vmem:[%s772_s1 + $0x28] sm:$0xff]  }
   0x4   :  { %v589_v3 = vld [vmem:[%s772_s1 + $0xb8] sm:$0xff]   ;;  %524 = vmatpush3.bf16.msra.mxu0 %v588_v2  ;;  %v593_v7 = vld [vmem:[%s772_s1 + $0xb0] sm:$0xff]   ;;  %v597_v11 = vld [vmem:[%s772_s1 + $0xa8] sm:$0xff]  }
   0x5   :  { %546 = vmatpush3.bf16.msra.mxu1 %v589_v3  ;;  %525 = vmatprep.subr.bf16.mxu0 %v590_v4  ;;  %v598_v12 = vld [vmem:[%s772_s1 + $0x60] sm:$0xff]   ;;  %v602_v16 = vld [vmem:[%s772_s1 + $0x58] sm:$0xff]   ;;  %v606_v20 = vld [vmem:[%s772_s1 + $0x50] sm:$0xff]  }
   0x6   :  { %547 = vmatprep.subr.bf16.mxu1 %v591_v5  ;;  %v599_v13 = vld [vmem:[%s772_s1 + $0xe0] sm:$0xff]   ;;  %v603_v17 = vld [vmem:[%s772_s1 + $0xd8] sm:$0xff]   ;;  %v607_v21 = vld [vmem:[%s772_s1 + $0xd0] sm:$0xff]  }
   0x7   :  { %v600_v14 = vld [vmem:[%s772_s1 + $0x20] sm:$0xff]   ;;  %v604_v18 = vld [vmem:[%s772_s1 + $0x18] sm:$0xff]   ;;  %v608_v22 = vld [vmem:[%s772_s1 + $0x10] sm:$0xff]  }
   0x8   :  { %526 = vmatpush3.bf16.msra.mxu0 %v592_v6  ;;  %v601_v15 = vld [vmem:[%s772_s1 + $0xa0] sm:$0xff]   ;;  %v605_v19 = vld [vmem:[%s772_s1 + $0x98] sm:$0xff]   ;;  %v609_v23 = vld [vmem:[%s772_s1 + $0x90] sm:$0xff]  }
   0x9   :  { %548 = vmatpush3.bf16.msra.mxu1 %v593_v7  ;;  %527 = vmatprep.subr.bf16.mxu0 %v594_v8  ;;  %v610_v24 = vld [vmem:[%s772_s1 + $0x48] sm:$0xff]   ;;  %v614_v28 = vld [vmem:[%s772_s1 + $0x40] sm:$0xff]   ;;  %v624_v37 = vld [vmem:[%s772_s1 + $0x118] sm:$0xff]  }
   0xa   :  { %549 = vmatprep.subr.bf16.mxu1 %v595_v9  ;;  %v611_v25 = vld [vmem:[%s772_s1 + $0xc8] sm:$0xff]   ;;  %v615_v29 = vld [vmem:[%s772_s1 + $0xc0] sm:$0xff]   ;;  %v625_v38 = vld [vmem:[%s772_s1 + $0x110] sm:$0xff]  }
   0xb   :  { %v612_v26 = vld [vmem:[%s772_s1 + $0x8] sm:$0xff]   ;;  %v616_v30 = vld [vmem:[%s772_s1] sm:$0xff]  }
   0xc   :  { %528 = vmatpush3.bf16.msra.mxu0 %v596_v10  ;;  %v613_v27 = vld [vmem:[%s772_s1 + $0x88] sm:$0xff]   ;;  %v617_v31 = vld [vmem:[%s772_s1 + $0x80] sm:$0xff]  }
   0xd   :  { %550 = vmatpush3.bf16.msra.mxu1 %v597_v11  ;;  %529 = vmatprep.subr.bf16.mxu0 %v598_v12  ;;  %v618_v32 = vld [vmem:[%s773_s0] ss:$20 sps:$4 sm:$0xff]   ;;  %v620_v33 = vld [vmem:[%s773_s0 + $0x4] ss:$20 sps:$4 sm:$0xff]   ;;  %v621_v35 = vld [vmem:[%s773_s0 + $0x8] ss:$20 sps:$4 sm:$0xff]  }
   0xe   :  { %551 = vmatprep.subr.bf16.mxu1 %v599_v13  ;;  %v623_v36 = vld [vmem:[%s773_s0 + $0xc] ss:$20 sps:$4 sm:$0xff]   ;;  %367 = vmatprep.mubr.bf16.mxu0 %v620_v33  ;;  %v628_v41 = vld [vmem:[%s773_s0 + $0x10] ss:$20 sps:$4 sm:$0xff]  }
   0xf   :  { %408 = vmatprep.mubr.bf16.mxu1 %v623_v36  ;;  %v626_v39 = vld [vmem:[%s772_s1 + $0x108] sm:$0xff]   ;;  %v627_v40 = vld [vmem:[%s772_s1 + $0x100] sm:$0xff]  }
  0x10   :  { %530 = vmatpush3.bf16.msra.mxu0 %v600_v14 }
  0x11   :  { %552 = vmatpush3.bf16.msra.mxu1 %v601_v15  ;;  %531 = vmatprep.subr.bf16.mxu0 %v602_v16 }
  0x12   :  { %553 = vmatprep.subr.bf16.mxu1 %v603_v17 }
  0x14   :  { %532 = vmatpush3.bf16.msra.mxu0 %v604_v18 }
  0x15   :  { %554 = vmatpush3.bf16.msra.mxu1 %v605_v19  ;;  %533 = vmatprep.subr.bf16.mxu0 %v606_v20 }
  0x16   :  { %555 = vmatprep.subr.bf16.mxu1 %v607_v21 }
  0x18   :  { %534 = vmatpush3.bf16.msra.mxu0 %v608_v22 }
  0x19   :  { %556 = vmatpush3.bf16.msra.mxu1 %v609_v23  ;;  %535 = vmatprep.subr.bf16.mxu0 %v610_v24 }
  0x1a   :  { %557 = vmatprep.subr.bf16.mxu1 %v611_v25 }
  0x1c   :  { %536 = vmatpush3.bf16.msra.mxu0 %v612_v26 }
  0x1d   :  { %558 = vmatpush3.bf16.msra.mxu1 %v613_v27  ;;  %537 = vmatprep.subr.bf16.mxu0 %v614_v28 }
  0x1e   :  { %559 = vmatprep.subr.bf16.mxu1 %v615_v29 }
  0x20   :  { %538 = vmatpush3.bf16.msra.mxu0 %v616_v30 }
  0x21   :  { %560 = vmatpush3.bf16.msra.mxu1 %v617_v31  ;;  %572 = vmatprep.subr.bf16.mxu0 %v629_v34 }
  0x23   :  { %368 = vmatmul.mubr.bf16.vlgmr.msra.gmra.mxu0 %v618_v32 }
  0x24   :  { %409 = vmatmul.mubr.bf16.vlgmr.msra.gmra.mxu1 %v621_v35  ;;  %573 = vmatpush3.bf16.msra.mxu0 %v624_v37 }
  0x25   :  { %574 = vmatprep.subr.bf16.mxu0 %v629_v34  ;;  %580 = vmatprep.mubr.msk.bf16.mxu0 %vm630_vm0, %v629_v34 }
  0x28   :  { %575 = vmatpush3.bf16.msra.mxu0 %v625_v38 }
  0x29   :  { %576 = vmatprep.subr.bf16.mxu0 %v629_v34 }
  0x2c   :  { %577 = vmatpush3.bf16.msra.mxu0 %v626_v39 }
  0x2d   :  { %578 = vmatprep.subr.bf16.mxu0 %v629_v34 }
  0x30   :  { %579 = vmatpush3.bf16.msra.mxu0 %v627_v40 }
  0x33   :  { %581 = vmatmul.mubr.msk.bf16.vlgmr.msra.gmra.mxu0 %vm331_vm1, %v628_v41 }
  0xe3   :  { %v539_v42 = vpop.f32.mrf.mxu0 }
  0xe4   :  { %v561_v43 = vpop.f32.mrf.mxu1 }
  0xe5   :  { %v540_v44 = vpop.f32.mrf.mxu0 }
  0xe6   :  { %v562_v45 = vpop.f32.mrf.mxu1  ;;  %v541_v50 = vadd.f32 %v540_v44, %v539_v42 }
  0xe7   :  { %v542_v46 = vpop.f32.mrf.mxu0  ;;  %v563_v51 = vadd.f32 %v562_v45, %v561_v43 }
  0xe8   :  { %v564_v47 = vpop.f32.mrf.mxu1 }
  0xe9   :  { %v543_v48 = vpop.f32.mrf.mxu0  ;;  %v411_v56 = vadd.f32 %v563_v51, %v541_v50 }
  0xea   :  { %v565_v49 = vpop.f32.mrf.mxu1  ;;  %v544_v52 = vadd.f32 %v543_v48, %v542_v46 }
  0xeb   :  { %v566_v53 = vadd.f32 %v565_v49, %v564_v47 }
  0xed   :  { %v414_v57 = vadd.f32 %v566_v53, %v544_v52 }
  0xf3   :  { %v451_v54 = vpop.f32.mrf.mxu0 }
  0xf4   :  { %v452_v59 = vadd.f32 %v451_v54, %v411_v56 }
  0xf5   :  { %v582_v55 = vpop.f32.mrf.mxu0 }
  0xf7   :  { %v454_v58 = vpop.f32.mrf.mxu0 }
  0xf8   :  { %v455_v60 = vadd.f32 %v454_v58, %v414_v57 }
  0xf9   :  { %v583_v61 = vpop.f32.mrf.mxu0 }
  0xfa   :  { %v521_v62 = vpack.c.bf16 %v455_v60, %v452_v59 }
  0xfc   :  { %522 = vst [vmem:[%s774_s2] sm:$0xff] %v521_v62  }

// kernel: resnet_forward.50
= control target key start
LH: loop header
LB: loop body
LE: loop exit
PB: predicated region body
PF: predicated region fallthrough
CT: control target
= control target key end

     0   :  { %s765_s18 = smov 0   ;;  %s854_s0 = inlined_call_operand.vmem [shape: bf16[2,4,64], index: 0, kind: input, shape index: {}]   ;;  %s855_s1 = inlined_call_operand.vmem [shape: f32[64,8], index: 1, kind: input, shape index: {}]   ;;  %s856_s2 = inlined_call_operand.vmem [shape: f32[8,64], index: 2, kind: input, shape index: {}]   ;;  %s857_s3 = inlined_call_operand.vmem [shape: f32[1,64], index: 3, kind: input, shape index: {}]   ;;  %s858_s4 = inlined_call_operand.vmem [shape: f32[1,64], index: 4, kind: input, shape index: {}]   ;;  %s859_s5 = inlined_call_operand.vmem [shape: bf16[2,4,64], index: 5, kind: output, shape index: {}]  }
   0x1 LB: > { %s628_s19 = sadd.s32 4294967295, %s731_s18   ;;  %p632_p0 = scmp.ge.s32.totalorder %s731_s18, 1  ;;  %s731_s18 = sphi %s765_s18, %s15_s18  }
   0x2   : > { %p186_p1 = scmp.lt.s32.totalorder %s731_s18, 3 }
   0x4   : > { %p187_p2 = pnand %p632_p0, %p186_p1 }
   0x5   : > { %p212_p3 = scmp.lt.s32.totalorder (!%p187_p2), %s628_s19, 1 }
   0x6   : > { %190 = sbr.rel (%p187_p2) target bundleno = 854 (0x356), region = 40 }
   0xb   : > { %v237_v0 = vld [vmem:[%s855_s1 + $0x38] sm:$0xff]  ;;  %v733_v1 = vmov 0.0   ;;  %v236_v2 = vld [vmem:[%s855_s1 + $0x30] sm:$0xff]  ;;  %vm734_vm0 = vmmov 0   ;;  %s861_s19 = smov (!%p212_p3, %s628_s19), 1  ;;  %v235_v3 = vld [vmem:[%s855_s1 + $0x28] sm:$0xff]  ;;  %v388_v22 = vlaneseq }
   0xc   : > { %665 = vmatprep.subr.mxu0 %v733_v1  ;;  %681 = vmatprep.mubr.msk.f32.mxu0 %vm734_vm0, %v733_v1  ;;  %s633_s26 = sshll.u32 %s861_s19, 1  ;;  %v234_v4 = vld [vmem:[%s855_s1 + $0x20] sm:$0xff]  ;;  %vm222_vm1 = vcmask 519168   ;;  %v233_v6 = vld [vmem:[%s855_s1 + $0x18] sm:$0xff]  ;;  %v232_v8 = vld [vmem:[%s855_s1 + $0x10] sm:$0xff]  ;;  %vm238_vm2 = vcmask 523264  }
   0xd   : > { %666 = vmatpush3.msra.mxu0 %v237_v0  ;;  %684 = vmatprep.subr.mxu1 %v733_v1  ;;  %s215_s6 = scalar_lea.vmem %s854_s0, %s633_s26  ;;  %v231_v11 = vld [vmem:[%s855_s1 + $0x8] sm:$0xff]  ;;  %v230_v13 = vld [vmem:[%s855_s1] sm:$0xff]  ;;  %vm314_vm3 = vcmask 64512   ;;  %v389_v23 = vshrl.u32 %v388_v22, 7  ;;  %s219_s25 = scalar_lea.vmem %s859_s5, %s633_s26  ;;  %vm573_vm4 = vcmask 517120  }
   0xe   : > { %667 = vmatprep.subr.mxu0 %v733_v1  ;;  %686 = vmatprep.mubr.msk.f32.mxu1 %vm734_vm0, %v733_v1  ;;  %v220_v5 = vld [vmem:[%s215_s6] sm:$0x3] }
   0xf   : > { %668 = vmatpush3.msra.mxu0 %v236_v2  ;;  %v221_v7 = vunpack.c.l.bf16 %v220_v5  ;;  %v313_v18 = vld [vmem:[%s856_s2] sm:$0xff]  ;;  %v390_v24 = vsub.s32 0, %v389_v23 }
  0x10   : > { %669 = vmatprep.subr.mxu0 %v733_v1  ;;  %685 = vmatpush3.msra.mxu1 %v313_v18  ;;  %v639_v44 = vld [vmem:[%s857_s3] ss:$0 sm:$0xff] }
  0x11   : > { %670 = vmatpush3.msra.mxu0 %v235_v3  ;;  %v223_v9 = vsel %vm222_vm1, %v221_v7, 0.0  ;;  %689 = vmatprep.subr.mxu1 %v733_v1  ;;  %v640_v47 = vld [vmem:[%s858_s4] ss:$0 sm:$0xff] }
  0x12   : > { %671 = vmatprep.subr.mxu0 %v733_v1  ;;  %v224_v10 = vrot.slane %v223_v9, 4 }
  0x13   : > { %672 = vmatpush3.msra.mxu0 %v234_v4 }
  0x14   : > { %673 = vmatprep.subr.mxu0 %v733_v1  ;;  %v225_v12 = vadd.f32 %v224_v10, %v223_v9 }
  0x15   : > { %674 = vmatpush3.msra.mxu0 %v233_v6 }
  0x16   : > { %675 = vmatprep.subr.mxu0 %v733_v1  ;;  %v226_v14 = vrot.slane %v225_v12, 2 }
  0x17   : > { %676 = vmatpush3.msra.mxu0 %v232_v8 }
  0x18   : > { %677 = vmatprep.subr.mxu0 %v733_v1  ;;  %v227_v15 = vadd.f32 %v226_v14, %v225_v12 }
  0x19   : > { %678 = vmatpush3.msra.mxu0 %v231_v11 }
  0x1a   : > { %679 = vmatprep.subr.mxu0 %v733_v1  ;;  %v228_v16 = vrot.slane %v227_v15, 1 }
  0x1b   : > { %680 = vmatpush3.msra.mxu0 %v230_v13 }
  0x1c   : > { %708 = vmatprep.subr.mxu0 %v733_v1  ;;  %v229_v17 = vadd.f32 %v228_v16, %v227_v15 }
  0x1e   : > { %682 = vmatmul.mubr.msk.f32.vlgmr.msra.gmra.mxu0 %vm238_vm2, %v229_v17 }
  0x1f   : > { %710 = vmatprep.mubr.msk.f32.mxu0 %vm734_vm0, %v733_v1  ;;  %709 = vmatpush3.msra.mxu0 %v313_v18 }
  0xde   : > { %v308_v19 = vpop.f32.mrf.mxu0 }
  0xdf   : > { %v312_v20 = vmul.f32 0.03125, %v308_v19 }
  0xe0   : > { %v683_v21 = vpop.f32.mrf.mxu0 }
  0xe1   : > { %687 = vmatmul.mubr.msk.f32.vlgmr.msra.gmra.mxu1 %vm314_vm3, %v312_v20 }
  0xe2   : > { %690 = vmatpush3.msra.mxu1 %v237_v0  ;;  %705 = vmatprep.mubr.msk.f32.mxu1 %vm734_vm0, %v733_v1 }
  0xe3   : > { %691 = vmatprep.subr.mxu1 %v733_v1 }
  0xe4   : > { %692 = vmatpush3.msra.mxu1 %v236_v2 }
  0xe5   : > { %693 = vmatprep.subr.mxu1 %v733_v1 }
  0xe6   : > { %694 = vmatpush3.msra.mxu1 %v235_v3 }
  0xe7   : > { %695 = vmatprep.subr.mxu1 %v733_v1 }
  0xe8   : > { %696 = vmatpush3.msra.mxu1 %v234_v4 }
  0xe9   : > { %697 = vmatprep.subr.mxu1 %v733_v1 }
  0xea   : > { %698 = vmatpush3.msra.mxu1 %v233_v6 }
  0xeb   : > { %699 = vmatprep.subr.mxu1 %v733_v1 }
  0xec   : > { %700 = vmatpush3.msra.mxu1 %v232_v8 }
  0xed   : > { %701 = vmatprep.subr.mxu1 %v733_v1 }
  0xee   : > { %702 = vmatpush3.msra.mxu1 %v231_v11 }
  0xef   : > { %703 = vmatprep.subr.mxu1 %v733_v1 }
  0xf0   : > { %704 = vmatpush3.msra.mxu1 %v230_v13 }
 0x1a1   : > { %v384_v25 = vpop.f32.mrf.mxu1 }
 0x1a2   : > { %v391_v26 = vrot.slane %v384_v25, %v390_v24 }
 0x1a3   : > { %v688_v27 = vpop.f32.mrf.mxu1 }
 0x1a4   : > { %v392_v28 = vsub.f32 %v221_v7, %v391_v26 }
 0x1a6   : > { %v393_v29 = vmul.f32 %v392_v28, %v392_v28 }
 0x1a8   : > { %v394_v30 = vsel %vm222_vm1, %v393_v29, 0.0 }
 0x1a9   : > { %v395_v31 = vrot.slane %v394_v30, 4 }
 0x1ab   : > { %v396_v32 = vadd.f32 %v395_v31, %v394_v30 }
 0x1ad   : > { %v397_v33 = vrot.slane %v396_v32, 2 }
 0x1af   : > { %v398_v34 = vadd.f32 %v397_v33, %v396_v32 }
 0x1b1   : > { %v399_v35 = vrot.slane %v398_v34, 1 }
 0x1b3   : > { %v400_v36 = vadd.f32 %v399_v35, %v398_v34 }
 0x1b5   : > { %706 = vmatmul.mubr.msk.f32.vlgmr.msra.gmra.mxu1 %vm238_vm2, %v400_v36 }
 0x275   : > { %v470_v37 = vpop.f32.mrf.mxu1 }
 0x276   : > { %v474_v38 = vmul.f32 0.03125, %v470_v37 }
 0x277   : > { %v707_v39 = vpop.f32.mrf.mxu1 }
 0x278   : > { %v475_v40 = vadd.f32 1e-05, %v474_v38 }
 0x27a   : > { %723 = vrsqrt.f32 %v475_v40 }
 0x287   : > { %v724_v41 = vpop.eup %723 }
 0x288   : > { %711 = vmatmul.mubr.msk.f32.vlgmr.msra.gmra.mxu0 %vm314_vm3, %v724_v41 }
 0x348   : > { %v546_v42 = vpop.f32.mrf.mxu0 }
 0x349   : > { %v553_v43 = vrot.slane %v546_v42, %v390_v24 }
 0x34a   : > { %v712_v45 = vpop.f32.mrf.mxu0 }
 0x34b   : > { %v554_v46 = vmul.f32 %v553_v43, %v392_v28 }
 0x34d   : > { %v562_v48 = vmul.f32 %v639_v44, %v554_v46 }
 0x34f   : > { %v570_v49 = vadd.f32 %v640_v47, %v562_v48 }
 0x351   : > { %v571_v50 = vmax.f32 %v570_v49, 0.0 }
 0x353   : > { %v572_v51 = vpack.c.bf16 %v571_v50, %v571_v50 }
 0x355   : > { %574 = vst.msk [vmem:[%s219_s25] sm:$0x3] %vm573_vm4, %v572_v51 }
 0x356 PF: > { %s15_s18 = sadd.s32 1, %s731_s18  }
 0x357   : > { %p12_p4 = scmp.ge.s32.totalorder %s15_s18, 4  }
 0x359   :  { %14 = sbr.rel (!%p12_p4) target bundleno = 1 (0x1), region = 70 }

// kernel: resnet_forward.51
= control target key start
LH: loop header
LB: loop body
LE: loop exit
PB: predicated region body
PF: predicated region fallthrough
CT: control target
= control target key end

     0   :  { %s352_s1 = inlined_call_operand.vmem [shape: bf16[256,128], index: 1, kind: input, shape index: {}]   ;;  %s353_s0 = inlined_call_operand.vmem [shape: bf16[16,256], index: 0, kind: input, shape index: {}]   ;;  %s354_s2 = inlined_call_operand.vmem [shape: f32[1,128], index: 2, kind: input, shape index: {}]   ;;  %s355_s3 = inlined_call_operand.vmem [shape: f32[16,128], index: 3, kind: output, shape index: {}]  }
   0x1   :  { %v250_v0 = vld [vmem:[%s352_s1 + $0x78] sm:$0xff]   ;;  %v252_v2 = vld [vmem:[%s352_s1 + $0x70] sm:$0xff]   ;;  %v254_v4 = vld [vmem:[%s352_s1 + $0x68] sm:$0xff]  }
   0x2   :  { %v251_v1 = vld [vmem:[%s352_s1 + $0x38] sm:$0xff]   ;;  %228 = vmatprep.subr.bf16.mxu0 %v250_v0  ;;  %v253_v3 = vld [vmem:[%s352_s1 + $0x30] sm:$0xff]   ;;  %v255_v5 = vld [vmem:[%s352_s1 + $0x28] sm:$0xff]  }
   0x3   :  { %229 = vmatpush3.bf16.msra.mxu0 %v251_v1  ;;  %v256_v6 = vld [vmem:[%s352_s1 + $0x60] sm:$0xff]   ;;  %v258_v8 = vld [vmem:[%s352_s1 + $0x58] sm:$0xff]   ;;  %v260_v10 = vld [vmem:[%s352_s1 + $0x50] sm:$0xff]  }
   0x4   :  { %230 = vmatprep.subr.bf16.mxu0 %v252_v2  ;;  %v257_v7 = vld [vmem:[%s352_s1 + $0x20] sm:$0xff]   ;;  %v259_v9 = vld [vmem:[%s352_s1 + $0x18] sm:$0xff]   ;;  %v261_v12 = vld [vmem:[%s352_s1 + $0x10] sm:$0xff]  }
   0x5   :  { %v268_v11 = vld [vmem:[%s353_s0 + $0x4] ss:$8 sps:$4 sm:$0xff]   ;;  %v266_v17 = vld [vmem:[%s353_s0] ss:$8 sps:$4 sm:$0xff]  }
   0x6   :  { %194 = vmatprep.mubr.bf16.mxu0 %v268_v11  ;;  %v262_v13 = vld [vmem:[%s352_s1 + $0x48] sm:$0xff]   ;;  %v264_v15 = vld [vmem:[%s352_s1 + $0x40] sm:$0xff]  }
   0x7   :  { %231 = vmatpush3.bf16.msra.mxu0 %v253_v3  ;;  %v263_v14 = vld [vmem:[%s352_s1 + $0x8] sm:$0xff]   ;;  %v265_v16 = vld [vmem:[%s352_s1] sm:$0xff]  }
   0x8   :  { %232 = vmatprep.subr.bf16.mxu0 %v254_v4  ;;  %v209_v19 = vld [vmem:[%s354_s2] ss:$0 sm:$0xff] }
   0xb   :  { %233 = vmatpush3.bf16.msra.mxu0 %v255_v5 }
   0xc   :  { %234 = vmatprep.subr.bf16.mxu0 %v256_v6 }
   0xf   :  { %235 = vmatpush3.bf16.msra.mxu0 %v257_v7 }
  0x10   :  { %236 = vmatprep.subr.bf16.mxu0 %v258_v8 }
  0x13   :  { %237 = vmatpush3.bf16.msra.mxu0 %v259_v9 }
  0x14   :  { %238 = vmatprep.subr.bf16.mxu0 %v260_v10 }
  0x17   :  { %239 = vmatpush3.bf16.msra.mxu0 %v261_v12 }
  0x18   :  { %240 = vmatprep.subr.bf16.mxu0 %v262_v13 }
  0x1b   :  { %241 = vmatpush3.bf16.msra.mxu0 %v263_v14 }
  0x1c   :  { %242 = vmatprep.subr.bf16.mxu0 %v264_v15 }
  0x1f   :  { %243 = vmatpush3.bf16.msra.mxu0 %v265_v16 }
  0x22   :  { %195 = vmatmul.mubr.bf16.vlgmr.msra.gmra.mxu0 %v266_v17 }
  0xe2   :  { %v244_v18 = vpop.f32.mrf.mxu0 }
  0xe4   :  { %v245_v20 = vpop.f32.mrf.mxu0 }
  0xe5   :  { %v246_v21 = vadd.f32 %v245_v20, %v244_v18 }
  0xe6   :  { %v247_v22 = vpop.f32.mrf.mxu0 }
  0xe7   :  { %v197_v23 = vadd.f32 %v246_v21, %v209_v19 }
  0xe8   :  { %v248_v24 = vpop.f32.mrf.mxu0 }
  0xe9   :  { %203 = vst [vmem:[%s355_s3] sm:$0xff] %v197_v23  ;;  %v249_v25 = vadd.f32 %v248_v24, %v247_v22 }
  0xeb   :  { %v200_v26 = vadd.f32 %v249_v25, %v209_v19 }
  0xed   :  { %204 = vst [vmem:[%s355_s3 + $0x8] sm:$0xff] %v200_v26 }

</bundles_post_ra>
